<compile_context>
chip_gen: v7x
topology: tpu7x:2x2x1
jax: 0.10.0
libtpu: 0.0.40
codegen_flags: <defaults>
</compile_context>

<pallas_src>
import functools

import jax
import jax.numpy as jnp
from jax.experimental import pallas as pl
from jax.experimental.pallas import tpu as pltpu

CP = 128      # lane-padded channel count carried between layers
TN = 1        # batch tile per grid step


def _round_up(a, m):
    return (a + m - 1) // m * m


# ----------------------------------------------------------------------------
# Fused Conv2d(valid, stride 1) + folded BatchNorm + ReLU + MaxPool2d(2) kernel
# ----------------------------------------------------------------------------
def _conv_bn_relu_pool_kernel(x_ref, w_ref, s_ref, b_ref, out_ref, h_ref,
                              *, KH, KW, Cin, Cout, OH, OWc, OWp):
    """One batch tile of fused conv + BN + ReLU + 2x2 maxpool.

    x_ref:   (TN, Hin, Win, Cin)  bf16   (Win >= OWc + KW - 1, zero padded)
    w_ref:   (KH*KW, Cin, Cout)   bf16
    s_ref:   (1, Cout) f32    b_ref: (1, Cout) f32   (folded BN affine)
    out_ref: (TN, OH//2, OWp, Cout)
    h_ref:   (TN*OH//2, OWc, Cout) f32 scratch (post H-pool, pre W-pool)
    """
    R = TN * OH * OWc
    OHp = OH // 2

    # Convolution: per-tap matmuls with register (value) accumulation, f32 acc.
    acc = jnp.zeros((R, Cout), jnp.float32)
    for kh in range(KH):
        for kw in range(KW):
            xs = x_ref[:, pl.ds(kh, OH), pl.ds(kw, OWc), :].reshape(R, Cin)
            acc = acc + jnp.dot(xs, w_ref[kh * KW + kw],
                                preferred_element_type=jnp.float32)

    # Folded BatchNorm (inference) + ReLU.
    y = jnp.maximum(acc * s_ref[...] + b_ref[...], 0.0)          # (R, Cout) f32

    # 2x2 max pool, stride 2.
    # H-pool: conv rows 2r / 2r+1 are contiguous OWc-row blocks of y, so pair them
    # with an aligned reshape + contiguous slices (no strided access needed).
    y3 = y.reshape(TN * OHp, 2 * OWc, Cout)
    h_ref[...] = jnp.maximum(y3[:, :OWc, :], y3[:, OWc:, :])     # (TN*OHp, OWc, C)
    # W-pool: strided sublane reads of even/odd columns (padded columns ignored).
    pooled = jnp.maximum(h_ref[:, pl.ds(0, OWp, 2), :],
                         h_ref[:, pl.ds(1, OWp, 2), :])          # (TN*OHp, OWp, C)
    out_ref[...] = pooled.reshape(TN, OHp, OWp, Cout).astype(out_ref.dtype)


# ----------------------------------------------------------------------------
# Last layer: Conv + BN + ReLU + Pool + Flatten + Linear fused in one kernel
# ----------------------------------------------------------------------------
def _conv_bn_relu_pool_fc_kernel(x_ref, w_ref, s_ref, b_ref, fcw_ref, fcb_ref,
                                 out_ref, h_ref,
                                 *, KH, KW, Cin, Cout, OH, OWc, OWp):
    R = TN * OH * OWc
    OHp = OH // 2

    acc = jnp.zeros((R, Cout), jnp.float32)
    for kh in range(KH):
        for kw in range(KW):
            xs = x_ref[:, pl.ds(kh, OH), pl.ds(kw, OWc), :].reshape(R, Cin)
            acc = acc + jnp.dot(xs, w_ref[kh * KW + kw],
                                preferred_element_type=jnp.float32)

    y = jnp.maximum(acc * s_ref[...] + b_ref[...], 0.0)
    y3 = y.reshape(TN * OHp, 2 * OWc, Cout)
    h_ref[...] = jnp.maximum(y3[:, :OWc, :], y3[:, OWc:, :])
    pooled = jnp.maximum(h_ref[:, pl.ds(0, OWp, 2), :],
                         h_ref[:, pl.ds(1, OWp, 2), :])          # (TN*OHp, OWp, C)

    # Flatten in (H, W, C-padded) order and apply the Linear layer; the FC weight
    # rows were pre-permuted at init to match this order, so this is one matmul
    # with K = OHp*OWp*Cout.
    p4 = pooled.reshape(TN, OHp, OWp, Cout)
    feat = jnp.concatenate([p4[:, hh, ww, :] for hh in range(OHp)
                            for ww in range(OWp)], axis=-1)      # (TN, OHp*OWp*C)
    logits = (jnp.dot(feat, fcw_ref[...], preferred_element_type=jnp.float32)
              + fcb_ref[...])                                    # (TN, num_out)
    out_ref[...] = logits.reshape(TN, 1, logits.shape[-1])


# ----------------------------------------------------------------------------
# Wrappers
# ----------------------------------------------------------------------------
def _conv_layer_dims(x_shape, w_shape, ow_valid):
    N, H, Wv, Cin = x_shape
    KH, KW, Cin_w, Cout = w_shape
    assert Cin_w == Cin
    OH = H - KH + 1
    OWv = (Wv - KW + 1) if ow_valid is None else ow_valid
    assert OH % 2 == 0 and OWv % 2 == 0, "MaxPool2d(2) needs even conv output dims"
    OWc = _round_up(OWv, 16)              # bf16-friendly sublane multiple
    Wneed = OWc + KW - 1
    assert Wv <= Wneed
    return N, H, Wv, Cin, KH, KW, Cout, OH, OWv, OWc, Wneed


def conv_bn_relu_pool(x, w_hwio, scale, bias, *, ow_valid=None,
                      out_dtype=jnp.bfloat16):
    """x: (N, H, W, Cin) NHWC; w_hwio: (KH, KW, Cin, Cout) (channel-padded)."""
    (N, H, Wv, Cin, KH, KW, Cout, OH, OWv, OWc, Wneed) = _conv_layer_dims(
        x.shape, w_hwio.shape, ow_valid)
    OHp, OWp = OH // 2, OWv // 2
    assert N % TN == 0

    xp = jnp.pad(x, ((0, 0), (0, 0), (0, Wneed - Wv), (0, 0))).astype(jnp.bfloat16)
    w = w_hwio.reshape(KH * KW, Cin, Cout).astype(jnp.bfloat16)

    kernel = functools.partial(_conv_bn_relu_pool_kernel, KH=KH, KW=KW,
                               Cin=Cin, Cout=Cout, OH=OH, OWc=OWc, OWp=OWp)
    return pl.pallas_call(
        kernel,
        grid=(N // TN,),
        out_shape=jax.ShapeDtypeStruct((N, OHp, OWp, Cout), out_dtype),
        in_specs=[
            pl.BlockSpec((TN, H, Wneed, Cin), lambda n: (n, 0, 0, 0)),
            pl.BlockSpec((KH * KW, Cin, Cout), lambda n: (0, 0, 0)),
            pl.BlockSpec((1, Cout), lambda n: (0, 0)),
            pl.BlockSpec((1, Cout), lambda n: (0, 0)),
        ],
        out_specs=pl.BlockSpec((TN, OHp, OWp, Cout), lambda n: (n, 0, 0, 0)),
        scratch_shapes=[pltpu.VMEM((TN * OHp, OWc, Cout), jnp.float32)],
        compiler_params=pltpu.CompilerParams(dimension_semantics=("parallel",)),
    )(xp, w, scale, bias)


def conv_bn_relu_pool_fc(x, w_hwio, scale, bias, fc_w, fc_b, *, ow_valid=None):
    """Last conv block fused with Flatten + Linear.  Returns (N, num_out) f32."""
    (N, H, Wv, Cin, KH, KW, Cout, OH, OWv, OWc, Wneed) = _conv_layer_dims(
        x.shape, w_hwio.shape, ow_valid)
    OHp, OWp = OH // 2, OWv // 2
    assert N % TN == 0 and TN == 1
    num_out = fc_w.shape[-1]
    assert fc_w.shape[0] == OHp * OWp * Cout

    xp = jnp.pad(x, ((0, 0), (0, 0), (0, Wneed - Wv), (0, 0))).astype(jnp.bfloat16)
    w = w_hwio.reshape(KH * KW, Cin, Cout).astype(jnp.bfloat16)

    kernel = functools.partial(_conv_bn_relu_pool_fc_kernel, KH=KH, KW=KW,
                               Cin=Cin, Cout=Cout, OH=OH, OWc=OWc, OWp=OWp)
    out = pl.pallas_call(
        kernel,
        grid=(N // TN,),
        out_shape=jax.ShapeDtypeStruct((N, 1, num_out), jnp.float32),
        in_specs=[
            pl.BlockSpec((TN, H, Wneed, Cin), lambda n: (n, 0, 0, 0)),
            pl.BlockSpec((KH * KW, Cin, Cout), lambda n: (0, 0, 0)),
            pl.BlockSpec((1, Cout), lambda n: (0, 0)),
            pl.BlockSpec((1, Cout), lambda n: (0, 0)),
            pl.BlockSpec((OHp * OWp * Cout, num_out), lambda n: (0, 0)),
            pl.BlockSpec((1, num_out), lambda n: (0, 0)),
        ],
        out_specs=pl.BlockSpec((TN, 1, num_out), lambda n: (n, 0, 0)),
        scratch_shapes=[pltpu.VMEM((TN * OHp, OWc, Cout), jnp.float32)],
        compiler_params=pltpu.CompilerParams(dimension_semantics=("parallel",)),
    )(xp, w, scale, bias, fc_w, fc_b)
    return out.reshape(N, num_out)


def _im2col(x, KH, KW, OH, OWc):
    """x: (N, H, W, Cin) -> (N, OH, OWc, KH*KW*Cin), tap order (kh, kw, cin)."""
    cols = [x[:, kh:kh + OH, kw:kw + OWc, :]
            for kh in range(KH) for kw in range(KW)]
    return jnp.concatenate(cols, axis=-1)


# ----------------------------------------------------------------------------
# Parameters (deterministic synthetic init, BN folded) and forward pass
# ----------------------------------------------------------------------------
def init_params(key):
    specs = [(3, 3, 3, 100), (4, 4, 100, 50), (3, 3, 50, 30)]
    eps = 1e-5
    convs = []
    for i, (kh, kw, cin, cout) in enumerate(specs):
        k = jax.random.fold_in(key, i)
        k1, k2, k3, k4, k5, k6 = jax.random.split(k, 6)
        w = jax.random.normal(k1, (kh, kw, cin, cout), jnp.float32) / jnp.sqrt(
            float(kh * kw * cin))
        conv_b = 0.1 * jax.random.normal(k2, (cout,), jnp.float32)
        gamma = 1.0 + 0.1 * jax.random.normal(k3, (cout,), jnp.float32)
        beta = 0.1 * jax.random.normal(k4, (cout,), jnp.float32)
        r_mean = 0.1 * jax.random.normal(k5, (cout,), jnp.float32)
        r_var = 0.5 + jax.random.uniform(k6, (cout,), jnp.float32)
        # Fold conv bias + BN(running stats) into a per-channel affine.
        scale = gamma / jnp.sqrt(r_var + eps)
        bias = (conv_b - r_mean) * scale + beta

        # Pad channels to 128 lanes (padded output channels produce exact zeros).
        cin_p = cin if i == 0 else CP       # layer 1 keeps Cin=3 (im2col folds it)
        w_p = jnp.zeros((kh, kw, cin_p, CP), jnp.float32).at[:, :, :cin, :cout].set(w)
        if i == 0:
            # Layer 1 is applied to a wrapper-side im2col input: store the taps as
            # a (1, 1, KH*KW*Cin, CP) "1x1 conv" weight -> single K=27 contraction.
            w_p = w_p.reshape(1, 1, kh * kw * cin, CP)
        s_p = jnp.zeros((1, CP), jnp.float32).at[0, :cout].set(scale)
        b_p = jnp.zeros((1, CP), jnp.float32).at[0, :cout].set(bias)
        convs.append((w_p, s_p, b_p))

    kf = jax.random.fold_in(key, 100)
    kw1, kw2 = jax.random.split(kf)
    fc_w_pt = jax.random.normal(kw1, (10, 120), jnp.float32) / jnp.sqrt(120.0)
    fc_b = 0.1 * jax.random.normal(kw2, (10,), jnp.float32)
    # Permute FC rows: PyTorch flattens (C=30, H=2, W=2); the kernel flattens
    # (H=2, W=2, C padded to 128).  Padded channel rows are zero.
    w_chw = fc_w_pt.reshape(10, 30, 2, 2)                  # (o, c, h, w)
    w_hwc = jnp.transpose(w_chw, (2, 3, 1, 0))             # (h, w, c, o)
    fc_w = jnp.zeros((2, 2, CP, 10), jnp.float32).at[:, :, :30, :].set(w_hwc)
    fc_w = fc_w.reshape(2 * 2 * CP, 10)
    return {"convs": convs, "fc_w": fc_w, "fc_b": fc_b.reshape(1, 10)}


def net_forward(params, x_nchw):
    N, C, H, W = x_nchw.shape
    assert (C, H, W) == (3, 32, 32), "Net requires 3x32x32 inputs (Flatten -> 120)."
    (w1, s1, b1), (w2, s2, b2), (w3, s3, b3) = params["convs"]

    # NCHW (PyTorch) -> NHWC; bf16 matmul operands.
    x = jnp.transpose(x_nchw, (0, 2, 3, 1)).astype(jnp.bfloat16)     # (N,32,32,3)
    # Layer 1 (Cin=3): fold the 3x3 taps via im2col so the kernel contracts K=27.
    xp = jnp.pad(x, ((0, 0), (0, 0), (0, 2), (0, 0)))                # W: 32 -> 34
    xc = _im2col(xp, 3, 3, 30, 32)                                   # (N,30,32,27)
    x = conv_bn_relu_pool(xc, w1, s1, b1, ow_valid=30)               # (N,15,15,128)
    x = conv_bn_relu_pool(x, w2, s2, b2)                             # (N, 6, 6,128)
    # Layer 3 + Flatten + Linear fused in one pallas_call.
    return conv_bn_relu_pool_fc(x, w3, s3, b3,
                                params["fc_w"], params["fc_b"])      # (N, 10)


if __name__ == "__main__":
    key = jax.random.PRNGKey(0)
    params = init_params(key)
    x = jax.random.normal(jax.random.fold_in(key, 777), (2, 3, 32, 32), jnp.float32)

    fwd = jax.jit(net_forward)
    out = jax.block_until_ready(fwd(params, x))

    assert out.shape == (2, 10), out.shape
    assert bool(jnp.all(jnp.isfinite(out)))
    print("KERNEL_OK")
</pallas_src>

<mosaic_0001>
module attributes {stable_mosaic.version = 11 : i64} {
  func.func @_conv_bn_relu_pool_kernel(%arg0: i32, %arg1: memref<1x30x32x27xbf16, #tpu.memory_space<vmem>>, %arg2: memref<1x27x128xbf16, #tpu.memory_space<vmem>>, %arg3: memref<1x128xf32, #tpu.memory_space<vmem>>, %arg4: memref<1x128xf32, #tpu.memory_space<vmem>>, %arg5: memref<1x15x15x128xbf16, #tpu.memory_space<vmem>>, %arg6: memref<15x32x128xf32, #tpu.memory_space<vmem>>) attributes {dimension_semantics = [#tpu.dimension_semantics<parallel>], iteration_bounds = array<i64: 2>, scalar_prefetch = 0 : i64, scratch_operands = 1 : i64, tpu.core_type = #tpu.core_type<tc>, window_params = [{transform_indices = @transform_0, window_bounds = array<i64: 1, 30, 32, 27>}, {pipeline_mode = #tpu.pipeline_mode<synchronous>, transform_indices = @transform_1, window_bounds = array<i64: 1, 27, 128>}, {pipeline_mode = #tpu.pipeline_mode<synchronous>, transform_indices = @transform_2, window_bounds = array<i64: 1, 128>}, {pipeline_mode = #tpu.pipeline_mode<synchronous>, transform_indices = @transform_3, window_bounds = array<i64: 1, 128>}, {transform_indices = @transform_4, window_bounds = array<i64: 1, 15, 15, 128>}]} {
    %cst = arith.constant 0.000000e+00 : f32
    %0 = vector.broadcast %cst : f32 to vector<960x128xf32>
    %c0 = arith.constant 0 : index
    %c0_0 = arith.constant 0 : index
    %c0_1 = arith.constant 0 : index
    %c0_2 = arith.constant 0 : index
    %1 = vector.load %arg1[%c0, %c0_0, %c0_1, %c0_2] : memref<1x30x32x27xbf16, #tpu.memory_space<vmem>>, vector<1x30x32x27xbf16>
    %2 = vector.shape_cast %1 : vector<1x30x32x27xbf16> to vector<960x27xbf16>
    %c0_3 = arith.constant 0 : index
    %c0_4 = arith.constant 0 : index
    %c0_5 = arith.constant 0 : index
    %3 = vector.load %arg2[%c0_3, %c0_4, %c0_5] : memref<1x27x128xbf16, #tpu.memory_space<vmem>>, vector<1x27x128xbf16>
    %4 = vector.shape_cast %3 : vector<1x27x128xbf16> to vector<27x128xbf16>
    %cst_6 = arith.constant dense<0.000000e+00> : vector<960x128xf32>
    %5 = tpu.matmul %2, %4, %cst_6 {dimension_numbers = #tpu.dot_dimension_numbers<[1], [0], [0], [1], [0, 0, 1, 1], [], []>} : vector<960x27xbf16>, vector<27x128xbf16>, vector<960x128xf32> -> vector<960x128xf32>
    %6 = arith.addf %0, %5 : vector<960x128xf32>
    %c0_7 = arith.constant 0 : index
    %c0_8 = arith.constant 0 : index
    %7 = vector.load %arg3[%c0_7, %c0_8] : memref<1x128xf32, #tpu.memory_space<vmem>>, vector<1x128xf32>
    %8 = vector.broadcast %7 : vector<1x128xf32> to vector<960x128xf32>
    %9 = arith.mulf %6, %8 : vector<960x128xf32>
    %c0_9 = arith.constant 0 : index
    %c0_10 = arith.constant 0 : index
    %10 = vector.load %arg4[%c0_9, %c0_10] : memref<1x128xf32, #tpu.memory_space<vmem>>, vector<1x128xf32>
    %11 = vector.broadcast %10 : vector<1x128xf32> to vector<960x128xf32>
    %12 = arith.addf %9, %11 : vector<960x128xf32>
    %cst_11 = arith.constant 0.000000e+00 : f32
    %13 = vector.broadcast %cst_11 : f32 to vector<960x128xf32>
    %14 = arith.maximumf %12, %13 : vector<960x128xf32>
    %15 = vector.shape_cast %14 : vector<960x128xf32> to vector<15x64x128xf32>
    %16 = vector.extract_strided_slice %15 {offsets = [0, 0, 0], sizes = [15, 32, 128], strides = [1, 1, 1]} : vector<15x64x128xf32> to vector<15x32x128xf32>
    %17 = vector.extract_strided_slice %15 {offsets = [0, 32, 0], sizes = [15, 32, 128], strides = [1, 1, 1]} : vector<15x64x128xf32> to vector<15x32x128xf32>
    %18 = arith.maximumf %16, %17 : vector<15x32x128xf32>
    %c0_12 = arith.constant 0 : index
    %c0_13 = arith.constant 0 : index
    %c0_14 = arith.constant 0 : index
    %19 = vector.load %arg6[%c0_12, %c0_13, %c0_14] : memref<15x32x128xf32, #tpu.memory_space<vmem>>, vector<15x32x128xf32>
    tpu.vector_store %arg6[%c0_12, %c0_13, %c0_14], %18 {strides = array<i32>} : memref<15x32x128xf32, #tpu.memory_space<vmem>>, vector<15x32x128xf32>,
    %c0_15 = arith.constant 0 : index
    %c0_16 = arith.constant 0 : index
    %c0_17 = arith.constant 0 : index
    %20 = tpu.strided_load %arg6[%c0_15, %c0_16, %c0_17] {strides = array<i32: 1, 2, 1>} : memref<15x32x128xf32, #tpu.memory_space<vmem>>, vector<15x15x128xf32>
    %c0_18 = arith.constant 0 : index
    %c1 = arith.constant 1 : index
    %c0_19 = arith.constant 0 : index
    %21 = tpu.strided_load %arg6[%c0_18, %c1, %c0_19] {strides = array<i32: 1, 2, 1>} : memref<15x32x128xf32, #tpu.memory_space<vmem>>, vector<15x15x128xf32>
    %22 = arith.maximumf %20, %21 : vector<15x15x128xf32>
    %23 = vector.shape_cast %22 : vector<15x15x128xf32> to vector<1x15x15x128xf32>
    %24 = arith.truncf %23 : vector<1x15x15x128xf32> to vector<1x15x15x128xbf16>
    %c0_20 = arith.constant 0 : index
    %c0_21 = arith.constant 0 : index
    %c0_22 = arith.constant 0 : index
    %c0_23 = arith.constant 0 : index
    %25 = vector.load %arg5[%c0_20, %c0_21, %c0_22, %c0_23] : memref<1x15x15x128xbf16, #tpu.memory_space<vmem>>, vector<1x15x15x128xbf16>
    tpu.vector_store %arg5[%c0_20, %c0_21, %c0_22, %c0_23], %24 {strides = array<i32>} : memref<1x15x15x128xbf16, #tpu.memory_space<vmem>>, vector<1x15x15x128xbf16>,
    return
  }
  func.func @transform_0(%arg0: i32) -> (i32, i32, i32, i32) {
    %c0_i32 = arith.constant 0 : i32
    %c0_i32_0 = arith.constant 0 : i32
    %c0_i32_1 = arith.constant 0 : i32
    %c0_i32_2 = arith.constant 0 : i32
    return %arg0, %c0_i32, %c0_i32_0, %c0_i32_1 : i32, i32, i32, i32
  }
  func.func @transform_1(%arg0: i32) -> (i32, i32, i32) {
    %c0_i32 = arith.constant 0 : i32
    %c0_i32_0 = arith.constant 0 : i32
    %c0_i32_1 = arith.constant 0 : i32
    %c0_i32_2 = arith.constant 0 : i32
    return %c0_i32, %c0_i32_0, %c0_i32_1 : i32, i32, i32
  }
  func.func @transform_2(%arg0: i32) -> (i32, i32) {
    %c0_i32 = arith.constant 0 : i32
    %c0_i32_0 = arith.constant 0 : i32
    %c0_i32_1 = arith.constant 0 : i32
    return %c0_i32, %c0_i32_0 : i32, i32
  }
  func.func @transform_3(%arg0: i32) -> (i32, i32) {
    %c0_i32 = arith.constant 0 : i32
    %c0_i32_0 = arith.constant 0 : i32
    %c0_i32_1 = arith.constant 0 : i32
    return %c0_i32, %c0_i32_0 : i32, i32
  }
  func.func @transform_4(%arg0: i32) -> (i32, i32, i32, i32) {
    %c0_i32 = arith.constant 0 : i32
    %c0_i32_0 = arith.constant 0 : i32
    %c0_i32_1 = arith.constant 0 : i32
    %c0_i32_2 = arith.constant 0 : i32
    return %arg0, %c0_i32, %c0_i32_0, %c0_i32_1 : i32, i32, i32, i32
  }
}

module attributes {stable_mosaic.version = 11 : i64} {
  func.func @_conv_bn_relu_pool_kernel(%arg0: i32, %arg1: memref<1x15x19x128xbf16, #tpu.memory_space<vmem>>, %arg2: memref<16x128x128xbf16, #tpu.memory_space<vmem>>, %arg3: memref<1x128xf32, #tpu.memory_space<vmem>>, %arg4: memref<1x128xf32, #tpu.memory_space<vmem>>, %arg5: memref<1x6x6x128xbf16, #tpu.memory_space<vmem>>, %arg6: memref<6x16x128xf32, #tpu.memory_space<vmem>>) attributes {dimension_semantics = [#tpu.dimension_semantics<parallel>], iteration_bounds = array<i64: 2>, scalar_prefetch = 0 : i64, scratch_operands = 1 : i64, tpu.core_type = #tpu.core_type<tc>, window_params = [{transform_indices = @transform_0, window_bounds = array<i64: 1, 15, 19, 128>}, {pipeline_mode = #tpu.pipeline_mode<synchronous>, transform_indices = @transform_1, window_bounds = array<i64: 16, 128, 128>}, {pipeline_mode = #tpu.pipeline_mode<synchronous>, transform_indices = @transform_2, window_bounds = array<i64: 1, 128>}, {pipeline_mode = #tpu.pipeline_mode<synchronous>, transform_indices = @transform_3, window_bounds = array<i64: 1, 128>}, {transform_indices = @transform_4, window_bounds = array<i64: 1, 6, 6, 128>}]} {
    %cst = arith.constant 0.000000e+00 : f32
    %0 = vector.broadcast %cst : f32 to vector<192x128xf32>
    %c0 = arith.constant 0 : index
    %c0_0 = arith.constant 0 : index
    %c0_1 = arith.constant 0 : index
    %c0_2 = arith.constant 0 : index
    %1 = vector.load %arg1[%c0, %c0_0, %c0_1, %c0_2] : memref<1x15x19x128xbf16, #tpu.memory_space<vmem>>, vector<1x12x16x128xbf16>
    %2 = vector.shape_cast %1 : vector<1x12x16x128xbf16> to vector<192x128xbf16>
    %c0_3 = arith.constant 0 : index
    %c0_4 = arith.constant 0 : index
    %c0_5 = arith.constant 0 : index
    %3 = vector.load %arg2[%c0_3, %c0_4, %c0_5] : memref<16x128x128xbf16, #tpu.memory_space<vmem>>, vector<1x128x128xbf16>
    %4 = vector.shape_cast %3 : vector<1x128x128xbf16> to vector<128x128xbf16>
    %cst_6 = arith.constant dense<0.000000e+00> : vector<192x128xf32>
    %5 = tpu.matmul %2, %4, %cst_6 {dimension_numbers = #tpu.dot_dimension_numbers<[1], [0], [0], [1], [0, 0, 1, 1], [], []>} : vector<192x128xbf16>, vector<128x128xbf16>, vector<192x128xf32> -> vector<192x128xf32>
    %6 = arith.addf %0, %5 : vector<192x128xf32>
    %c0_7 = arith.constant 0 : index
    %c0_8 = arith.constant 0 : index
    %c1 = arith.constant 1 : index
    %c0_9 = arith.constant 0 : index
    %7 = vector.load %arg1[%c0_7, %c0_8, %c1, %c0_9] : memref<1x15x19x128xbf16, #tpu.memory_space<vmem>>, vector<1x12x16x128xbf16>
    %8 = vector.shape_cast %7 : vector<1x12x16x128xbf16> to vector<192x128xbf16>
    %c1_10 = arith.constant 1 : index
    %c0_11 = arith.constant 0 : index
    %c0_12 = arith.constant 0 : index
    %9 = vector.load %arg2[%c1_10, %c0_11, %c0_12] : memref<16x128x128xbf16, #tpu.memory_space<vmem>>, vector<1x128x128xbf16>
    %10 = vector.shape_cast %9 : vector<1x128x128xbf16> to vector<128x128xbf16>
    %cst_13 = arith.constant dense<0.000000e+00> : vector<192x128xf32>
    %11 = tpu.matmul %8, %10, %cst_13 {dimension_numbers = #tpu.dot_dimension_numbers<[1], [0], [0], [1], [0, 0, 1, 1], [], []>} : vector<192x128xbf16>, vector<128x128xbf16>, vector<192x128xf32> -> vector<192x128xf32>
    %12 = arith.addf %6, %11 : vector<192x128xf32>
    %c0_14 = arith.constant 0 : index
    %c0_15 = arith.constant 0 : index
    %c2 = arith.constant 2 : index
    %c0_16 = arith.constant 0 : index
    %13 = vector.load %arg1[%c0_14, %c0_15, %c2, %c0_16] : memref<1x15x19x128xbf16, #tpu.memory_space<vmem>>, vector<1x12x16x128xbf16>
    %14 = vector.shape_cast %13 : vector<1x12x16x128xbf16> to vector<192x128xbf16>
    %c2_17 = arith.constant 2 : index
    %c0_18 = arith.constant 0 : index
    %c0_19 = arith.constant 0 : index
    %15 = vector.load %arg2[%c2_17, %c0_18, %c0_19] : memref<16x128x128xbf16, #tpu.memory_space<vmem>>, vector<1x128x128xbf16>
    %16 = vector.shape_cast %15 : vector<1x128x128xbf16> to vector<128x128xbf16>
    %cst_20 = arith.constant dense<0.000000e+00> : vector<192x128xf32>
    %17 = tpu.matmul %14, %16, %cst_20 {dimension_numbers = #tpu.dot_dimension_numbers<[1], [0], [0], [1], [0, 0, 1, 1], [], []>} : vector<192x128xbf16>, vector<128x128xbf16>, vector<192x128xf32> -> vector<192x128xf32>
    %18 = arith.addf %12, %17 : vector<192x128xf32>
    %c0_21 = arith.constant 0 : index
    %c0_22 = arith.constant 0 : index
    %c3 = arith.constant 3 : index
    %c0_23 = arith.constant 0 : index
    %19 = vector.load %arg1[%c0_21, %c0_22, %c3, %c0_23] : memref<1x15x19x128xbf16, #tpu.memory_space<vmem>>, vector<1x12x16x128xbf16>
    %20 = vector.shape_cast %19 : vector<1x12x16x128xbf16> to vector<192x128xbf16>
    %c3_24 = arith.constant 3 : index
    %c0_25 = arith.constant 0 : index
    %c0_26 = arith.constant 0 : index
    %21 = vector.load %arg2[%c3_24, %c0_25, %c0_26] : memref<16x128x128xbf16, #tpu.memory_space<vmem>>, vector<1x128x128xbf16>
    %22 = vector.shape_cast %21 : vector<1x128x128xbf16> to vector<128x128xbf16>
    %cst_27 = arith.constant dense<0.000000e+00> : vector<192x128xf32>
    %23 = tpu.matmul %20, %22, %cst_27 {dimension_numbers = #tpu.dot_dimension_numbers<[1], [0], [0], [1], [0, 0, 1, 1], [], []>} : vector<192x128xbf16>, vector<128x128xbf16>, vector<192x128xf32> -> vector<192x128xf32>
    %24 = arith.addf %18, %23 : vector<192x128xf32>
    %c0_28 = arith.constant 0 : index
    %c1_29 = arith.constant 1 : index
    %c0_30 = arith.constant 0 : index
    %c0_31 = arith.constant 0 : index
    %25 = vector.load %arg1[%c0_28, %c1_29, %c0_30, %c0_31] : memref<1x15x19x128xbf16, #tpu.memory_space<vmem>>, vector<1x12x16x128xbf16>
    %26 = vector.shape_cast %25 : vector<1x12x16x128xbf16> to vector<192x128xbf16>
    %c4 = arith.constant 4 : index
    %c0_32 = arith.constant 0 : index
    %c0_33 = arith.constant 0 : index
    %27 = vector.load %arg2[%c4, %c0_32, %c0_33] : memref<16x128x128xbf16, #tpu.memory_space<vmem>>, vector<1x128x128xbf16>
    %28 = vector.shape_cast %27 : vector<1x128x128xbf16> to vector<128x128xbf16>
    %cst_34 = arith.constant dense<0.000000e+00> : vector<192x128xf32>
    %29 = tpu.matmul %26, %28, %cst_34 {dimension_numbers = #tpu.dot_dimension_numbers<[1], [0], [0], [1], [0, 0, 1, 1], [], []>} : vector<192x128xbf16>, vector<128x128xbf16>, vector<192x128xf32> -> vector<192x128xf32>
    %30 = arith.addf %24, %29 : vector<192x128xf32>
    %c0_35 = arith.constant 0 : index
    %c1_36 = arith.constant 1 : index
    %c1_37 = arith.constant 1 : index
    %c0_38 = arith.constant 0 : index
    %31 = vector.load %arg1[%c0_35, %c1_36, %c1_37, %c0_38] : memref<1x15x19x128xbf16, #tpu.memory_space<vmem>>, vector<1x12x16x128xbf16>
    %32 = vector.shape_cast %31 : vector<1x12x16x128xbf16> to vector<192x128xbf16>
    %c5 = arith.constant 5 : index
    %c0_39 = arith.constant 0 : index
    %c0_40 = arith.constant 0 : index
    %33 = vector.load %arg2[%c5, %c0_39, %c0_40] : memref<16x128x128xbf16, #tpu.memory_space<vmem>>, vector<1x128x128xbf16>
    %34 = vector.shape_cast %33 : vector<1x128x128xbf16> to vector<128x128xbf16>
    %cst_41 = arith.constant dense<0.000000e+00> : vector<192x128xf32>
    %35 = tpu.matmul %32, %34, %cst_41 {dimension_numbers = #tpu.dot_dimension_numbers<[1], [0], [0], [1], [0, 0, 1, 1], [], []>} : vector<192x128xbf16>, vector<128x128xbf16>, vector<192x128xf32> -> vector<192x128xf32>
    %36 = arith.addf %30, %35 : vector<192x128xf32>
    %c0_42 = arith.constant 0 : index
    %c1_43 = arith.constant 1 : index
    %c2_44 = arith.constant 2 : index
    %c0_45 = arith.constant 0 : index
    %37 = vector.load %arg1[%c0_42, %c1_43, %c2_44, %c0_45] : memref<1x15x19x128xbf16, #tpu.memory_space<vmem>>, vector<1x12x16x128xbf16>
    %38 = vector.shape_cast %37 : vector<1x12x16x128xbf16> to vector<192x128xbf16>
    %c6 = arith.constant 6 : index
    %c0_46 = arith.constant 0 : index
    %c0_47 = arith.constant 0 : index
    %39 = vector.load %arg2[%c6, %c0_46, %c0_47] : memref<16x128x128xbf16, #tpu.memory_space<vmem>>, vector<1x128x128xbf16>
    %40 = vector.shape_cast %39 : vector<1x128x128xbf16> to vector<128x128xbf16>
    %cst_48 = arith.constant dense<0.000000e+00> : vector<192x128xf32>
    %41 = tpu.matmul %38, %40, %cst_48 {dimension_numbers = #tpu.dot_dimension_numbers<[1], [0], [0], [1], [0, 0, 1, 1], [], []>} : vector<192x128xbf16>, vector<128x128xbf16>, vector<192x128xf32> -> vector<192x128xf32>
    %42 = arith.addf %36, %41 : vector<192x128xf32>
    %c0_49 = arith.constant 0 : index
    %c1_50 = arith.constant 1 : index
    %c3_51 = arith.constant 3 : index
    %c0_52 = arith.constant 0 : index
    %43 = vector.load %arg1[%c0_49, %c1_50, %c3_51, %c0_52] : memref<1x15x19x128xbf16, #tpu.memory_space<vmem>>, vector<1x12x16x128xbf16>
    %44 = vector.shape_cast %43 : vector<1x12x16x128xbf16> to vector<192x128xbf16>
    %c7 = arith.constant 7 : index
    %c0_53 = arith.constant 0 : index
    %c0_54 = arith.constant 0 : index
    %45 = vector.load %arg2[%c7, %c0_53, %c0_54] : memref<16x128x128xbf16, #tpu.memory_space<vmem>>, vector<1x128x128xbf16>
    %46 = vector.shape_cast %45 : vector<1x128x128xbf16> to vector<128x128xbf16>
    %cst_55 = arith.constant dense<0.000000e+00> : vector<192x128xf32>
    %47 = tpu.matmul %44, %46, %cst_55 {dimension_numbers = #tpu.dot_dimension_numbers<[1], [0], [0], [1], [0, 0, 1, 1], [], []>} : vector<192x128xbf16>, vector<128x128xbf16>, vector<192x128xf32> -> vector<192x128xf32>
    %48 = arith.addf %42, %47 : vector<192x128xf32>
    %c0_56 = arith.constant 0 : index
    %c2_57 = arith.constant 2 : index
    %c0_58 = arith.constant 0 : index
    %c0_59 = arith.constant 0 : index
    %49 = vector.load %arg1[%c0_56, %c2_57, %c0_58, %c0_59] : memref<1x15x19x128xbf16, #tpu.memory_space<vmem>>, vector<1x12x16x128xbf16>
    %50 = vector.shape_cast %49 : vector<1x12x16x128xbf16> to vector<192x128xbf16>
    %c8 = arith.constant 8 : index
    %c0_60 = arith.constant 0 : index
    %c0_61 = arith.constant 0 : index
    %51 = vector.load %arg2[%c8, %c0_60, %c0_61] : memref<16x128x128xbf16, #tpu.memory_space<vmem>>, vector<1x128x128xbf16>
    %52 = vector.shape_cast %51 : vector<1x128x128xbf16> to vector<128x128xbf16>
    %cst_62 = arith.constant dense<0.000000e+00> : vector<192x128xf32>
    %53 = tpu.matmul %50, %52, %cst_62 {dimension_numbers = #tpu.dot_dimension_numbers<[1], [0], [0], [1], [0, 0, 1, 1], [], []>} : vector<192x128xbf16>, vector<128x128xbf16>, vector<192x128xf32> -> vector<192x128xf32>
    %54 = arith.addf %48, %53 : vector<192x128xf32>
    %c0_63 = arith.constant 0 : index
    %c2_64 = arith.constant 2 : index
    %c1_65 = arith.constant 1 : index
    %c0_66 = arith.constant 0 : index
    %55 = vector.load %arg1[%c0_63, %c2_64, %c1_65, %c0_66] : memref<1x15x19x128xbf16, #tpu.memory_space<vmem>>, vector<1x12x16x128xbf16>
    %56 = vector.shape_cast %55 : vector<1x12x16x128xbf16> to vector<192x128xbf16>
    %c9 = arith.constant 9 : index
    %c0_67 = arith.constant 0 : index
    %c0_68 = arith.constant 0 : index
    %57 = vector.load %arg2[%c9, %c0_67, %c0_68] : memref<16x128x128xbf16, #tpu.memory_space<vmem>>, vector<1x128x128xbf16>
    %58 = vector.shape_cast %57 : vector<1x128x128xbf16> to vector<128x128xbf16>
    %cst_69 = arith.constant dense<0.000000e+00> : vector<192x128xf32>
    %59 = tpu.matmul %56, %58, %cst_69 {dimension_numbers = #tpu.dot_dimension_numbers<[1], [0], [0], [1], [0, 0, 1, 1], [], []>} : vector<192x128xbf16>, vector<128x128xbf16>, vector<192x128xf32> -> vector<192x128xf32>
    %60 = arith.addf %54, %59 : vector<192x128xf32>
    %c0_70 = arith.constant 0 : index
    %c2_71 = arith.constant 2 : index
    %c2_72 = arith.constant 2 : index
    %c0_73 = arith.constant 0 : index
    %61 = vector.load %arg1[%c0_70, %c2_71, %c2_72, %c0_73] : memref<1x15x19x128xbf16, #tpu.memory_space<vmem>>, vector<1x12x16x128xbf16>
    %62 = vector.shape_cast %61 : vector<1x12x16x128xbf16> to vector<192x128xbf16>
    %c10 = arith.constant 10 : index
    %c0_74 = arith.constant 0 : index
    %c0_75 = arith.constant 0 : index
    %63 = vector.load %arg2[%c10, %c0_74, %c0_75] : memref<16x128x128xbf16, #tpu.memory_space<vmem>>, vector<1x128x128xbf16>
    %64 = vector.shape_cast %63 : vector<1x128x128xbf16> to vector<128x128xbf16>
    %cst_76 = arith.constant dense<0.000000e+00> : vector<192x128xf32>
    %65 = tpu.matmul %62, %64, %cst_76 {dimension_numbers = #tpu.dot_dimension_numbers<[1], [0], [0], [1], [0, 0, 1, 1], [], []>} : vector<192x128xbf16>, vector<128x128xbf16>, vector<192x128xf32> -> vector<192x128xf32>
    %66 = arith.addf %60, %65 : vector<192x128xf32>
    %c0_77 = arith.constant 0 : index
    %c2_78 = arith.constant 2 : index
    %c3_79 = arith.constant 3 : index
    %c0_80 = arith.constant 0 : index
    %67 = vector.load %arg1[%c0_77, %c2_78, %c3_79, %c0_80] : memref<1x15x19x128xbf16, #tpu.memory_space<vmem>>, vector<1x12x16x128xbf16>
    %68 = vector.shape_cast %67 : vector<1x12x16x128xbf16> to vector<192x128xbf16>
    %c11 = arith.constant 11 : index
    %c0_81 = arith.constant 0 : index
    %c0_82 = arith.constant 0 : index
    %69 = vector.load %arg2[%c11, %c0_81, %c0_82] : memref<16x128x128xbf16, #tpu.memory_space<vmem>>, vector<1x128x128xbf16>
    %70 = vector.shape_cast %69 : vector<1x128x128xbf16> to vector<128x128xbf16>
    %cst_83 = arith.constant dense<0.000000e+00> : vector<192x128xf32>
    %71 = tpu.matmul %68, %70, %cst_83 {dimension_numbers = #tpu.dot_dimension_numbers<[1], [0], [0], [1], [0, 0, 1, 1], [], []>} : vector<192x128xbf16>, vector<128x128xbf16>, vector<192x128xf32> -> vector<192x128xf32>
    %72 = arith.addf %66, %71 : vector<192x128xf32>
    %c0_84 = arith.constant 0 : index
    %c3_85 = arith.constant 3 : index
    %c0_86 = arith.constant 0 : index
    %c0_87 = arith.constant 0 : index
    %73 = vector.load %arg1[%c0_84, %c3_85, %c0_86, %c0_87] : memref<1x15x19x128xbf16, #tpu.memory_space<vmem>>, vector<1x12x16x128xbf16>
    %74 = vector.shape_cast %73 : vector<1x12x16x128xbf16> to vector<192x128xbf16>
    %c12 = arith.constant 12 : index
    %c0_88 = arith.constant 0 : index
    %c0_89 = arith.constant 0 : index
    %75 = vector.load %arg2[%c12, %c0_88, %c0_89] : memref<16x128x128xbf16, #tpu.memory_space<vmem>>, vector<1x128x128xbf16>
    %76 = vector.shape_cast %75 : vector<1x128x128xbf16> to vector<128x128xbf16>
    %cst_90 = arith.constant dense<0.000000e+00> : vector<192x128xf32>
    %77 = tpu.matmul %74, %76, %cst_90 {dimension_numbers = #tpu.dot_dimension_numbers<[1], [0], [0], [1], [0, 0, 1, 1], [], []>} : vector<192x128xbf16>, vector<128x128xbf16>, vector<192x128xf32> -> vector<192x128xf32>
    %78 = arith.addf %72, %77 : vector<192x128xf32>
    %c0_91 = arith.constant 0 : index
    %c3_92 = arith.constant 3 : index
    %c1_93 = arith.constant 1 : index
    %c0_94 = arith.constant 0 : index
    %79 = vector.load %arg1[%c0_91, %c3_92, %c1_93, %c0_94] : memref<1x15x19x128xbf16, #tpu.memory_space<vmem>>, vector<1x12x16x128xbf16>
    %80 = vector.shape_cast %79 : vector<1x12x16x128xbf16> to vector<192x128xbf16>
    %c13 = arith.constant 13 : index
    %c0_95 = arith.constant 0 : index
    %c0_96 = arith.constant 0 : index
    %81 = vector.load %arg2[%c13, %c0_95, %c0_96] : memref<16x128x128xbf16, #tpu.memory_space<vmem>>, vector<1x128x128xbf16>
    %82 = vector.shape_cast %81 : vector<1x128x128xbf16> to vector<128x128xbf16>
    %cst_97 = arith.constant dense<0.000000e+00> : vector<192x128xf32>
    %83 = tpu.matmul %80, %82, %cst_97 {dimension_numbers = #tpu.dot_dimension_numbers<[1], [0], [0], [1], [0, 0, 1, 1], [], []>} : vector<192x128xbf16>, vector<128x128xbf16>, vector<192x128xf32> -> vector<192x128xf32>
    %84 = arith.addf %78, %83 : vector<192x128xf32>
    %c0_98 = arith.constant 0 : index
    %c3_99 = arith.constant 3 : index
    %c2_100 = arith.constant 2 : index
    %c0_101 = arith.constant 0 : index
    %85 = vector.load %arg1[%c0_98, %c3_99, %c2_100, %c0_101] : memref<1x15x19x128xbf16, #tpu.memory_space<vmem>>, vector<1x12x16x128xbf16>
    %86 = vector.shape_cast %85 : vector<1x12x16x128xbf16> to vector<192x128xbf16>
    %c14 = arith.constant 14 : index
    %c0_102 = arith.constant 0 : index
    %c0_103 = arith.constant 0 : index
    %87 = vector.load %arg2[%c14, %c0_102, %c0_103] : memref<16x128x128xbf16, #tpu.memory_space<vmem>>, vector<1x128x128xbf16>
    %88 = vector.shape_cast %87 : vector<1x128x128xbf16> to vector<128x128xbf16>
    %cst_104 = arith.constant dense<0.000000e+00> : vector<192x128xf32>
    %89 = tpu.matmul %86, %88, %cst_104 {dimension_numbers = #tpu.dot_dimension_numbers<[1], [0], [0], [1], [0, 0, 1, 1], [], []>} : vector<192x128xbf16>, vector<128x128xbf16>, vector<192x128xf32> -> vector<192x128xf32>
    %90 = arith.addf %84, %89 : vector<192x128xf32>
    %c0_105 = arith.constant 0 : index
    %c3_106 = arith.constant 3 : index
    %c3_107 = arith.constant 3 : index
    %c0_108 = arith.constant 0 : index
    %91 = vector.load %arg1[%c0_105, %c3_106, %c3_107, %c0_108] : memref<1x15x19x128xbf16, #tpu.memory_space<vmem>>, vector<1x12x16x128xbf16>
    %92 = vector.shape_cast %91 : vector<1x12x16x128xbf16> to vector<192x128xbf16>
    %c15 = arith.constant 15 : index
    %c0_109 = arith.constant 0 : index
    %c0_110 = arith.constant 0 : index
    %93 = vector.load %arg2[%c15, %c0_109, %c0_110] : memref<16x128x128xbf16, #tpu.memory_space<vmem>>, vector<1x128x128xbf16>
    %94 = vector.shape_cast %93 : vector<1x128x128xbf16> to vector<128x128xbf16>
    %cst_111 = arith.constant dense<0.000000e+00> : vector<192x128xf32>
    %95 = tpu.matmul %92, %94, %cst_111 {dimension_numbers = #tpu.dot_dimension_numbers<[1], [0], [0], [1], [0, 0, 1, 1], [], []>} : vector<192x128xbf16>, vector<128x128xbf16>, vector<192x128xf32> -> vector<192x128xf32>
    %96 = arith.addf %90, %95 : vector<192x128xf32>
    %c0_112 = arith.constant 0 : index
    %c0_113 = arith.constant 0 : index
    %97 = vector.load %arg3[%c0_112, %c0_113] : memref<1x128xf32, #tpu.memory_space<vmem>>, vector<1x128xf32>
    %98 = vector.broadcast %97 : vector<1x128xf32> to vector<192x128xf32>
    %99 = arith.mulf %96, %98 : vector<192x128xf32>
    %c0_114 = arith.constant 0 : index
    %c0_115 = arith.constant 0 : index
    %100 = vector.load %arg4[%c0_114, %c0_115] : memref<1x128xf32, #tpu.memory_space<vmem>>, vector<1x128xf32>
    %101 = vector.broadcast %100 : vector<1x128xf32> to vector<192x128xf32>
    %102 = arith.addf %99, %101 : vector<192x128xf32>
    %cst_116 = arith.constant 0.000000e+00 : f32
    %103 = vector.broadcast %cst_116 : f32 to vector<192x128xf32>
    %104 = arith.maximumf %102, %103 : vector<192x128xf32>
    %105 = vector.shape_cast %104 : vector<192x128xf32> to vector<6x32x128xf32>
    %106 = vector.extract_strided_slice %105 {offsets = [0, 0, 0], sizes = [6, 16, 128], strides = [1, 1, 1]} : vector<6x32x128xf32> to vector<6x16x128xf32>
    %107 = vector.extract_strided_slice %105 {offsets = [0, 16, 0], sizes = [6, 16, 128], strides = [1, 1, 1]} : vector<6x32x128xf32> to vector<6x16x128xf32>
    %108 = arith.maximumf %106, %107 : vector<6x16x128xf32>
    %c0_117 = arith.constant 0 : index
    %c0_118 = arith.constant 0 : index
    %c0_119 = arith.constant 0 : index
    %109 = vector.load %arg6[%c0_117, %c0_118, %c0_119] : memref<6x16x128xf32, #tpu.memory_space<vmem>>, vector<6x16x128xf32>
    tpu.vector_store %arg6[%c0_117, %c0_118, %c0_119], %108 {strides = array<i32>} : memref<6x16x128xf32, #tpu.memory_space<vmem>>, vector<6x16x128xf32>,
    %c0_120 = arith.constant 0 : index
    %c0_121 = arith.constant 0 : index
    %c0_122 = arith.constant 0 : index
    %110 = tpu.strided_load %arg6[%c0_120, %c0_121, %c0_122] {strides = array<i32: 1, 2, 1>} : memref<6x16x128xf32, #tpu.memory_space<vmem>>, vector<6x6x128xf32>
    %c0_123 = arith.constant 0 : index
    %c1_124 = arith.constant 1 : index
    %c0_125 = arith.constant 0 : index
    %111 = tpu.strided_load %arg6[%c0_123, %c1_124, %c0_125] {strides = array<i32: 1, 2, 1>} : memref<6x16x128xf32, #tpu.memory_space<vmem>>, vector<6x6x128xf32>
    %112 = arith.maximumf %110, %111 : vector<6x6x128xf32>
    %113 = vector.shape_cast %112 : vector<6x6x128xf32> to vector<1x6x6x128xf32>
    %114 = arith.truncf %113 : vector<1x6x6x128xf32> to vector<1x6x6x128xbf16>
    %c0_126 = arith.constant 0 : index
    %c0_127 = arith.constant 0 : index
    %c0_128 = arith.constant 0 : index
    %c0_129 = arith.constant 0 : index
    %115 = vector.load %arg5[%c0_126, %c0_127, %c0_128, %c0_129] : memref<1x6x6x128xbf16, #tpu.memory_space<vmem>>, vector<1x6x6x128xbf16>
    tpu.vector_store %arg5[%c0_126, %c0_127, %c0_128, %c0_129], %114 {strides = array<i32>} : memref<1x6x6x128xbf16, #tpu.memory_space<vmem>>, vector<1x6x6x128xbf16>,
    return
  }
  func.func @transform_0(%arg0: i32) -> (i32, i32, i32, i32) {
    %c0_i32 = arith.constant 0 : i32
    %c0_i32_0 = arith.constant 0 : i32
    %c0_i32_1 = arith.constant 0 : i32
    %c0_i32_2 = arith.constant 0 : i32
    return %arg0, %c0_i32, %c0_i32_0, %c0_i32_1 : i32, i32, i32, i32
  }
  func.func @transform_1(%arg0: i32) -> (i32, i32, i32) {
    %c0_i32 = arith.constant 0 : i32
    %c0_i32_0 = arith.constant 0 : i32
    %c0_i32_1 = arith.constant 0 : i32
    %c0_i32_2 = arith.constant 0 : i32
    return %c0_i32, %c0_i32_0, %c0_i32_1 : i32, i32, i32
  }
  func.func @transform_2(%arg0: i32) -> (i32, i32) {
    %c0_i32 = arith.constant 0 : i32
    %c0_i32_0 = arith.constant 0 : i32
    %c0_i32_1 = arith.constant 0 : i32
    return %c0_i32, %c0_i32_0 : i32, i32
  }
  func.func @transform_3(%arg0: i32) -> (i32, i32) {
    %c0_i32 = arith.constant 0 : i32
    %c0_i32_0 = arith.constant 0 : i32
    %c0_i32_1 = arith.constant 0 : i32
    return %c0_i32, %c0_i32_0 : i32, i32
  }
  func.func @transform_4(%arg0: i32) -> (i32, i32, i32, i32) {
    %c0_i32 = arith.constant 0 : i32
    %c0_i32_0 = arith.constant 0 : i32
    %c0_i32_1 = arith.constant 0 : i32
    %c0_i32_2 = arith.constant 0 : i32
    return %arg0, %c0_i32, %c0_i32_0, %c0_i32_1 : i32, i32, i32, i32
  }
}

module attributes {stable_mosaic.version = 11 : i64} {
  func.func @_conv_bn_relu_pool_fc_kernel(%arg0: i32, %arg1: memref<1x6x18x128xbf16, #tpu.memory_space<vmem>>, %arg2: memref<9x128x128xbf16, #tpu.memory_space<vmem>>, %arg3: memref<1x128xf32, #tpu.memory_space<vmem>>, %arg4: memref<1x128xf32, #tpu.memory_space<vmem>>, %arg5: memref<512x10xf32, #tpu.memory_space<vmem>>, %arg6: memref<1x10xf32, #tpu.memory_space<vmem>>, %arg7: memref<1x1x10xf32, #tpu.memory_space<vmem>>, %arg8: memref<2x16x128xf32, #tpu.memory_space<vmem>>) attributes {dimension_semantics = [#tpu.dimension_semantics<parallel>], iteration_bounds = array<i64: 2>, scalar_prefetch = 0 : i64, scratch_operands = 1 : i64, tpu.core_type = #tpu.core_type<tc>, window_params = [{transform_indices = @transform_0, window_bounds = array<i64: 1, 6, 18, 128>}, {pipeline_mode = #tpu.pipeline_mode<synchronous>, transform_indices = @transform_1, window_bounds = array<i64: 9, 128, 128>}, {pipeline_mode = #tpu.pipeline_mode<synchronous>, transform_indices = @transform_2, window_bounds = array<i64: 1, 128>}, {pipeline_mode = #tpu.pipeline_mode<synchronous>, transform_indices = @transform_3, window_bounds = array<i64: 1, 128>}, {pipeline_mode = #tpu.pipeline_mode<synchronous>, transform_indices = @transform_4, window_bounds = array<i64: 512, 10>}, {pipeline_mode = #tpu.pipeline_mode<synchronous>, transform_indices = @transform_5, window_bounds = array<i64: 1, 10>}, {transform_indices = @transform_6, window_bounds = array<i64: 1, 1, 10>}]} {
    %cst = arith.constant 0.000000e+00 : f32
    %0 = vector.broadcast %cst : f32 to vector<64x128xf32>
    %c0 = arith.constant 0 : index
    %c0_0 = arith.constant 0 : index
    %c0_1 = arith.constant 0 : index
    %c0_2 = arith.constant 0 : index
    %1 = vector.load %arg1[%c0, %c0_0, %c0_1, %c0_2] : memref<1x6x18x128xbf16, #tpu.memory_space<vmem>>, vector<1x4x16x128xbf16>
    %2 = vector.shape_cast %1 : vector<1x4x16x128xbf16> to vector<64x128xbf16>
    %c0_3 = arith.constant 0 : index
    %c0_4 = arith.constant 0 : index
    %c0_5 = arith.constant 0 : index
    %3 = vector.load %arg2[%c0_3, %c0_4, %c0_5] : memref<9x128x128xbf16, #tpu.memory_space<vmem>>, vector<1x128x128xbf16>
    %4 = vector.shape_cast %3 : vector<1x128x128xbf16> to vector<128x128xbf16>
    %cst_6 = arith.constant dense<0.000000e+00> : vector<64x128xf32>
    %5 = tpu.matmul %2, %4, %cst_6 {dimension_numbers = #tpu.dot_dimension_numbers<[1], [0], [0], [1], [0, 0, 1, 1], [], []>} : vector<64x128xbf16>, vector<128x128xbf16>, vector<64x128xf32> -> vector<64x128xf32>
    %6 = arith.addf %0, %5 : vector<64x128xf32>
    %c0_7 = arith.constant 0 : index
    %c0_8 = arith.constant 0 : index
    %c1 = arith.constant 1 : index
    %c0_9 = arith.constant 0 : index
    %7 = vector.load %arg1[%c0_7, %c0_8, %c1, %c0_9] : memref<1x6x18x128xbf16, #tpu.memory_space<vmem>>, vector<1x4x16x128xbf16>
    %8 = vector.shape_cast %7 : vector<1x4x16x128xbf16> to vector<64x128xbf16>
    %c1_10 = arith.constant 1 : index
    %c0_11 = arith.constant 0 : index
    %c0_12 = arith.constant 0 : index
    %9 = vector.load %arg2[%c1_10, %c0_11, %c0_12] : memref<9x128x128xbf16, #tpu.memory_space<vmem>>, vector<1x128x128xbf16>
    %10 = vector.shape_cast %9 : vector<1x128x128xbf16> to vector<128x128xbf16>
    %cst_13 = arith.constant dense<0.000000e+00> : vector<64x128xf32>
    %11 = tpu.matmul %8, %10, %cst_13 {dimension_numbers = #tpu.dot_dimension_numbers<[1], [0], [0], [1], [0, 0, 1, 1], [], []>} : vector<64x128xbf16>, vector<128x128xbf16>, vector<64x128xf32> -> vector<64x128xf32>
    %12 = arith.addf %6, %11 : vector<64x128xf32>
    %c0_14 = arith.constant 0 : index
    %c0_15 = arith.constant 0 : index
    %c2 = arith.constant 2 : index
    %c0_16 = arith.constant 0 : index
    %13 = vector.load %arg1[%c0_14, %c0_15, %c2, %c0_16] : memref<1x6x18x128xbf16, #tpu.memory_space<vmem>>, vector<1x4x16x128xbf16>
    %14 = vector.shape_cast %13 : vector<1x4x16x128xbf16> to vector<64x128xbf16>
    %c2_17 = arith.constant 2 : index
    %c0_18 = arith.constant 0 : index
    %c0_19 = arith.constant 0 : index
    %15 = vector.load %arg2[%c2_17, %c0_18, %c0_19] : memref<9x128x128xbf16, #tpu.memory_space<vmem>>, vector<1x128x128xbf16>
    %16 = vector.shape_cast %15 : vector<1x128x128xbf16> to vector<128x128xbf16>
    %cst_20 = arith.constant dense<0.000000e+00> : vector<64x128xf32>
    %17 = tpu.matmul %14, %16, %cst_20 {dimension_numbers = #tpu.dot_dimension_numbers<[1], [0], [0], [1], [0, 0, 1, 1], [], []>} : vector<64x128xbf16>, vector<128x128xbf16>, vector<64x128xf32> -> vector<64x128xf32>
    %18 = arith.addf %12, %17 : vector<64x128xf32>
    %c0_21 = arith.constant 0 : index
    %c1_22 = arith.constant 1 : index
    %c0_23 = arith.constant 0 : index
    %c0_24 = arith.constant 0 : index
    %19 = vector.load %arg1[%c0_21, %c1_22, %c0_23, %c0_24] : memref<1x6x18x128xbf16, #tpu.memory_space<vmem>>, vector<1x4x16x128xbf16>
    %20 = vector.shape_cast %19 : vector<1x4x16x128xbf16> to vector<64x128xbf16>
    %c3 = arith.constant 3 : index
    %c0_25 = arith.constant 0 : index
    %c0_26 = arith.constant 0 : index
    %21 = vector.load %arg2[%c3, %c0_25, %c0_26] : memref<9x128x128xbf16, #tpu.memory_space<vmem>>, vector<1x128x128xbf16>
    %22 = vector.shape_cast %21 : vector<1x128x128xbf16> to vector<128x128xbf16>
    %cst_27 = arith.constant dense<0.000000e+00> : vector<64x128xf32>
    %23 = tpu.matmul %20, %22, %cst_27 {dimension_numbers = #tpu.dot_dimension_numbers<[1], [0], [0], [1], [0, 0, 1, 1], [], []>} : vector<64x128xbf16>, vector<128x128xbf16>, vector<64x128xf32> -> vector<64x128xf32>
    %24 = arith.addf %18, %23 : vector<64x128xf32>
    %c0_28 = arith.constant 0 : index
    %c1_29 = arith.constant 1 : index
    %c1_30 = arith.constant 1 : index
    %c0_31 = arith.constant 0 : index
    %25 = vector.load %arg1[%c0_28, %c1_29, %c1_30, %c0_31] : memref<1x6x18x128xbf16, #tpu.memory_space<vmem>>, vector<1x4x16x128xbf16>
    %26 = vector.shape_cast %25 : vector<1x4x16x128xbf16> to vector<64x128xbf16>
    %c4 = arith.constant 4 : index
    %c0_32 = arith.constant 0 : index
    %c0_33 = arith.constant 0 : index
    %27 = vector.load %arg2[%c4, %c0_32, %c0_33] : memref<9x128x128xbf16, #tpu.memory_space<vmem>>, vector<1x128x128xbf16>
    %28 = vector.shape_cast %27 : vector<1x128x128xbf16> to vector<128x128xbf16>
    %cst_34 = arith.constant dense<0.000000e+00> : vector<64x128xf32>
    %29 = tpu.matmul %26, %28, %cst_34 {dimension_numbers = #tpu.dot_dimension_numbers<[1], [0], [0], [1], [0, 0, 1, 1], [], []>} : vector<64x128xbf16>, vector<128x128xbf16>, vector<64x128xf32> -> vector<64x128xf32>
    %30 = arith.addf %24, %29 : vector<64x128xf32>
    %c0_35 = arith.constant 0 : index
    %c1_36 = arith.constant 1 : index
    %c2_37 = arith.constant 2 : index
    %c0_38 = arith.constant 0 : index
    %31 = vector.load %arg1[%c0_35, %c1_36, %c2_37, %c0_38] : memref<1x6x18x128xbf16, #tpu.memory_space<vmem>>, vector<1x4x16x128xbf16>
    %32 = vector.shape_cast %31 : vector<1x4x16x128xbf16> to vector<64x128xbf16>
    %c5 = arith.constant 5 : index
    %c0_39 = arith.constant 0 : index
    %c0_40 = arith.constant 0 : index
    %33 = vector.load %arg2[%c5, %c0_39, %c0_40] : memref<9x128x128xbf16, #tpu.memory_space<vmem>>, vector<1x128x128xbf16>
    %34 = vector.shape_cast %33 : vector<1x128x128xbf16> to vector<128x128xbf16>
    %cst_41 = arith.constant dense<0.000000e+00> : vector<64x128xf32>
    %35 = tpu.matmul %32, %34, %cst_41 {dimension_numbers = #tpu.dot_dimension_numbers<[1], [0], [0], [1], [0, 0, 1, 1], [], []>} : vector<64x128xbf16>, vector<128x128xbf16>, vector<64x128xf32> -> vector<64x128xf32>
    %36 = arith.addf %30, %35 : vector<64x128xf32>
    %c0_42 = arith.constant 0 : index
    %c2_43 = arith.constant 2 : index
    %c0_44 = arith.constant 0 : index
    %c0_45 = arith.constant 0 : index
    %37 = vector.load %arg1[%c0_42, %c2_43, %c0_44, %c0_45] : memref<1x6x18x128xbf16, #tpu.memory_space<vmem>>, vector<1x4x16x128xbf16>
    %38 = vector.shape_cast %37 : vector<1x4x16x128xbf16> to vector<64x128xbf16>
    %c6 = arith.constant 6 : index
    %c0_46 = arith.constant 0 : index
    %c0_47 = arith.constant 0 : index
    %39 = vector.load %arg2[%c6, %c0_46, %c0_47] : memref<9x128x128xbf16, #tpu.memory_space<vmem>>, vector<1x128x128xbf16>
    %40 = vector.shape_cast %39 : vector<1x128x128xbf16> to vector<128x128xbf16>
    %cst_48 = arith.constant dense<0.000000e+00> : vector<64x128xf32>
    %41 = tpu.matmul %38, %40, %cst_48 {dimension_numbers = #tpu.dot_dimension_numbers<[1], [0], [0], [1], [0, 0, 1, 1], [], []>} : vector<64x128xbf16>, vector<128x128xbf16>, vector<64x128xf32> -> vector<64x128xf32>
    %42 = arith.addf %36, %41 : vector<64x128xf32>
    %c0_49 = arith.constant 0 : index
    %c2_50 = arith.constant 2 : index
    %c1_51 = arith.constant 1 : index
    %c0_52 = arith.constant 0 : index
    %43 = vector.load %arg1[%c0_49, %c2_50, %c1_51, %c0_52] : memref<1x6x18x128xbf16, #tpu.memory_space<vmem>>, vector<1x4x16x128xbf16>
    %44 = vector.shape_cast %43 : vector<1x4x16x128xbf16> to vector<64x128xbf16>
    %c7 = arith.constant 7 : index
    %c0_53 = arith.constant 0 : index
    %c0_54 = arith.constant 0 : index
    %45 = vector.load %arg2[%c7, %c0_53, %c0_54] : memref<9x128x128xbf16, #tpu.memory_space<vmem>>, vector<1x128x128xbf16>
    %46 = vector.shape_cast %45 : vector<1x128x128xbf16> to vector<128x128xbf16>
    %cst_55 = arith.constant dense<0.000000e+00> : vector<64x128xf32>
    %47 = tpu.matmul %44, %46, %cst_55 {dimension_numbers = #tpu.dot_dimension_numbers<[1], [0], [0], [1], [0, 0, 1, 1], [], []>} : vector<64x128xbf16>, vector<128x128xbf16>, vector<64x128xf32> -> vector<64x128xf32>
    %48 = arith.addf %42, %47 : vector<64x128xf32>
    %c0_56 = arith.constant 0 : index
    %c2_57 = arith.constant 2 : index
    %c2_58 = arith.constant 2 : index
    %c0_59 = arith.constant 0 : index
    %49 = vector.load %arg1[%c0_56, %c2_57, %c2_58, %c0_59] : memref<1x6x18x128xbf16, #tpu.memory_space<vmem>>, vector<1x4x16x128xbf16>
    %50 = vector.shape_cast %49 : vector<1x4x16x128xbf16> to vector<64x128xbf16>
    %c8 = arith.constant 8 : index
    %c0_60 = arith.constant 0 : index
    %c0_61 = arith.constant 0 : index
    %51 = vector.load %arg2[%c8, %c0_60, %c0_61] : memref<9x128x128xbf16, #tpu.memory_space<vmem>>, vector<1x128x128xbf16>
    %52 = vector.shape_cast %51 : vector<1x128x128xbf16> to vector<128x128xbf16>
    %cst_62 = arith.constant dense<0.000000e+00> : vector<64x128xf32>
    %53 = tpu.matmul %50, %52, %cst_62 {dimension_numbers = #tpu.dot_dimension_numbers<[1], [0], [0], [1], [0, 0, 1, 1], [], []>} : vector<64x128xbf16>, vector<128x128xbf16>, vector<64x128xf32> -> vector<64x128xf32>
    %54 = arith.addf %48, %53 : vector<64x128xf32>
    %c0_63 = arith.constant 0 : index
    %c0_64 = arith.constant 0 : index
    %55 = vector.load %arg3[%c0_63, %c0_64] : memref<1x128xf32, #tpu.memory_space<vmem>>, vector<1x128xf32>
    %56 = vector.broadcast %55 : vector<1x128xf32> to vector<64x128xf32>
    %57 = arith.mulf %54, %56 : vector<64x128xf32>
    %c0_65 = arith.constant 0 : index
    %c0_66 = arith.constant 0 : index
    %58 = vector.load %arg4[%c0_65, %c0_66] : memref<1x128xf32, #tpu.memory_space<vmem>>, vector<1x128xf32>
    %59 = vector.broadcast %58 : vector<1x128xf32> to vector<64x128xf32>
    %60 = arith.addf %57, %59 : vector<64x128xf32>
    %cst_67 = arith.constant 0.000000e+00 : f32
    %61 = vector.broadcast %cst_67 : f32 to vector<64x128xf32>
    %62 = arith.maximumf %60, %61 : vector<64x128xf32>
    %63 = vector.shape_cast %62 : vector<64x128xf32> to vector<2x32x128xf32>
    %64 = vector.extract_strided_slice %63 {offsets = [0, 0, 0], sizes = [2, 16, 128], strides = [1, 1, 1]} : vector<2x32x128xf32> to vector<2x16x128xf32>
    %65 = vector.extract_strided_slice %63 {offsets = [0, 16, 0], sizes = [2, 16, 128], strides = [1, 1, 1]} : vector<2x32x128xf32> to vector<2x16x128xf32>
    %66 = arith.maximumf %64, %65 : vector<2x16x128xf32>
    %c0_68 = arith.constant 0 : index
    %c0_69 = arith.constant 0 : index
    %c0_70 = arith.constant 0 : index
    %67 = vector.load %arg8[%c0_68, %c0_69, %c0_70] : memref<2x16x128xf32, #tpu.memory_space<vmem>>, vector<2x16x128xf32>
    tpu.vector_store %arg8[%c0_68, %c0_69, %c0_70], %66 {strides = array<i32>} : memref<2x16x128xf32, #tpu.memory_space<vmem>>, vector<2x16x128xf32>,
    %c0_71 = arith.constant 0 : index
    %c0_72 = arith.constant 0 : index
    %c0_73 = arith.constant 0 : index
    %68 = tpu.strided_load %arg8[%c0_71, %c0_72, %c0_73] {strides = array<i32: 1, 2, 1>} : memref<2x16x128xf32, #tpu.memory_space<vmem>>, vector<2x2x128xf32>
    %c0_74 = arith.constant 0 : index
    %c1_75 = arith.constant 1 : index
    %c0_76 = arith.constant 0 : index
    %69 = tpu.strided_load %arg8[%c0_74, %c1_75, %c0_76] {strides = array<i32: 1, 2, 1>} : memref<2x16x128xf32, #tpu.memory_space<vmem>>, vector<2x2x128xf32>
    %70 = arith.maximumf %68, %69 : vector<2x2x128xf32>
    %71 = vector.shape_cast %70 : vector<2x2x128xf32> to vector<1x2x2x128xf32>
    %72 = vector.extract_strided_slice %71 {offsets = [0, 0, 0, 0], sizes = [1, 1, 1, 128], strides = [1, 1, 1, 1]} : vector<1x2x2x128xf32> to vector<1x1x1x128xf32>
    %73 = vector.shape_cast %72 : vector<1x1x1x128xf32> to vector<1x128xf32>
    %74 = vector.extract_strided_slice %71 {offsets = [0, 0, 1, 0], sizes = [1, 1, 1, 128], strides = [1, 1, 1, 1]} : vector<1x2x2x128xf32> to vector<1x1x1x128xf32>
    %75 = vector.shape_cast %74 : vector<1x1x1x128xf32> to vector<1x128xf32>
    %76 = vector.extract_strided_slice %71 {offsets = [0, 1, 0, 0], sizes = [1, 1, 1, 128], strides = [1, 1, 1, 1]} : vector<1x2x2x128xf32> to vector<1x1x1x128xf32>
    %77 = vector.shape_cast %76 : vector<1x1x1x128xf32> to vector<1x128xf32>
    %78 = vector.extract_strided_slice %71 {offsets = [0, 1, 1, 0], sizes = [1, 1, 1, 128], strides = [1, 1, 1, 1]} : vector<1x2x2x128xf32> to vector<1x1x1x128xf32>
    %79 = vector.shape_cast %78 : vector<1x1x1x128xf32> to vector<1x128xf32>
    %80 = tpu.concatenate %73, %75, %77, %79 in 1 : vector<1x128xf32>, vector<1x128xf32>, vector<1x128xf32>, vector<1x128xf32> -> vector<1x512xf32>
    %c0_77 = arith.constant 0 : index
    %c0_78 = arith.constant 0 : index
    %81 = vector.load %arg5[%c0_77, %c0_78] : memref<512x10xf32, #tpu.memory_space<vmem>>, vector<512x10xf32>
    %cst_79 = arith.constant dense<0.000000e+00> : vector<1x10xf32>
    %82 = tpu.matmul %80, %81, %cst_79 {dimension_numbers = #tpu.dot_dimension_numbers<[1], [0], [0], [1], [0, 0, 1, 1], [], []>} : vector<1x512xf32>, vector<512x10xf32>, vector<1x10xf32> -> vector<1x10xf32>
    %c0_80 = arith.constant 0 : index
    %c0_81 = arith.constant 0 : index
    %83 = vector.load %arg6[%c0_80, %c0_81] : memref<1x10xf32, #tpu.memory_space<vmem>>, vector<1x10xf32>
    %84 = arith.addf %82, %83 : vector<1x10xf32>
    %85 = vector.shape_cast %84 : vector<1x10xf32> to vector<1x1x10xf32>
    %c0_82 = arith.constant 0 : index
    %c0_83 = arith.constant 0 : index
    %c0_84 = arith.constant 0 : index
    %86 = vector.load %arg7[%c0_82, %c0_83, %c0_84] : memref<1x1x10xf32, #tpu.memory_space<vmem>>, vector<1x1x10xf32>
    tpu.vector_store %arg7[%c0_82, %c0_83, %c0_84], %85 {strides = array<i32>} : memref<1x1x10xf32, #tpu.memory_space<vmem>>, vector<1x1x10xf32>,
    return
  }
  func.func @transform_0(%arg0: i32) -> (i32, i32, i32, i32) {
    %c0_i32 = arith.constant 0 : i32
    %c0_i32_0 = arith.constant 0 : i32
    %c0_i32_1 = arith.constant 0 : i32
    %c0_i32_2 = arith.constant 0 : i32
    return %arg0, %c0_i32, %c0_i32_0, %c0_i32_1 : i32, i32, i32, i32
  }
  func.func @transform_1(%arg0: i32) -> (i32, i32, i32) {
    %c0_i32 = arith.constant 0 : i32
    %c0_i32_0 = arith.constant 0 : i32
    %c0_i32_1 = arith.constant 0 : i32
    %c0_i32_2 = arith.constant 0 : i32
    return %c0_i32, %c0_i32_0, %c0_i32_1 : i32, i32, i32
  }
  func.func @transform_2(%arg0: i32) -> (i32, i32) {
    %c0_i32 = arith.constant 0 : i32
    %c0_i32_0 = arith.constant 0 : i32
    %c0_i32_1 = arith.constant 0 : i32
    return %c0_i32, %c0_i32_0 : i32, i32
  }
  func.func @transform_3(%arg0: i32) -> (i32, i32) {
    %c0_i32 = arith.constant 0 : i32
    %c0_i32_0 = arith.constant 0 : i32
    %c0_i32_1 = arith.constant 0 : i32
    return %c0_i32, %c0_i32_0 : i32, i32
  }
  func.func @transform_4(%arg0: i32) -> (i32, i32) {
    %c0_i32 = arith.constant 0 : i32
    %c0_i32_0 = arith.constant 0 : i32
    %c0_i32_1 = arith.constant 0 : i32
    return %c0_i32, %c0_i32_0 : i32, i32
  }
  func.func @transform_5(%arg0: i32) -> (i32, i32) {
    %c0_i32 = arith.constant 0 : i32
    %c0_i32_0 = arith.constant 0 : i32
    %c0_i32_1 = arith.constant 0 : i32
    return %c0_i32, %c0_i32_0 : i32, i32
  }
  func.func @transform_6(%arg0: i32) -> (i32, i32, i32) {
    %c0_i32 = arith.constant 0 : i32
    %c0_i32_0 = arith.constant 0 : i32
    %c0_i32_1 = arith.constant 0 : i32
    return %arg0, %c0_i32, %c0_i32_0 : i32, i32, i32
  }
}

</mosaic_0001>

<bundles_post_ra>
// kernel: net_forward.3
= control target key start
LH: loop header
LB: loop body
LE: loop exit
PB: predicated region body
PF: predicated region fallthrough
CT: control target
= control target key end

     0   :  { %s2708_s15 = smov 0   ;;  %s3390_s0 = inlined_call_operand.vmem [shape: bf16[2,30,32,27], index: 0, kind: input, shape index: {}]   ;;  %s3391_s1 = inlined_call_operand.vmem [shape: bf16[1,27,128], index: 1, kind: input, shape index: {}]   ;;  %s3392_s2 = inlined_call_operand.vmem [shape: f32[1,128], index: 2, kind: input, shape index: {}]   ;;  %s3393_s3 = inlined_call_operand.vmem [shape: f32[1,128], index: 3, kind: input, shape index: {}]   ;;  %s3394_s4 = inlined_call_operand.vmem [shape: bf16[2,15,15,128], index: 4, kind: output, shape index: {}]  }
   0x1 LB: > { %s2216_s16 = sadd.s32 4294967295, %s2680_s15   ;;  %p2220_p0 = scmp.ge.s32.totalorder %s2680_s15, 1  ;;  %s2680_s15 = sphi %s2708_s15, %s14_s15  }
   0x2   : > { %p162_p1 = scmp.lt.s32.totalorder %s2680_s15, 3 }
   0x4   : > { %p163_p2 = pnand %p2220_p0, %p162_p1 }
   0x5   : > { %v2610_v0 = vld [vmem:[%s3391_s1] sm:$0xff] (!%p163_p2)   ;;  %vm815_vm0 = vcmask (!%p163_p2), 1044480   ;;  %v2611_v1 = vld [vmem:[%s3391_s1 + $0x8] sm:$0x3f] (!%p163_p2)   ;;  %vm816_vm1 = vcmask (!%p163_p2), 1045504   ;;  %p188_p3 = scmp.lt.s32.totalorder (!%p163_p2), %s2216_s16, 1 }
   0x6   : > { %166 = sbr.rel (%p163_p2) target bundleno = 376 (0x178), region = 36  ;;  %2471 = vmatprep.subr.bf16.mxu0 (!%p163_p2), %v2610_v0  ;;  %2595 = vmatprep.subr.bf16.mxu1 (!%p163_p2), %v2610_v0  ;;  %v2682_v2 = vmov (!%p163_p2), 65535   ;;  %vm634_vm2 = vcmask (!%p163_p2), 220160   ;;  %vm2099_vm3 = vcmask (!%p163_p2), 1043456   ;;  %vm2100_vm4 = vsmask.f32 (!%p163_p2), 3328 }
   0x7   : > { %2472 = vmatpush3.bf16.msra.mxu0 (!%p163_p2), %v2610_v0  ;;  %2597 = vmatpush3.bf16.msra.mxu1 (!%p163_p2), %v2610_v0  ;;  %v817_v3 = vsel (!%p163_p2), %vm815_vm0, 4294967295, %v2682_v2  ;;  %v2853_v2 = vld [vmem:[%s3392_s2] ss:$0 sm:$0xff] (!%p163_p2)  ;;  %vm2940_vm5 = vmand (!%p163_p2), %vm2099_vm3, %vm2100_vm4 }
   0x8   : > { %v818_v4 = vsel (!%p163_p2), %vm816_vm1, %v817_v3, 0 }
   0x9   : > { %v820_v5 = vand.u32 (!%p163_p2), %v2611_v1, %v818_v4 }
   0xb   : > { %2473 = vmatprep.subr.bf16.mxu0 (!%p163_p2), %v820_v5  ;;  %2596 = vmatprep.subr.bf16.mxu1 (!%p163_p2), %v820_v5 }
   0xc   : > { %2474 = vmatpush3.bf16.msra.mxu0 (!%p163_p2), %v820_v5  ;;  %2598 = vmatpush3.bf16.msra.mxu1 (!%p163_p2), %v820_v5 }
   0xd   : > { %s3398_s16 = smov (!%p188_p3, %s2216_s16), 1 }
   0xe   : > { %s2599_s21 = smul.u32 480, %s3398_s16 }
   0xf   : > { %s2600_s29 = smul.u32 120, %s3398_s16 }
  0x10   : > { %s2728_s24 = scalar_lea.vmem %s3390_s0, %s2599_s21 }
  0x11   : > { %v2612_v6 = vld [vmem:[%s2728_s24] sm:$0xff]   ;;  %v2613_v7 = vld [vmem:[%s2728_s24 + $0xf0] sm:$0xff]   ;;  %v2614_v8 = vld [vmem:[%s2728_s24 + $0x8] sm:$0xff]   ;;  %s2927_s6 = scalar_lea.vmem %s3394_s4, %s2600_s29 }
  0x12   : > { %2475 = vmatprep.mubr.msk.bf16.mxu0 %vm634_vm2, %v2612_v6  ;;  %2535 = vmatprep.mubr.msk.bf16.mxu1 %vm634_vm2, %v2613_v7  ;;  %v2615_v9 = vld [vmem:[%s2728_s24 + $0xf8] sm:$0xff]   ;;  %v2616_v10 = vld [vmem:[%s2728_s24 + $0x10] sm:$0xff]   ;;  %v2617_v11 = vld [vmem:[%s2728_s24 + $0x100] sm:$0xff]  }
  0x13   : > { %2476 = vmatmul.mubr.msk.bf16.vlgmr.msra.gmra.mrb[0].mxu0 %vm634_vm2, %v2614_v8  ;;  %2536 = vmatmul.mubr.msk.bf16.vlgmr.msra.gmra.mrb[0].mxu1 %vm634_vm2, %v2615_v9  ;;  %v2618_v12 = vld [vmem:[%s2728_s24 + $0x18] sm:$0xff]   ;;  %v2619_v13 = vld [vmem:[%s2728_s24 + $0x108] sm:$0xff]   ;;  %v2620_v14 = vld [vmem:[%s2728_s24 + $0x20] sm:$0xff]  }
  0x14   : > { %2479 = vmatprep.mubr.msk.bf16.mxu0 %vm634_vm2, %v2616_v10  ;;  %2539 = vmatprep.mubr.msk.bf16.mxu1 %vm634_vm2, %v2617_v11  ;;  %v2621_v15 = vld [vmem:[%s2728_s24 + $0x110] sm:$0xff]   ;;  %v2622_v16 = vld [vmem:[%s2728_s24 + $0x28] sm:$0xff]   ;;  %v2623_v17 = vld [vmem:[%s2728_s24 + $0x118] sm:$0xff]  }
  0x15   : > { %v2624_v18 = vld [vmem:[%s2728_s24 + $0x30] sm:$0xff]   ;;  %v2625_v19 = vld [vmem:[%s2728_s24 + $0x120] sm:$0xff]   ;;  %v2626_v20 = vld [vmem:[%s2728_s24 + $0x38] sm:$0xff]  }
  0x16   : > { %v2627_v21 = vld [vmem:[%s2728_s24 + $0x128] sm:$0xff]   ;;  %v2628_v22 = vld [vmem:[%s2728_s24 + $0x40] sm:$0xff]   ;;  %v2629_v23 = vld [vmem:[%s2728_s24 + $0x130] sm:$0xff]  }
  0x17   : > { %v2630_v24 = vld [vmem:[%s2728_s24 + $0x48] sm:$0xff]   ;;  %v2631_v25 = vld [vmem:[%s2728_s24 + $0x138] sm:$0xff]   ;;  %v2632_v26 = vld [vmem:[%s2728_s24 + $0x50] sm:$0xff]  }
  0x18   : > { %v2633_v27 = vld [vmem:[%s2728_s24 + $0x140] sm:$0xff]   ;;  %v2634_v28 = vld [vmem:[%s2728_s24 + $0x58] sm:$0xff]   ;;  %v2635_v29 = vld [vmem:[%s2728_s24 + $0x148] sm:$0xff]  }
  0x19   : > { %v2636_v30 = vld [vmem:[%s2728_s24 + $0x60] sm:$0xff]   ;;  %v2637_v31 = vld [vmem:[%s2728_s24 + $0x150] sm:$0xff]   ;;  %v2638_v32 = vld [vmem:[%s2728_s24 + $0x68] sm:$0xff]  }
  0x1a   : > { %v2639_v33 = vld [vmem:[%s2728_s24 + $0x158] sm:$0xff]   ;;  %v2640_v34 = vld [vmem:[%s2728_s24 + $0x70] sm:$0xff]   ;;  %v2641_v35 = vld [vmem:[%s2728_s24 + $0x160] sm:$0xff]  }
  0x1b   : > { %2480 = vmatmul.mubr.msk.bf16.gmra.mrb[4].mxu0 %vm634_vm2, %v2618_v12  ;;  %2540 = vmatmul.mubr.msk.bf16.gmra.mrb[4].mxu1 %vm634_vm2, %v2619_v13  ;;  %v2642_v36 = vld [vmem:[%s2728_s24 + $0x78] sm:$0xff]   ;;  %v2643_v37 = vld [vmem:[%s2728_s24 + $0x168] sm:$0xff]   ;;  %v2644_v38 = vld [vmem:[%s2728_s24 + $0x80] sm:$0xff]  }
  0x1c   : > { %2483 = vmatprep.mubr.msk.bf16.mxu0 %vm634_vm2, %v2620_v14  ;;  %2543 = vmatprep.mubr.msk.bf16.mxu1 %vm634_vm2, %v2621_v15  ;;  %v2645_v39 = vld [vmem:[%s2728_s24 + $0x170] sm:$0xff]   ;;  %v2646_v40 = vld [vmem:[%s2728_s24 + $0x88] sm:$0xff]   ;;  %v2647_v41 = vld [vmem:[%s2728_s24 + $0x178] sm:$0xff]  }
  0x1d   : > { %v2648_v42 = vld [vmem:[%s2728_s24 + $0x90] sm:$0xff]   ;;  %v2649_v43 = vld [vmem:[%s2728_s24 + $0x180] sm:$0xff]   ;;  %v2650_v44 = vld [vmem:[%s2728_s24 + $0x98] sm:$0xff]  }
  0x1e   : > { %v2651_v45 = vld [vmem:[%s2728_s24 + $0x188] sm:$0xff]   ;;  %v2652_v46 = vld [vmem:[%s2728_s24 + $0xa0] sm:$0xff]   ;;  %v2653_v47 = vld [vmem:[%s2728_s24 + $0x190] sm:$0xff]  }
  0x1f   : > { %v2654_v48 = vld [vmem:[%s2728_s24 + $0xa8] sm:$0xff]   ;;  %v2655_v49 = vld [vmem:[%s2728_s24 + $0x198] sm:$0xff]   ;;  %v2656_v50 = vld [vmem:[%s2728_s24 + $0xb0] sm:$0xff]  }
  0x20   : > { %v2657_v51 = vld [vmem:[%s2728_s24 + $0x1a0] sm:$0xff]   ;;  %v2658_v52 = vld [vmem:[%s2728_s24 + $0xb8] sm:$0xff]   ;;  %v2659_v53 = vld [vmem:[%s2728_s24 + $0x1a8] sm:$0xff]  }
  0x21   : > { %v2660_v54 = vld [vmem:[%s2728_s24 + $0xc0] sm:$0xff]   ;;  %v2661_v55 = vld [vmem:[%s2728_s24 + $0x1b0] sm:$0xff]   ;;  %v2662_v56 = vld [vmem:[%s2728_s24 + $0xc8] sm:$0xff]  }
  0x22   : > { %v2663_v57 = vld [vmem:[%s2728_s24 + $0x1b8] sm:$0xff]   ;;  %v2664_v58 = vld [vmem:[%s2728_s24 + $0xd0] sm:$0xff]   ;;  %v2665_v59 = vld [vmem:[%s2728_s24 + $0x1c0] sm:$0xff]  }
  0x23   : > { %2484 = vmatmul.mubr.msk.bf16.gmra.mrb[8].mxu0 %vm634_vm2, %v2622_v16  ;;  %2544 = vmatmul.mubr.msk.bf16.gmra.mrb[8].mxu1 %vm634_vm2, %v2623_v17  ;;  %v2666_v60 = vld [vmem:[%s2728_s24 + $0xd8] sm:$0xff]   ;;  %v2667_v61 = vld [vmem:[%s2728_s24 + $0x1c8] sm:$0xff]   ;;  %v2668_v62 = vld [vmem:[%s2728_s24 + $0xe0] sm:$0xff]  }
  0x24   : > { %2487 = vmatprep.mubr.msk.bf16.mxu0 %vm634_vm2, %v2624_v18  ;;  %2547 = vmatprep.mubr.msk.bf16.mxu1 %vm634_vm2, %v2625_v19  ;;  %v2669_v63 = vld [vmem:[%s2728_s24 + $0x1d0] sm:$0xff]   ;;  %v2670_v0 = vld [vmem:[%s2728_s24 + $0xe8] sm:$0xff]   ;;  %v2671_v1 = vld [vmem:[%s2728_s24 + $0x1d8] sm:$0xff]  }
  0x25   : > { %v2859_v9 = vld [vmem:[%s3393_s3] ss:$0 sm:$0xff] }
  0x2b   : > { %2488 = vmatmul.mubr.msk.bf16.gmra.mrb[12].mxu0 %vm634_vm2, %v2626_v20  ;;  %2548 = vmatmul.mubr.msk.bf16.gmra.mrb[12].mxu1 %vm634_vm2, %v2627_v21 }
  0x2c   : > { %2491 = vmatprep.mubr.msk.bf16.mxu0 %vm634_vm2, %v2628_v22  ;;  %2551 = vmatprep.mubr.msk.bf16.mxu1 %vm634_vm2, %v2629_v23 }
  0x33   : > { %2492 = vmatmul.mubr.msk.bf16.gmra.mrb[16].mxu0 %vm634_vm2, %v2630_v24  ;;  %2552 = vmatmul.mubr.msk.bf16.gmra.mrb[16].mxu1 %vm634_vm2, %v2631_v25 }
  0x34   : > { %2495 = vmatprep.mubr.msk.bf16.mxu0 %vm634_vm2, %v2632_v26  ;;  %2555 = vmatprep.mubr.msk.bf16.mxu1 %vm634_vm2, %v2633_v27 }
  0x3b   : > { %2496 = vmatmul.mubr.msk.bf16.gmra.mrb[20].mxu0 %vm634_vm2, %v2634_v28  ;;  %2556 = vmatmul.mubr.msk.bf16.gmra.mrb[20].mxu1 %vm634_vm2, %v2635_v29 }
  0x3c   : > { %2499 = vmatprep.mubr.msk.bf16.mxu0 %vm634_vm2, %v2636_v30  ;;  %2559 = vmatprep.mubr.msk.bf16.mxu1 %vm634_vm2, %v2637_v31 }
  0x43   : > { %2500 = vmatmul.mubr.msk.bf16.gmra.mrb[24].mxu0 %vm634_vm2, %v2638_v32  ;;  %2560 = vmatmul.mubr.msk.bf16.gmra.mrb[24].mxu1 %vm634_vm2, %v2639_v33 }
  0x44   : > { %2503 = vmatprep.mubr.msk.bf16.mxu0 %vm634_vm2, %v2640_v34  ;;  %2563 = vmatprep.mubr.msk.bf16.mxu1 %vm634_vm2, %v2641_v35 }
  0x4b   : > { %2504 = vmatmul.mubr.msk.bf16.gmra.mrb[28].mxu0 %vm634_vm2, %v2642_v36  ;;  %2564 = vmatmul.mubr.msk.bf16.gmra.mrb[28].mxu1 %vm634_vm2, %v2643_v37 }
  0x4c   : > { %2507 = vmatprep.mubr.msk.bf16.mxu0 %vm634_vm2, %v2644_v38  ;;  %2567 = vmatprep.mubr.msk.bf16.mxu1 %vm634_vm2, %v2645_v39 }
  0x53   : > { %2508 = vmatmul.mubr.msk.bf16.gmra.mrb[32].mxu0 %vm634_vm2, %v2646_v40  ;;  %2568 = vmatmul.mubr.msk.bf16.gmra.mrb[32].mxu1 %vm634_vm2, %v2647_v41 }
  0x54   : > { %2511 = vmatprep.mubr.msk.bf16.mxu0 %vm634_vm2, %v2648_v42  ;;  %2571 = vmatprep.mubr.msk.bf16.mxu1 %vm634_vm2, %v2649_v43 }
  0x5b   : > { %2512 = vmatmul.mubr.msk.bf16.gmra.mrb[36].mxu0 %vm634_vm2, %v2650_v44  ;;  %2572 = vmatmul.mubr.msk.bf16.gmra.mrb[36].mxu1 %vm634_vm2, %v2651_v45 }
  0x5c   : > { %2515 = vmatprep.mubr.msk.bf16.mxu0 %vm634_vm2, %v2652_v46  ;;  %2575 = vmatprep.mubr.msk.bf16.mxu1 %vm634_vm2, %v2653_v47 }
  0x63   : > { %2516 = vmatmul.mubr.msk.bf16.gmra.mrb[40].mxu0 %vm634_vm2, %v2654_v48  ;;  %2576 = vmatmul.mubr.msk.bf16.gmra.mrb[40].mxu1 %vm634_vm2, %v2655_v49 }
  0x64   : > { %2519 = vmatprep.mubr.msk.bf16.mxu0 %vm634_vm2, %v2656_v50  ;;  %2579 = vmatprep.mubr.msk.bf16.mxu1 %vm634_vm2, %v2657_v51 }
  0x6b   : > { %2520 = vmatmul.mubr.msk.bf16.gmra.mrb[44].mxu0 %vm634_vm2, %v2658_v52  ;;  %2580 = vmatmul.mubr.msk.bf16.gmra.mrb[44].mxu1 %vm634_vm2, %v2659_v53 }
  0x6c   : > { %2523 = vmatprep.mubr.msk.bf16.mxu0 %vm634_vm2, %v2660_v54  ;;  %2583 = vmatprep.mubr.msk.bf16.mxu1 %vm634_vm2, %v2661_v55 }
  0x73   : > { %2524 = vmatmul.mubr.msk.bf16.gmra.mrb[48].mxu0 %vm634_vm2, %v2662_v56  ;;  %2584 = vmatmul.mubr.msk.bf16.gmra.mrb[48].mxu1 %vm634_vm2, %v2663_v57 }
  0x74   : > { %2527 = vmatprep.mubr.msk.bf16.mxu0 %vm634_vm2, %v2664_v58  ;;  %2587 = vmatprep.mubr.msk.bf16.mxu1 %vm634_vm2, %v2665_v59 }
  0x7b   : > { %2528 = vmatmul.mubr.msk.bf16.gmra.mrb[52].mxu0 %vm634_vm2, %v2666_v60  ;;  %2588 = vmatmul.mubr.msk.bf16.gmra.mrb[52].mxu1 %vm634_vm2, %v2667_v61 }
  0x7c   : > { %2531 = vmatprep.mubr.msk.bf16.mxu0 %vm634_vm2, %v2668_v62  ;;  %2591 = vmatprep.mubr.msk.bf16.mxu1 %vm634_vm2, %v2669_v63 }
  0x83   : > { %2532 = vmatmul.mubr.msk.bf16.gmra.mrb[56].mxu0 %vm634_vm2, %v2670_v0  ;;  %2592 = vmatmul.mubr.msk.bf16.gmra.mrb[56].mxu1 %vm634_vm2, %v2671_v1 }
  0xe6   : > { %v2477_v3 = vpop.f32.mrb[0].mxu0  ;;  %v2537_v4 = vpop.f32.mrb[0].mxu1 }
  0xe7   : > { %v856_v5 = vpop.f32.mrb[1].mxu0  ;;  %v1344_v6 = vmul.f32 %v2477_v3, %v2853_v2  ;;  %v1096_v7 = vpop.f32.mrb[1].mxu1  ;;  %v1404_v10 = vmul.f32 %v2537_v4, %v2853_v2 }
  0xe8   : > { %v2478_v8 = vpop.f32.mrb[2].mxu0  ;;  %v2538_v11 = vpop.f32.mrb[2].mxu1  ;;  %v1342_v13 = vmul.f32 %v2853_v2, %v856_v5  ;;  %v1402_v16 = vmul.f32 %v2853_v2, %v1096_v7 }
  0xe9   : > { %v859_v12 = vpop.f32.mrb[3].mxu0  ;;  %v1099_v14 = vpop.f32.mrb[3].mxu1  ;;  %v1471_v15 = vadd.f32 %v2859_v9, %v1344_v6  ;;  %v1345_v17 = vmul.f32 %v2478_v8, %v2853_v2  ;;  %v2867_v18 = vadd.f32 %v2859_v9, %v1404_v10  ;;  %v1405_v22 = vmul.f32 %v2538_v11, %v2853_v2 }
  0xea   : > { %v1469_v19 = vadd.f32 %v2859_v9, %v1342_v13  ;;  %v1343_v20 = vmul.f32 %v2853_v2, %v859_v12  ;;  %v2874_v27 = vadd.f32 %v2859_v9, %v1402_v16  ;;  %v1403_v33 = vmul.f32 %v2853_v2, %v1099_v14 }
  0xeb   : > { %v1591_v26 = vmax.f32 %v1471_v15, 0.0  ;;  %v1472_v28 = vadd.f32 %v2859_v9, %v1345_v17  ;;  %v1651_v32 = vmax.f32 %v2867_v18, 0.0  ;;  %v2886_v43 = vadd.f32 %v2859_v9, %v1405_v22 }
  0xec   : > { %v1589_v38 = vmax.f32 %v1469_v19, 0.0  ;;  %v1470_v39 = vadd.f32 %v2859_v9, %v1343_v20  ;;  %v2893_v51 = vadd.f32 %v2859_v9, %v1403_v33  ;;  %v1649_v60 = vmax.f32 %v2874_v27, 0.0 }
  0xed   : > { %v1592_v47 = vmax.f32 %v1472_v28, 0.0  ;;  %v1652_v10 = vmax.f32 %v2886_v43, 0.0 }
  0xee   : > { %v2481_v21 = vpop.f32.mrb[4].mxu0  ;;  %v2541_v24 = vpop.f32.mrb[4].mxu1  ;;  %v1590_v55 = vmax.f32 %v1470_v39, 0.0  ;;  %v1650_v11 = vmax.f32 %v2893_v51, 0.0 }
  0xef   : > { %v1348_v23 = vmul.f32 %v2481_v21, %v2853_v2  ;;  %v872_v25 = vpop.f32.mrb[5].mxu0  ;;  %v1112_v30 = vpop.f32.mrb[5].mxu1  ;;  %v1408_v45 = vmul.f32 %v2541_v24, %v2853_v2 }
  0xf0   : > { %v1346_v29 = vmul.f32 %v2853_v2, %v872_v25  ;;  %v2482_v31 = vpop.f32.mrb[6].mxu0  ;;  %v2542_v36 = vpop.f32.mrb[6].mxu1  ;;  %v1406_v49 = vmul.f32 %v2853_v2, %v1112_v30 }
  0xf1   : > { %v1475_v34 = vadd.f32 %v2859_v9, %v1348_v23  ;;  %v1349_v35 = vmul.f32 %v2482_v31, %v2853_v2  ;;  %v875_v37 = vpop.f32.mrb[7].mxu0  ;;  %v1115_v42 = vpop.f32.mrb[7].mxu1  ;;  %v1409_v54 = vmul.f32 %v2542_v36, %v2853_v2  ;;  %v1535_v61 = vadd.f32 %v2859_v9, %v1408_v45 }
  0xf2   : > { %v1473_v40 = vadd.f32 %v2859_v9, %v1346_v29  ;;  %v1347_v41 = vmul.f32 %v2853_v2, %v875_v37  ;;  %v1407_v58 = vmul.f32 %v2853_v2, %v1115_v42  ;;  %v1533_v3 = vadd.f32 %v2859_v9, %v1406_v49 }
  0xf3   : > { %v1595_v44 = vmax.f32 %v1475_v34, 0.0  ;;  %v1476_v46 = vadd.f32 %v2859_v9, %v1349_v35  ;;  %v1536_v12 = vadd.f32 %v2859_v9, %v1409_v54  ;;  %v1655_v22 = vmax.f32 %v1535_v61, 0.0 }
  0xf4   : > { %v1593_v48 = vmax.f32 %v1473_v40, 0.0  ;;  %v1474_v50 = vadd.f32 %v2859_v9, %v1347_v41  ;;  %v1534_v16 = vadd.f32 %v2859_v9, %v1407_v58 }
  0xf5   : > { %v1711_v52 = vmax.f32 %v1591_v26, %v1595_v44  ;;  %v1596_v53 = vmax.f32 %v1476_v46, 0.0  ;;  %v1653_v26 = vmax.f32 %v1533_v3, 0.0  ;;  %v1656_v31 = vmax.f32 %v1536_v12, 0.0 }
  0xf6   : > { %v1709_v56 = vmax.f32 %v1589_v38, %v1593_v48  ;;  %v1594_v57 = vmax.f32 %v1474_v50, 0.0  ;;  %v2485_v59 = vpop.f32.mrb[8].mxu0  ;;  %v2545_v0 = vpop.f32.mrb[8].mxu1  ;;  %v1654_v36 = vmax.f32 %v1534_v16, 0.0 }
  0xf7   : > { %1771 = vst [vmem:[#allocation2 + $0x10] sm:$0xff] %v1711_v52  ;;  %v1712_v62 = vmax.f32 %v1592_v47, %v1596_v53  ;;  %v1352_v63 = vmul.f32 %v2485_v59, %v2853_v2  ;;  %v888_v1 = vpop.f32.mrb[9].mxu0  ;;  %v1412_v5 = vmul.f32 %v2545_v0, %v2853_v2  ;;  %v1128_v7 = vpop.f32.mrb[9].mxu1 }
  0xf8   : > { %1769 = vst [vmem:[#allocation2] sm:$0xff] %v1709_v56  ;;  %v1710_v4 = vmax.f32 %v1590_v55, %v1594_v57  ;;  %v1350_v6 = vmul.f32 %v2853_v2, %v888_v1  ;;  %v2486_v8 = vpop.f32.mrb[10].mxu0  ;;  %v1410_v13 = vmul.f32 %v2853_v2, %v1128_v7  ;;  %v2546_v14 = vpop.f32.mrb[10].mxu1  ;;  %v2102_v1 = vld [vmem:[%s2927_s6 + $0x4] sm:$0xf] }
  0xf9   : > { %1772 = vst [vmem:[#allocation2 + $0x18] sm:$0xff] %v1712_v62  ;;  %v891_v15 = vpop.f32.mrb[11].mxu0  ;;  %v2909_v17 = vadd.f32 %v2859_v9, %v1352_v63  ;;  %v1539_v19 = vadd.f32 %v2859_v9, %v1412_v5  ;;  %v1413_v20 = vmul.f32 %v2546_v14, %v2853_v2  ;;  %v1131_v21 = vpop.f32.mrb[11].mxu1  ;;  %v1353_v29 = vmul.f32 %v2486_v8, %v2853_v2 }
  0xfa   : > { %1770 = vst [vmem:[#allocation2 + $0x8] sm:$0xff] %v1710_v4  ;;  %v2915_v23 = vadd.f32 %v2859_v9, %v1350_v6  ;;  %v1537_v24 = vadd.f32 %v2859_v9, %v1410_v13  ;;  %v1411_v25 = vmul.f32 %v2853_v2, %v1131_v21  ;;  %v1351_v34 = vmul.f32 %v2853_v2, %v891_v15 }
  0xfb   : > { %v1659_v28 = vmax.f32 %v1539_v19, 0.0  ;;  %v1540_v30 = vadd.f32 %v2859_v9, %v1413_v20  ;;  %v1599_v37 = vmax.f32 %v2909_v17, 0.0  ;;  %v1480_v50 = vadd.f32 %v2859_v9, %v1353_v29 }
  0xfc   : > { %v1657_v33 = vmax.f32 %v1537_v24, 0.0  ;;  %v1538_v35 = vadd.f32 %v2859_v9, %v1411_v25  ;;  %v1597_v41 = vmax.f32 %v2915_v23, 0.0  ;;  %v2935_v58 = vadd.f32 %v2859_v9, %v1351_v34 }
  0xfd   : > { %v1743_v38 = vmax.f32 %v1655_v22, %v1659_v28  ;;  %v1660_v39 = vmax.f32 %v1540_v30, 0.0  ;;  %v1600_v19 = vmax.f32 %v1480_v50, 0.0 }
  0xfe   : > { %v2489_v40 = vpop.f32.mrb[12].mxu0  ;;  %v1741_v42 = vmax.f32 %v1653_v26, %v1657_v33  ;;  %v1658_v44 = vmax.f32 %v1538_v35, 0.0  ;;  %v2549_v46 = vpop.f32.mrb[12].mxu1  ;;  %v1598_v23 = vmax.f32 %v2935_v58, 0.0 }
  0xff   : > { %v1356_v45 = vmul.f32 %v2489_v40, %v2853_v2  ;;  %v904_v47 = vpop.f32.mrb[13].mxu0  ;;  %1803 = vst [vmem:[#allocation2 + $0x110] sm:$0xff] %v1743_v38  ;;  %v1744_v52 = vmax.f32 %v1656_v31, %v1660_v39  ;;  %v1416_v53 = vmul.f32 %v2549_v46, %v2853_v2  ;;  %v1144_v62 = vpop.f32.mrb[13].mxu1 }
 0x100   : > { %v1831_v48 = vld [vmem:[#allocation2 + $0x10] ss:$2 sm:$0x7f]  ;;  %v1891_v49 = vld [vmem:[#allocation2 + $0x11] ss:$2 sm:$0x7f]  ;;  %v1354_v54 = vmul.f32 %v2853_v2, %v904_v47  ;;  %v1742_v59 = vmax.f32 %v1654_v36, %v1658_v44  ;;  %v1414_v6 = vmul.f32 %v2853_v2, %v1144_v62 }
 0x101   : > { %v1949_v55 = vmax.f32 %v1831_v48, %v1891_v49  ;;  %v1829_v56 = vld [vmem:[#allocation2] ss:$2 sm:$0xff]  ;;  %v1889_v57 = vld [vmem:[#allocation2 + $0x1] ss:$2 sm:$0xff]  ;;  %1801 = vst [vmem:[#allocation2 + $0x100] sm:$0xff] %v1741_v42  ;;  %v1483_v61 = vadd.f32 %v2859_v9, %v1356_v45  ;;  %v2490_v63 = vpop.f32.mrb[14].mxu0  ;;  %v2946_v4 = vadd.f32 %v2859_v9, %v1416_v53 }
 0x102   : > { %v1948_v3 = vmax.f32 %v1829_v56, %v1889_v57  ;;  %1804 = vst [vmem:[#allocation2 + $0x118] sm:$0xff] %v1744_v52  ;;  %v1481_v5 = vadd.f32 %v2859_v9, %v1354_v54  ;;  %v2550_v7 = vpop.f32.mrb[14].mxu1  ;;  %v907_v8 = vpop.f32.mrb[15].mxu0  ;;  %1802 = vst [vmem:[#allocation2 + $0x108] sm:$0xff] %v1742_v59  ;;  %v1357_v14 = vmul.f32 %v2490_v63, %v2853_v2  ;;  %v2134_v59 = vld [vmem:[%s2927_s6 + $0x44] sm:$0xf] }
 0x103   : > { %v2380_v12 = vpack.c.bf16 %v1949_v55, %v1949_v55  ;;  %v1603_v13 = vmax.f32 %v1483_v61, 0.0  ;;  %v1417_v15 = vmul.f32 %v2550_v7, %v2853_v2  ;;  %v1147_v16 = vpop.f32.mrb[15].mxu1  ;;  %v2953_v21 = vadd.f32 %v2859_v9, %v1414_v6 }
 0x104   : > { %v2379_v17 = vpack.c.bf16 %v1948_v3, %v1948_v3  ;;  %v1601_v20 = vmax.f32 %v1481_v5, 0.0  ;;  %v1484_v25 = vadd.f32 %v2859_v9, %v1357_v14  ;;  %v1355_v29 = vmul.f32 %v2853_v2, %v907_v8 }
 0x105   : > { %v2103_v22 = vsel %vm2940_vm5, %v2380_v12, %v2102_v1  ;;  %v1715_v24 = vmax.f32 %v1599_v37, %v1603_v13  ;;  %v2962_v28 = vadd.f32 %v2859_v9, %v1417_v15  ;;  %v1415_v30 = vmul.f32 %v2853_v2, %v1147_v16 }
 0x106   : > { %2104 = vst [vmem:[%s2927_s6 + $0x4] sm:$0xf] %v2103_v22  ;;  %2098 = vst [vmem:[%s2927_s6] sm:$0xf] %v2379_v17  ;;  %v1713_v26 = vmax.f32 %v1597_v41, %v1601_v20  ;;  %v2493_v31 = vpop.f32.mrb[16].mxu0  ;;  %v1663_v33 = vmax.f32 %v2946_v4, 0.0  ;;  %v1661_v34 = vmax.f32 %v2953_v21, 0.0  ;;  %v1482_v39 = vadd.f32 %v2859_v9, %v1355_v29 }
 0x107   : > { %1775 = vst [vmem:[#allocation2 + $0x30] sm:$0xff] %v1715_v24  ;;  %v1604_v35 = vmax.f32 %v1484_v25, 0.0  ;;  %v1360_v36 = vmul.f32 %v2493_v31, %v2853_v2  ;;  %v2553_v37 = vpop.f32.mrb[16].mxu1  ;;  %v920_v38 = vpop.f32.mrb[17].mxu0  ;;  %v2971_v40 = vadd.f32 %v2859_v9, %v1415_v30  ;;  %v1664_v56 = vmax.f32 %v2962_v28, 0.0 }
 0x108   : > { %1773 = vst [vmem:[#allocation2 + $0x20] sm:$0xff] %v1713_v26  ;;  %v1420_v41 = vmul.f32 %v2553_v37, %v2853_v2  ;;  %v1358_v42 = vmul.f32 %v2853_v2, %v920_v38  ;;  %v1160_v44 = vpop.f32.mrb[17].mxu1  ;;  %v2494_v45 = vpop.f32.mrb[18].mxu0  ;;  %v1602_v57 = vmax.f32 %v1482_v39, 0.0 }
 0x109   : > { %v1863_v46 = vld [vmem:[#allocation2 + $0x110] ss:$2 sm:$0x7f]  ;;  %v1923_v47 = vld [vmem:[#allocation2 + $0x111] ss:$2 sm:$0x7f]  ;;  %v1716_v48 = vmax.f32 %v1600_v19, %v1604_v35  ;;  %v2976_v49 = vadd.f32 %v2859_v9, %v1360_v36  ;;  %v1418_v50 = vmul.f32 %v2853_v2, %v1160_v44  ;;  %v1361_v52 = vmul.f32 %v2494_v45, %v2853_v2 }
 0x10a   : > { %v1965_v53 = vmax.f32 %v1863_v46, %v1923_v47  ;;  %v1861_v54 = vld [vmem:[#allocation2 + $0x100] ss:$2 sm:$0xff]  ;;  %v1921_v55 = vld [vmem:[#allocation2 + $0x101] ss:$2 sm:$0xff]  ;;  %v1547_v58 = vadd.f32 %v2859_v9, %v1420_v41  ;;  %v1662_v62 = vmax.f32 %v2971_v40, 0.0  ;;  %v2985_v63 = vadd.f32 %v2859_v9, %v1358_v42  ;;  %v2554_v3 = vpop.f32.mrb[18].mxu1 }
 0x10b   : > { %v1964_v61 = vmax.f32 %v1861_v54, %v1921_v55  ;;  %1776 = vst [vmem:[#allocation2 + $0x38] sm:$0xff] %v1716_v48  ;;  %v1545_v1 = vadd.f32 %v2859_v9, %v1418_v50  ;;  %v923_v4 = vpop.f32.mrb[19].mxu0  ;;  %v1714_v6 = vmax.f32 %v1598_v23, %v1602_v57  ;;  %v2989_v8 = vadd.f32 %v2859_v9, %v1361_v52  ;;  %v1163_v12 = vpop.f32.mrb[19].mxu1  ;;  %v2106_v57 = vld [vmem:[%s2927_s6 + $0xc] sm:$0xf] }
 0x10c   : > { %v2396_v5 = vpack.c.bf16 %v1965_v53, %v1965_v53  ;;  %v1667_v7 = vmax.f32 %v1547_v58, 0.0  ;;  %v1607_v14 = vmax.f32 %v2976_v49, 0.0  ;;  %v1421_v16 = vmul.f32 %v2554_v3, %v2853_v2 }
 0x10d   : > { %v2395_v13 = vpack.c.bf16 %v1964_v61, %v1964_v61  ;;  %v1665_v15 = vmax.f32 %v1545_v1, 0.0  ;;  %1774 = vst [vmem:[#allocation2 + $0x28] sm:$0xff] %v1714_v6  ;;  %v1605_v20 = vmax.f32 %v2985_v63, 0.0  ;;  %v1359_v21 = vmul.f32 %v2853_v2, %v923_v4 }
 0x10e   : > { %v2135_v17 = vsel %vm2940_vm5, %v2396_v5, %v2134_v59  ;;  %v1747_v19 = vmax.f32 %v1663_v33, %v1667_v7  ;;  %v2497_v22 = vpop.f32.mrb[20].mxu0  ;;  %v1548_v24 = vadd.f32 %v2859_v9, %v1421_v16  ;;  %v1419_v25 = vmul.f32 %v2853_v2, %v1163_v12  ;;  %v2557_v28 = vpop.f32.mrb[20].mxu1 }
 0x10f   : > { %2136 = vst [vmem:[%s2927_s6 + $0x44] sm:$0xf] %v2135_v17  ;;  %2133 = vst [vmem:[%s2927_s6 + $0x40] sm:$0xf] %v2395_v13  ;;  %v1745_v23 = vmax.f32 %v1661_v34, %v1665_v15  ;;  %v1364_v26 = vmul.f32 %v2497_v22, %v2853_v2  ;;  %v936_v29 = vpop.f32.mrb[21].mxu0  ;;  %v1608_v30 = vmax.f32 %v2989_v8, 0.0  ;;  %v3004_v31 = vadd.f32 %v2859_v9, %v1359_v21 }
 0x110   : > { %1807 = vst [vmem:[#allocation2 + $0x130] sm:$0xff] %v1747_v19  ;;  %v1424_v33 = vmul.f32 %v2557_v28, %v2853_v2  ;;  %v1362_v35 = vmul.f32 %v2853_v2, %v936_v29  ;;  %v1176_v36 = vpop.f32.mrb[21].mxu1  ;;  %v2498_v34 = vpop.f32.mrb[22].mxu0  ;;  %v1668_v37 = vmax.f32 %v1548_v24, 0.0  ;;  %v1546_v38 = vadd.f32 %v2859_v9, %v1419_v25 }
 0x111   : > { %1805 = vst [vmem:[#allocation2 + $0x120] sm:$0xff] %v1745_v23  ;;  %v1491_v39 = vadd.f32 %v2859_v9, %v1364_v26  ;;  %v1422_v40 = vmul.f32 %v2853_v2, %v1176_v36  ;;  %v2558_v41 = vpop.f32.mrb[22].mxu1  ;;  %v939_v42 = vpop.f32.mrb[23].mxu0  ;;  %v1365_v48 = vmul.f32 %v2498_v34, %v2853_v2  ;;  %v1606_v53 = vmax.f32 %v3004_v31, 0.0 }
 0x112   : > { %v1835_v44 = vld [vmem:[#allocation2 + $0x30] ss:$2 sm:$0x7f]  ;;  %v1895_v45 = vld [vmem:[#allocation2 + $0x31] ss:$2 sm:$0x7f]  ;;  %v3012_v46 = vadd.f32 %v2859_v9, %v1424_v33  ;;  %v1489_v47 = vadd.f32 %v2859_v9, %v1362_v35  ;;  %v1425_v49 = vmul.f32 %v2558_v41, %v2853_v2  ;;  %v1748_v52 = vmax.f32 %v1664_v56, %v1668_v37 }
 0x113   : > { %v1951_v50 = vmax.f32 %v1835_v44, %v1895_v45  ;;  %v1666_v54 = vmax.f32 %v1546_v38, 0.0  ;;  %v1179_v55 = vpop.f32.mrb[23].mxu1  ;;  %v1611_v58 = vmax.f32 %v1491_v39, 0.0  ;;  %v3021_v63 = vadd.f32 %v2859_v9, %v1422_v40 }
 0x114   : > { %v1671_v59 = vmax.f32 %v3012_v46, 0.0  ;;  %v1609_v61 = vmax.f32 %v1489_v47, 0.0  ;;  %v1833_v3 = vld [vmem:[#allocation2 + $0x20] ss:$2 sm:$0xff]  ;;  %v1893_v4 = vld [vmem:[#allocation2 + $0x21] ss:$2 sm:$0xff]  ;;  %v1492_v56 = vadd.f32 %v2859_v9, %v1365_v48  ;;  %v3025_v6 = vadd.f32 %v2859_v9, %v1425_v49 }
 0x115   : > { %v2382_v1 = vpack.c.bf16 %v1951_v50, %v1951_v50  ;;  %1808 = vst [vmem:[#allocation2 + $0x138] sm:$0xff] %v1748_v52  ;;  %v1746_v5 = vmax.f32 %v1662_v62, %v1666_v54  ;;  %v1950_v7 = vmax.f32 %v1833_v3, %v1893_v4  ;;  %v1719_v8 = vmax.f32 %v1607_v14, %v1611_v58  ;;  %v2138_v54 = vld [vmem:[%s2927_s6 + $0x4c] sm:$0xf] }
 0x116   : > { %v1717_v12 = vmax.f32 %v1605_v20, %v1609_v61  ;;  %v1669_v13 = vmax.f32 %v3021_v63, 0.0  ;;  %v2501_v15 = vpop.f32.mrb[24].mxu0  ;;  %v1612_v17 = vmax.f32 %v1492_v56, 0.0  ;;  %v1672_v19 = vmax.f32 %v3025_v6, 0.0  ;;  %v2561_v21 = vpop.f32.mrb[24].mxu1 }
 0x117   : > { %v2107_v16 = vsel %vm2940_vm5, %v2382_v1, %v2106_v57  ;;  %1806 = vst [vmem:[#allocation2 + $0x128] sm:$0xff] %v1746_v5  ;;  %v1363_v62 = vmul.f32 %v2853_v2, %v939_v42  ;;  %v952_v22 = vpop.f32.mrb[25].mxu0  ;;  %v2381_v23 = vpack.c.bf16 %v1950_v7, %v1950_v7  ;;  %1779 = vst [vmem:[#allocation2 + $0x50] sm:$0xff] %v1719_v8  ;;  %v1192_v25 = vpop.f32.mrb[25].mxu1 }
 0x118   : > { %2108 = vst [vmem:[%s2927_s6 + $0xc] sm:$0xf] %v2107_v16  ;;  %1777 = vst [vmem:[#allocation2 + $0x40] sm:$0xff] %v1717_v12  ;;  %v1423_v14 = vmul.f32 %v2853_v2, %v1179_v55  ;;  %v1368_v20 = vmul.f32 %v2501_v15, %v2853_v2  ;;  %v1428_v24 = vmul.f32 %v2561_v21, %v2853_v2  ;;  %v2502_v26 = vpop.f32.mrb[26].mxu0  ;;  %v2562_v35 = vpop.f32.mrb[26].mxu1 }
 0x119   : > { %v1720_v28 = vmax.f32 %v1608_v30, %v1612_v17  ;;  %v1490_v29 = vadd.f32 %v2859_v9, %v1363_v62  ;;  %v1366_v31 = vmul.f32 %v2853_v2, %v952_v22  ;;  %v1426_v33 = vmul.f32 %v2853_v2, %v1192_v25  ;;  %v955_v36 = vpop.f32.mrb[27].mxu0  ;;  %2105 = vst [vmem:[%s2927_s6 + $0x8] sm:$0xf] %v2381_v23  ;;  %v1195_v39 = vpop.f32.mrb[27].mxu1 }
 0x11a   : > { %v3041_v34 = vadd.f32 %v2859_v9, %v1423_v14  ;;  %v3044_v37 = vadd.f32 %v2859_v9, %v1368_v20  ;;  %v1555_v38 = vadd.f32 %v2859_v9, %v1428_v24  ;;  %v1369_v30 = vmul.f32 %v2502_v26, %v2853_v2 }
 0x11b   : > { %1780 = vst [vmem:[#allocation2 + $0x58] sm:$0xff] %v1720_v28  ;;  %v1610_v40 = vmax.f32 %v1490_v29, 0.0  ;;  %v3049_v41 = vadd.f32 %v2859_v9, %v1366_v31  ;;  %v1553_v42 = vadd.f32 %v2859_v9, %v1426_v33  ;;  %v1429_v44 = vmul.f32 %v2562_v35, %v2853_v2 }
 0x11c   : > { %v1867_v45 = vld [vmem:[#allocation2 + $0x130] ss:$2 sm:$0x7f]  ;;  %v1927_v47 = vld [vmem:[#allocation2 + $0x131] ss:$2 sm:$0x7f]  ;;  %v3054_v48 = vadd.f32 %v2859_v9, %v1369_v30  ;;  %v1367_v49 = vmul.f32 %v2853_v2, %v955_v36  ;;  %v1427_v50 = vmul.f32 %v2853_v2, %v1195_v39 }
 0x11d   : > { %v1967_v52 = vmax.f32 %v1867_v45, %v1927_v47  ;;  %v1718_v55 = vmax.f32 %v1606_v53, %v1610_v40  ;;  %v1670_v57 = vmax.f32 %v3041_v34, 0.0  ;;  %v1615_v58 = vmax.f32 %v3044_v37, 0.0  ;;  %v2110_v39 = vld [vmem:[%s2927_s6 + $0x14] sm:$0xf] }
 0x11e   : > { %v1865_v61 = vld [vmem:[#allocation2 + $0x120] ss:$2 sm:$0xff]  ;;  %v1925_v1 = vld [vmem:[#allocation2 + $0x121] ss:$2 sm:$0xff]  ;;  %v1675_v3 = vmax.f32 %v1555_v38, 0.0  ;;  %v1613_v4 = vmax.f32 %v3049_v41, 0.0  ;;  %v1556_v5 = vadd.f32 %v2859_v9, %v1429_v44  ;;  %v3064_v56 = vadd.f32 %v2859_v9, %v1367_v49 }
 0x11f   : > { %v2398_v7 = vpack.c.bf16 %v1967_v52, %v1967_v52  ;;  %v1966_v8 = vmax.f32 %v1865_v61, %v1925_v1  ;;  %1778 = vst [vmem:[#allocation2 + $0x48] sm:$0xff] %v1718_v55  ;;  %v1673_v12 = vmax.f32 %v1553_v42, 0.0  ;;  %v1616_v53 = vmax.f32 %v3054_v48, 0.0  ;;  %v2505_v15 = vpop.f32.mrb[28].mxu0  ;;  %v2565_v16 = vpop.f32.mrb[28].mxu1 }
 0x120   : > { %v1751_v17 = vmax.f32 %v1671_v59, %v1675_v3  ;;  %v1676_v62 = vmax.f32 %v1556_v5, 0.0  ;;  %v1614_v21 = vmax.f32 %v3064_v56, 0.0  ;;  %v1554_v22 = vadd.f32 %v2859_v9, %v1427_v50  ;;  %v968_v23 = vpop.f32.mrb[29].mxu0  ;;  %v1208_v14 = vpop.f32.mrb[29].mxu1 }
 0x121   : > { %v2139_v20 = vsel %vm2940_vm5, %v2398_v7, %v2138_v54  ;;  %v2397_v24 = vpack.c.bf16 %v1966_v8, %v1966_v8  ;;  %v1749_v25 = vmax.f32 %v1669_v13, %v1673_v12  ;;  %v1372_v26 = vmul.f32 %v2505_v15, %v2853_v2  ;;  %v2506_v28 = vpop.f32.mrb[30].mxu0  ;;  %v2566_v46 = vpop.f32.mrb[30].mxu1 }
 0x122   : > { %2140 = vst [vmem:[%s2927_s6 + $0x4c] sm:$0xf] %v2139_v20  ;;  %v1839_v59 = vld [vmem:[#allocation2 + $0x50] ss:$2 sm:$0x7f]  ;;  %1811 = vst [vmem:[#allocation2 + $0x150] sm:$0xff] %v1751_v17  ;;  %v1752_v31 = vmax.f32 %v1672_v19, %v1676_v62  ;;  %v1432_v33 = vmul.f32 %v2565_v16, %v2853_v2  ;;  %v1370_v35 = vmul.f32 %v2853_v2, %v968_v23 }
 0x123   : > { %v1899_v29 = vld [vmem:[#allocation2 + $0x51] ss:$2 sm:$0x7f]  ;;  %v1430_v36 = vmul.f32 %v2853_v2, %v1208_v14  ;;  %2137 = vst [vmem:[%s2927_s6 + $0x48] sm:$0xf] %v2397_v24  ;;  %1809 = vst [vmem:[#allocation2 + $0x140] sm:$0xff] %v1749_v25  ;;  %v1499_v34 = vadd.f32 %v2859_v9, %v1372_v26  ;;  %v1373_v37 = vmul.f32 %v2506_v28, %v2853_v2 }
 0x124   : > { %v1953_v63 = vmax.f32 %v1839_v59, %v1899_v29  ;;  %v1674_v13 = vmax.f32 %v1554_v22, 0.0  ;;  %v971_v38 = vpop.f32.mrb[31].mxu0  ;;  %v1211_v30 = vpop.f32.mrb[31].mxu1  ;;  %1812 = vst [vmem:[#allocation2 + $0x158] sm:$0xff] %v1752_v31  ;;  %v3087_v6 = vadd.f32 %v2859_v9, %v1432_v33  ;;  %v1497_v19 = vadd.f32 %v2859_v9, %v1370_v35 }
 0x125   : > { %v3091_v40 = vadd.f32 %v2859_v9, %v1430_v36  ;;  %v1433_v41 = vmul.f32 %v2566_v46, %v2853_v2  ;;  %v1619_v45 = vmax.f32 %v1499_v34, 0.0  ;;  %v1500_v47 = vadd.f32 %v2859_v9, %v1373_v37 }
 0x126   : > { %v2384_v42 = vpack.c.bf16 %v1953_v63, %v1953_v63  ;;  %v1750_v44 = vmax.f32 %v1670_v57, %v1674_v13  ;;  %v1837_v49 = vld [vmem:[#allocation2 + $0x40] ss:$2 sm:$0xff]  ;;  %v1897_v50 = vld [vmem:[#allocation2 + $0x41] ss:$2 sm:$0xff]  ;;  %v1679_v52 = vmax.f32 %v3087_v6, 0.0  ;;  %v1617_v54 = vmax.f32 %v1497_v19, 0.0 }
 0x127   : > { %v3097_v55 = vadd.f32 %v2859_v9, %v1433_v41  ;;  %v1371_v61 = vmul.f32 %v2853_v2, %v971_v38  ;;  %v1952_v3 = vmax.f32 %v1837_v49, %v1897_v50  ;;  %v1723_v57 = vmax.f32 %v1615_v58, %v1619_v45  ;;  %v2509_v7 = vpop.f32.mrb[32].mxu0  ;;  %v2569_v8 = vpop.f32.mrb[32].mxu1  ;;  %v2142_v38 = vld [vmem:[%s2927_s6 + $0x54] sm:$0xf] }
 0x128   : > { %v2111_v1 = vsel %vm2940_vm5, %v2384_v42, %v2110_v39  ;;  %1810 = vst [vmem:[#allocation2 + $0x148] sm:$0xff] %v1750_v44  ;;  %v1677_v5 = vmax.f32 %v3091_v40, 0.0  ;;  %v1721_v12 = vmax.f32 %v1613_v4, %v1617_v54  ;;  %v1620_v15 = vmax.f32 %v1500_v47, 0.0  ;;  %v984_v62 = vpop.f32.mrb[33].mxu0  ;;  %v1224_v22 = vpop.f32.mrb[33].mxu1 }
 0x129   : > { %2112 = vst [vmem:[%s2927_s6 + $0x14] sm:$0xf] %v2111_v1  ;;  %v1680_v16 = vmax.f32 %v3097_v55, 0.0  ;;  %v1498_v17 = vadd.f32 %v2859_v9, %v1371_v61  ;;  %v2383_v23 = vpack.c.bf16 %v1952_v3, %v1952_v3  ;;  %1783 = vst [vmem:[#allocation2 + $0x70] sm:$0xff] %v1723_v57  ;;  %v1431_v14 = vmul.f32 %v2853_v2, %v1211_v30  ;;  %v2510_v24 = vpop.f32.mrb[34].mxu0  ;;  %v2570_v25 = vpop.f32.mrb[34].mxu1 }
 0x12a   : > { %v1376_v58 = vmul.f32 %v2509_v7, %v2853_v2  ;;  %v1436_v20 = vmul.f32 %v2569_v8, %v2853_v2  ;;  %1781 = vst [vmem:[#allocation2 + $0x60] sm:$0xff] %v1721_v12  ;;  %v1724_v4 = vmax.f32 %v1616_v53, %v1620_v15  ;;  %v1374_v28 = vmul.f32 %v2853_v2, %v984_v62  ;;  %v987_v59 = vpop.f32.mrb[35].mxu0  ;;  %v1227_v29 = vpop.f32.mrb[35].mxu1 }
 0x12b   : > { %v1618_v26 = vmax.f32 %v1498_v17, 0.0  ;;  %v1434_v46 = vmul.f32 %v2853_v2, %v1224_v22  ;;  %2109 = vst [vmem:[%s2927_s6 + $0x10] sm:$0xf] %v2383_v23  ;;  %v1871_v31 = vld [vmem:[#allocation2 + $0x150] ss:$2 sm:$0x7f]  ;;  %v3115_v35 = vadd.f32 %v2859_v9, %v1431_v14  ;;  %v1377_v53 = vmul.f32 %v2510_v24, %v2853_v2 }
 0x12c   : > { %v1931_v33 = vld [vmem:[#allocation2 + $0x151] ss:$2 sm:$0x7f]  ;;  %v3118_v36 = vadd.f32 %v2859_v9, %v1376_v58  ;;  %v1563_v48 = vadd.f32 %v2859_v9, %v1436_v20  ;;  %1784 = vst [vmem:[#allocation2 + $0x78] sm:$0xff] %v1724_v4  ;;  %v3125_v34 = vadd.f32 %v2859_v9, %v1374_v28  ;;  %v1437_v44 = vmul.f32 %v2570_v25, %v2853_v2 }
 0x12d   : > { %v1969_v63 = vmax.f32 %v1871_v31, %v1931_v33  ;;  %v1722_v13 = vmax.f32 %v1614_v21, %v1618_v26  ;;  %v1561_v37 = vadd.f32 %v2859_v9, %v1434_v46  ;;  %v1678_v30 = vmax.f32 %v3115_v35, 0.0  ;;  %v2114_v33 = vld [vmem:[%s2927_s6 + $0x1c] sm:$0xf] }
 0x12e   : > { %v1623_v39 = vmax.f32 %v3118_v36, 0.0  ;;  %v1683_v6 = vmax.f32 %v1563_v48, 0.0  ;;  %v3132_v19 = vadd.f32 %v2859_v9, %v1377_v53  ;;  %v1621_v56 = vmax.f32 %v3125_v34, 0.0  ;;  %v2513_v54 = vpop.f32.mrb[36].mxu0  ;;  %v2573_v61 = vpop.f32.mrb[36].mxu1 }
 0x12f   : > { %v2400_v40 = vpack.c.bf16 %v1969_v63, %v1969_v63  ;;  %v1869_v41 = vld [vmem:[#allocation2 + $0x140] ss:$2 sm:$0xff]  ;;  %v1929_v42 = vld [vmem:[#allocation2 + $0x141] ss:$2 sm:$0xff]  ;;  %1782 = vst [vmem:[#allocation2 + $0x68] sm:$0xff] %v1722_v13  ;;  %v1681_v21 = vmax.f32 %v1561_v37, 0.0  ;;  %v1375_v50 = vmul.f32 %v2853_v2, %v987_v59  ;;  %v1564_v57 = vadd.f32 %v2859_v9, %v1437_v44 }
 0x130   : > { %v1968_v45 = vmax.f32 %v1869_v41, %v1929_v42  ;;  %v1755_v47 = vmax.f32 %v1679_v52, %v1683_v6  ;;  %v1624_v49 = vmax.f32 %v3132_v19, 0.0  ;;  %v1435_v7 = vmul.f32 %v2853_v2, %v1227_v29  ;;  %v1000_v8 = vpop.f32.mrb[37].mxu0  ;;  %v1240_v12 = vpop.f32.mrb[37].mxu1 }
 0x131   : > { %v2143_v1 = vsel %vm2940_vm5, %v2400_v40, %v2142_v38  ;;  %v1753_v3 = vmax.f32 %v1677_v5, %v1681_v21  ;;  %v3144_v52 = vadd.f32 %v2859_v9, %v1375_v50  ;;  %v1380_v17 = vmul.f32 %v2513_v54, %v2853_v2  ;;  %v2514_v22 = vpop.f32.mrb[38].mxu0  ;;  %v2574_v23 = vpop.f32.mrb[38].mxu1 }
 0x132   : > { %2144 = vst [vmem:[%s2927_s6 + $0x54] sm:$0xf] %v2143_v1  ;;  %v2399_v15 = vpack.c.bf16 %v1968_v45, %v1968_v45  ;;  %1815 = vst [vmem:[#allocation2 + $0x170] sm:$0xff] %v1755_v47  ;;  %v1440_v62 = vmul.f32 %v2573_v61, %v2853_v2  ;;  %v1684_v5 = vmax.f32 %v1564_v57, 0.0  ;;  %v1562_v14 = vadd.f32 %v2859_v9, %v1435_v7  ;;  %v1003_v24 = vpop.f32.mrb[39].mxu0  ;;  %v1243_v25 = vpop.f32.mrb[39].mxu1 }
 0x133   : > { %1813 = vst [vmem:[#allocation2 + $0x160] sm:$0xff] %v1753_v3  ;;  %v1378_v58 = vmul.f32 %v2853_v2, %v1000_v8  ;;  %v1438_v20 = vmul.f32 %v2853_v2, %v1240_v12  ;;  %v1843_v4 = vld [vmem:[#allocation2 + $0x70] ss:$2 sm:$0x7f]  ;;  %v1507_v28 = vadd.f32 %v2859_v9, %v1380_v17  ;;  %v1381_v59 = vmul.f32 %v2514_v22, %v2853_v2 }
 0x134   : > { %2141 = vst [vmem:[%s2927_s6 + $0x50] sm:$0xf] %v2399_v15  ;;  %v1903_v26 = vld [vmem:[#allocation2 + $0x71] ss:$2 sm:$0x7f]  ;;  %v3154_v46 = vadd.f32 %v2859_v9, %v1440_v62  ;;  %v1441_v29 = vmul.f32 %v2574_v23, %v2853_v2  ;;  %v1756_v35 = vmax.f32 %v1680_v16, %v1684_v5  ;;  %v1622_v36 = vmax.f32 %v3144_v52, 0.0 }
 0x135   : > { %v1955_v31 = vmax.f32 %v1843_v4, %v1903_v26  ;;  %v1682_v48 = vmax.f32 %v1562_v14, 0.0  ;;  %v1627_v13 = vmax.f32 %v1507_v28, 0.0  ;;  %v1505_v38 = vadd.f32 %v2859_v9, %v1378_v58 }
 0x136   : > { %v1841_v53 = vld [vmem:[#allocation2 + $0x60] ss:$2 sm:$0xff]  ;;  %v1901_v63 = vld [vmem:[#allocation2 + $0x61] ss:$2 sm:$0xff]  ;;  %v1687_v37 = vmax.f32 %v3154_v46, 0.0  ;;  %v3165_v6 = vadd.f32 %v2859_v9, %v1438_v20  ;;  %1816 = vst [vmem:[#allocation2 + $0x178] sm:$0xff] %v1756_v35  ;;  %v1508_v55 = vadd.f32 %v2859_v9, %v1381_v59  ;;  %v3170_v47 = vadd.f32 %v2859_v9, %v1441_v29 }
 0x137   : > { %v2386_v40 = vpack.c.bf16 %v1955_v31, %v1955_v31  ;;  %v1954_v41 = vmax.f32 %v1841_v53, %v1901_v63  ;;  %v1754_v42 = vmax.f32 %v1678_v30, %v1682_v48  ;;  %v2517_v16 = vpop.f32.mrb[40].mxu0  ;;  %v1727_v21 = vmax.f32 %v1623_v39, %v1627_v13  ;;  %v2577_v50 = vpop.f32.mrb[40].mxu1  ;;  %v2146_v35 = vld [vmem:[%s2927_s6 + $0x5c] sm:$0xf] }
 0x138   : > { %v1625_v44 = vmax.f32 %v1505_v38, 0.0  ;;  %v1685_v45 = vmax.f32 %v3165_v6, 0.0  ;;  %v1016_v54 = vpop.f32.mrb[41].mxu0  ;;  %v1628_v30 = vmax.f32 %v1508_v55, 0.0  ;;  %v1379_v3 = vmul.f32 %v2853_v2, %v1003_v24  ;;  %v1256_v57 = vpop.f32.mrb[41].mxu1 }
 0x139   : > { %v2115_v61 = vsel %vm2940_vm5, %v2386_v40, %v2114_v33  ;;  %v2385_v1 = vpack.c.bf16 %v1954_v41, %v1954_v41  ;;  %1814 = vst [vmem:[#allocation2 + $0x168] sm:$0xff] %v1754_v42  ;;  %v2518_v7 = vpop.f32.mrb[42].mxu0  ;;  %1787 = vst [vmem:[#allocation2 + $0x90] sm:$0xff] %v1727_v21  ;;  %v1688_v8 = vmax.f32 %v3170_v47, 0.0  ;;  %v1439_v12 = vmul.f32 %v2853_v2, %v1243_v25  ;;  %v2578_v52 = vpop.f32.mrb[42].mxu1 }
 0x13a   : > { %2116 = vst [vmem:[%s2927_s6 + $0x1c] sm:$0xf] %v2115_v61  ;;  %v1725_v39 = vmax.f32 %v1621_v56, %v1625_v44  ;;  %v1384_v15 = vmul.f32 %v2517_v16, %v2853_v2  ;;  %v1019_v17 = vpop.f32.mrb[43].mxu0  ;;  %v1728_v62 = vmax.f32 %v1624_v49, %v1628_v30  ;;  %v1506_v22 = vadd.f32 %v2859_v9, %v1379_v3  ;;  %v1259_v34 = vpop.f32.mrb[43].mxu1 }
 0x13b   : > { %2113 = vst [vmem:[%s2927_s6 + $0x18] sm:$0xf] %v2385_v1  ;;  %v1444_v23 = vmul.f32 %v2577_v50, %v2853_v2  ;;  %v1382_v5 = vmul.f32 %v2853_v2, %v1016_v54  ;;  %v3188_v56 = vadd.f32 %v2859_v9, %v1439_v12  ;;  %v1442_v58 = vmul.f32 %v2853_v2, %v1256_v57 }
 0x13c   : > { %1785 = vst [vmem:[#allocation2 + $0x80] sm:$0xff] %v1725_v39  ;;  %v3191_v14 = vadd.f32 %v2859_v9, %v1384_v15  ;;  %v1385_v19 = vmul.f32 %v2518_v7, %v2853_v2  ;;  %1788 = vst [vmem:[#allocation2 + $0x98] sm:$0xff] %v1728_v62  ;;  %v1626_v49 = vmax.f32 %v1506_v22, 0.0  ;;  %v1445_v25 = vmul.f32 %v2578_v52, %v2853_v2 }
 0x13d   : > { %v1571_v20 = vadd.f32 %v2859_v9, %v1444_v23  ;;  %v3197_v24 = vadd.f32 %v2859_v9, %v1382_v5  ;;  %v1875_v4 = vld [vmem:[#allocation2 + $0x170] ss:$2 sm:$0x7f]  ;;  %v1935_v26 = vld [vmem:[#allocation2 + $0x171] ss:$2 sm:$0x7f]  ;;  %v1569_v28 = vadd.f32 %v2859_v9, %v1442_v58  ;;  %v1383_v29 = vmul.f32 %v2853_v2, %v1019_v17 }
 0x13e   : > { %v3202_v59 = vadd.f32 %v2859_v9, %v1385_v19  ;;  %v1443_v31 = vmul.f32 %v2853_v2, %v1259_v34  ;;  %v1971_v33 = vmax.f32 %v1875_v4, %v1935_v26  ;;  %v1726_v48 = vmax.f32 %v1622_v36, %v1626_v49  ;;  %v2521_v13 = vpop.f32.mrb[44].mxu0  ;;  %v2581_v50 = vpop.f32.mrb[44].mxu1 }
 0x13f   : > { %v1686_v53 = vmax.f32 %v3188_v56, 0.0  ;;  %v1631_v63 = vmax.f32 %v3191_v14, 0.0  ;;  %v1691_v41 = vmax.f32 %v1571_v20, 0.0  ;;  %v1629_v42 = vmax.f32 %v3197_v24, 0.0  ;;  %v1032_v54 = vpop.f32.mrb[45].mxu0  ;;  %v1272_v57 = vpop.f32.mrb[45].mxu1 }
 0x140   : > { %v1873_v38 = vld [vmem:[#allocation2 + $0x160] ss:$2 sm:$0xff]  ;;  %v1933_v40 = vld [vmem:[#allocation2 + $0x161] ss:$2 sm:$0xff]  ;;  %v1572_v55 = vadd.f32 %v2859_v9, %v1445_v25  ;;  %v3212_v16 = vadd.f32 %v2859_v9, %v1383_v29  ;;  %v2402_v21 = vpack.c.bf16 %v1971_v33, %v1971_v33  ;;  %1786 = vst [vmem:[#allocation2 + $0x88] sm:$0xff] %v1726_v48  ;;  %v1689_v44 = vmax.f32 %v1569_v28, 0.0 }
 0x141   : > { %v1970_v2 = vmax.f32 %v1873_v38, %v1933_v40  ;;  %v1632_v36 = vmax.f32 %v3202_v59, 0.0  ;;  %v1759_v61 = vmax.f32 %v1687_v37, %v1691_v41  ;;  %v3221_v9 = vld [vmem:[%s3393_s3] ss:$0 sm:$0xff]  ;;  %v2522_v7 = vpop.f32.mrb[46].mxu0  ;;  %v2582_v52 = vpop.f32.mrb[46].mxu1 }
 0x142   : > { %v1692_v1 = vmax.f32 %v1572_v55, 0.0  ;;  %v1630_v30 = vmax.f32 %v3212_v16, 0.0  ;;  %v1570_v3 = vadd.f32 %v3221_v9, %v1443_v31  ;;  %v2147_v39 = vsel %vm2940_vm5, %v2402_v21, %v2146_v35  ;;  %v3231_v37 = vld [vmem:[%s3392_s2] ss:$0 sm:$0xff]  ;;  %v1035_v17 = vpop.f32.mrb[47].mxu0  ;;  %v1275_v49 = vpop.f32.mrb[47].mxu1 }
 0x143   : > { %v2401_v12 = vpack.c.bf16 %v1970_v2, %v1970_v2  ;;  %v1757_v46 = vmax.f32 %v1685_v45, %v1689_v44  ;;  %v1388_v15 = vmul.f32 %v3231_v37, %v2521_v13  ;;  %2148 = vst [vmem:[%s2927_s6 + $0x5c] sm:$0xf] %v2147_v39  ;;  %v1847_v62 = vld [vmem:[#allocation2 + $0x90] ss:$2 sm:$0x7f]  ;;  %1819 = vst [vmem:[#allocation2 + $0x190] sm:$0xff] %v1759_v61 }
 0x144   : > { %v1907_v22 = vld [vmem:[#allocation2 + $0x91] ss:$2 sm:$0x7f]  ;;  %v1760_v23 = vmax.f32 %v1688_v8, %v1692_v1  ;;  %v1448_v6 = vmul.f32 %v3231_v37, %v2581_v50  ;;  %v1386_v45 = vmul.f32 %v3231_v37, %v1032_v54  ;;  %v1446_v5 = vmul.f32 %v3231_v37, %v1272_v57  ;;  %v2118_v20 = vld [vmem:[%s2927_s6 + $0x24] sm:$0xf] }
 0x145   : > { %2145 = vst [vmem:[%s2927_s6 + $0x58] sm:$0xf] %v2401_v12  ;;  %v1957_v34 = vmax.f32 %v1847_v62, %v1907_v22  ;;  %1817 = vst [vmem:[#allocation2 + $0x180] sm:$0xff] %v1757_v46  ;;  %v1690_v56 = vmax.f32 %v1570_v3, 0.0  ;;  %v1515_v58 = vadd.f32 %v3221_v9, %v1388_v15  ;;  %v1389_v19 = vmul.f32 %v3231_v37, %v2522_v7 }
 0x146   : > { %1820 = vst [vmem:[#allocation2 + $0x198] sm:$0xff] %v1760_v23  ;;  %v3245_v47 = vadd.f32 %v3221_v9, %v1448_v6  ;;  %v1513_v8 = vadd.f32 %v3221_v9, %v1386_v45  ;;  %v3249_v25 = vadd.f32 %v3221_v9, %v1446_v5  ;;  %v1449_v4 = vmul.f32 %v3231_v37, %v2582_v52  ;;  %v2525_v33 = vpop.f32.mrb[48].mxu0  ;;  %v2585_v2 = vpop.f32.mrb[48].mxu1  ;;  %v2150_v5 = vld [vmem:[%s2927_s6 + $0x64] sm:$0xf] }
 0x147   : > { %v2388_v26 = vpack.c.bf16 %v1957_v34, %v1957_v34  ;;  %v1758_v28 = vmax.f32 %v1686_v53, %v1690_v56  ;;  %v1635_v29 = vmax.f32 %v1515_v58, 0.0  ;;  %v1516_v31 = vadd.f32 %v3221_v9, %v1389_v19  ;;  %v1845_v35 = vld [vmem:[#allocation2 + $0x80] ss:$2 sm:$0xff]  ;;  %v1905_v48 = vld [vmem:[#allocation2 + $0x81] ss:$2 sm:$0xff]  ;;  %v1048_v44 = vpop.f32.mrb[49].mxu0 }
 0x148   : > { %v1695_v13 = vmax.f32 %v3245_v47, 0.0  ;;  %v1633_v38 = vmax.f32 %v1513_v8, 0.0  ;;  %v1387_v40 = vmul.f32 %v3231_v37, %v1035_v17  ;;  %v1956_v55 = vmax.f32 %v1845_v35, %v1905_v48  ;;  %v1288_v3 = vpop.f32.mrb[49].mxu1  ;;  %v2526_v57 = vpop.f32.mrb[50].mxu0 }
 0x149   : > { %v2119_v41 = vsel %vm2940_vm5, %v2388_v26, %v2118_v20  ;;  %1818 = vst [vmem:[#allocation2 + $0x188] sm:$0xff] %v1758_v28  ;;  %v1731_v53 = vmax.f32 %v1631_v63, %v1635_v29  ;;  %v3260_v21 = vadd.f32 %v3221_v9, %v1449_v4  ;;  %v1693_v54 = vmax.f32 %v3249_v25, 0.0  ;;  %v2586_v12 = vpop.f32.mrb[50].mxu1  ;;  %v1051_v24 = vpop.f32.mrb[51].mxu0 }
 0x14a   : > { %2120 = vst [vmem:[%s2927_s6 + $0x24] sm:$0xf] %v2119_v41  ;;  %v1729_v50 = vmax.f32 %v1629_v42, %v1633_v38  ;;  %v1636_v61 = vmax.f32 %v1516_v31, 0.0  ;;  %v1514_v1 = vadd.f32 %v3221_v9, %v1387_v40  ;;  %v2387_v7 = vpack.c.bf16 %v1956_v55, %v1956_v55  ;;  %v1291_v17 = vpop.f32.mrb[51].mxu1 }
 0x14b   : > { %1791 = vst [vmem:[#allocation2 + $0xb0] sm:$0xff] %v1731_v53  ;;  %v1447_v14 = vmul.f32 %v3231_v37, %v1275_v49  ;;  %v1392_v63 = vmul.f32 %v3231_v37, %v2525_v33  ;;  %v1452_v39 = vmul.f32 %v3231_v37, %v2585_v2  ;;  %v1390_v15 = vmul.f32 %v3231_v37, %v1048_v44 }
 0x14c   : > { %1789 = vst [vmem:[#allocation2 + $0xa0] sm:$0xff] %v1729_v50  ;;  %v1732_v42 = vmax.f32 %v1632_v36, %v1636_v61  ;;  %v1634_v46 = vmax.f32 %v1514_v1, 0.0  ;;  %v1450_v52 = vmul.f32 %v3231_v37, %v1288_v3  ;;  %2117 = vst [vmem:[%s2927_s6 + $0x20] sm:$0xf] %v2387_v7  ;;  %v1393_v59 = vmul.f32 %v3231_v37, %v2526_v57 }
 0x14d   : > { %v1879_v62 = vld [vmem:[#allocation2 + $0x190] ss:$2 sm:$0x7f]  ;;  %v1939_v22 = vld [vmem:[#allocation2 + $0x191] ss:$2 sm:$0x7f]  ;;  %v3276_v23 = vadd.f32 %v3221_v9, %v1447_v14  ;;  %v3279_v6 = vadd.f32 %v3221_v9, %v1392_v63  ;;  %v1579_v45 = vadd.f32 %v3221_v9, %v1452_v39  ;;  %v3287_v56 = vadd.f32 %v3221_v9, %v1390_v15 }
 0x14e   : > { %v1973_v36 = vmax.f32 %v1879_v62, %v1939_v22  ;;  %1792 = vst [vmem:[#allocation2 + $0xb8] sm:$0xff] %v1732_v42  ;;  %v1730_v34 = vmax.f32 %v1630_v30, %v1634_v46  ;;  %v1577_v58 = vadd.f32 %v3221_v9, %v1450_v52  ;;  %v1696_v19 = vmax.f32 %v3260_v21, 0.0  ;;  %v2529_v8 = vpop.f32.mrb[52].mxu0  ;;  %v2589_v48 = vpop.f32.mrb[52].mxu1 }
 0x14f   : > { %v1694_v49 = vmax.f32 %v3276_v23, 0.0  ;;  %v1639_v20 = vmax.f32 %v3279_v6, 0.0  ;;  %v1699_v47 = vmax.f32 %v1579_v45, 0.0  ;;  %v3294_v30 = vadd.f32 %v3221_v9, %v1393_v59  ;;  %v1064_v38 = vpop.f32.mrb[53].mxu0  ;;  %v1304_v21 = vpop.f32.mrb[53].mxu1 }
 0x150   : > { %v2404_v25 = vpack.c.bf16 %v1973_v36, %v1973_v36  ;;  %v1877_v4 = vld [vmem:[#allocation2 + $0x180] ss:$2 sm:$0xff]  ;;  %v1937_v26 = vld [vmem:[#allocation2 + $0x181] ss:$2 sm:$0xff]  ;;  %1790 = vst [vmem:[#allocation2 + $0xa8] sm:$0xff] %v1730_v34  ;;  %v1697_v16 = vmax.f32 %v1577_v58, 0.0  ;;  %v1453_v28 = vmul.f32 %v3231_v37, %v2586_v12  ;;  %v1391_v35 = vmul.f32 %v3231_v37, %v1051_v24 }
 0x151   : > { %v1972_v29 = vmax.f32 %v1877_v4, %v1937_v26  ;;  %v1763_v31 = vmax.f32 %v1695_v13, %v1699_v47  ;;  %v1637_v33 = vmax.f32 %v3287_v56, 0.0  ;;  %v1451_v53 = vmul.f32 %v3231_v37, %v1291_v17  ;;  %v2530_v2 = vpop.f32.mrb[54].mxu0  ;;  %v2590_v1 = vpop.f32.mrb[54].mxu1  ;;  %v2122_v17 = vld [vmem:[%s2927_s6 + $0x2c] sm:$0xf] }
 0x152   : > { %v2151_v40 = vsel %vm2940_vm5, %v2404_v25, %v2150_v5  ;;  %v1761_v41 = vmax.f32 %v1693_v54, %v1697_v16  ;;  %v1580_v55 = vadd.f32 %v3221_v9, %v1453_v28  ;;  %v3305_v13 = vadd.f32 %v3221_v9, %v1391_v35  ;;  %v1067_v54 = vpop.f32.mrb[55].mxu0  ;;  %v1307_v63 = vpop.f32.mrb[55].mxu1 }
 0x153   : > { %2152 = vst [vmem:[%s2927_s6 + $0x64] sm:$0xf] %v2151_v40  ;;  %v2403_v44 = vpack.c.bf16 %v1972_v29, %v1972_v29  ;;  %1823 = vst [vmem:[#allocation2 + $0x1b0] sm:$0xff] %v1763_v31  ;;  %v1396_v50 = vmul.f32 %v3231_v37, %v2529_v8  ;;  %v1456_v61 = vmul.f32 %v3231_v37, %v2589_v48  ;;  %v1640_v62 = vmax.f32 %v3294_v30, 0.0 }
 0x154   : > { %1821 = vst [vmem:[#allocation2 + $0x1a0] sm:$0xff] %v1761_v41  ;;  %v1700_v3 = vmax.f32 %v1580_v55, 0.0  ;;  %v1578_v57 = vadd.f32 %v3221_v9, %v1451_v53  ;;  %v1394_v7 = vmul.f32 %v3231_v37, %v1064_v38  ;;  %v1454_v14 = vmul.f32 %v3231_v37, %v1304_v21 }
 0x155   : > { %2149 = vst [vmem:[%s2927_s6 + $0x60] sm:$0xf] %v2403_v44  ;;  %v1851_v39 = vld [vmem:[#allocation2 + $0xb0] ss:$2 sm:$0x7f]  ;;  %v1523_v24 = vadd.f32 %v3221_v9, %v1396_v50  ;;  %v3315_v42 = vadd.f32 %v3221_v9, %v1456_v61  ;;  %v1397_v46 = vmul.f32 %v3231_v37, %v2530_v2  ;;  %v1457_v15 = vmul.f32 %v3231_v37, %v2590_v1 }
 0x156   : > { %v1911_v12 = vld [vmem:[#allocation2 + $0xb1] ss:$2 sm:$0x7f]  ;;  %v1764_v22 = vmax.f32 %v1696_v19, %v1700_v3  ;;  %v1698_v23 = vmax.f32 %v1578_v57, 0.0  ;;  %v1638_v59 = vmax.f32 %v3305_v13, 0.0  ;;  %v1521_v5 = vadd.f32 %v3221_v9, %v1394_v7  ;;  %v2533_v4 = vpop.f32.mrb[56].mxu0 }
 0x157   : > { %v1959_v52 = vmax.f32 %v1851_v39, %v1911_v12  ;;  %v1849_v6 = vld [vmem:[#allocation2 + $0xa0] ss:$2 sm:$0xff]  ;;  %v1909_v45 = vld [vmem:[#allocation2 + $0xa1] ss:$2 sm:$0xff]  ;;  %v1643_v36 = vmax.f32 %v1523_v24, 0.0  ;;  %v3324_v34 = vadd.f32 %v3221_v9, %v1454_v14  ;;  %v1524_v25 = vadd.f32 %v3221_v9, %v1397_v46  ;;  %v2593_v19 = vpop.f32.mrb[56].mxu1 }
 0x158   : > { %v1958_v47 = vmax.f32 %v1849_v6, %v1909_v45  ;;  %1824 = vst [vmem:[#allocation2 + $0x1b8] sm:$0xff] %v1764_v22  ;;  %v1762_v8 = vmax.f32 %v1694_v49, %v1698_v23  ;;  %v1703_v16 = vmax.f32 %v3315_v42, 0.0  ;;  %v1641_v30 = vmax.f32 %v1521_v5, 0.0  ;;  %v1080_v29 = vpop.f32.mrb[57].mxu0  ;;  %v1320_v31 = vpop.f32.mrb[57].mxu1 }
 0x159   : > { %v2390_v58 = vpack.c.bf16 %v1959_v52, %v1959_v52  ;;  %v1735_v26 = vmax.f32 %v1639_v20, %v1643_v36  ;;  %v3329_v28 = vadd.f32 %v3221_v9, %v1457_v15  ;;  %v1644_v49 = vmax.f32 %v1524_v25, 0.0  ;;  %v2534_v40 = vpop.f32.mrb[58].mxu0  ;;  %v2594_v41 = vpop.f32.mrb[58].mxu1 }
 0x15a   : > { %v2389_v48 = vpack.c.bf16 %v1958_v47, %v1958_v47  ;;  %1822 = vst [vmem:[#allocation2 + $0x1a8] sm:$0xff] %v1762_v8  ;;  %v1395_v38 = vmul.f32 %v3231_v37, %v1067_v54  ;;  %v1733_v20 = vmax.f32 %v1637_v33, %v1641_v30  ;;  %v1701_v55 = vmax.f32 %v3324_v34, 0.0  ;;  %v1083_v2 = vpop.f32.mrb[59].mxu0  ;;  %v1323_v44 = vpop.f32.mrb[59].mxu1 }
 0x15b   : > { %v2123_v35 = vsel %vm2940_vm5, %v2390_v58, %v2122_v17  ;;  %1795 = vst [vmem:[#allocation2 + $0xd0] sm:$0xff] %v1735_v26  ;;  %v1455_v53 = vmul.f32 %v3231_v37, %v1307_v63  ;;  %v1400_v21 = vmul.f32 %v3231_v37, %v2533_v4  ;;  %v1736_v13 = vmax.f32 %v1640_v62, %v1644_v49  ;;  %v2154_v17 = vld [vmem:[%s2927_s6 + $0x6c] sm:$0xf]  ;;  %v2126_v49 = vld [vmem:[%s2927_s6 + $0x34] sm:$0xf] }
 0x15c   : > { %2124 = vst [vmem:[%s2927_s6 + $0x2c] sm:$0xf] %v2123_v35  ;;  %2121 = vst [vmem:[%s2927_s6 + $0x28] sm:$0xf] %v2389_v48  ;;  %v1522_v50 = vadd.f32 %v3221_v9, %v1395_v38  ;;  %v1460_v61 = vmul.f32 %v3231_v37, %v2593_v19  ;;  %v1398_v1 = vmul.f32 %v3231_v37, %v1080_v29  ;;  %v1704_v56 = vmax.f32 %v3329_v28, 0.0 }
 0x15d   : > { %1793 = vst [vmem:[#allocation2 + $0xc0] sm:$0xff] %v1733_v20  ;;  %v1527_v33 = vadd.f32 %v3221_v9, %v1400_v21  ;;  %v1458_v54 = vmul.f32 %v3231_v37, %v1320_v31  ;;  %v1401_v3 = vmul.f32 %v3231_v37, %v2534_v40  ;;  %1796 = vst [vmem:[#allocation2 + $0xd8] sm:$0xff] %v1736_v13  ;;  %v2130_v13 = vld [vmem:[%s2927_s6 + $0x3c] sm:$0xf] }
 0x15e   : > { %v1642_v57 = vmax.f32 %v1522_v50, 0.0  ;;  %v1587_v7 = vadd.f32 %v3221_v9, %v1460_v61  ;;  %v1525_v14 = vadd.f32 %v3221_v9, %v1398_v1  ;;  %v1461_v63 = vmul.f32 %v3231_v37, %v2594_v41 }
 0x15f   : > { %v1883_v39 = vld [vmem:[#allocation2 + $0x1b0] ss:$2 sm:$0x7f]  ;;  %v1943_v12 = vld [vmem:[#allocation2 + $0x1b1] ss:$2 sm:$0x7f]  ;;  %v1582_v24 = vadd.f32 %v3221_v9, %v1455_v53  ;;  %v1585_v42 = vadd.f32 %v3221_v9, %v1458_v54  ;;  %v1528_v46 = vadd.f32 %v3221_v9, %v1401_v3  ;;  %v1399_v15 = vmul.f32 %v3231_v37, %v1083_v2 }
 0x160   : > { %v1975_v52 = vmax.f32 %v1883_v39, %v1943_v12  ;;  %v1734_v62 = vmax.f32 %v1638_v59, %v1642_v57  ;;  %v1647_v22 = vmax.f32 %v1527_v33, 0.0  ;;  %v1459_v23 = vmul.f32 %v3231_v37, %v1323_v44  ;;  %v2158_v33 = vld [vmem:[%s2927_s6 + $0x74] sm:$0xf] }
 0x161   : > { %v1881_v6 = vld [vmem:[#allocation2 + $0x1a0] ss:$2 sm:$0xff]  ;;  %v1941_v45 = vld [vmem:[#allocation2 + $0x1a1] ss:$2 sm:$0xff]  ;;  %v1707_v36 = vmax.f32 %v1587_v7, 0.0  ;;  %v1645_v5 = vmax.f32 %v1525_v14, 0.0  ;;  %v1588_v34 = vadd.f32 %v3221_v9, %v1461_v63  ;;  %v1526_v58 = vadd.f32 %v3221_v9, %v1399_v15 }
 0x162   : > { %v2406_v47 = vpack.c.bf16 %v1975_v52, %v1975_v52  ;;  %v1974_v8 = vmax.f32 %v1881_v6, %v1941_v45  ;;  %1794 = vst [vmem:[#allocation2 + $0xc8] sm:$0xff] %v1734_v62  ;;  %v1739_v25 = vmax.f32 %v1647_v22, %v1651_v32  ;;  %v1705_v4 = vmax.f32 %v1585_v42, 0.0 }
 0x163   : > { %v1767_v59 = vmax.f32 %v1703_v16, %v1707_v36  ;;  %v1737_v37 = vmax.f32 %v1645_v5, %v1649_v60  ;;  %v1648_v19 = vmax.f32 %v1528_v46, 0.0  ;;  %v1708_v26 = vmax.f32 %v1588_v34, 0.0 }
 0x164   : > { %v2155_v30 = vsel %vm2940_vm5, %v2406_v47, %v2154_v17  ;;  %v2405_v28 = vpack.c.bf16 %v1974_v8, %v1974_v8  ;;  %1799 = vst [vmem:[#allocation2 + $0xf0] sm:$0xff] %v1739_v25  ;;  %v1765_v29 = vmax.f32 %v1701_v55, %v1705_v4  ;;  %v1646_v31 = vmax.f32 %v1526_v58, 0.0  ;;  %v1855_v35 = vld [vmem:[#allocation2 + $0xd0] ss:$2 sm:$0x7f] }
 0x165   : > { %2156 = vst [vmem:[%s2927_s6 + $0x6c] sm:$0xf] %v2155_v30  ;;  %v1915_v18 = vld [vmem:[#allocation2 + $0xd1] ss:$2 sm:$0x7f]  ;;  %1827 = vst [vmem:[#allocation2 + $0x1d0] sm:$0xff] %v1767_v59  ;;  %v1740_v27 = vmax.f32 %v1648_v19, %v1652_v10  ;;  %v1768_v32 = vmax.f32 %v1704_v56, %v1708_v26  ;;  %v1586_v60 = vadd.f32 %v3221_v9, %v1459_v23 }
 0x166   : > { %1797 = vst [vmem:[#allocation2 + $0xe0] sm:$0xff] %v1737_v37  ;;  %2153 = vst [vmem:[%s2927_s6 + $0x68] sm:$0xf] %v2405_v28  ;;  %v1961_v16 = vmax.f32 %v1855_v35, %v1915_v18  ;;  %v1738_v48 = vmax.f32 %v1646_v31, %v1650_v11  ;;  %v1702_v38 = vmax.f32 %v1582_v24, 0.0 }
 0x167   : > { %1825 = vst [vmem:[#allocation2 + $0x1c0] sm:$0xff] %v1765_v29  ;;  %1800 = vst [vmem:[#allocation2 + $0xf8] sm:$0xff] %v1740_v27  ;;  %v1706_v40 = vmax.f32 %v1586_v60, 0.0 }
 0x168   : > { %1828 = vst [vmem:[#allocation2 + $0x1d8] sm:$0xff] %v1768_v32  ;;  %v2392_v41 = vpack.c.bf16 %v1961_v16, %v1961_v16  ;;  %1798 = vst [vmem:[#allocation2 + $0xe8] sm:$0xff] %v1738_v48 }
 0x169   : > { %v1853_v43 = vld [vmem:[#allocation2 + $0xc0] ss:$2 sm:$0xff]  ;;  %v1913_v10 = vld [vmem:[#allocation2 + $0xc1] ss:$2 sm:$0xff]  ;;  %v1766_v20 = vmax.f32 %v1702_v38, %v1706_v40 }
 0x16a   : > { %v2127_v9 = vsel %vm2940_vm5, %v2392_v41, %v2126_v49  ;;  %v1960_v55 = vmax.f32 %v1853_v43, %v1913_v10 }
 0x16b   : > { %2128 = vst [vmem:[%s2927_s6 + $0x34] sm:$0xf] %v2127_v9  ;;  %1826 = vst [vmem:[#allocation2 + $0x1c8] sm:$0xff] %v1766_v20 }
 0x16c   : > { %v2391_v51 = vpack.c.bf16 %v1960_v55, %v1960_v55 }
 0x16e   : > { %2125 = vst [vmem:[%s2927_s6 + $0x30] sm:$0xf] %v2391_v51  ;;  %v1859_v11 = vld [vmem:[#allocation2 + $0xf0] ss:$2 sm:$0x7f] }
 0x16f   : > { %v1919_v53 = vld [vmem:[#allocation2 + $0xf1] ss:$2 sm:$0x7f]  ;;  %v1887_v2 = vld [vmem:[#allocation2 + $0x1d0] ss:$2 sm:$0x7f] }
 0x170   : > { %v1963_v21 = vmax.f32 %v1859_v11, %v1919_v53  ;;  %v1947_v44 = vld [vmem:[#allocation2 + $0x1d1] ss:$2 sm:$0x7f]  ;;  %v1857_v61 = vld [vmem:[#allocation2 + $0xe0] ss:$2 sm:$0xff] }
 0x171   : > { %v1977_v50 = vmax.f32 %v1887_v2, %v1947_v44  ;;  %v1917_v1 = vld [vmem:[#allocation2 + $0xe1] ss:$2 sm:$0xff] }
 0x172   : > { %v2394_v56 = vpack.c.bf16 %v1963_v21, %v1963_v21  ;;  %v1962_v54 = vmax.f32 %v1857_v61, %v1917_v1  ;;  %v1885_v57 = vld [vmem:[#allocation2 + $0x1c0] ss:$2 sm:$0xff]  ;;  %v1945_v7 = vld [vmem:[#allocation2 + $0x1c1] ss:$2 sm:$0xff] }
 0x173   : > { %v2408_v3 = vpack.c.bf16 %v1977_v50, %v1977_v50  ;;  %v1976_v39 = vmax.f32 %v1885_v57, %v1945_v7 }
 0x174   : > { %v2131_v14 = vsel %vm2940_vm5, %v2394_v56, %v2130_v13  ;;  %v2393_v63 = vpack.c.bf16 %v1962_v54, %v1962_v54 }
 0x175   : > { %2132 = vst [vmem:[%s2927_s6 + $0x3c] sm:$0xf] %v2131_v14  ;;  %v2159_v12 = vsel %vm2940_vm5, %v2408_v3, %v2158_v33  ;;  %v2407_v24 = vpack.c.bf16 %v1976_v39, %v1976_v39 }
 0x176   : > { %2160 = vst [vmem:[%s2927_s6 + $0x74] sm:$0xf] %v2159_v12  ;;  %2129 = vst [vmem:[%s2927_s6 + $0x38] sm:$0xf] %v2393_v63 }
 0x177   : > { %2157 = vst [vmem:[%s2927_s6 + $0x70] sm:$0xf] %v2407_v24 }
 0x178 PF: > { %s14_s15 = sadd.s32 1, %s2680_s15  }
 0x179   : > { %p11_p4 = scmp.ge.s32.totalorder %s14_s15, 4  }
 0x17b   :  { %13 = sbr.rel (!%p11_p4) target bundleno = 1 (0x1), region = 125 }

// kernel: net_forward.5
= control target key start
LH: loop header
LB: loop body
LE: loop exit
PB: predicated region body
PF: predicated region fallthrough
CT: control target
= control target key end

     0   :  { %11 = vsyncpa [#allocation4], 0  ;;  %s4338_s0 = inlined_call_operand.vmem [shape: bf16[2,6,18,128], index: 0, kind: input, shape index: {}]   ;;  %s4339_s1 = inlined_call_operand.vmem [shape: bf16[9,128,128], index: 1, kind: input, shape index: {}]   ;;  %s4340_s2 = inlined_call_operand.vmem [shape: f32[1,128], index: 2, kind: input, shape index: {}]   ;;  %s4341_s3 = inlined_call_operand.vmem [shape: f32[1,128], index: 3, kind: input, shape index: {}]   ;;  %s4342_s4 = inlined_call_operand.vmem [shape: f32[512,10], index: 4, kind: input, shape index: {}]   ;;  %s4343_s5 = inlined_call_operand.vmem [shape: f32[1,10], index: 5, kind: input, shape index: {}]   ;;  %s4344_s6 = inlined_call_operand.hbm [shape: f32[2,1,10], index: 6, kind: output, shape index: {}]  }
   0x1   :  { %13 = vsyncpa [#allocation4 + $0x1], 0  ;;  %s3507_s21 = smov 0   ;;  %s3509_s22 = smov 0  }
   0x2   :  { %s3511_s23 = smov 0   ;;  %s3513_s24 = smov 0  }
   0x3 LB: > { %s3528_s25 = sadd.s32 4294967295, %s3469_s24   ;;  %s2455_s26 = sadd.s32 4294967294, %s3469_s24   ;;  %s3469_s24 = sphi %s3513_s24, %s4354_s24   ;;  %s3465_s23 = sphi %s3511_s23, %s4353_s23   ;;  %s3461_s22 = sphi %s3509_s22, %s4352_s22   ;;  %s3457_s21 = sphi %s3507_s21, %s4351_s21  }
   0x4   : > { %s3532_s27 = sadd.s32 1, %s3469_s24   ;;  %s157_s28 = sadd.s32 1, %s3465_s23 }
   0x5   : > { %s154_s29 = ssub.s32 %s3469_s24, %s3532_s27  ;;  %p167_p0 = scmp.ne.s32.totalorder %s3465_s23, %s3461_s22 }
   0x6   : > { %p155_p1 = scmp.eq.s32.totalorder %s154_s29, 0  ;;  %p168_p2 = scmp.eq.s32.totalorder %s3528_s25, 1 }
   0x7   : > { %p173_p3 = scmp.ne.s32.totalorder %s3461_s22, %s3457_s21  ;;  %p174_p4 = scmp.eq.s32.totalorder %s2455_s26, 1 }
   0x8   : > { %s3543_s30 = scalar_select %p155_p1, %s3465_s23, %s157_s28  }
   0x9   : > { %p3545_p5 = por %p168_p2, %p167_p0  ;;  %p3549_p6 = por %p174_p4, %p173_p3 }
   0xa   : > { %p2458_p7 = scmp.ge.s32.totalorder %s3469_s24, 1  ;;  %p215_p8 = scmp.lt.s32.totalorder %s3469_s24, 3 }
   0xc   : > { %p216_p9 = pnand %p2458_p7, %p215_p8 }
   0xd   : > { %v3323_v0 = vld [vmem:[%s4339_s1 + $0x40] sm:$0xff] (!%p216_p9)   ;;  %p244_p10 = scmp.lt.s32.totalorder (!%p216_p9), %s3528_s25, 1  ;;  %v3325_v2 = vld [vmem:[%s4339_s1 + $0x48] sm:$0xff] (!%p216_p9)   ;;  %v3327_v4 = vld [vmem:[%s4339_s1 + $0x50] sm:$0xff] (!%p216_p9)   ;;  %vm278_vm0 = vsmask.f32 (!%p216_p9), 3328 }
   0xe   : > { %219 = sbr.rel (%p216_p9) target bundleno = 678 (0x2a6), region = 44  ;;  %v3324_v1 = vld [vmem:[%s4339_s1 + $0x100] sm:$0xff] (!%p216_p9)   ;;  %2939 = vmatprep.subr.bf16.mxu1 (!%p216_p9), %v3323_v0  ;;  %v3326_v3 = vld [vmem:[%s4339_s1 + $0x108] sm:$0xff] (!%p216_p9)   ;;  %v3328_v5 = vld [vmem:[%s4339_s1 + $0x110] sm:$0xff] (!%p216_p9)   ;;  %vm279_vm1 = vsmask.f32 (!%p216_p9), 7440 }
   0xf   : > { %3035 = vmatprep.subr.bf16.mxu0 (!%p216_p9), %v3324_v1  ;;  %2940 = vmatpush3.bf16.msra.mxu1 (!%p216_p9), %v3323_v0  ;;  %v3329_v6 = vld [vmem:[%s4339_s1 + $0x58] sm:$0xff] (!%p216_p9)   ;;  %v3331_v8 = vld [vmem:[%s4339_s1 + $0x60] sm:$0xff] (!%p216_p9)   ;;  %v3333_v10 = vld [vmem:[%s4339_s1 + $0x68] sm:$0xff] (!%p216_p9)   ;;  %vm672_vm3 = vcmask (!%p216_p9), 1042432   ;;  %vm673_vm4 = vcmask (!%p216_p9), 1046532   ;;  %s242_s13 = sand.u32 (!%p216_p9), 1, %s3461_s22  }
  0x10   : > { %3036 = vmatpush3.bf16.msra.mxu0 (!%p216_p9), %v3324_v1  ;;  %2941 = vmatprep.subr.bf16.mxu1 (!%p216_p9), %v3325_v2  ;;  %v3330_v7 = vld [vmem:[%s4339_s1 + $0x118] sm:$0xff] (!%p216_p9)   ;;  %v3332_v9 = vld [vmem:[%s4339_s1 + $0x120] sm:$0xff] (!%p216_p9)   ;;  %v3334_v14 = vld [vmem:[%s4339_s1 + $0x128] sm:$0xff] (!%p216_p9)   ;;  %s2758_s16 = sshll.u32 (!%p216_p9), %s3528_s25, 4  ;;  %s243_s17 = scalar_lea.vmem (!%p216_p9), [#allocation3], %s242_s13  ;;  %vm2385_vm6 = vcmask (!%p216_p9), 73728  }
  0x11   : > { %3037 = vmatprep.subr.bf16.mxu0 (!%p216_p9), %v3326_v3  ;;  %v3335_v17 = vld [vmem:[%s4339_s1 + $0x70] sm:$0xff] (!%p216_p9)   ;;  %v3337_v33 = vld [vmem:[%s4339_s1 + $0x78] sm:$0xff] (!%p216_p9)   ;;  %vm3630_vm2 = vmor (!%p216_p9), %vm278_vm0, %vm279_vm1  ;;  %s2388_s28 = scalar_lea.sflag (!%p216_p9), [#allocation4], %s242_s13 }
  0x12   : > { %v3336_v23 = vld [vmem:[%s4339_s1 + $0x130] sm:$0xff] (!%p216_p9)   ;;  %v3338_v39 = vld [vmem:[%s4339_s1 + $0x138] sm:$0xff] (!%p216_p9)   ;;  %v3339_v61 = vld [vmem:[%s4339_s1] sm:$0xff] (!%p216_p9)  }
  0x13   : > { %2942 = vmatpush3.bf16.msra.mxu1 (!%p216_p9), %v3325_v2  ;;  %vm3788_vm5 = vmor (!%p216_p9), %vm672_vm3, %vm673_vm4  ;;  %v3402_v34 = vld [vmem:[%s4339_s1 + $0x218] sm:$0xff] (!%p216_p9)  }
  0x14   : > { %3038 = vmatpush3.bf16.msra.mxu0 (!%p216_p9), %v3326_v3  ;;  %2943 = vmatprep.subr.bf16.mxu1 (!%p216_p9), %v3327_v4 }
  0x15   : > { %s245_s26 = scalar_select %p244_p10, %s3528_s25, 1  ;;  %3039 = vmatprep.subr.bf16.mxu0 %v3328_v5 }
  0x16   : > { %s3471_s25 = smov [#allocation3]  }
  0x17   : > { %s3283_s11 = smul.u32 72, %s245_s26  ;;  %2944 = vmatpush3.bf16.msra.mxu1 %v3327_v4  ;;  %s4296_s26 = scalar_lea.hbm %s4344_s6, %s2758_s16 }
  0x18   : > { %3040 = vmatpush3.bf16.msra.mxu0 %v3328_v5  ;;  %2945 = vmatprep.subr.bf16.mxu1 %v3329_v6  ;;  %s3411_s9 = sshll.u32 %s3471_s25, 4  ;;  %s3412_s9 = int_to_ptr.vmem [resolvable:$false] %s3411_s9 }
  0x19   : > { %3041 = vmatprep.subr.bf16.mxu0 %v3330_v7  ;;  %s3590_s18 = scalar_lea.vmem %s4338_s0, %s3283_s11  ;;  %s3413_s10 = scalar_lea.vmem %s3412_s9, 32 }
  0x1a   : > { %v3596_v11 = vld [vmem:[%s3590_s18] sm:$0xf]  ;;  %v3599_v12 = vld [vmem:[%s3590_s18 + $0x4] sm:$0xf]  ;;  %v3602_v13 = vld [vmem:[%s3590_s18 + $0x8] sm:$0x1] }
  0x1b   : > { %2946 = vmatpush3.bf16.msra.mxu1 %v3329_v6  ;;  %v282_v15 = vshrl.u32 %v3596_v11, 16  ;;  %v285_v16 = vshll.u32 %v3596_v11, 16  ;;  %v291_v18 = vshll.u32 %v3599_v12, 16  ;;  %v295_v19 = vshrl.u32 %v3599_v12, 16  ;;  %v2568_v27 = vld [vmem:[%s3590_s18 + $0xc] sm:$0xf] }
  0x1c   : > { %3042 = vmatpush3.bf16.msra.mxu0 %v3330_v7  ;;  %2947 = vmatprep.subr.bf16.mxu1 %v3331_v8  ;;  %v301_v20 = vshll.u32 %v3602_v13, 16  ;;  %v3620_v29 = vld [vmem:[%s3590_s18 + $0x10] sm:$0xf]  ;;  %v3623_v30 = vld [vmem:[%s3590_s18 + $0x14] sm:$0x1]  ;;  %v1041_v31 = vshrl.u32 %v2568_v27, 16 }
  0x1d   : > { %3043 = vmatprep.subr.bf16.mxu0 %v3332_v9  ;;  %v284_v21 = vrot.slane %v282_v15, 4  ;;  %v287_v22 = vrot.slane %v285_v16, 5  ;;  %v293_v24 = vrot.slane %v291_v18, 5  ;;  %v297_v25 = vrot.slane %v295_v19, 4  ;;  %v3641_v47 = vld [vmem:[%s3590_s18 + $0xc] sm:$0xf] }
  0x1e   : > { %v303_v26 = vrot.slane %v301_v20, 5  ;;  %v1044_v32 = vshll.u32 %v2568_v27, 16  ;;  %v1050_v36 = vshll.u32 %v3620_v29, 16  ;;  %v1054_v37 = vshrl.u32 %v3620_v29, 16  ;;  %v3646_v50 = vld [vmem:[%s3590_s18 + $0x10] sm:$0xf] }
  0x1f   : > { %2948 = vmatpush3.bf16.msra.mxu1 %v3331_v8  ;;  %v288_v28 = vor.u32 %v287_v22, %v284_v21  ;;  %v298_v35 = vor.u32 %v297_v25, %v293_v24  ;;  %v1060_v38 = vshll.u32 %v3623_v30, 16  ;;  %v1043_v41 = vrot.slane %v1041_v31, 4  ;;  %v3649_v51 = vld [vmem:[%s3590_s18 + $0x14] sm:$0x1]  ;;  %v2571_v58 = vld [vmem:[%s3590_s18 + $0x18] sm:$0xf] }
  0x20   : > { %3044 = vmatpush3.bf16.msra.mxu0 %v3332_v9  ;;  %2949 = vmatprep.subr.bf16.mxu1 %v3333_v10  ;;  %v1046_v42 = vrot.slane %v1044_v32, 5  ;;  %v1052_v44 = vrot.slane %v1050_v36, 5  ;;  %v1056_v45 = vrot.slane %v1054_v37, 4  ;;  %v306_v52 = vshrl.u32 %v3641_v47, 16  ;;  %v3659_v59 = vld [vmem:[%s3590_s18 + $0x1c] sm:$0xf] }
  0x21   : > { %3045 = vmatprep.subr.bf16.mxu0 %v3334_v14  ;;  %v289_v40 = vrot.slane %v288_v28, 4  ;;  %v299_v43 = vrot.slane %v298_v35, 4  ;;  %v1062_v46 = vrot.slane %v1060_v38, 5  ;;  %v309_v53 = vshll.u32 %v3641_v47, 16  ;;  %v3665_v1 = vld [vmem:[%s3590_s18 + $0x20] sm:$0x1] }
  0x22   : > { %v1047_v49 = vor.u32 %v1046_v42, %v1043_v41  ;;  %v1057_v55 = vor.u32 %v1056_v45, %v1052_v44  ;;  %v315_v56 = vshll.u32 %v3646_v50, 16  ;;  %v319_v57 = vshrl.u32 %v3646_v50, 16  ;;  %v3340_v7 = vld [vmem:[%s4339_s1 + $0x140] sm:$0xff]   ;;  %v3342_v41 = vld [vmem:[%s4339_s1 + $0x148] sm:$0xff]   ;;  %v3343_v42 = vld [vmem:[%s4339_s1 + $0x10] sm:$0xff]  }
  0x23   : > { %2950 = vmatpush3.bf16.msra.mxu1 %v3333_v10  ;;  %v294_v48 = vsel %vm3630_vm2, %v289_v40, %v293_v24  ;;  %v304_v54 = vsel %vm3630_vm2, %v299_v43, %v303_v26  ;;  %v308_v63 = vrot.slane %v306_v52, 4  ;;  %v311_v0 = vrot.slane %v309_v53, 5  ;;  %v3698_v45 = vld [vmem:[%s3590_s18 + $0x18] sm:$0xf] }
  0x24   : > { %3046 = vmatpush3.bf16.msra.mxu0 %v3334_v14  ;;  %2951 = vmatprep.subr.bf16.mxu1 %v3335_v17  ;;  %v2476_v60 = vcombine.low %v294_v48, %v304_v54  ;;  %v1048_v62 = vrot.slane %v1047_v49, 4  ;;  %v1058_v2 = vrot.slane %v1057_v55, 4  ;;  %v317_v3 = vrot.slane %v315_v56, 5  ;;  %v3704_v48 = vld [vmem:[%s3590_s18 + $0x20] sm:$0x1]  ;;  %v3345_v52 = vld [vmem:[%s4339_s1 + $0x18] sm:$0xff]  }
  0x25   : > { %3047 = vmatprep.subr.bf16.mxu0 %v3336_v23  ;;  %v321_v4 = vrot.slane %v319_v57, 4  ;;  %v325_v5 = vshll.u32 %v3649_v51, 16  ;;  %v312_v8 = vor.u32 %v311_v0, %v308_v63  ;;  %v1065_v9 = vshrl.u32 %v2571_v58, 16  ;;  %v3719_v0 = vld [vmem:[%s3590_s18 + $0x28] sm:$0xf] }
  0x26   : > { %2955 = vmatprep.mubr.bf16.mxu1 %v2476_v60  ;;  %v1053_v6 = vsel %vm3630_vm2, %v1048_v62, %v1052_v44  ;;  %v1063_v10 = vsel %vm3630_vm2, %v1058_v2, %v1062_v46  ;;  %v1068_v16 = vshll.u32 %v2571_v58, 16  ;;  %v1074_v20 = vshll.u32 %v3659_v59, 16  ;;  %v3701_v46 = vld [vmem:[%s3590_s18 + $0x1c] sm:$0xf]  ;;  %v2574_v58 = vld [vmem:[%s3590_s18 + $0x24] sm:$0xf] }
  0x27   : > { %2952 = vmatpush3.bf16.msra.mxu1 %v3335_v17  ;;  %v322_v14 = vor.u32 %v321_v4, %v317_v3  ;;  %v327_v15 = vrot.slane %v325_v5, 5  ;;  %v2596_v17 = vcombine.low %v1053_v6, %v1063_v10  ;;  %v313_v18 = vrot.slane %v312_v8, 4  ;;  %v3344_v60 = vld [vmem:[%s4339_s1 + $0x150] sm:$0xff]   ;;  %v3722_v5 = vld [vmem:[%s3590_s18 + $0x2c] sm:$0x1] }
  0x28   : > { %3048 = vmatpush3.bf16.msra.mxu0 %v3336_v23  ;;  %2953 = vmatprep.subr.bf16.mxu1 %v3337_v33  ;;  %v1067_v19 = vrot.slane %v1065_v9, 4  ;;  %v1070_v22 = vrot.slane %v1068_v16, 5  ;;  %v1078_v23 = vshrl.u32 %v3659_v59, 16  ;;  %v1084_v24 = vshll.u32 %v3665_v1, 16  ;;  %v3347_v9 = vld [vmem:[%s4339_s1 + $0x20] sm:$0xff]  }
  0x29   : > { %3049 = vmatprep.subr.bf16.mxu0 %v3338_v39  ;;  %v323_v21 = vrot.slane %v322_v14, 4  ;;  %3051 = vmatprep.mubr.bf16.mxu0 %v2596_v17  ;;  %v318_v25 = vsel %vm3630_vm2, %v313_v18, %v317_v3  ;;  %v1076_v26 = vrot.slane %v1074_v20, 5  ;;  %v1311_v38 = vrot.slane %v3623_v30, 5 }
  0x2a   : > { %v1071_v28 = vor.u32 %v1070_v22, %v1067_v19  ;;  %v1080_v31 = vrot.slane %v1078_v23, 4  ;;  %v1086_v37 = vrot.slane %v1084_v24, 5  ;;  %v1308_v43 = vrot.slane %v3620_v29, 5  ;;  %v3731_v19 = vld [vmem:[%s3590_s18 + $0x24] sm:$0xf] }
  0x2b   : > { %2954 = vmatpush3.bf16.msra.mxu1 %v3337_v33  ;;  %v328_v27 = vsel %vm3630_vm2, %v323_v21, %v327_v15  ;;  %v3341_v33 = vld [vmem:[%s4339_s1 + $0x8] sm:$0xff]   ;;  %v330_v53 = vshrl.u32 %v3698_v45, 16  ;;  %v333_v54 = vshll.u32 %v3698_v45, 16  ;;  %v339_v55 = vshll.u32 %v3701_v46, 16 }
  0x2c   : > { %3050 = vmatpush3.bf16.msra.mxu0 %v3338_v39  ;;  %2963 = vmatprep.subr.bf16.mxu1 %v3339_v61  ;;  %v2477_v32 = vcombine.low %v318_v25, %v328_v27  ;;  %v1072_v35 = vrot.slane %v1071_v28, 4  ;;  %v1081_v36 = vor.u32 %v1080_v31, %v1076_v26  ;;  %v343_v56 = vshrl.u32 %v3701_v46, 16  ;;  %v3734_v23 = vld [vmem:[%s3590_s18 + $0x28] sm:$0xf]  ;;  %v3346_v25 = vld [vmem:[%s4339_s1 + $0x158] sm:$0xff]  }
  0x2d   : > { %3059 = vmatprep.subr.bf16.mxu0 %v3340_v7  ;;  %v349_v57 = vshll.u32 %v3704_v48, 16  ;;  %v335_v62 = vrot.slane %v333_v54, 5  ;;  %v341_v63 = vrot.slane %v339_v55, 5  ;;  %v1089_v2 = vshrl.u32 %v2574_v58, 16  ;;  %v3741_v28 = vld [vmem:[%s3590_s18 + $0x2c] sm:$0x1] }
  0x2e   : > { %2956 = vmatmul.mubr.bf16.vlgmr.msra.gmra.mrb[0].mxu1 %v2477_v32  ;;  %v1077_v39 = vsel %vm3630_vm2, %v1072_v35, %v1076_v26  ;;  %v1082_v40 = vrot.slane %v1081_v36, 4  ;;  %v345_v3 = vrot.slane %v343_v56, 4  ;;  %v1092_v6 = vshll.u32 %v2574_v58, 16  ;;  %v3348_v54 = vld [vmem:[%s4339_s1 + $0x160] sm:$0xff]   ;;  %v3349_v55 = vld [vmem:[%s4339_s1 + $0x28] sm:$0xff]  }
  0x2f   : > { %2964 = vmatpush3.bf16.msra.mxu1 %v3339_v61  ;;  %v332_v61 = vrot.slane %v330_v53, 4  ;;  %v351_v4 = vrot.slane %v349_v57, 5  ;;  %v1098_v8 = vshll.u32 %v3719_v0, 16  ;;  %v1091_v14 = vrot.slane %v1089_v2, 4  ;;  %v3755_v53 = vld [vmem:[%s3590_s18 + $0x38] sm:$0x1] }
  0x30   : > { %2965 = vmatprep.subr.bf16.mxu1 %v3341_v33  ;;  %v1087_v44 = vsel %vm3630_vm2, %v1082_v40, %v1086_v37  ;;  %v1102_v15 = vshrl.u32 %v3719_v0, 16  ;;  %v346_v16 = vor.u32 %v345_v3, %v341_v63  ;;  %v1094_v17 = vrot.slane %v1092_v6, 5  ;;  %v3750_v40 = vld [vmem:[%s3590_s18 + $0x34] sm:$0xf] }
  0x31   : > { %v2597_v49 = vcombine.low %v1077_v39, %v1087_v44  ;;  %v336_v10 = vor.u32 %v335_v62, %v332_v61  ;;  %v1100_v18 = vrot.slane %v1098_v8, 5  ;;  %v354_v24 = vshrl.u32 %v3731_v19, 16  ;;  %v2577_v39 = vld [vmem:[%s3590_s18 + $0x30] sm:$0xf] }
  0x32   : > { %v1104_v21 = vrot.slane %v1102_v15, 4  ;;  %v347_v26 = vrot.slane %v346_v16, 4  ;;  %v1095_v27 = vor.u32 %v1094_v17, %v1091_v14  ;;  %v357_v31 = vshll.u32 %v3731_v19, 16 }
  0x33   : > { %2966 = vmatpush3.bf16.msra.mxu1 %v3341_v33  ;;  %3052 = vmatmul.mubr.bf16.vlgmr.msra.gmra.mrb[0].mxu0 %v2597_v49  ;;  %v337_v20 = vrot.slane %v336_v10, 4  ;;  %v363_v32 = vshll.u32 %v3734_v23, 16  ;;  %v356_v36 = vrot.slane %v354_v24, 4  ;;  %v367_v37 = vshrl.u32 %v3734_v23, 16 }
  0x34   : > { %2967 = vmatprep.subr.bf16.mxu1 %v3343_v42  ;;  %3060 = vmatpush3.bf16.msra.mxu0 %v3340_v7  ;;  %v1108_v7 = vshll.u32 %v3722_v5, 16  ;;  %v1105_v35 = vor.u32 %v1104_v21, %v1100_v18  ;;  %v359_v44 = vrot.slane %v357_v31, 5  ;;  %v373_v58 = vshll.u32 %v3741_v28, 16  ;;  %v2608_v21 = vld [vmem:[%s3590_s18 + $0xc] sm:$0xe] }
  0x35   : > { %3061 = vmatprep.subr.bf16.mxu0 %v3342_v41  ;;  %v342_v33 = vsel %vm3630_vm2, %v337_v20, %v341_v63  ;;  %v365_v49 = vrot.slane %v363_v32, 5  ;;  %v1113_v63 = vshrl.u32 %v2577_v39, 16  ;;  %v1116_v2 = vshll.u32 %v2577_v39, 16  ;;  %v3352_v39 = vld [vmem:[%s4339_s1 + $0x170] sm:$0xff]  }
  0x36   : > { %v1110_v22 = vrot.slane %v1108_v7, 5  ;;  %v1106_v57 = vrot.slane %v1105_v35, 4  ;;  %v360_v62 = vor.u32 %v359_v44, %v356_v36  ;;  %v375_v6 = vrot.slane %v373_v58, 5 }
  0x37   : > { %2968 = vmatpush3.bf16.msra.mxu1 %v3343_v42  ;;  %v1096_v42 = vrot.slane %v1095_v27, 4  ;;  %v1122_v8 = vshll.u32 %v3750_v40, 16  ;;  %v1115_v15 = vrot.slane %v1113_v63, 4  ;;  %v1118_v7 = vrot.slane %v1116_v2, 5  ;;  %v3350_v27 = vld [vmem:[%s4339_s1 + $0x168] sm:$0xff]  }
  0x38   : > { %2969 = vmatprep.subr.bf16.mxu1 %v3345_v52  ;;  %3062 = vmatpush3.bf16.msra.mxu0 %v3342_v41  ;;  %v352_v41 = vsel %vm3630_vm2, %v347_v26, %v351_v4  ;;  %v1111_v3 = vsel %vm3630_vm2, %v1106_v57, %v1110_v22  ;;  %v361_v14 = vrot.slane %v360_v62, 4  ;;  %v1132_v20 = vshll.u32 %v3755_v53, 16 }
  0x39   : > { %3063 = vmatprep.subr.bf16.mxu0 %v3344_v60  ;;  %v2478_v56 = vcombine.low %v342_v33, %v352_v41  ;;  %v1101_v61 = vsel %vm3630_vm2, %v1096_v42, %v1100_v18  ;;  %v1124_v17 = vrot.slane %v1122_v8, 5  ;;  %v1126_v18 = vshrl.u32 %v3750_v40, 16  ;;  %v2181_v33 = vld [vmem:[%s4342_s4 + $0x8] sm:$0xff] }
  0x3a   : > { %v2598_v10 = vcombine.low %v1101_v61, %v1111_v3  ;;  %v1119_v22 = vor.u32 %v1118_v7, %v1115_v15  ;;  %v2612_v24 = vrot.slane %v2608_v21, 9  ;;  %v1310_v26 = vrot.slane %v1308_v43, 4 }
  0x3b   : > { %2970 = vmatpush3.bf16.msra.mxu1 %v3345_v52  ;;  %v369_v52 = vrot.slane %v367_v37, 4  ;;  %2959 = vmatprep.mubr.bf16.mxu1 %v2478_v56  ;;  %v1128_v32 = vrot.slane %v1126_v18, 4  ;;  %v1315_v35 = vrot.slane %v3659_v59, 5  ;;  %v1134_v42 = vrot.slane %v1132_v20, 5  ;;  %v660_v20 = vld [vmem:[%s3590_s18] sm:$0xe] }
  0x3c   : > { %2971 = vmatprep.subr.bf16.mxu1 %v3347_v9  ;;  %3064 = vmatpush3.bf16.msra.mxu0 %v3344_v60  ;;  %v3351_v60 = vld [vmem:[%s4339_s1 + $0x30] sm:$0xff]   ;;  %v1120_v37 = vrot.slane %v1119_v22, 4  ;;  %v1309_v59 = vsel %vm3788_vm5, %v2612_v24, %v1308_v43  ;;  %v1312_v44 = vsel %vm3788_vm5, %v1310_v26, %v1311_v38  ;;  %v680_v57 = vrot.slane %v3602_v13, 5  ;;  %v3356_v38 = vld [vmem:[%s4339_s1 + $0x80] sm:$0xff]  }
  0x3d   : > { %3065 = vmatprep.subr.bf16.mxu0 %v3346_v25  ;;  %v370_v4 = vor.u32 %v369_v52, %v365_v49  ;;  %3055 = vmatprep.mubr.bf16.mxu0 %v2598_v10  ;;  %v1129_v41 = vor.u32 %v1128_v32, %v1124_v17  ;;  %v1318_v29 = vrot.slane %v3665_v1, 5  ;;  %v1317_v43 = vrot.slane %v1315_v35, 4  ;;  %v661_v32 = vld [vmem:[%s3590_s18 + $0xc] sm:$0xe] }
  0x3e   : > { %v2632_v52 = vcombine.low %v1309_v59, %v1312_v44  ;;  %v2489_v1 = vcombine.low %v3641_v47, %v3646_v50  ;;  %v1325_v62 = vrot.slane %v3722_v5, 5  ;;  %v687_v63 = vrot.slane %v3649_v51, 5  ;;  %v3357_v51 = vld [vmem:[%s4339_s1 + $0x180] sm:$0xff]   ;;  %v3376_v59 = vld [vmem:[%s3590_s18 + $0x18] sm:$0xff]  }
  0x3f   : > { %2972 = vmatpush3.bf16.msra.mxu1 %v3347_v9  ;;  %v371_v16 = vrot.slane %v370_v4, 4  ;;  %v366_v9 = vsel %vm3630_vm2, %v361_v14, %v365_v49  ;;  %v2609_v49 = vld [vmem:[%s3590_s18 + $0x18] sm:$0xe]  ;;  %v1130_v56 = vrot.slane %v1129_v41, 4  ;;  %v2490_v2 = vcombine.low %v3698_v45, %v3701_v46  ;;  %v3359_v4 = vld [vmem:[%s4339_s1 + $0x88] sm:$0xff]   ;;  %v3365_v41 = vld [vmem:[%s4339_s1 + $0xa0] sm:$0xff]  }
  0x40   : > { %2973 = vmatprep.subr.bf16.mxu1 %v3349_v55  ;;  %3066 = vmatpush3.bf16.msra.mxu0 %v3346_v25  ;;  %v2488_v25 = vcombine.low %v3596_v11, %v3599_v12  ;;  %v3353_v11 = vld [vmem:[%s4339_s1 + $0x38] sm:$0xff]   ;;  %v2613_v13 = vrot.slane %v2609_v49, 9  ;;  %v677_v3 = vrot.slane %v3599_v12, 5  ;;  %v1329_v47 = vrot.slane %v3750_v40, 5  ;;  %v2610_v45 = vld [vmem:[%s3590_s18 + $0x24] sm:$0xe] }
  0x41   : > { %3067 = vmatprep.subr.bf16.mxu0 %v3348_v54  ;;  %v376_v31 = vsel %vm3630_vm2, %v371_v16, %v375_v6  ;;  %v1135_v30 = vsel %vm3630_vm2, %v1130_v56, %v1134_v42  ;;  %v1319_v12 = vsel %vm3788_vm5, %v1317_v43, %v1318_v29  ;;  %v684_v6 = vrot.slane %v3646_v50, 5  ;;  %v3361_v40 = vld [vmem:[%s4339_s1 + $0x90] sm:$0xff]   ;;  %v3364_v44 = vld [vmem:[%s4339_s1 + $0x198] sm:$0xff]   ;;  %v3367_v49 = vld [vmem:[%s4339_s1 + $0xa8] sm:$0xff]  }
  0x42   : > { %v2479_v36 = vcombine.low %v366_v9, %v376_v31  ;;  %v1316_v5 = vsel %vm3788_vm5, %v2613_v13, %v1315_v35  ;;  %v2614_v8 = vrot.slane %v2610_v45, 9  ;;  %v679_v10 = vrot.slane %v677_v3, 4  ;;  %v2611_v14 = vld [vmem:[%s3590_s18 + $0x30] sm:$0xe]  ;;  %v3360_v9 = vld [vmem:[%s4339_s1 + $0x188] sm:$0xff]   ;;  %v3373_v43 = vld [vmem:[%s4339_s1 + $0xb8] sm:$0xff]  }
  0x43   : > { %2974 = vmatpush3.bf16.msra.mxu1 %v3349_v55  ;;  %v1125_v55 = vsel %vm3630_vm2, %v1120_v37, %v1124_v17  ;;  %v2633_v15 = vcombine.low %v1316_v5, %v1319_v12  ;;  %v1331_v7 = vrot.slane %v1329_v47, 4  ;;  %v1332_v16 = vrot.slane %v3755_v53, 5  ;;  %v3362_v37 = vld [vmem:[%s4339_s1 + $0x190] sm:$0xff]   ;;  %v662_v29 = vld [vmem:[%s3590_s18 + $0x18] sm:$0xe] }
  0x44   : > { %2975 = vmatprep.subr.bf16.mxu1 %v3351_v60  ;;  %3068 = vmatpush3.bf16.msra.mxu0 %v3348_v54  ;;  %v1322_v54 = vrot.slane %v3719_v0, 5  ;;  %v2599_v58 = vcombine.low %v1125_v55, %v1135_v30  ;;  %v3354_v0 = vld [vmem:[%s4339_s1 + $0x178] sm:$0xff]   ;;  %v2615_v18 = vrot.slane %v2611_v14, 9  ;;  %v686_v21 = vrot.slane %v684_v6, 4  ;;  %v3366_v55 = vld [vmem:[%s4339_s1 + $0x1a0] sm:$0xff]   ;;  %v3370_v56 = vld [vmem:[%s4339_s1 + $0xb0] sm:$0xff]  }
  0x45   : > { %2960 = vmatmul.mubr.bf16.gmra.mrb[4].mxu1 %v2479_v36  ;;  %3069 = vmatprep.subr.bf16.mxu0 %v3350_v27  ;;  %v2491_v22 = vcombine.low %v3731_v19, %v3734_v23  ;;  %v2500_v24 = vrot.slane %v660_v20, 9  ;;  %v681_v26 = vsel %vm3788_vm5, %v679_v10, %v680_v57  ;;  %v2501_v36 = vrot.slane %v661_v32, 9  ;;  %v3368_v57 = vld [vmem:[%s4339_s1 + $0x1a8] sm:$0xff]   ;;  %v3377_v14 = vld [vmem:[%s4339_s1 + $0x1c0] sm:$0xff]   ;;  %v3381_v20 = vld [vmem:[%s4339_s1 + $0xd0] sm:$0xff]  }
  0x46   : > { %2979 = vmatprep.mubr.bf16.mxu1 %v2488_v25  ;;  %v1324_v61 = vrot.slane %v1322_v54, 4  ;;  %3056 = vmatmul.mubr.bf16.gmra.mrb[4].mxu0 %v2599_v58  ;;  %v1323_v50 = vsel %vm3788_vm5, %v2614_v8, %v1322_v54  ;;  %v3860_v53 = vsel %vm3788_vm5, %v686_v21, %v687_v63  ;;  %v1330_v19 = vsel %vm3788_vm5, %v2615_v18, %v1329_v47  ;;  %v3926_v63 = vld [vmem:[%s3590_s18 + $0x20] sm:$0x1]  ;;  %v3379_v8 = vld [vmem:[%s4339_s1 + $0xc8] sm:$0xff]   ;;  %v3390_v21 = vld [vmem:[%s3590_s18 + $0x30] sm:$0xff]  }
  0x47   : > { %2976 = vmatpush3.bf16.msra.mxu1 %v3351_v60  ;;  %3075 = vmatprep.mubr.bf16.mxu0 %v2632_v52  ;;  %v678_v31 = vsel %vm3788_vm5, %v2500_v24, %v677_v3  ;;  %v1333_v25 = vsel %vm3788_vm5, %v1331_v7, %v1332_v16  ;;  %v691_v54 = vrot.slane %v3701_v46, 5  ;;  %v694_v30 = vrot.slane %v3704_v48, 5  ;;  %v3371_v52 = vld [vmem:[%s4339_s1 + $0x1b0] sm:$0xff]   ;;  %v3374_v48 = vld [vmem:[%s4339_s1 + $0x1b8] sm:$0xff]   ;;  %v3378_v7 = vld [vmem:[%s3590_s18 + $0x24] sm:$0xff]  }
  0x48   : > { %2977 = vmatprep.subr.bf16.mxu1 %v3353_v11  ;;  %3070 = vmatpush3.bf16.msra.mxu0 %v3350_v27  ;;  %v1326_v60 = vsel %vm3788_vm5, %v1324_v61, %v1325_v62  ;;  %v3363_v27 = vld [vmem:[%s4339_s1 + $0x98] sm:$0xff]   ;;  %v2520_v35 = vcombine.low %v678_v31, %v681_v26  ;;  %v2635_v42 = vcombine.low %v1330_v19, %v1333_v25  ;;  %v698_v58 = vrot.slane %v3734_v23, 5  ;;  %v663_v61 = vld [vmem:[%s3590_s18 + $0x24] sm:$0xe]  ;;  %v3380_v18 = vld [vmem:[%s4339_s1 + $0x1c8] sm:$0xff]  }
  0x49   : > { %3071 = vmatprep.subr.bf16.mxu0 %v3352_v39  ;;  %v2634_v17 = vcombine.low %v1323_v50, %v1326_v60  ;;  %v693_v46 = vrot.slane %v691_v54, 4  ;;  %v2680_v62 = vld [vmem:[%s3590_s18 + $0x18] sm:$0xf]  ;;  %v3923_v23 = vld [vmem:[%s3590_s18 + $0x1c] sm:$0xf]  ;;  %v701_v47 = vrot.slane %v3741_v28, 5 }
  0x4a   : > { %v1675_v3 = vshll.u32 %v2680_v62, 16  ;;  %v1685_v5 = vshrl.u32 %v3923_v23, 16  ;;  %v2503_v45 = vrot.slane %v663_v61, 9  ;;  %v1691_v28 = vshll.u32 %v3926_v63, 16  ;;  %v3382_v31 = vld [vmem:[%s4339_s1 + $0x1d0] sm:$0xff]   ;;  %v3385_v25 = vld [vmem:[%s4339_s1 + $0xe0] sm:$0xff]  }
  0x4b   : > { %2978 = vmatpush3.bf16.msra.mxu1 %v3353_v11 }
  0x4c   : > { %2987 = vmatprep.subr.bf16.mxu1 %v3356_v38  ;;  %3072 = vmatpush3.bf16.msra.mxu0 %v3352_v39  ;;  %v3877_v39 = vsel %vm3788_vm5, %v2501_v36, %v684_v6  ;;  %v1687_v10 = vrot.slane %v1685_v5, 4  ;;  %v699_v16 = vsel %vm3788_vm5, %v2503_v45, %v698_v58 }
  0x4d   : > { %3073 = vmatprep.subr.bf16.mxu0 %v3354_v0  ;;  %v2521_v11 = vcombine.low %v3877_v39, %v3860_v53  ;;  %v3383_v53 = vld [vmem:[%s4339_s1 + $0xd8] sm:$0xff]   ;;  %v3967_v39 = vld [vmem:[%s3590_s18 + $0x28] sm:$0xf] }
  0x4e   : > { %2980 = vmatmul.mubr.bf16.vlgmr.msra.gmra.mrb[0].mxu1 %v2489_v1  ;;  %v695_v1 = vsel %vm3788_vm5, %v693_v46, %v694_v30 }
  0x4f   : > { %2988 = vmatpush3.bf16.msra.mxu1 %v3356_v38  ;;  %2983 = vmatprep.mubr.bf16.mxu1 %v2490_v2  ;;  %v2502_v38 = vrot.slane %v662_v29, 9  ;;  %v1672_v2 = vshrl.u32 %v2680_v62, 16 }
  0x50   : > { %2989 = vmatprep.subr.bf16.mxu1 %v3359_v4  ;;  %3074 = vmatpush3.bf16.msra.mxu0 %v3354_v0  ;;  %v3375_v0 = vld [vmem:[%s4339_s1 + $0xc0] sm:$0xff]  }
  0x51   : > { %3083 = vmatprep.subr.bf16.mxu0 %v3357_v51  ;;  %v692_v13 = vsel %vm3788_vm5, %v2502_v38, %v691_v54  ;;  %v1674_v6 = vrot.slane %v1672_v2, 4  ;;  %v3386_v54 = vld [vmem:[%s4339_s1 + $0x1e0] sm:$0xff]   ;;  %v3389_v38 = vld [vmem:[%s4339_s1 + $0xf0] sm:$0xff]  }
  0x52   : > { %v2522_v12 = vcombine.low %v692_v13, %v695_v1  ;;  %v3995_v13 = vld [vmem:[%s3590_s18 + $0x2c] sm:$0x1]  ;;  %v2689_v1 = vld [vmem:[%s3590_s18 + $0x3c] sm:$0xf] }
  0x53   : > { %2990 = vmatpush3.bf16.msra.mxu1 %v3359_v4  ;;  %3076 = vmatmul.mubr.bf16.vlgmr.msra.gmra.mrb[0].mxu0 %v2633_v15  ;;  %v700_v4 = vrot.slane %v698_v58, 4  ;;  %v1715_v45 = vshll.u32 %v3995_v13, 16 }
  0x54   : > { %2991 = vmatprep.subr.bf16.mxu1 %v3361_v40  ;;  %3084 = vmatpush3.bf16.msra.mxu0 %v3357_v51  ;;  %v1681_v51 = vshll.u32 %v3923_v23, 16 }
  0x55   : > { %3079 = vmatprep.mubr.bf16.mxu0 %v2634_v17  ;;  %3085 = vmatprep.subr.bf16.mxu0 %v3360_v9  ;;  %v702_v17 = vsel %vm3788_vm5, %v700_v4, %v701_v47  ;;  %v3999_v4 = vld [vmem:[%s3590_s18 + $0x40] sm:$0xf]  ;;  %v4002_v47 = vld [vmem:[%s3590_s18 + $0x38] sm:$0x1] }
  0x56   : > { %2984 = vmatmul.mubr.bf16.gmra.mrb[4].mxu1 %v2491_v22  ;;  %v1683_v60 = vrot.slane %v1681_v51, 5  ;;  %v2523_v22 = vcombine.low %v699_v16, %v702_v17  ;;  %v3393_v51 = vld [vmem:[%s4339_s1 + $0xf8] sm:$0xff]   ;;  %v1717_v16 = vrot.slane %v1715_v45, 5 }
  0x57   : > { %2992 = vmatpush3.bf16.msra.mxu1 %v3361_v40  ;;  %3003 = vmatprep.mubr.bf16.mxu1 %v2520_v35  ;;  %v1677_v40 = vrot.slane %v1675_v3, 5  ;;  %v3392_v35 = vld [vmem:[%s3590_s18 + $0x3c] sm:$0xff]  }
  0x58   : > { %2993 = vmatprep.subr.bf16.mxu1 %v3363_v27  ;;  %3086 = vmatpush3.bf16.msra.mxu0 %v3360_v9  ;;  %v1688_v50 = vor.u32 %v1687_v10, %v1683_v60  ;;  %v1693_v9 = vrot.slane %v1691_v28, 5  ;;  %v3391_v10 = vld [vmem:[%s4339_s1 + $0x1f0] sm:$0xff]   ;;  %v3394_v17 = vld [vmem:[%s4339_s1 + $0x1f8] sm:$0xff]  }
  0x59   : > { %3087 = vmatprep.subr.bf16.mxu0 %v3362_v37  ;;  %v1678_v15 = vor.u32 %v1677_v40, %v1674_v6  ;;  %v1744_v6 = vshrl.u32 %v2689_v1, 16  ;;  %v1747_v40 = vshll.u32 %v2689_v1, 16 }
  0x5a   : > { %v1689_v26 = vrot.slane %v1688_v50, 4 }
  0x5b   : > { %2994 = vmatpush3.bf16.msra.mxu1 %v3363_v27  ;;  %3080 = vmatmul.mubr.bf16.gmra.mrb[4].mxu0 %v2635_v42  ;;  %v1679_v24 = vrot.slane %v1678_v15, 4  ;;  %v3395_v27 = vld [vmem:[%s3590_s18 + $0xc] sm:$0xff]   ;;  %v1739_v15 = vshll.u32 %v4002_v47, 16 }
  0x5c   : > { %2995 = vmatprep.subr.bf16.mxu1 %v3365_v41  ;;  %3088 = vmatpush3.bf16.msra.mxu0 %v3362_v37  ;;  %v1694_v19 = vsel %vm3630_vm2, %v1689_v26, %v1693_v9  ;;  %v2683_v37 = vld [vmem:[%s3590_s18 + $0x24] sm:$0xf]  ;;  %v2686_v42 = vld [vmem:[%s3590_s18 + $0x30] sm:$0xf] }
  0x5d   : > { %3099 = vmatprep.mubr.bf16.mxu0 %v3376_v59  ;;  %3089 = vmatprep.subr.bf16.mxu0 %v3364_v44  ;;  %v1684_v32 = vsel %vm3630_vm2, %v1679_v24, %v1683_v60  ;;  %v3387_v59 = vld [vmem:[%s4339_s1 + $0xe8] sm:$0xff]   ;;  %v1723_v29 = vshll.u32 %v2686_v42, 16  ;;  %v1757_v60 = vshrl.u32 %v3999_v4, 16 }
  0x5e   : > { %v2708_v36 = vcombine.low %v1684_v32, %v1694_v19 }
  0x5f   : > { %2996 = vmatpush3.bf16.msra.mxu1 %v3365_v41  ;;  %v3384_v41 = vld [vmem:[%s4339_s1 + $0x1d8] sm:$0xff]   ;;  %v1725_v62 = vrot.slane %v1723_v29, 5  ;;  %v1759_v9 = vrot.slane %v1757_v60, 4  ;;  %v3398_v29 = vld [vmem:[%s4339_s1 + $0x208] sm:$0xff]  }
  0x60   : > { %2997 = vmatprep.subr.bf16.mxu1 %v3367_v49  ;;  %3090 = vmatpush3.bf16.msra.mxu0 %v3364_v44  ;;  %v1696_v44 = vshrl.u32 %v2683_v37, 16 }
  0x61   : > { %3091 = vmatprep.subr.bf16.mxu0 %v3366_v55 }
  0x62   : > { %v1698_v46 = vrot.slane %v1696_v44, 4  ;;  %v2720_v44 = vld [vmem:[%s3590_s18 + $0x18] sm:$0xe] }
  0x63   : > { %2998 = vmatpush3.bf16.msra.mxu1 %v3367_v49  ;;  %v1699_v49 = vshll.u32 %v2683_v37, 16  ;;  %v3397_v37 = vld [vmem:[%s4339_s1 + $0x200] sm:$0xff]  }
  0x64   : > { %2999 = vmatprep.subr.bf16.mxu1 %v3370_v56  ;;  %3092 = vmatpush3.bf16.msra.mxu0 %v3366_v55  ;;  %v1705_v55 = vshll.u32 %v3967_v39, 16 }
  0x65   : > { %3093 = vmatprep.subr.bf16.mxu0 %v3368_v57 }
  0x66   : > { %v3989_v58 = vrot.slane %v1705_v55, 5 }
  0x67   : > { %3000 = vmatpush3.bf16.msra.mxu1 %v3370_v56  ;;  %v1709_v56 = vshrl.u32 %v3967_v39, 16 }
  0x68   : > { %3001 = vmatprep.subr.bf16.mxu1 %v3373_v43  ;;  %3094 = vmatpush3.bf16.msra.mxu0 %v3368_v57  ;;  %v1720_v57 = vshrl.u32 %v2686_v42, 16 }
  0x69   : > { %3095 = vmatprep.subr.bf16.mxu0 %v3371_v52 }
  0x6a   : > { %v1722_v61 = vrot.slane %v1720_v57, 4 }
  0x6b   : > { %3002 = vmatpush3.bf16.msra.mxu1 %v3373_v43 }
  0x6c   : > { %3011 = vmatprep.subr.bf16.mxu1 %v3375_v0  ;;  %3096 = vmatpush3.bf16.msra.mxu0 %v3371_v52  ;;  %v1701_v52 = vrot.slane %v1699_v49, 5  ;;  %v1726_v28 = vor.u32 %v1725_v62, %v1722_v61  ;;  %v3403_v61 = vld [vmem:[%s4339_s1 + $0x220] sm:$0xff]   ;;  %v3404_v62 = vld [vmem:[%s4339_s1 + $0x228] sm:$0xff]  }
  0x6d   : > { %3097 = vmatprep.subr.bf16.mxu0 %v3374_v48 }
  0x6e   : > { %3004 = vmatmul.mubr.bf16.vlgmr.msra.gmra.mrb[0].mxu1 %v2521_v11  ;;  %v3974_v11 = vld [vmem:[%s3590_s18 + $0x34] sm:$0xf]  ;;  %v1702_v5 = vor.u32 %v1701_v52, %v1698_v46  ;;  %v1727_v24 = vrot.slane %v1726_v28, 4  ;;  %v1942_v46 = vrot.slane %v3926_v63, 5 }
  0x6f   : > { %3012 = vmatpush3.bf16.msra.mxu1 %v3375_v0  ;;  %3007 = vmatprep.mubr.bf16.mxu1 %v2522_v12  ;;  %v1729_v43 = vshll.u32 %v3974_v11, 16  ;;  %v1733_v30 = vshrl.u32 %v3974_v11, 16  ;;  %v1711_v0 = vrot.slane %v1709_v56, 4 }
  0x70   : > { %3013 = vmatprep.subr.bf16.mxu1 %v3379_v8  ;;  %3098 = vmatpush3.bf16.msra.mxu0 %v3374_v48  ;;  %v3388_v48 = vld [vmem:[%s4339_s1 + $0x1e8] sm:$0xff]   ;;  %v1703_v50 = vrot.slane %v1702_v5, 4  ;;  %v1953_v5 = vrot.slane %v3974_v11, 5 }
  0x71   : > { %3107 = vmatprep.subr.bf16.mxu0 %v3377_v14  ;;  %v1731_v2 = vrot.slane %v1729_v43, 5  ;;  %v1735_v3 = vrot.slane %v1733_v30, 4  ;;  %v1712_v12 = vor.u32 %v1711_v0, %v3989_v58  ;;  %v3400_v43 = vld [vmem:[%s3590_s18 + $0x30] sm:$0xff]   ;;  %v2724_v30 = vrot.slane %v2720_v44, 9 }
  0x72   : > { %v1708_v32 = vsel %vm3630_vm2, %v1703_v50, %v3989_v58  ;;  %v3401_v58 = vld [vmem:[%s4339_s1 + $0x210] sm:$0xff]   ;;  %v1955_v60 = vrot.slane %v1953_v5, 4  ;;  %v2723_v50 = vld [vmem:[%s3590_s18 + $0x3c] sm:$0xe] }
  0x73   : > { %3014 = vmatpush3.bf16.msra.mxu1 %v3379_v8  ;;  %3100 = vmatmul.mubr.bf16.vlgmr.msra.gmra.mrb[0].mxu0 %v3378_v7  ;;  %v1753_v8 = vshll.u32 %v3999_v4, 16  ;;  %v1713_v7 = vrot.slane %v1712_v12, 4  ;;  %v2722_v12 = vld [vmem:[%s3590_s18 + $0x30] sm:$0xe] }
  0x74   : > { %3015 = vmatprep.subr.bf16.mxu1 %v3381_v20  ;;  %3108 = vmatpush3.bf16.msra.mxu0 %v3377_v14  ;;  %v1736_v14 = vor.u32 %v1735_v3, %v1731_v2  ;;  %v3405_v3 = vld [vmem:[%s4339_s1 + $0x230] sm:$0xff]  }
  0x75   : > { %3103 = vmatprep.mubr.bf16.mxu0 %v3390_v21  ;;  %3109 = vmatprep.subr.bf16.mxu0 %v3380_v18  ;;  %v1755_v21 = vrot.slane %v1753_v8, 5  ;;  %v1718_v19 = vsel %vm3630_vm2, %v1713_v7, %v1717_v16  ;;  %v2726_v8 = vrot.slane %v2722_v12, 9  ;;  %v2727_v16 = vrot.slane %v2723_v50, 9  ;;  %v2210_v12 = vld [vmem:[%s4342_s4 + $0xf0] sm:$0xff] }
  0x76   : > { %3008 = vmatmul.mubr.bf16.gmra.mrb[4].mxu1 %v2523_v22  ;;  %v3396_v22 = vld [vmem:[%s3590_s18 + $0x18] sm:$0xff]   ;;  %v1737_v26 = vrot.slane %v1736_v14, 4  ;;  %v2709_v49 = vcombine.low %v1708_v32, %v1718_v19  ;;  %v1960_v14 = vrot.slane %v3999_v4, 5  ;;  %v2182_v19 = vld [vmem:[%s4342_s4 + $0x10] sm:$0xff] }
  0x77   : > { %3016 = vmatpush3.bf16.msra.mxu1 %v3381_v20  ;;  %3027 = vmatprep.mubr.bf16.mxu1 %v3395_v27  ;;  %v1749_v20 = vrot.slane %v1747_v40, 5  ;;  %v4020_v27 = vld [vmem:[%s3590_s18 + $0x44] sm:$0x1]  ;;  %v1949_v40 = vrot.slane %v3995_v13, 5  ;;  %v1954_v13 = vsel %vm3788_vm5, %v2726_v8, %v1953_v5 }
  0x78   : > { %3017 = vmatprep.subr.bf16.mxu1 %v3383_v53  ;;  %3110 = vmatpush3.bf16.msra.mxu0 %v3380_v18  ;;  %v1746_v18 = vrot.slane %v1744_v6, 4  ;;  %v1961_v4 = vsel %vm3788_vm5, %v2727_v16, %v1960_v14 }
  0x79   : > { %3111 = vmatprep.subr.bf16.mxu0 %v3382_v31 }
  0x7b   : > { %3018 = vmatpush3.bf16.msra.mxu1 %v3383_v53  ;;  %3104 = vmatmul.mubr.bf16.gmra.mrb[4].mxu0 %v3392_v35  ;;  %v1741_v53 = vrot.slane %v1739_v15, 5  ;;  %v1760_v35 = vor.u32 %v1759_v9, %v1755_v21  ;;  %v2196_v9 = vld [vmem:[%s4342_s4 + $0x80] sm:$0xff] }
  0x7c   : > { %3019 = vmatprep.subr.bf16.mxu1 %v3385_v25  ;;  %3112 = vmatpush3.bf16.msra.mxu0 %v3382_v31  ;;  %v3399_v31 = vld [vmem:[%s3590_s18 + $0x24] sm:$0xff]  }
  0x7d   : > { %3123 = vmatprep.mubr.bf16.mxu0 %v2708_v36  ;;  %3113 = vmatprep.subr.bf16.mxu0 %v3384_v41  ;;  %v1763_v36 = vshll.u32 %v4020_v27, 16  ;;  %v1742_v42 = vsel %vm3630_vm2, %v1737_v26, %v1741_v53  ;;  %v2198_v53 = vld [vmem:[%s4342_s4 + $0x90] sm:$0xff] }
  0x7f   : > { %3020 = vmatpush3.bf16.msra.mxu1 %v3385_v25  ;;  %v1750_v25 = vor.u32 %v1749_v20, %v1746_v18  ;;  %v1765_v57 = vrot.slane %v1763_v36, 5  ;;  %v1963_v18 = vrot.slane %v4020_v27, 5  ;;  %v2199_v27 = vld [vmem:[%s4342_s4 + $0x98] sm:$0xff]  ;;  %v2200_v36 = vld [vmem:[%s4342_s4 + $0xa0] sm:$0xff] }
  0x80   : > { %3021 = vmatprep.subr.bf16.mxu1 %v3387_v59  ;;  %3114 = vmatpush3.bf16.msra.mxu0 %v3384_v41  ;;  %v1732_v41 = vsel %vm3630_vm2, %v1727_v24, %v1731_v2  ;;  %v1946_v2 = vrot.slane %v3967_v39, 5  ;;  %v3406_v39 = vld [vmem:[%s4339_s1 + $0x238] sm:$0xff]   ;;  %v2180_v24 = vld [vmem:[%s4342_s4] sm:$0xff]  ;;  %v3159_v32 = vpack.c.bf16 %v2199_v27, %v2198_v53 }
  0x81   : > { %3115 = vmatprep.subr.bf16.mxu0 %v3386_v54  ;;  %v2710_v55 = vcombine.low %v1732_v41, %v1742_v42  ;;  %v1751_v56 = vrot.slane %v1750_v25, 4  ;;  %v2183_v25 = vld [vmem:[%s4342_s4 + $0x18] sm:$0xff]  ;;  %v2184_v42 = vld [vmem:[%s4342_s4 + $0x20] sm:$0xff] }
  0x82   : > { %v1948_v6 = vrot.slane %v1946_v2, 4 }
  0x83   : > { %3022 = vmatpush3.bf16.msra.mxu1 %v3387_v59  ;;  %v1939_v59 = vrot.slane %v3923_v23, 5  ;;  %v1756_v23 = vsel %vm3630_vm2, %v1751_v56, %v1755_v21 }
  0x84   : > { %3023 = vmatprep.subr.bf16.mxu1 %v3389_v38  ;;  %3116 = vmatpush3.bf16.msra.mxu0 %v3386_v54  ;;  %v1761_v54 = vrot.slane %v1760_v35, 4  ;;  %v1950_v28 = vsel %vm3788_vm5, %v1948_v6, %v1949_v40  ;;  %v3161_v35 = vpack.c.bf16 %v2183_v25, %v2182_v19  ;;  %v2194_v40 = vld [vmem:[%s4342_s4 + $0x70] sm:$0xff] }
  0x85   : > { %3117 = vmatprep.subr.bf16.mxu0 %v3388_v48  ;;  %v1940_v0 = vsel %vm3788_vm5, %v2724_v30, %v1939_v59  ;;  %v2205_v30 = vld [vmem:[%s4342_s4 + $0xc8] sm:$0xff] }
  0x86   : > { %v1766_v52 = vsel %vm3630_vm2, %v1761_v54, %v1765_v57  ;;  %v2186_v54 = vld [vmem:[%s4342_s4 + $0x30] sm:$0xff]  ;;  %v2187_v57 = vld [vmem:[%s4342_s4 + $0x38] sm:$0xff] }
  0x87   : > { %3024 = vmatpush3.bf16.msra.mxu1 %v3389_v38  ;;  %v1941_v38 = vrot.slane %v1939_v59, 4  ;;  %v2185_v59 = vld [vmem:[%s4342_s4 + $0x28] sm:$0xff] }
  0x88   : > { %3025 = vmatprep.subr.bf16.mxu1 %v3393_v51  ;;  %3118 = vmatpush3.bf16.msra.mxu0 %v3388_v48  ;;  %v2711_v48 = vcombine.low %v1756_v23, %v1766_v52  ;;  %v3165_v44 = vpack.c.bf16 %v2185_v59, %v2184_v42  ;;  %v2189_v23 = vld [vmem:[%s4342_s4 + $0x48] sm:$0xff] }
  0x89   : > { %3119 = vmatprep.subr.bf16.mxu0 %v3391_v10  ;;  %v1943_v63 = vsel %vm3788_vm5, %v1941_v38, %v1942_v46  ;;  %v2188_v46 = vld [vmem:[%s4342_s4 + $0x40] sm:$0xff] }
  0x8a   : > { %v2744_v1 = vcombine.low %v1940_v0, %v1943_v63  ;;  %v3173_v52 = vpack.c.bf16 %v2189_v23, %v2188_v46  ;;  %v2207_v0 = vld [vmem:[%s4342_s4 + $0xd8] sm:$0xff]  ;;  %v2230_v23 = vld [vmem:[%s4342_s4 + $0x190] sm:$0xff] }
  0x8b   : > { %3026 = vmatpush3.bf16.msra.mxu1 %v3393_v51  ;;  %v2721_v51 = vld [vmem:[%s3590_s18 + $0x24] sm:$0xe]  ;;  %s2400_s18 = sshll.u32 %s243_s17, 4  ;;  %s4298_s18 = int_to_ptr.vmem [resolvable:$true] %s2400_s18 }
  0x8c   : > { %3120 = vmatpush3.bf16.msra.mxu0 %v3391_v10  ;;  %v2725_v45 = vrot.slane %v2721_v51, 9  ;;  %v1956_v10 = vrot.slane %v4002_v47, 5  ;;  %v2193_v51 = vld [vmem:[%s4342_s4 + $0x68] sm:$0xff]  ;;  %s3407_s29 = scalar_lea.vmem %s4298_s18, 16  ;;  %p3414_p0 = scmp.lt.s32.totalorder %s4298_s18, %s3412_s9 }
  0x8d   : > { %3121 = vmatprep.subr.bf16.mxu0 %v3394_v17  ;;  %p3408_p11 = scmp.ne.s32.totalorder %s4298_s18, %s3407_s29  ;;  %p3415_p1 = scmp.lt.s32.totalorder %s3413_s10, %s3407_s29 }
  0x8e   : > { %3028 = vmatmul.mubr.bf16.vlgmr.msra.gmra.mrb[0].mxu1 %v3396_v22  ;;  %v1947_v11 = vsel %vm3788_vm5, %v2725_v45, %v1946_v2  ;;  %v1957_v15 = vsel %vm3788_vm5, %v1955_v60, %v1956_v10  ;;  %v2197_v22 = vld [vmem:[%s4342_s4 + $0x88] sm:$0xff]  ;;  %v2211_v45 = vld [vmem:[%s4342_s4 + $0xf8] sm:$0xff]  ;;  %v2228_v60 = vld [vmem:[%s4342_s4 + $0x180] sm:$0xff] }
  0x8f   : > { %3031 = vmatprep.mubr.bf16.mxu1 %v3399_v31  ;;  %v2745_v7 = vcombine.low %v1947_v11, %v1950_v28  ;;  %v2746_v47 = vcombine.low %v1954_v13, %v1957_v15  ;;  %v3155_v26 = vpack.c.bf16 %v2197_v22, %v2196_v9  ;;  %v3157_v31 = vpack.c.bf16 %v2181_v33, %v2180_v24  ;;  %v2229_v10 = vld [vmem:[%s4342_s4 + $0x188] sm:$0xff]  ;;  %p3409_p12 = pnand %p3408_p11, %p3545_p5  ;;  %p3416_p2 = por %p3415_p1, %p3414_p0 }
  0x90   : > { %3122 = vmatpush3.bf16.msra.mxu0 %v3394_v17  ;;  %v1962_v17 = vrot.slane %v1960_v14, 4  ;;  %v3183_v6 = vpack.c.bf16 %v2211_v45, %v2210_v12  ;;  %v3187_v11 = vpack.c.bf16 %v2229_v10, %v2228_v60  ;;  %v2218_v10 = vld [vmem:[%s4342_s4 + $0x130] sm:$0xff] }
  0x91   : > { %3131 = vmatprep.subr.bf16.mxu0 %v3397_v37  ;;  %3156 = vmatprep.subr.bf16.mxu1 %v3155_v26  ;;  %p3410_p13 = pneg %p3409_p12 }
  0x92   : > { %v1964_v20 = vsel %vm3788_vm5, %v1962_v17, %v1963_v18  ;;  %3158 = vmatpush3.bf16.msra.mxu1 %v3157_v31  ;;  %v2756_v18 = vld [vmem:[%s4340_s2] ss:$0 sm:$0xff] }
  0x93   : > { %3124 = vmatmul.mubr.bf16.vlgmr.msra.gmra.mrb[0].mxu0 %v2709_v49  ;;  %v2747_v21 = vcombine.low %v1961_v4, %v1964_v20  ;;  %3160 = vmatprep.subr.bf16.mxu1 %v3159_v32  ;;  %v2202_v49 = vld [vmem:[%s4342_s4 + $0xb0] sm:$0xff]  ;;  %p3417_p3 = pnand %p3416_p2, %p3410_p13 }
  0x94   : > { %3132 = vmatpush3.bf16.msra.mxu0 %v3397_v37  ;;  %3127 = vmatprep.mubr.bf16.mxu0 %v2710_v55  ;;  %v2201_v37 = vld [vmem:[%s4342_s4 + $0xa8] sm:$0xff]  ;;  %v2203_v55 = vld [vmem:[%s4342_s4 + $0xb8] sm:$0xff] }
  0x95   : > { %3133 = vmatprep.subr.bf16.mxu0 %v3398_v29  ;;  %v3163_v41 = vpack.c.bf16 %v2201_v37, %v2200_v36  ;;  %v3167_v56 = vpack.c.bf16 %v2203_v55, %v2202_v49 }
  0x96   : > { %3032 = vmatmul.mubr.bf16.gmra.mrb[4].mxu1 %v3400_v43  ;;  %v2204_v43 = vld [vmem:[%s4342_s4 + $0xc0] sm:$0xff] }
  0x97   : > { %3162 = vmatpush3.bf16.msra.mxu1 %v3161_v35  ;;  %v3171_v38 = vpack.c.bf16 %v2205_v30, %v2204_v43  ;;  %v2213_v43 = vld [vmem:[%s4342_s4 + $0x108] sm:$0xff] }
  0x98   : > { %3134 = vmatpush3.bf16.msra.mxu0 %v3398_v29  ;;  %3164 = vmatprep.subr.bf16.mxu1 %v3163_v41  ;;  %v3169_v29 = vpack.c.bf16 %v2187_v57, %v2186_v54 }
  0x99   : > { %3135 = vmatprep.subr.bf16.mxu0 %v3401_v58 }
  0x9b   : > { %3128 = vmatmul.mubr.bf16.gmra.mrb[4].mxu0 %v2711_v48  ;;  %3166 = vmatpush3.bf16.msra.mxu1 %v3165_v44  ;;  %v2190_v48 = vld [vmem:[%s4342_s4 + $0x50] sm:$0xff] }
  0x9c   : > { %3136 = vmatpush3.bf16.msra.mxu0 %v3401_v58  ;;  %3147 = vmatprep.mubr.bf16.mxu0 %v2744_v1  ;;  %v2206_v58 = vld [vmem:[%s4342_s4 + $0xd0] sm:$0xff]  ;;  %v2191_v1 = vld [vmem:[%s4342_s4 + $0x58] sm:$0xff] }
  0x9d   : > { %3137 = vmatprep.subr.bf16.mxu0 %v3402_v34  ;;  %3168 = vmatprep.subr.bf16.mxu1 %v3167_v56  ;;  %v3175_v63 = vpack.c.bf16 %v2207_v0, %v2206_v58 }
  0x9f   : > { %3170 = vmatpush3.bf16.msra.mxu1 %v3169_v29  ;;  %v2212_v29 = vld [vmem:[%s4342_s4 + $0x100] sm:$0xff] }
  0xa0   : > { %3138 = vmatpush3.bf16.msra.mxu0 %v3402_v34  ;;  %3172 = vmatprep.subr.bf16.mxu1 %v3171_v38  ;;  %v3177_v34 = vpack.c.bf16 %v2191_v1, %v2190_v48  ;;  %v3189_v0 = vpack.c.bf16 %v2213_v43, %v2212_v29  ;;  %v2214_v48 = vld [vmem:[%s4342_s4 + $0x110] sm:$0xff]  ;;  %v2215_v1 = vld [vmem:[%s4342_s4 + $0x118] sm:$0xff] }
  0xa1   : > { %3139 = vmatprep.subr.bf16.mxu0 %v3403_v61 }
  0xa3   : > { %3174 = vmatpush3.bf16.msra.mxu1 %v3173_v52  ;;  %v2231_v52 = vld [vmem:[%s4342_s4 + $0x198] sm:$0xff] }
  0xa4   : > { %3140 = vmatpush3.bf16.msra.mxu0 %v3403_v61  ;;  %3176 = vmatprep.subr.bf16.mxu1 %v3175_v63  ;;  %v2208_v61 = vld [vmem:[%s4342_s4 + $0xe0] sm:$0xff]  ;;  %v3191_v63 = vpack.c.bf16 %v2231_v52, %v2230_v23 }
  0xa5   : > { %3141 = vmatprep.subr.bf16.mxu0 %v3404_v62 }
  0xa7   : > { %3178 = vmatpush3.bf16.msra.mxu1 %v3177_v34  ;;  %v2232_v34 = vld [vmem:[%s4342_s4 + $0x1a0] sm:$0xff] }
  0xa8   : > { %3142 = vmatpush3.bf16.msra.mxu0 %v3404_v62  ;;  %v2209_v62 = vld [vmem:[%s4342_s4 + $0xe8] sm:$0xff] }
  0xa9   : > { %3143 = vmatprep.subr.bf16.mxu0 %v3405_v3  ;;  %v3179_v2 = vpack.c.bf16 %v2209_v62, %v2208_v61  ;;  %v2233_v61 = vld [vmem:[%s4342_s4 + $0x1a8] sm:$0xff]  ;;  %v3193_v62 = vpack.c.bf16 %v2215_v1, %v2214_v48 }
  0xab   : > { %3180 = vmatprep.subr.bf16.mxu1 %v3179_v2  ;;  %v2216_v2 = vld [vmem:[%s4342_s4 + $0x120] sm:$0xff] }
  0xac   : > { %3144 = vmatpush3.bf16.msra.mxu0 %v3405_v3  ;;  %v2192_v3 = vld [vmem:[%s4342_s4 + $0x60] sm:$0xff] }
  0xad   : > { %3145 = vmatprep.subr.bf16.mxu0 %v3406_v39  ;;  %v3181_v5 = vpack.c.bf16 %v2193_v51, %v2192_v3  ;;  %v2217_v3 = vld [vmem:[%s4342_s4 + $0x128] sm:$0xff]  ;;  %v3195_v51 = vpack.c.bf16 %v2233_v61, %v2232_v34 }
  0xaf   : > { %3182 = vmatpush3.bf16.msra.mxu1 %v3181_v5 }
  0xb0   : > { %3146 = vmatpush3.bf16.msra.mxu0 %v3406_v39  ;;  %v2195_v39 = vld [vmem:[%s4342_s4 + $0x78] sm:$0xff]  ;;  %3184 = vmatprep.subr.bf16.mxu1 %v3183_v6  ;;  %v2234_v6 = vld [vmem:[%s4342_s4 + $0x1b0] sm:$0xff] }
  0xb1   : > { %v3185_v8 = vpack.c.bf16 %v2195_v39, %v2194_v40  ;;  %v2235_v40 = vld [vmem:[%s4342_s4 + $0x1b8] sm:$0xff] }
  0xb2   : > { %v3199_v60 = vpack.c.bf16 %v2235_v40, %v2234_v6 }
  0xb3   : > { %3148 = vmatmul.mubr.bf16.vlgmr.msra.gmra.mrb[0].mxu0 %v2745_v7  ;;  %3186 = vmatpush3.bf16.msra.mxu1 %v3185_v8  ;;  %v3197_v8 = vpack.c.bf16 %v2217_v3, %v2216_v2 }
  0xb4   : > { %3151 = vmatprep.mubr.bf16.mxu0 %v2746_v47  ;;  %3188 = vmatprep.subr.bf16.mxu1 %v3187_v11  ;;  %v2219_v11 = vld [vmem:[%s4342_s4 + $0x138] sm:$0xff] }
  0xbb   : > { %3152 = vmatmul.mubr.bf16.gmra.mrb[4].mxu0 %v2747_v21  ;;  %v2757_v21 = vld [vmem:[%s4341_s3] ss:$0 sm:$0xff] }
 0x161   : > { %v3029_v28 = vpop.f32.mrb[0].mxu1 }
 0x162   : > { %v989_v14 = vpop.f32.mrb[1].mxu1 }
 0x163   : > { %v3030_v13 = vpop.f32.mrb[2].mxu1 }
 0x164   : > { %v992_v15 = vpop.f32.mrb[3].mxu1  ;;  %v3201_v13 = vpack.c.bf16 %v2219_v11, %v2218_v10 }
 0x169   : > { %v3033_v50 = vpop.f32.mrb[4].mxu1 }
 0x16a   : > { %v1005_v7 = vpop.f32.mrb[5].mxu1 }
 0x16b   : > { %v3034_v47 = vpop.f32.mrb[6].mxu1 }
 0x16c   : > { %v1008_v16 = vpop.f32.mrb[7].mxu1  ;;  %v2238_v47 = vld [vmem:[%s4342_s4 + $0x1d0] sm:$0xff] }
 0x16d   : > { %v2239_v16 = vld [vmem:[%s4342_s4 + $0x1d8] sm:$0xff] }
 0x186   : > { %v3149_v17 = vpop.f32.mrb[0].mxu0 }
 0x187   : > { %v3219_v4 = vadd.f32 %v3149_v17, %v3029_v28  ;;  %v2080_v20 = vpop.f32.mrb[1].mxu0  ;;  %v2236_v28 = vld [vmem:[%s4342_s4 + $0x1c0] sm:$0xff] }
 0x188   : > { %v3220_v9 = vadd.f32 %v2080_v20, %v989_v14  ;;  %v3150_v22 = vpop.f32.mrb[2].mxu0  ;;  %v2237_v14 = vld [vmem:[%s4342_s4 + $0x1c8] sm:$0xff]  ;;  %v2223_v20 = vld [vmem:[%s4342_s4 + $0x158] sm:$0xff] }
 0x189   : > { %v2128_v24 = vmul.f32 %v3219_v4, %v2756_v18  ;;  %v2083_v26 = vpop.f32.mrb[3].mxu0  ;;  %v3203_v15 = vpack.c.bf16 %v2237_v14, %v2236_v28  ;;  %v2222_v4 = vld [vmem:[%s4342_s4 + $0x150] sm:$0xff] }
 0x18a   : > { %v2126_v33 = vmul.f32 %v3220_v9, %v2756_v18  ;;  %v2241_v9 = vld [vmem:[%s4342_s4 + $0x1e8] sm:$0xff]  ;;  %v3209_v22 = vpack.c.bf16 %v2223_v20, %v2222_v4  ;;  %v2224_v26 = vld [vmem:[%s4342_s4 + $0x160] sm:$0xff] }
 0x18b   : > { %v2143_v53 = vadd.f32 %v2757_v21, %v2128_v24 }
 0x18c   : > { %v2141_v27 = vadd.f32 %v2757_v21, %v2126_v33  ;;  %v2225_v33 = vld [vmem:[%s4342_s4 + $0x168] sm:$0xff] }
 0x18d   : > { %v2151_v31 = vmax.f32 %v2143_v53, 0.0  ;;  %v2242_v53 = vld [vmem:[%s4342_s4 + $0x1f0] sm:$0xff] }
 0x18e   : > { %v2149_v32 = vmax.f32 %v2141_v27, 0.0  ;;  %v3153_v19 = vpop.f32.mrb[4].mxu0  ;;  %v2243_v27 = vld [vmem:[%s4342_s4 + $0x1f8] sm:$0xff] }
 0x18f   : > { %v3223_v25 = vadd.f32 %v3153_v19, %v3033_v50  ;;  %v2096_v35 = vpop.f32.mrb[5].mxu0  ;;  %v2220_v50 = vld [vmem:[%s4342_s4 + $0x140] sm:$0xff]  ;;  %v2226_v19 = vld [vmem:[%s4342_s4 + $0x170] sm:$0xff] }
 0x190   : > { %v2157_v36 = vmax.f32 %v2149_v32, %v2151_v31  ;;  %v3224_v37 = vadd.f32 %v2096_v35, %v1005_v7  ;;  %v3154_v41 = vpop.f32.mrb[6].mxu0  ;;  %v2221_v7 = vld [vmem:[%s4342_s4 + $0x148] sm:$0xff]  ;;  %v3213_v31 = vpack.c.bf16 %v2225_v33, %v2224_v26  ;;  %v3215_v32 = vpack.c.bf16 %v2243_v27, %v2242_v53 }
 0x191   : > { %v2132_v42 = vmul.f32 %v3223_v25, %v2756_v18  ;;  %v2099_v59 = vpop.f32.mrb[7].mxu0  ;;  %v3205_v17 = vpack.c.bf16 %v2221_v7, %v2220_v50  ;;  %v2227_v25 = vld [vmem:[%s4342_s4 + $0x178] sm:$0xff] }
 0x192   : > { %2161 = vst [vmem:[#allocation2] sm:$0xff] %v2157_v36  ;;  %v2130_v44 = vmul.f32 %v3224_v37, %v2756_v18  ;;  %v3207_v18 = vpack.c.bf16 %v2239_v16, %v2238_v47  ;;  %v3217_v35 = vpack.c.bf16 %v2227_v25, %v2226_v19 }
 0x193   : > { %v2147_v49 = vadd.f32 %v2757_v21, %v2132_v42  ;;  %v2244_v42 = vld [vmem:[%s4343_s5] sm:$0x1] }
 0x194   : > { %v2145_v55 = vadd.f32 %v2757_v21, %v2130_v44  ;;  %v2240_v21 = vld [vmem:[%s4342_s4 + $0x1e0] sm:$0xff] }
 0x195   : > { %v2155_v56 = vmax.f32 %v2147_v49, 0.0  ;;  %v3211_v24 = vpack.c.bf16 %v2241_v9, %v2240_v21 }
 0x196   : > { %v2153_v54 = vmax.f32 %v2145_v55, 0.0 }
 0x198   : > { %v2159_v57 = vmax.f32 %v2153_v54, %v2155_v56 }
 0x199   : > { %v2165_v30 = vld [vmem:[#allocation2] ss:$2 sm:$0x3]  ;;  %v2169_v38 = vld [vmem:[#allocation2 + $0x1] ss:$2 sm:$0x3] }
 0x19a   : > { %2163 = vst [vmem:[#allocation2 + $0x10] sm:$0xff] %v2159_v57  ;;  %v2172_v46 = vmax.f32 %v2165_v30, %v2169_v38 }
 0x19c   : > { %v2175_v58 = vrot.slane %v2172_v46, 1 }
 0x19e   : > { %2309 = vmatprep.mubr.f32.mxu1 %v2175_v58 }
 0x19f   : > { %2310 = vmatmul.mubr.f32.vlgmr.msra.gmra.mrb[8].mxu1 %v2172_v46 }
 0x1a0   : > { %3190 = vmatpush3.bf16.msra.mxu1 %v3189_v0 }
 0x1a1   : > { %3192 = vmatprep.subr.bf16.mxu1 %v3191_v63  ;;  %v2167_v5 = vld [vmem:[#allocation2 + $0x10] ss:$2 sm:$0x3]  ;;  %v2171_v12 = vld [vmem:[#allocation2 + $0x11] ss:$2 sm:$0x3] }
 0x1a2   : > { %v2173_v45 = vmax.f32 %v2167_v5, %v2171_v12 }
 0x1a4   : > { %3194 = vmatpush3.bf16.msra.mxu1 %v3193_v62  ;;  %v2178_v39 = vrot.slane %v2173_v45, 1 }
 0x1a5   : > { %3196 = vmatprep.subr.bf16.mxu1 %v3195_v51 }
 0x1a6   : > { %2379 = vmatprep.mubr.f32.mxu1 %v2178_v39 }
 0x1a8   : > { %3198 = vmatpush3.bf16.msra.mxu1 %v3197_v8 }
 0x1a9   : > { %3200 = vmatprep.subr.bf16.mxu1 %v3199_v60 }
 0x1ac   : > { %3202 = vmatpush3.bf16.msra.mxu1 %v3201_v13 }
 0x1ad   : > { %3204 = vmatprep.subr.bf16.mxu1 %v3203_v15 }
 0x1b0   : > { %3206 = vmatpush3.bf16.msra.mxu1 %v3205_v17 }
 0x1b1   : > { %3208 = vmatprep.subr.bf16.mxu1 %v3207_v18 }
 0x1b4   : > { %3210 = vmatpush3.bf16.msra.mxu1 %v3209_v22 }
 0x1b5   : > { %3212 = vmatprep.subr.bf16.mxu1 %v3211_v24 }
 0x1b8   : > { %3214 = vmatpush3.bf16.msra.mxu1 %v3213_v31 }
 0x1b9   : > { %3216 = vmatprep.subr.bf16.mxu1 %v3215_v32 }
 0x1bc   : > { %3218 = vmatpush3.bf16.msra.mxu1 %v3217_v35 }
 0x1bf   : > { %2380 = vmatmul.mubr.f32.vlgmr.msra.gmra.mrb[10].mxu1 %v2173_v45 }
 0x272   : > { %v2901_v36 = vpop.f32.mrb[8].mxu1 }
 0x273   : > { %v2902_v37 = vpop.f32.mrb[9].mxu1 }
 0x274   : > { %v2903_v41 = vadd.f32 %v2902_v37, %v2901_v36 }
 0x276   : > { %v2312_v49 = vadd.f32 %v2903_v41, %v2244_v42 }
 0x292   : > { %v2936_v59 = vpop.f32.mrb[10].mxu1 }
 0x293   : > { %v2937_v44 = vpop.f32.mrb[11].mxu1 }
 0x294   : > { %v2938_v55 = vadd.f32 %v2937_v44, %v2936_v59 }
 0x296   : > { %v2382_v56 = vadd.f32 %v2938_v55, %v2312_v49 }
 0x298   : > { %2386 = vst.msk [vmem:[%s243_s17] sm:$0x1] %vm2385_vm6, %v2382_v56 }
 0x299   : > { %3420 = shalt.err (!%p3417_p3)
}
 0x29a   : > { %s3421_s11 = scalar_lea.hbm %s4296_s26, 16  ;;  %s3425_s14 = scalar_lea.hbm %s4344_s6, 32 }
 0x29b   : > { %p3422_p4 = scmp.ne.s32.totalorder %s4296_s26, %s3421_s11  ;;  %p3426_p9 = scmp.lt.u32.totalorder %s4296_s26, %s4344_s6 }
 0x29c   : > { %p3427_p10 = scmp.lt.u32.totalorder %s3425_s14, %s3421_s11  ;;  %p3429_p12 = scmp.lt.u32.totalorder %s3421_s11, %s4296_s26 }
 0x29d   : > { %p3423_p7 = pnand %p3422_p4, %p3545_p5 }
 0x29e   : > { %p3428_p11 = por %p3427_p10, %p3426_p9 }
 0x29f   : > { %p3424_p8 = pneg %p3423_p7 }
 0x2a0   : > { %p3430_p13 = por %p3429_p12, %p3428_p11 }
 0x2a2   : > { %p3431_p0 = pnand %p3430_p13, %p3424_p8 }
 0x2a4   : > { %3434 = shalt.err (!%p3431_p0)
}
 0x2a5   : > { %3284 = dma.vmem_to_hbm [thread:$0]  (%p3545_p5), %s4298_s18, 16, %s4296_s26, %s2388_s28  }
 0x2a6 PF: > { %p3290_p1 = scmp.ge.s32.totalorder %s3469_s24, 2  ;;  %s2412_s17 = sand.u32 1, %s3457_s21  }
 0x2a7   : > { %s2413_s19 = scalar_lea.sflag [#allocation4], %s2412_s17 }
 0x2a8   : > { %p3287_p2 = pnand %p3290_p1, %p3549_p6 }
 0x2aa   : > { %3452 = dma.done.wait (!%p3287_p2), %s2413_s19, 16  }
 0x2ab   : > { %3454 = vsyncadd (!%p3287_p2), %s2413_s19, 4294967280  ;;  %p16_p3 = scmp.ge.s32.totalorder %s3532_s27, 4   ;;  %s4351_s21 = smov %s3461_s22 }
 0x2ac   : > { %s4352_s22 = smov %s3465_s23  ;;  %s4353_s23 = smov %s3543_s30 }
 0x2ad   : > { %s4354_s24 = smov %s3532_s27  ;;  %18 = sbr.rel (!%p16_p3) target bundleno = 3 (0x3), region = 92 }
 0x2b4   :  { %2417 = vsyncpa [#allocation4], 1 }
 0x2b5   :  { %2419 = vsyncpa [#allocation4 + $0x1], 1 }

// kernel: net_forward.4
= control target key start
LH: loop header
LB: loop body
LE: loop exit
PB: predicated region body
PF: predicated region fallthrough
CT: control target
= control target key end

     0   :  { %s10222_s15 = smov 0   ;;  %s12782_s0 = inlined_call_operand.vmem [shape: bf16[2,15,19,128], index: 0, kind: input, shape index: {}]   ;;  %s12783_s1 = inlined_call_operand.vmem [shape: bf16[16,128,128], index: 1, kind: input, shape index: {}]   ;;  %s12784_s2 = inlined_call_operand.vmem [shape: f32[1,128], index: 2, kind: input, shape index: {}]   ;;  %s12785_s3 = inlined_call_operand.vmem [shape: f32[1,128], index: 3, kind: input, shape index: {}]   ;;  %s12786_s4 = inlined_call_operand.vmem [shape: bf16[2,6,6,128], index: 4, kind: output, shape index: {}]  }
   0x1 LB: > { %s7756_s16 = sadd.s32 4294967295, %s10195_s15   ;;  %p7760_p0 = scmp.ge.s32.totalorder %s10195_s15, 1  ;;  %s10195_s15 = sphi %s10222_s15, %s14_s15  }
   0x2   : > { %p162_p1 = scmp.lt.s32.totalorder %s10195_s15, 3 }
   0x4   : > { %p163_p2 = pnand %p7760_p0, %p162_p1 }
   0x6   : > { %166 = sbr.rel (%p163_p2) target bundleno = 811 (0x32b), region = 36 }
   0xd   : > { %v9957_v0 = vld [vmem:[%s12783_s1 + $0x40] sm:$0xff]   ;;  %p188_p3 = scmp.lt.s32.totalorder %s7756_s16, 1  ;;  %v9959_v2 = vld [vmem:[%s12783_s1 + $0x48] sm:$0xff]   ;;  %v9961_v4 = vld [vmem:[%s12783_s1 + $0x50] sm:$0xff]   ;;  %vm251_vm0 = vsmask.f32 3328 }
   0xe   : > { %v9958_v1 = vld [vmem:[%s12783_s1 + $0x200] sm:$0xff]   ;;  %8947 = vmatprep.subr.bf16.mxu1 %v9957_v0  ;;  %v9960_v3 = vld [vmem:[%s12783_s1 + $0x208] sm:$0xff]   ;;  %v9962_v5 = vld [vmem:[%s12783_s1 + $0x210] sm:$0xff]   ;;  %vm252_vm1 = vsmask.f32 7440  ;;  %v12920_v36 = vmov 0 }
   0xf   : > { %9267 = vmatprep.subr.bf16.mxu0 %v9958_v1  ;;  %8948 = vmatpush3.bf16.msra.mxu1 %v9957_v0  ;;  %s13073_s16 = smov (!%p188_p3, %s7756_s16), 1  ;;  %v9963_v6 = vld [vmem:[%s12783_s1 + $0x58] sm:$0xff]   ;;  %v9965_v8 = vld [vmem:[%s12783_s1 + $0x60] sm:$0xff]   ;;  %v9967_v10 = vld [vmem:[%s12783_s1 + $0x68] sm:$0xff]   ;;  %vm1069_vm3 = vcmask 1042432   ;;  %vm1070_vm4 = vcmask 1046532  }
  0x10   : > { %9268 = vmatpush3.bf16.msra.mxu0 %v9958_v1  ;;  %8949 = vmatprep.subr.bf16.mxu1 %v9959_v2  ;;  %v9964_v7 = vld [vmem:[%s12783_s1 + $0x218] sm:$0xff]   ;;  %s9947_s7 = smul.u32 180, %s13073_s16  ;;  %v9966_v9 = vld [vmem:[%s12783_s1 + $0x220] sm:$0xff]   ;;  %v9968_v11 = vld [vmem:[%s12783_s1 + $0x228] sm:$0xff]   ;;  %vm1434_vm6 = vsmask.f32 2304 }
  0x11   : > { %9269 = vmatprep.subr.bf16.mxu0 %v9960_v3  ;;  %v9969_v20 = vld [vmem:[%s12783_s1 + $0x70] sm:$0xff]   ;;  %v9971_v35 = vld [vmem:[%s12783_s1 + $0x78] sm:$0xff]   ;;  %vm10315_vm2 = vmor %vm251_vm0, %vm252_vm1  ;;  %vm1435_vm7 = vsmask.f32 6416  ;;  %s9948_s26 = smul.u32 24, %s13073_s16 }
  0x12   : > { %s10266_s14 = scalar_lea.vmem %s12782_s0, %s9947_s7  ;;  %v9970_v25 = vld [vmem:[%s12783_s1 + $0x230] sm:$0xff]   ;;  %v12921_v36 = vsel %vm10315_vm2, 4294967295, %v12920_v36  ;;  %v9972_v41 = vld [vmem:[%s12783_s1 + $0x238] sm:$0xff]   ;;  %v9974_v58 = vld [vmem:[%s12783_s1] sm:$0xff]  }
  0x13   : > { %8950 = vmatpush3.bf16.msra.mxu1 %v9959_v2  ;;  %v10275_v12 = vld [vmem:[%s10266_s14] sm:$0xf]  ;;  %v10278_v13 = vld [vmem:[%s10266_s14 + $0x4] sm:$0xf]  ;;  %v10281_v14 = vld [vmem:[%s10266_s14 + $0x8] sm:$0x1]  ;;  %s12733_s29 = scalar_lea.vmem %s12786_s4, %s9948_s26 }
  0x14   : > { %9270 = vmatpush3.bf16.msra.mxu0 %v9960_v3  ;;  %8951 = vmatprep.subr.bf16.mxu1 %v9961_v4  ;;  %v255_v15 = vshrl.u32 %v10275_v12, 16  ;;  %v258_v16 = vshll.u32 %v10275_v12, 16  ;;  %v264_v17 = vshll.u32 %v10278_v13, 16  ;;  %v12809_v18 = vshrl.u32 %v10278_v13, 16  ;;  %v9973_v23 = vld [vmem:[%s10266_s14 + $0x18] sm:$0xff]   ;;  %12922 = vst [vmem:[#allocation3_spill] sm:$0xff] %v12921_v36  ;;  %vm10930_vm5 = vmor %vm1069_vm3, %vm1070_vm4 }
  0x15   : > { %9271 = vmatprep.subr.bf16.mxu0 %v9962_v5  ;;  %v274_v19 = vshll.u32 %v10281_v14, 16  ;;  %v7799_v24 = vcombine.low %v10275_v12, %v10278_v13  ;;  %v10300_v29 = vld [vmem:[%s10266_s14 + $0xc] sm:$0xf]  ;;  %9283 = vmatprep.mubr.bf16.mxu0 %v9973_v23  ;;  %v10303_v31 = vld [vmem:[%s10266_s14 + $0x10] sm:$0xf]  ;;  %v9976_v62 = vld [vmem:[%s12783_s1 + $0x240] sm:$0xff]  }
  0x16   : > { %v257_v21 = vrot.slane %v255_v15, 4  ;;  %v260_v22 = vrot.slane %v258_v16, 5  ;;  %v266_v26 = vrot.slane %v264_v17, 5  ;;  %v270_v27 = vrot.slane %v12809_v18, 4  ;;  %v10306_v32 = vld [vmem:[%s10266_s14 + $0x14] sm:$0x1]  ;;  %vm11253_vm8 = vmor %vm1434_vm6, %vm1435_vm7 }
  0x17   : > { %8952 = vmatpush3.bf16.msra.mxu1 %v9961_v4  ;;  %v276_v28 = vrot.slane %v274_v19, 5  ;;  %v279_v33 = vshrl.u32 %v10300_v29, 16  ;;  %v282_v34 = vshll.u32 %v10300_v29, 16  ;;  %v288_v38 = vshll.u32 %v10303_v31, 16  ;;  %v10342_v0 = vld [vmem:[%s10266_s14 + $0x18] sm:$0xf] }
  0x18   : > { %9272 = vmatpush3.bf16.msra.mxu0 %v9962_v5  ;;  %8953 = vmatprep.subr.bf16.mxu1 %v9963_v6  ;;  %v261_v30 = vor.u32 %v260_v22, %v257_v21  ;;  %v271_v37 = vor.u32 %v270_v27, %v266_v26  ;;  %v292_v39 = vshrl.u32 %v10303_v31, 16  ;;  %v298_v40 = vshll.u32 %v10306_v32, 16  ;;  %v9975_v3 = vld [vmem:[%s10266_s14 + $0x24] sm:$0xff]   ;;  %v10349_v4 = vld [vmem:[%s10266_s14 + $0x1c] sm:$0xf] }
  0x19   : > { %9273 = vmatprep.subr.bf16.mxu0 %v9964_v7  ;;  %v281_v44 = vrot.slane %v279_v33, 4  ;;  %v284_v45 = vrot.slane %v282_v34, 5  ;;  %v10326_v47 = vrot.slane %v264_v17, 6  ;;  %v290_v48 = vrot.slane %v288_v38, 5  ;;  %v241_v5 = vld [vmem:[%s10266_s14 + $0x20] sm:$0x1] }
  0x1a   : > { %v262_v42 = vrot.slane %v261_v30, 4  ;;  %v272_v46 = vrot.slane %v271_v37, 4  ;;  %v294_v49 = vrot.slane %v292_v39, 4  ;;  %v1469_v52 = vrot.slane %v292_v39, 5  ;;  %v9978_v17 = vld [vmem:[%s12783_s1 + $0x248] sm:$0xff]   ;;  %v9979_v30 = vld [vmem:[%s10266_s14 + $0x30] sm:$0xff]  }
  0x1b   : > { %8954 = vmatpush3.bf16.msra.mxu1 %v9963_v6  ;;  %v285_v51 = vor.u32 %v284_v45, %v281_v44  ;;  %v1470_v53 = vrot.slane %v288_v38, 6  ;;  %v300_v56 = vrot.slane %v298_v40, 5  ;;  %v303_v6 = vshrl.u32 %v10342_v0, 16  ;;  %v10365_v21 = vld [vmem:[%s10266_s14 + $0x24] sm:$0xf] }
  0x1c   : > { %9274 = vmatpush3.bf16.msra.mxu0 %v9964_v7  ;;  %8955 = vmatprep.subr.bf16.mxu1 %v9965_v8  ;;  %v267_v50 = vsel %vm10315_vm2, %v262_v42, %v266_v26  ;;  %v277_v54 = vsel %vm10315_vm2, %v272_v46, %v276_v28  ;;  %v295_v55 = vor.u32 %v294_v49, %v290_v48  ;;  %v306_v7 = vshll.u32 %v10342_v0, 16  ;;  %v10372_v26 = vld [vmem:[%s10266_s14 + $0x28] sm:$0xf]  ;;  %v242_v33 = vld [vmem:[%s10266_s14 + $0x2c] sm:$0x1]  ;;  %v9981_v49 = vld [vmem:[%s12783_s1 + $0x10] sm:$0xff]  }
  0x1d   : > { %9275 = vmatprep.subr.bf16.mxu0 %v9966_v9  ;;  %v7779_v59 = vcombine.low %v267_v50, %v277_v54  ;;  %v286_v60 = vrot.slane %v285_v51, 4  ;;  %v10336_v61 = vor.u32 %v1470_v53, %v1469_v52  ;;  %v322_v15 = vshll.u32 %v241_v5, 16  ;;  %v9982_v50 = vld [vmem:[%s12783_s1 + $0x250] sm:$0xff]  }
  0x1e   : > { %v296_v63 = vrot.slane %v295_v55, 4  ;;  %v305_v19 = vrot.slane %v303_v6, 4  ;;  %v327_v27 = vshrl.u32 %v10365_v21, 16  ;;  %v330_v34 = vshll.u32 %v10365_v21, 16  ;;  %v10393_v54 = vld [vmem:[%s10266_s14 + $0x30] sm:$0xf] }
  0x1f   : > { %8956 = vmatpush3.bf16.msra.mxu1 %v9965_v8  ;;  %8963 = vmatprep.mubr.bf16.mxu1 %v7779_v59  ;;  %v291_v2 = vsel %vm10315_vm2, %v286_v60, %v290_v48  ;;  %v12804_v37 = vshrl.u32 %v10372_v26, 16  ;;  %v346_v40 = vshll.u32 %v242_v33, 16  ;;  %v351_v59 = vshrl.u32 %v10393_v54, 16 }
  0x20   : > { %9276 = vmatpush3.bf16.msra.mxu0 %v9966_v9  ;;  %8957 = vmatprep.subr.bf16.mxu1 %v9967_v10  ;;  %v301_v8 = vsel %vm10315_vm2, %v296_v63, %v300_v56  ;;  %v9977_v9 = vld [vmem:[%s12783_s1 + $0x8] sm:$0xff]   ;;  %v329_v39 = vrot.slane %v327_v27, 4  ;;  %v332_v42 = vrot.slane %v330_v34, 5  ;;  %v10398_v56 = vld [vmem:[%s10266_s14 + $0x34] sm:$0xf]  ;;  %v354_v60 = vshll.u32 %v10393_v54, 16 }
  0x21   : > { %9277 = vmatprep.subr.bf16.mxu0 %v9968_v11  ;;  %v7780_v16 = vcombine.low %v291_v2, %v301_v8  ;;  %v342_v45 = vrot.slane %v12804_v37, 4  ;;  %v348_v48 = vrot.slane %v346_v40, 5  ;;  %12923 = vst [vmem:[#allocation4_spill] sm:$0xff] %v10398_v56  ;;  %v12799_v5 = vshll.u32 %v10398_v56, 16 }
  0x22   : > { %v333_v52 = vor.u32 %v332_v42, %v329_v39  ;;  %v353_v6 = vrot.slane %v351_v59, 4  ;;  %v12802_v8 = vshrl.u32 %v10398_v56, 16 }
  0x23   : > { %8958 = vmatpush3.bf16.msra.mxu1 %v9967_v10  ;;  %v12805_v10 = vshll.u32 %v10349_v4, 16 }
  0x24   : > { %9278 = vmatpush3.bf16.msra.mxu0 %v9968_v11  ;;  %8959 = vmatprep.subr.bf16.mxu1 %v9969_v20  ;;  %v12806_v11 = vshrl.u32 %v10349_v4, 16  ;;  %v334_v63 = vrot.slane %v333_v52, 4  ;;  %v366_v27 = vrot.slane %v12802_v8, 4 }
  0x25   : > { %9279 = vmatprep.subr.bf16.mxu0 %v9970_v25  ;;  %v314_v22 = vrot.slane %v12805_v10, 5  ;;  %v10628_v10 = vld [vmem:[%s10266_s14 + $0x28] sm:$0xf] }
  0x26   : > { %v318_v23 = vrot.slane %v12806_v11, 4  ;;  %v12810_v18 = vshll.u32 %v10628_v10, 16 }
  0x27   : > { %8960 = vmatpush3.bf16.msra.mxu1 %v9969_v20  ;;  %v308_v20 = vrot.slane %v306_v7, 5  ;;  %v356_v7 = vrot.slane %v354_v60, 5  ;;  %v10440_v60 = vld [vmem:[%s10266_s14 + $0x48] sm:$0xf] }
  0x28   : > { %9280 = vmatpush3.bf16.msra.mxu0 %v9970_v25  ;;  %8961 = vmatprep.subr.bf16.mxu1 %v9971_v35  ;;  %v324_v25 = vrot.slane %v322_v15, 5  ;;  %v319_v38 = vor.u32 %v318_v23, %v314_v22  ;;  %v4223_v43 = vrot.slane %v12810_v18, 5 }
  0x29   : > { %9281 = vmatprep.subr.bf16.mxu0 %v9972_v41  ;;  %v309_v28 = vor.u32 %v308_v20, %v305_v19  ;;  %v362_v19 = vrot.slane %v12799_v5, 5  ;;  %v9983_v20 = vld [vmem:[%s10266_s14 + $0x48] sm:$0xff]  }
  0x2a   : > { %v320_v46 = vrot.slane %v319_v38, 4 }
  0x2b   : > { %8962 = vmatpush3.bf16.msra.mxu1 %v9971_v35  ;;  %v12803_v35 = vshll.u32 %v10372_v26, 16 }
  0x2c   : > { %9282 = vmatpush3.bf16.msra.mxu0 %v9972_v41  ;;  %8987 = vmatprep.subr.bf16.mxu1 %v9974_v58  ;;  %v310_v41 = vrot.slane %v309_v28, 4  ;;  %v325_v55 = vsel %vm10315_vm2, %v320_v46, %v324_v25  ;;  %v357_v25 = vor.u32 %v356_v7, %v353_v6  ;;  %v402_v6 = vshll.u32 %v10440_v60, 16 }
  0x2d   : > { %9307 = vmatprep.subr.bf16.mxu0 %v9976_v62  ;;  %v338_v44 = vrot.slane %v12803_v35, 5 }
  0x2e   : > { %8964 = vmatmul.mubr.bf16.vlgmr.msra.gmra.mrb[0].mxu1 %v7780_v16  ;;  %v315_v51 = vsel %vm10315_vm2, %v310_v41, %v314_v22  ;;  %v10417_v22 = vld [vmem:[%s10266_s14 + $0x40] sm:$0xf]  ;;  %v358_v40 = vrot.slane %v357_v25, 4  ;;  %v367_v41 = vor.u32 %v366_v27, %v362_v19  ;;  %v404_v27 = vrot.slane %v402_v6, 5 }
  0x2f   : > { %9284 = vmatmul.mubr.bf16.vlgmr.msra.gmra.mrb[0].mxu0 %v9975_v3  ;;  %8988 = vmatpush3.bf16.msra.mxu1 %v9974_v58  ;;  %v343_v53 = vor.u32 %v342_v45, %v338_v44  ;;  %v243_v58 = vld [vmem:[%s10266_s14 + $0x38] sm:$0x1]  ;;  %v9980_v3 = vld [vmem:[%s10266_s14 + $0x3c] sm:$0xff]   ;;  %v12797_v38 = vshll.u32 %v10417_v22, 16  ;;  %v12798_v39 = vshrl.u32 %v10417_v22, 16 }
  0x30   : > { %9308 = vmatpush3.bf16.msra.mxu0 %v9976_v62  ;;  %8989 = vmatprep.subr.bf16.mxu1 %v9977_v9  ;;  %v7781_v62 = vcombine.low %v315_v51, %v325_v55  ;;  %v370_v15 = vshll.u32 %v243_v58, 16  ;;  %v9986_v51 = vld [vmem:[%s12783_s1 + $0x258] sm:$0xff]   ;;  %v363_v52 = vsel %vm10315_vm2, %v358_v40, %v362_v19 }
  0x31   : > { %9309 = vmatprep.subr.bf16.mxu0 %v9978_v17  ;;  %9287 = vmatprep.mubr.bf16.mxu0 %v9979_v30  ;;  %v344_v2 = vrot.slane %v343_v53, 4  ;;  %v244_v30 = vld [vmem:[%s10266_s14 + $0x44] sm:$0x1]  ;;  %v386_v46 = vrot.slane %v12797_v38, 5  ;;  %v368_v53 = vrot.slane %v367_v41, 4  ;;  %v9999_v38 = vld [vmem:[%s12783_s1 + $0x38] sm:$0xff]  }
  0x32   : > { %8967 = vmatprep.mubr.bf16.mxu1 %v7781_v62  ;;  %v372_v28 = vrot.slane %v370_v15, 5  ;;  %v394_v42 = vshll.u32 %v244_v30, 16  ;;  %v10443_v62 = vld [vmem:[%s10266_s14 + $0x4c] sm:$0xf]  ;;  %v9987_v15 = vld [vmem:[%s10266_s14 + $0x60] sm:$0xff]  }
  0x33   : > { %8990 = vmatpush3.bf16.msra.mxu1 %v9977_v9  ;;  %v339_v9 = vsel %vm10315_vm2, %v334_v63, %v338_v44  ;;  %v349_v16 = vsel %vm10315_vm2, %v344_v2, %v348_v48  ;;  %v390_v48 = vrot.slane %v12798_v39, 4  ;;  %12924 = vst [vmem:[#allocation5_spill] sm:$0xff] %v10443_v62  ;;  %v245_v63 = vld [vmem:[%s10266_s14 + $0x50] sm:$0x1]  ;;  %v12793_v7 = vshll.u32 %v10443_v62, 16 }
  0x34   : > { %9310 = vmatpush3.bf16.msra.mxu0 %v9978_v17  ;;  %8991 = vmatprep.subr.bf16.mxu1 %v9981_v49  ;;  %v10414_v17 = vld [vmem:[%s10266_s14 + $0x3c] sm:$0xf]  ;;  %v7782_v23 = vcombine.low %v339_v9, %v349_v16  ;;  %v396_v55 = vrot.slane %v394_v42, 5  ;;  %v373_v2 = vsel %vm10315_vm2, %v368_v53, %v372_v28  ;;  %v418_v30 = vshll.u32 %v245_v63, 16  ;;  %v10468_v42 = vld [vmem:[%s10266_s14 + $0x58] sm:$0xf] }
  0x35   : > { %9311 = vmatprep.subr.bf16.mxu0 %v9982_v50  ;;  %v375_v33 = vshrl.u32 %v10414_v17, 16  ;;  %v378_v34 = vshll.u32 %v10414_v17, 16  ;;  %v391_v59 = vor.u32 %v390_v48, %v386_v46  ;;  %v7783_v9 = vcombine.low %v363_v52, %v373_v2 }
  0x36   : > { %8968 = vmatmul.mubr.bf16.gmra.mrb[4].mxu1 %v7782_v23  ;;  %v9988_v23 = vld [vmem:[%s12783_s1 + $0x20] sm:$0xff]   ;;  %v410_v28 = vrot.slane %v12793_v7, 5 }
  0x37   : > { %9288 = vmatmul.mubr.bf16.gmra.mrb[4].mxu0 %v9980_v3  ;;  %8992 = vmatpush3.bf16.msra.mxu1 %v9981_v49  ;;  %v377_v44 = vrot.slane %v375_v33, 4  ;;  %v380_v45 = vrot.slane %v378_v34, 5  ;;  %v9984_v49 = vld [vmem:[%s10266_s14 + $0x54] sm:$0xff]   ;;  %v399_v3 = vshrl.u32 %v10440_v60, 16  ;;  %v392_v19 = vrot.slane %v391_v59, 4 }
  0x38   : > { %9312 = vmatpush3.bf16.msra.mxu0 %v9982_v50  ;;  %9291 = vmatprep.mubr.bf16.mxu0 %v9983_v20  ;;  %v9985_v50 = vld [vmem:[%s12783_s1 + $0x18] sm:$0xff]   ;;  %v12794_v20 = vshrl.u32 %v10443_v62, 16  ;;  %v10459_v33 = vld [vmem:[%s10266_s14 + $0x54] sm:$0xf]  ;;  %v10558_v7 = vld [vmem:[%s10266_s14 + $0x84] sm:$0xf] }
  0x39   : > { %v381_v58 = vor.u32 %v380_v45, %v377_v44  ;;  %8993 = vmatprep.subr.bf16.mxu1 %v9985_v50  ;;  %9313 = vmatprep.subr.bf16.mxu0 %v9986_v51  ;;  %v401_v25 = vrot.slane %v399_v3, 4  ;;  %v397_v40 = vsel %vm10315_vm2, %v392_v19, %v396_v55  ;;  %v246_v44 = vld [vmem:[%s10266_s14 + $0x5c] sm:$0x1]  ;;  %v423_v45 = vshrl.u32 %v10459_v33, 16  ;;  %v9990_v3 = vld [vmem:[%s12783_s1 + $0x260] sm:$0xff]  }
  0x3a   : > { %8971 = vmatprep.mubr.bf16.mxu1 %v7783_v9  ;;  %v414_v41 = vrot.slane %v12794_v20, 4  ;;  %v426_v52 = vshll.u32 %v10459_v33, 16  ;;  %v12791_v55 = vshll.u32 %v10468_v42, 16  ;;  %v442_v2 = vshll.u32 %v246_v44, 16  ;;  %v10494_v44 = vld [vmem:[%s10266_s14 + $0x60] sm:$0xf] }
  0x3b   : > { %8994 = vmatpush3.bf16.msra.mxu1 %v9985_v50  ;;  %v382_v16 = vrot.slane %v381_v58, 4  ;;  %v405_v50 = vor.u32 %v404_v27, %v401_v25  ;;  %v425_v53 = vrot.slane %v423_v45, 4  ;;  %v9989_v58 = vld [vmem:[%s10266_s14 + $0x6c] sm:$0xff]   ;;  %v9993_v45 = vld [vmem:[%s10266_s14 + $0x78] sm:$0xff]  }
  0x3c   : > { %9314 = vmatpush3.bf16.msra.mxu0 %v9986_v51  ;;  %v420_v51 = vrot.slane %v418_v30, 5  ;;  %8995 = vmatprep.subr.bf16.mxu1 %v9988_v23  ;;  %v428_v63 = vrot.slane %v426_v52, 5  ;;  %v444_v25 = vrot.slane %v442_v2, 5  ;;  %v9992_v27 = vld [vmem:[%s12783_s1 + $0x268] sm:$0xff]   ;;  %v447_v52 = vshrl.u32 %v10494_v44, 16 }
  0x3d   : > { %v387_v34 = vsel %vm10315_vm2, %v382_v16, %v386_v46  ;;  %v415_v46 = vor.u32 %v414_v41, %v410_v28  ;;  %v406_v59 = vrot.slane %v405_v50, 4  ;;  %v9991_v16 = vld [vmem:[%s12783_s1 + $0x28] sm:$0xff]   ;;  %9315 = vmatprep.subr.bf16.mxu0 %v9990_v3 }
  0x3e   : > { %v7784_v48 = vcombine.low %v387_v34, %v397_v40  ;;  %v247_v50 = vld [vmem:[%s10266_s14 + $0x68] sm:$0x1]  ;;  %v449_v2 = vrot.slane %v447_v52, 4 }
  0x3f   : > { %9292 = vmatmul.mubr.bf16.gmra.mrb[8].mxu0 %v9984_v49  ;;  %v12792_v49 = vshrl.u32 %v10468_v42, 16  ;;  %8996 = vmatpush3.bf16.msra.mxu1 %v9988_v23  ;;  %v416_v6 = vrot.slane %v415_v46, 4  ;;  %v411_v19 = vsel %vm10315_vm2, %v406_v59, %v410_v28  ;;  %v429_v23 = vor.u32 %v428_v63, %v425_v53  ;;  %v10497_v28 = vld [vmem:[%s10266_s14 + $0x64] sm:$0xf] }
  0x40   : > { %9295 = vmatprep.mubr.bf16.mxu0 %v9987_v15  ;;  %8972 = vmatmul.mubr.bf16.gmra.mrb[8].mxu1 %v7784_v48  ;;  %v434_v15 = vrot.slane %v12791_v55, 5  ;;  %12925 = vst [vmem:[#allocation6_spill] sm:$0xff] %v10497_v28  ;;  %v12787_v46 = vshll.u32 %v10497_v28, 16  ;;  %v12790_v59 = vshrl.u32 %v10497_v28, 16  ;;  %v466_v63 = vshll.u32 %v247_v50, 16  ;;  %v9997_v55 = vld [vmem:[%s10266_s14 + $0x90] sm:$0xff]  }
  0x41   : > { %v438_v9 = vrot.slane %v12792_v49, 4  ;;  %v421_v30 = vsel %vm10315_vm2, %v416_v6, %v420_v51  ;;  %9316 = vmatpush3.bf16.msra.mxu0 %v9990_v3  ;;  %8997 = vmatprep.subr.bf16.mxu1 %v9991_v16  ;;  %v430_v41 = vrot.slane %v429_v23, 4  ;;  %v450_v51 = vshll.u32 %v10494_v44, 16 }
  0x42   : > { %v7785_v40 = vcombine.low %v411_v19, %v421_v30  ;;  %9317 = vmatprep.subr.bf16.mxu0 %v9992_v27  ;;  %v458_v6 = vrot.slane %v12787_v46, 5  ;;  %v468_v23 = vrot.slane %v466_v63, 5  ;;  %v10518_v30 = vld [vmem:[%s10266_s14 + $0x70] sm:$0xf] }
  0x43   : > { %v439_v34 = vor.u32 %v438_v9, %v434_v15  ;;  %8998 = vmatpush3.bf16.msra.mxu1 %v9991_v16  ;;  %v435_v53 = vsel %vm10315_vm2, %v430_v41, %v434_v15  ;;  %v452_v3 = vrot.slane %v450_v51, 5  ;;  %v10512_v9 = vld [vmem:[%s10266_s14 + $0x6c] sm:$0xf]  ;;  %v9994_v16 = vld [vmem:[%s10266_s14 + $0x84] sm:$0xff]   ;;  %v462_v15 = vrot.slane %v12790_v59, 4  ;;  %12926 = vst [vmem:[#allocation7_spill] sm:$0xff] %v10518_v30 }
  0x44   : > { %8975 = vmatprep.mubr.bf16.mxu1 %v7785_v40  ;;  %v474_v41 = vshll.u32 %v10512_v9, 16  ;;  %v12789_v50 = vshrl.u32 %v10518_v30, 16 }
  0x45   : > { %v440_v48 = vrot.slane %v439_v34, 4  ;;  %9318 = vmatpush3.bf16.msra.mxu0 %v9992_v27  ;;  %v248_v34 = vld [vmem:[%s10266_s14 + $0x74] sm:$0x1]  ;;  %v453_v40 = vor.u32 %v452_v3, %v449_v2 }
  0x46   : > { %v9995_v27 = vld [vmem:[%s12783_s1 + $0x30] sm:$0xff]   ;;  %v490_v52 = vshll.u32 %v248_v34, 16  ;;  %v476_v63 = vrot.slane %v474_v41, 5  ;;  %v486_v3 = vrot.slane %v12789_v50, 4  ;;  %v10543_v41 = vld [vmem:[%s10266_s14 + $0x7c] sm:$0xf] }
  0x47   : > { %9296 = vmatmul.mubr.bf16.gmra.mrb[12].mxu0 %v9989_v58  ;;  %v445_v58 = vsel %vm10315_vm2, %v440_v48, %v444_v25  ;;  %v471_v25 = vshrl.u32 %v10512_v9, 16  ;;  %v463_v48 = vor.u32 %v462_v15, %v458_v6  ;;  %v454_v51 = vrot.slane %v453_v40, 4  ;;  %8999 = vmatprep.subr.bf16.mxu1 %v9995_v27  ;;  %12927 = vst [vmem:[#allocation8_spill] sm:$0xff] %v10543_v41 }
  0x48   : > { %9299 = vmatprep.mubr.bf16.mxu0 %v9993_v45  ;;  %v7786_v19 = vcombine.low %v435_v53, %v445_v58  ;;  %v12788_v45 = vshll.u32 %v10518_v30, 16  ;;  %v492_v46 = vrot.slane %v490_v52, 5  ;;  %9000 = vmatpush3.bf16.msra.mxu1 %v9995_v27  ;;  %v7800_v15 = vcombine.low %v10300_v29, %v10303_v31  ;;  %v8215_v52 = vld [vmem:[%s10266_s14 + $0x48] sm:$0xf]  ;;  %v10703_v29 = vld [vmem:[%s10266_s14 + $0x50] sm:$0x1] }
  0x49   : > { %v473_v53 = vrot.slane %v471_v25, 4  ;;  %v464_v2 = vrot.slane %v463_v48, 4  ;;  %v459_v34 = vsel %vm10315_vm2, %v454_v51, %v458_v6  ;;  %v10540_v25 = vld [vmem:[%s10266_s14 + $0x78] sm:$0xf]  ;;  %v7801_v48 = vcombine.low %v10342_v0, %v10349_v4  ;;  %v249_v6 = vld [vmem:[%s10266_s14 + $0x80] sm:$0x1]  ;;  %9001 = vmatprep.subr.bf16.mxu1 %v9999_v38 }
  0x4a   : > { %8976 = vmatmul.mubr.bf16.gmra.mrb[12].mxu1 %v7786_v19  ;;  %v482_v58 = vrot.slane %v12788_v45, 5  ;;  %v9996_v19 = vld [vmem:[%s12783_s1 + $0x270] sm:$0xff]   ;;  %v498_v51 = vshll.u32 %v10540_v25, 16  ;;  %v12795_v50 = vshll.u32 %v10543_v41, 16  ;;  %v12796_v59 = vshrl.u32 %v10543_v41, 16 }
  0x4b   : > { %v477_v40 = vor.u32 %v476_v63, %v473_v53  ;;  %v469_v27 = vsel %vm10315_vm2, %v464_v2, %v468_v23  ;;  %9319 = vmatprep.subr.bf16.mxu0 %v9996_v19  ;;  %v4287_v31 = vshll.u32 %v8215_v52, 16 }
  0x4c   : > { %v487_v45 = vor.u32 %v486_v3, %v482_v58  ;;  %v7787_v53 = vcombine.low %v459_v34, %v469_v27  ;;  %9320 = vmatpush3.bf16.msra.mxu0 %v9996_v19  ;;  %v500_v2 = vrot.slane %v498_v51, 5  ;;  %v514_v3 = vshll.u32 %v249_v6, 16  ;;  %v10567_v27 = vld [vmem:[%s10266_s14 + $0x88] sm:$0xf]  ;;  %9002 = vmatpush3.bf16.msra.mxu1 %v9999_v38 }
  0x4d   : > { %v478_v63 = vrot.slane %v477_v40, 4  ;;  %v506_v40 = vrot.slane %v12795_v50, 5  ;;  %v510_v19 = vrot.slane %v12796_v59, 4  ;;  %12928 = vst [vmem:[#allocation9_spill] sm:$0xff] %v10567_v27  ;;  %v522_v50 = vshll.u32 %v10558_v7, 16 }
  0x4e   : > { %v488_v49 = vrot.slane %v487_v45, 4  ;;  %8979 = vmatprep.mubr.bf16.mxu1 %v7787_v53  ;;  %v250_v45 = vld [vmem:[%s10266_s14 + $0x8c] sm:$0x1]  ;;  %v516_v53 = vrot.slane %v514_v3, 5  ;;  %v12800_v59 = vshll.u32 %v10567_v27, 16 }
  0x4f   : > { %9300 = vmatmul.mubr.bf16.gmra.mrb[16].mxu0 %v9994_v16  ;;  %v495_v16 = vshrl.u32 %v10540_v25, 16  ;;  %v483_v34 = vsel %vm10315_vm2, %v478_v63, %v482_v58  ;;  %v519_v58 = vshrl.u32 %v10558_v7, 16  ;;  %v511_v20 = vor.u32 %v510_v19, %v506_v40 }
  0x50   : > { %9303 = vmatprep.mubr.bf16.mxu0 %v9997_v55  ;;  %v9998_v55 = vld [vmem:[%s10266_s14 + $0x9c] sm:$0xff]   ;;  %v530_v3 = vrot.slane %v12800_v59, 5 }
  0x51   : > { %v497_v23 = vrot.slane %v495_v16, 4  ;;  %v493_v16 = vsel %vm10315_vm2, %v488_v49, %v492_v46  ;;  %v521_v5 = vrot.slane %v519_v58, 4  ;;  %v12801_v49 = vshrl.u32 %v10567_v27, 16  ;;  %v10602_v59 = vld [vmem:[%s10266_s14 + $0x20] sm:$0x1] }
  0x52   : > { %v7788_v63 = vcombine.low %v483_v34, %v493_v16  ;;  %v538_v46 = vshll.u32 %v250_v45, 16  ;;  %v10000_v34 = vld [vmem:[%s12783_s1 + $0x278] sm:$0xff]   ;;  %v4207_v38 = vshll.u32 %v10602_v59, 16 }
  0x53   : > { %v501_v51 = vor.u32 %v500_v2, %v497_v23  ;;  %v512_v23 = vrot.slane %v511_v20, 4  ;;  %v524_v2 = vrot.slane %v522_v50, 5  ;;  %v534_v20 = vrot.slane %v12801_v49, 4  ;;  %v8203_v50 = vld [vmem:[%s10266_s14 + $0x18] sm:$0xf]  ;;  %9321 = vmatprep.subr.bf16.mxu0 %v10000_v34 }
  0x54   : > { %8980 = vmatmul.mubr.bf16.gmra.mrb[16].mxu1 %v7788_v63  ;;  %v540_v45 = vrot.slane %v538_v46, 5  ;;  %9322 = vmatpush3.bf16.msra.mxu0 %v10000_v34 }
  0x55   : > { %v502_v39 = vrot.slane %v501_v51, 4  ;;  %v517_v58 = vsel %vm10315_vm2, %v512_v23, %v516_v53  ;;  %v525_v63 = vor.u32 %v524_v2, %v521_v5  ;;  %v535_v46 = vor.u32 %v534_v20, %v530_v3  ;;  %v10610_v23 = vld [vmem:[%s12783_s1 + $0x80] sm:$0xff]  }
  0x56   : > { %v10615_v2 = vld [vmem:[%s12783_s1 + $0x280] sm:$0xff]   ;;  %9027 = vmatprep.subr.bf16.mxu1 %v10610_v23 }
  0x57   : > { %9304 = vmatmul.mubr.bf16.gmra.mrb[20].mxu0 %v9998_v55  ;;  %v507_v16 = vsel %vm10315_vm2, %v502_v39, %v506_v40  ;;  %v10599_v55 = vld [vmem:[%s10266_s14 + $0x1c] sm:$0xf]  ;;  %v4188_v39 = vshrl.u32 %v8203_v50, 16  ;;  %v4191_v40 = vshll.u32 %v8203_v50, 16  ;;  %v526_v37 = vrot.slane %v525_v63, 4  ;;  %9347 = vmatprep.subr.bf16.mxu0 %v10615_v2 }
  0x58   : > { %v7789_v49 = vcombine.low %v507_v16, %v517_v58  ;;  %v12807_v8 = vshll.u32 %v10599_v55, 16  ;;  %v12808_v35 = vshrl.u32 %v10599_v55, 16  ;;  %v536_v34 = vrot.slane %v535_v46, 4  ;;  %v8206_v50 = vld [vmem:[%s10266_s14 + $0x24] sm:$0xf] }
  0x59   : > { %v4190_v53 = vrot.slane %v4188_v39, 4  ;;  %v4193_v5 = vrot.slane %v4191_v40, 5  ;;  %v531_v63 = vsel %vm10315_vm2, %v526_v37, %v530_v3  ;;  %v4209_v40 = vrot.slane %v4207_v38, 5 }
  0x5a   : > { %8983 = vmatprep.mubr.bf16.mxu1 %v7789_v49  ;;  %v4199_v16 = vrot.slane %v12807_v8, 5  ;;  %v4203_v20 = vrot.slane %v12808_v35, 4  ;;  %v10631_v49 = vld [vmem:[%s10266_s14 + $0x2c] sm:$0x1]  ;;  %v4212_v46 = vshrl.u32 %v8206_v50, 16  ;;  %v541_v11 = vsel %vm10315_vm2, %v536_v34, %v540_v45 }
  0x5b   : > { %v4194_v39 = vor.u32 %v4193_v5, %v4190_v53  ;;  %v4215_v35 = vshll.u32 %v8206_v50, 16  ;;  %v7790_v57 = vcombine.low %v531_v63, %v541_v11  ;;  %v12811_v53 = vshrl.u32 %v10628_v10, 16  ;;  %v10656_v50 = vld [vmem:[%s10266_s14 + $0x34] sm:$0xf] }
  0x5c   : > { %v4204_v8 = vor.u32 %v4203_v20, %v4199_v16  ;;  %v4214_v3 = vrot.slane %v4212_v46, 4  ;;  %v4231_v1 = vshll.u32 %v10631_v49, 16  ;;  %v8209_v20 = vld [vmem:[%s10266_s14 + $0x30] sm:$0xf] }
  0x5d   : > { %v4195_v37 = vrot.slane %v4194_v39, 4  ;;  %v4217_v38 = vrot.slane %v4215_v35, 5  ;;  %8984 = vmatmul.mubr.bf16.gmra.mrb[20].mxu1 %v7790_v57  ;;  %v4227_v11 = vrot.slane %v12811_v53, 4  ;;  %v4236_v18 = vshrl.u32 %v8209_v20, 16  ;;  %v10006_v35 = vld [vmem:[%s12783_s1 + $0x288] sm:$0xff]  }
  0x5e   : > { %v4205_v5 = vrot.slane %v4204_v8, 4  ;;  %9003 = vmatprep.mubr.bf16.mxu1 %v7799_v24  ;;  %v4239_v12 = vshll.u32 %v8209_v20, 16  ;;  %v8212_v24 = vld [vmem:[%s10266_s14 + $0x3c] sm:$0xf]  ;;  %v10674_v20 = vld [vmem:[%s10266_s14 + $0x44] sm:$0x1] }
  0x5f   : > { %v4200_v45 = vsel %vm10315_vm2, %v4195_v37, %v4199_v16  ;;  %v4218_v8 = vor.u32 %v4217_v38, %v4214_v3  ;;  %v4233_v16 = vrot.slane %v4231_v1, 5  ;;  %v4228_v46 = vor.u32 %v4227_v11, %v4223_v43  ;;  %v10661_v37 = vld [vmem:[%s10266_s14 + $0x38] sm:$0x1] }
  0x60   : > { %v4210_v57 = vsel %vm10315_vm2, %v4205_v5, %v4209_v40  ;;  %v12812_v40 = vshll.u32 %v10656_v50, 16  ;;  %v12813_v3 = vshrl.u32 %v10656_v50, 16  ;;  %v4255_v1 = vshll.u32 %v10661_v37, 16  ;;  %v10668_v5 = vld [vmem:[%s10266_s14 + $0x40] sm:$0xf] }
  0x61   : > { %v8255_v39 = vcombine.low %v4200_v45, %v4210_v57  ;;  %v4219_v53 = vrot.slane %v4218_v8, 4  ;;  %v4229_v38 = vrot.slane %v4228_v46, 4  ;;  %v10005_v45 = vld [vmem:[%s12783_s1 + $0x88] sm:$0xff]   ;;  %v4238_v11 = vrot.slane %v4236_v18, 4 }
  0x62   : > { %v4241_v57 = vrot.slane %v4239_v12, 5  ;;  %v4260_v8 = vshrl.u32 %v8212_v24, 16  ;;  %v4251_v46 = vrot.slane %v12813_v3, 4  ;;  %v4257_v18 = vrot.slane %v4255_v1, 5 }
  0x63   : > { %9323 = vmatprep.mubr.bf16.mxu0 %v8255_v39  ;;  %v4224_v63 = vsel %vm10315_vm2, %v4219_v53, %v4223_v43  ;;  %v4247_v39 = vrot.slane %v12812_v40, 5  ;;  %v4234_v12 = vsel %vm10315_vm2, %v4229_v38, %v4233_v16  ;;  %v4263_v51 = vshll.u32 %v8212_v24, 16  ;;  %v10695_v16 = vld [vmem:[%s10266_s14 + $0x4c] sm:$0xf] }
  0x64   : > { %v4242_v34 = vor.u32 %v4241_v57, %v4238_v11  ;;  %v4262_v58 = vrot.slane %v4260_v8, 4  ;;  %v8256_v19 = vcombine.low %v4224_v63, %v4234_v12  ;;  %v12820_v53 = vshll.u32 %v10668_v5, 16  ;;  %v10722_v8 = vld [vmem:[%s10266_s14 + $0x58] sm:$0xf] }
  0x65   : > { %v4252_v43 = vor.u32 %v4251_v46, %v4247_v39  ;;  %v12821_v6 = vshrl.u32 %v10668_v5, 16  ;;  %9004 = vmatmul.mubr.bf16.vlgmr.msra.gmra.mrb[0].mxu1 %v7800_v15  ;;  %v4265_v1 = vrot.slane %v4263_v51, 5  ;;  %v4279_v3 = vshll.u32 %v10674_v20, 16 }
  0x66   : > { %v4243_v40 = vrot.slane %v4242_v34, 4  ;;  %v4284_v38 = vshrl.u32 %v8215_v52, 16  ;;  %9324 = vmatmul.mubr.bf16.vlgmr.msra.gmra.mrb[0].mxu0 %v8256_v19  ;;  %9028 = vmatpush3.bf16.msra.mxu1 %v10610_v23  ;;  %v4271_v24 = vrot.slane %v12820_v53, 5  ;;  %v10009_v23 = vld [vmem:[%s12783_s1 + $0x90] sm:$0xff]   ;;  %v12819_v12 = vshrl.u32 %v10695_v16, 16 }
  0x67   : > { %v4253_v63 = vrot.slane %v4252_v43, 4  ;;  %v4275_v11 = vrot.slane %v12821_v6, 4  ;;  %9348 = vmatpush3.bf16.msra.mxu0 %v10615_v2  ;;  %9029 = vmatprep.subr.bf16.mxu1 %v10005_v45  ;;  %v4266_v19 = vor.u32 %v4265_v1, %v4262_v58  ;;  %v4281_v51 = vrot.slane %v4279_v3, 5  ;;  %v10010_v34 = vld [vmem:[%s12783_s1 + $0x290] sm:$0xff]   ;;  %v10727_v1 = vld [vmem:[%s10266_s14 + $0x5c] sm:$0x1] }
  0x68   : > { %v4248_v15 = vsel %vm10315_vm2, %v4243_v40, %v4247_v39  ;;  %v4286_v57 = vrot.slane %v4284_v38, 4  ;;  %v8218_v52 = vld [vmem:[%s10266_s14 + $0x54] sm:$0xf]  ;;  %9349 = vmatprep.subr.bf16.mxu0 %v10006_v35  ;;  %9007 = vmatprep.mubr.bf16.mxu1 %v7801_v48  ;;  %v4289_v40 = vrot.slane %v4287_v31, 5  ;;  %v12816_v3 = vshll.u32 %v10695_v16, 16 }
  0x69   : > { %v4258_v2 = vsel %vm10315_vm2, %v4253_v63, %v4257_v18  ;;  %v4276_v58 = vor.u32 %v4275_v11, %v4271_v24  ;;  %v4267_v46 = vrot.slane %v4266_v19, 4  ;;  %v4303_v43 = vshll.u32 %v10703_v29, 16 }
  0x6a   : > { %v8257_v39 = vcombine.low %v4248_v15, %v4258_v2  ;;  %9030 = vmatpush3.bf16.msra.mxu1 %v10005_v45  ;;  %v4290_v48 = vor.u32 %v4289_v40, %v4286_v57  ;;  %v4295_v18 = vrot.slane %v12816_v3, 5  ;;  %v4308_v38 = vshrl.u32 %v8218_v52, 16  ;;  %v10013_v45 = vld [vmem:[%s12783_s1 + $0x98] sm:$0xff]  }
  0x6b   : > { %v4277_v0 = vrot.slane %v4276_v58, 4  ;;  %9350 = vmatpush3.bf16.msra.mxu0 %v10006_v35  ;;  %v4272_v63 = vsel %vm10315_vm2, %v4267_v46, %v4271_v24  ;;  %v4299_v11 = vrot.slane %v12819_v12, 4  ;;  %v4305_v31 = vrot.slane %v4303_v43, 5  ;;  %9031 = vmatprep.subr.bf16.mxu1 %v10009_v23  ;;  %v10014_v2 = vld [vmem:[%s12783_s1 + $0x298] sm:$0xff]   ;;  %v8221_v58 = vld [vmem:[%s10266_s14 + $0x60] sm:$0xf] }
  0x6c   : > { %9327 = vmatprep.mubr.bf16.mxu0 %v8257_v39  ;;  %v4311_v15 = vshll.u32 %v8218_v52, 16  ;;  %9351 = vmatprep.subr.bf16.mxu0 %v10010_v34  ;;  %v4291_v35 = vrot.slane %v4290_v48, 4  ;;  %v4310_v57 = vrot.slane %v4308_v38, 4  ;;  %v12814_v24 = vshll.u32 %v10722_v8, 16  ;;  %v10750_v43 = vld [vmem:[%s10266_s14 + $0x64] sm:$0xf] }
  0x6d   : > { %v4282_v19 = vsel %vm10315_vm2, %v4277_v0, %v4281_v51  ;;  %v12929_v52 = vcombine.low %v10365_v21, %v10372_v26  ;;  %v4300_v39 = vor.u32 %v4299_v11, %v4295_v18  ;;  %v12815_v51 = vshrl.u32 %v10722_v8, 16  ;;  %v10753_v0 = vld [vmem:[%s10266_s14 + $0x68] sm:$0x1] }
  0x6e   : > { %v8258_v40 = vcombine.low %v4272_v63, %v4282_v19  ;;  %v4313_v46 = vrot.slane %v4311_v15, 5  ;;  %9032 = vmatpush3.bf16.msra.mxu1 %v10009_v23  ;;  %v12930_v48 = vcombine.low %v10393_v54, %v10398_v56  ;;  %v4296_v38 = vsel %vm10315_vm2, %v4291_v35, %v4295_v18  ;;  %v10017_v18 = vld [vmem:[%s12783_s1 + $0xa0] sm:$0xff]  }
  0x6f   : > { %9008 = vmatmul.mubr.bf16.gmra.mrb[4].mxu1 %v12929_v52  ;;  %v4319_v21 = vrot.slane %v12814_v24, 5  ;;  %v4327_v63 = vshll.u32 %v10727_v1, 16  ;;  %v4332_v11 = vshrl.u32 %v8221_v58, 16  ;;  %v4301_v15 = vrot.slane %v4300_v39, 4  ;;  %9033 = vmatprep.subr.bf16.mxu1 %v10013_v45  ;;  %v8224_v39 = vld [vmem:[%s10266_s14 + $0x6c] sm:$0xf] }
  0x70   : > { %9011 = vmatprep.mubr.bf16.mxu1 %v12930_v48  ;;  %9328 = vmatmul.mubr.bf16.gmra.mrb[4].mxu0 %v8258_v40  ;;  %v4314_v19 = vor.u32 %v4313_v46, %v4310_v57  ;;  %v4323_v23 = vrot.slane %v12815_v51, 4  ;;  %v4335_v54 = vshll.u32 %v8221_v58, 16  ;;  %v12817_v48 = vshll.u32 %v10750_v43, 16  ;;  %v10774_v51 = vld [vmem:[%s10266_s14 + $0x70] sm:$0xf] }
  0x71   : > { %9352 = vmatpush3.bf16.msra.mxu0 %v10010_v34  ;;  %v4329_v35 = vrot.slane %v4327_v63, 5  ;;  %v4334_v52 = vrot.slane %v4332_v11, 4  ;;  %v12818_v40 = vshrl.u32 %v10750_v43, 16  ;;  %v4306_v57 = vsel %vm10315_vm2, %v4301_v15, %v4305_v31  ;;  %v10018_v34 = vld [vmem:[%s12783_s1 + $0x2a0] sm:$0xff]   ;;  %v10785_v15 = vld [vmem:[%s10266_s14 + $0x74] sm:$0x1] }
  0x72   : > { %v4315_v46 = vrot.slane %v4314_v19, 4  ;;  %v4324_v24 = vor.u32 %v4323_v23, %v4319_v21  ;;  %9353 = vmatprep.subr.bf16.mxu0 %v10014_v2  ;;  %v4337_v58 = vrot.slane %v4335_v54, 5  ;;  %v8259_v63 = vcombine.low %v4296_v38, %v4306_v57  ;;  %9034 = vmatpush3.bf16.msra.mxu1 %v10013_v45  ;;  %v10019_v19 = vld [vmem:[%s12783_s1 + $0xa8] sm:$0xff]  }
  0x73   : > { %v4343_v11 = vrot.slane %v12817_v48, 5  ;;  %v4347_v3 = vrot.slane %v12818_v40, 4  ;;  %v4351_v31 = vshll.u32 %v10753_v0, 16  ;;  %9035 = vmatprep.subr.bf16.mxu1 %v10017_v18  ;;  %v4356_v45 = vshrl.u32 %v8224_v39, 16 }
  0x74   : > { %v4320_v23 = vsel %vm10315_vm2, %v4315_v46, %v4319_v21  ;;  %v4325_v54 = vrot.slane %v4324_v24, 4  ;;  %v4338_v38 = vor.u32 %v4337_v58, %v4334_v52  ;;  %9331 = vmatprep.mubr.bf16.mxu0 %v8259_v63  ;;  %v4359_v40 = vshll.u32 %v8224_v39, 16  ;;  %v10023_v39 = vld [vmem:[%s12783_s1 + $0xb0] sm:$0xff]   ;;  %v10817_v58 = vld [vmem:[%s10266_s14 + $0x7c] sm:$0xf] }
  0x75   : > { %9354 = vmatpush3.bf16.msra.mxu0 %v10014_v2  ;;  %v4348_v57 = vor.u32 %v4347_v3, %v4343_v11  ;;  %v4353_v48 = vrot.slane %v4351_v31, 5  ;;  %v12824_v12 = vshll.u32 %v10774_v51, 16  ;;  %v12931_v53 = vcombine.low %v10414_v17, %v10417_v22  ;;  %v10020_v3 = vld [vmem:[%s12783_s1 + $0x2a8] sm:$0xff]  }
  0x76   : > { %v4330_v6 = vsel %vm10315_vm2, %v4325_v54, %v4329_v35  ;;  %v4339_v56 = vrot.slane %v4338_v38, 4  ;;  %v4358_v24 = vrot.slane %v4356_v45, 4  ;;  %v12826_v21 = vshrl.u32 %v10774_v51, 16  ;;  %9355 = vmatprep.subr.bf16.mxu0 %v10018_v34  ;;  %9036 = vmatpush3.bf16.msra.mxu1 %v10017_v18  ;;  %v8230_v54 = vld [vmem:[%s10266_s14 + $0x84] sm:$0xf] }
  0x77   : > { %9012 = vmatmul.mubr.bf16.gmra.mrb[8].mxu1 %v12931_v53  ;;  %v8260_v2 = vcombine.low %v4320_v23, %v4330_v6  ;;  %v12932_v52 = vcombine.low %v10440_v60, %v10443_v62  ;;  %v4349_v17 = vrot.slane %v4348_v57, 4  ;;  %v4361_v53 = vrot.slane %v4359_v40, 5  ;;  %9037 = vmatprep.subr.bf16.mxu1 %v10019_v19  ;;  %v8227_v40 = vld [vmem:[%s10266_s14 + $0x78] sm:$0xf]  ;;  %v10824_v23 = vld [vmem:[%s10266_s14 + $0x80] sm:$0x1] }
  0x78   : > { %v4367_v35 = vrot.slane %v12824_v12, 5  ;;  %v4344_v46 = vsel %vm10315_vm2, %v4339_v56, %v4343_v11  ;;  %v4371_v6 = vrot.slane %v12826_v21, 4  ;;  %v4375_v60 = vshll.u32 %v10785_v15, 16  ;;  %v10829_v12 = vld [vmem:[%s10266_s14 + $0x88] sm:$0xf] }
  0x79   : > { %9015 = vmatprep.mubr.bf16.mxu1 %v12932_v52  ;;  %9332 = vmatmul.mubr.bf16.gmra.mrb[8].mxu0 %v8260_v2  ;;  %v4354_v63 = vsel %vm10315_vm2, %v4349_v17, %v4353_v48  ;;  %v4362_v31 = vor.u32 %v4361_v53, %v4358_v24  ;;  %v4380_v56 = vshrl.u32 %v8227_v40, 16  ;;  %v4383_v11 = vshll.u32 %v8227_v40, 16  ;;  %v10024_v2 = vld [vmem:[%s12783_s1 + $0x2b0] sm:$0xff]   ;;  %v10836_v40 = vld [vmem:[%s10266_s14 + $0x8c] sm:$0x1] }
  0x7a   : > { %v8261_v38 = vcombine.low %v4344_v46, %v4354_v63  ;;  %v4372_v45 = vor.u32 %v4371_v6, %v4367_v35  ;;  %v4377_v57 = vrot.slane %v4375_v60, 5  ;;  %9356 = vmatpush3.bf16.msra.mxu0 %v10018_v34  ;;  %v12825_v52 = vshll.u32 %v10817_v58, 16  ;;  %9038 = vmatpush3.bf16.msra.mxu1 %v10019_v19  ;;  %v10027_v34 = vld [vmem:[%s12783_s1 + $0xb8] sm:$0xff]   ;;  %v8233_v62 = vld [vmem:[%s10266_s14 + $0x90] sm:$0xf] }
  0x7b   : > { %v4363_v48 = vrot.slane %v4362_v31, 4  ;;  %9357 = vmatprep.subr.bf16.mxu0 %v10020_v3  ;;  %v4382_v24 = vrot.slane %v4380_v56, 4  ;;  %v4385_v17 = vrot.slane %v4383_v11, 5  ;;  %v12830_v53 = vshrl.u32 %v10817_v58, 16  ;;  %9039 = vmatprep.subr.bf16.mxu1 %v10023_v39 }
  0x7c   : > { %9335 = vmatprep.mubr.bf16.mxu0 %v8261_v38  ;;  %v4373_v46 = vrot.slane %v4372_v45, 4  ;;  %v4391_v6 = vrot.slane %v12825_v52, 5  ;;  %v4399_v60 = vshll.u32 %v10824_v23, 16  ;;  %v4404_v63 = vshrl.u32 %v8230_v54, 16 }
  0x7d   : > { %v4368_v19 = vsel %vm10315_vm2, %v4363_v48, %v4367_v35  ;;  %v4386_v31 = vor.u32 %v4385_v17, %v4382_v24  ;;  %v4395_v56 = vrot.slane %v12830_v53, 4  ;;  %v4407_v11 = vshll.u32 %v8230_v54, 16  ;;  %v10867_v17 = vld [vmem:[%s12783_s1 + $0xc0] sm:$0xff]  }
  0x7e   : > { %v12933_v38 = vcombine.low %v10459_v33, %v10468_v42  ;;  %v4378_v45 = vsel %vm10315_vm2, %v4373_v46, %v4377_v57  ;;  %v4401_v52 = vrot.slane %v4399_v60, 5  ;;  %9358 = vmatpush3.bf16.msra.mxu0 %v10020_v3  ;;  %v4406_v21 = vrot.slane %v4404_v63, 4  ;;  %v10859_v57 = vld [vmem:[%s10266_s14 + $0x94] sm:$0xf]  ;;  %v10028_v3 = vld [vmem:[%s12783_s1 + $0x2b8] sm:$0xff]   ;;  %9040 = vmatpush3.bf16.msra.mxu1 %v10023_v39 }
  0x7f   : > { %v12829_v18 = vshll.u32 %v10829_v12, 16  ;;  %v8262_v35 = vcombine.low %v4368_v19, %v4378_v45  ;;  %v12934_v54 = vcombine.low %v10494_v44, %v10497_v28  ;;  %v4387_v33 = vrot.slane %v4386_v31, 4  ;;  %9359 = vmatprep.subr.bf16.mxu0 %v10024_v2  ;;  %v10874_v63 = vld [vmem:[%s10266_s14 + $0x98] sm:$0x1]  ;;  %v8236_v45 = vld [vmem:[%s10266_s14 + $0x9c] sm:$0xf]  ;;  %9041 = vmatprep.subr.bf16.mxu1 %v10027_v34 }
  0x80   : > { %9016 = vmatmul.mubr.bf16.gmra.mrb[12].mxu1 %v12933_v38  ;;  %v4396_v48 = vor.u32 %v4395_v56, %v4391_v6  ;;  %v4409_v24 = vrot.slane %v4407_v11, 5  ;;  %v12833_v46 = vshrl.u32 %v10829_v12, 16  ;;  %v4423_v60 = vshll.u32 %v10836_v40, 16 }
  0x81   : > { %9019 = vmatprep.mubr.bf16.mxu1 %v12934_v54  ;;  %v4415_v44 = vrot.slane %v12829_v18, 5  ;;  %v4428_v19 = vshrl.u32 %v8233_v62, 16  ;;  %9336 = vmatmul.mubr.bf16.gmra.mrb[12].mxu0 %v8262_v35  ;;  %v4392_v31 = vsel %vm10315_vm2, %v4387_v33, %v4391_v6  ;;  %v4431_v38 = vshll.u32 %v8233_v62, 16  ;;  %v10880_v54 = vld [vmem:[%s10266_s14 + $0xa0] sm:$0xf] }
  0x82   : > { %v4397_v56 = vrot.slane %v4396_v48, 4  ;;  %v4410_v11 = vor.u32 %v4409_v24, %v4406_v21  ;;  %v4419_v18 = vrot.slane %v12833_v46, 4  ;;  %v4425_v53 = vrot.slane %v4423_v60, 5  ;;  %9360 = vmatpush3.bf16.msra.mxu0 %v10024_v2  ;;  %v10891_v33 = vld [vmem:[%s12783_s1 + $0x2c0] sm:$0xff]   ;;  %9042 = vmatpush3.bf16.msra.mxu1 %v10027_v34 }
  0x83   : > { %v4430_v39 = vrot.slane %v4428_v19, 4  ;;  %v12834_v28 = vshll.u32 %v10859_v57, 16  ;;  %v4433_v21 = vrot.slane %v4431_v38, 5  ;;  %v12835_v62 = vshrl.u32 %v10859_v57, 16  ;;  %9361 = vmatprep.subr.bf16.mxu0 %v10028_v3  ;;  %v10904_v46 = vld [vmem:[%s10266_s14] sm:$0xe]  ;;  %9067 = vmatprep.subr.bf16.mxu1 %v10867_v17 }
  0x84   : > { %v4402_v35 = vsel %vm10315_vm2, %v4397_v56, %v4401_v52  ;;  %v4411_v6 = vrot.slane %v4410_v11, 4  ;;  %v4420_v2 = vor.u32 %v4419_v18, %v4415_v44  ;;  %v4447_v60 = vshll.u32 %v10874_v63, 16  ;;  %v10901_v11 = vld [vmem:[%s10266_s14 + $0xa4] sm:$0x1] }
  0x85   : > { %v8263_v48 = vcombine.low %v4392_v31, %v4402_v35  ;;  %v4439_v24 = vrot.slane %v12834_v28, 5  ;;  %v4434_v19 = vor.u32 %v4433_v21, %v4430_v39  ;;  %v4443_v56 = vrot.slane %v12835_v62, 4  ;;  %v10912_v39 = vld [vmem:[%s10266_s14 + $0x18] sm:$0xe] }
  0x86   : > { %v4416_v52 = vsel %vm10315_vm2, %v4411_v6, %v4415_v44  ;;  %v4452_v38 = vshrl.u32 %v8236_v45, 16  ;;  %v12935_v18 = vcombine.low %v10512_v9, %v10518_v30  ;;  %v4421_v34 = vrot.slane %v4420_v2, 4  ;;  %9362 = vmatpush3.bf16.msra.mxu0 %v10028_v3 }
  0x87   : > { %9339 = vmatprep.mubr.bf16.mxu0 %v8263_v48  ;;  %v4449_v31 = vrot.slane %v4447_v60, 5  ;;  %v4455_v35 = vshll.u32 %v8236_v45, 16  ;;  %v12836_v44 = vshll.u32 %v10880_v54, 16  ;;  %v12936_v6 = vcombine.low %v10540_v25, %v10543_v41  ;;  %9387 = vmatprep.subr.bf16.mxu0 %v10891_v33 }
  0x88   : > { %9020 = vmatmul.mubr.bf16.gmra.mrb[16].mxu1 %v12935_v18  ;;  %v4435_v21 = vrot.slane %v4434_v19, 4  ;;  %v4444_v28 = vor.u32 %v4443_v56, %v4439_v24  ;;  %v4454_v62 = vrot.slane %v4452_v38, 4  ;;  %v12837_v48 = vshrl.u32 %v10880_v54, 16  ;;  %v10935_v38 = vld [vmem:[%s10266_s14 + $0xc] sm:$0xe] }
  0x89   : > { %9023 = vmatprep.mubr.bf16.mxu1 %v12936_v6  ;;  %v4426_v9 = vsel %vm10315_vm2, %v4421_v34, %v4425_v53  ;;  %v4457_v45 = vrot.slane %v4455_v35, 5  ;;  %v4463_v2 = vrot.slane %v12836_v44, 5  ;;  %v4471_v60 = vshll.u32 %v10901_v11, 16 }
  0x8a   : > { %v8264_v25 = vcombine.low %v4416_v52, %v4426_v9  ;;  %v4440_v19 = vsel %vm10315_vm2, %v4435_v21, %v4439_v24  ;;  %v4445_v56 = vrot.slane %v4444_v28, 4  ;;  %v4467_v3 = vrot.slane %v12837_v48, 4  ;;  %v10941_v28 = vld [vmem:[%s10266_s14 + $0x24] sm:$0xe] }
  0x8b   : > { %v4458_v18 = vor.u32 %v4457_v45, %v4454_v62  ;;  %v4473_v34 = vrot.slane %v4471_v60, 5  ;;  %v7819_v35 = vrot.slane %v10904_v46, 9  ;;  %v12939_v52 = vrot.slane %v10278_v13, 5 }
  0x8c   : > { %9340 = vmatmul.mubr.bf16.gmra.mrb[16].mxu0 %v8264_v25  ;;  %v4450_v6 = vsel %vm10315_vm2, %v4445_v56, %v4449_v31  ;;  %v4468_v21 = vor.u32 %v4467_v3, %v4463_v2  ;;  %v8287_v9 = vrot.slane %v10912_v39, 9  ;;  %v4791_v44 = vrot.slane %v10599_v55, 5 }
  0x8d   : > { %v1076_v24 = vrot.slane %v12939_v52, 4  ;;  %v8265_v62 = vcombine.low %v4440_v19, %v4450_v6  ;;  %v4459_v45 = vrot.slane %v4458_v18, 4  ;;  %v12940_v60 = vmov %v12939_v52  ;;  %v10958_v19 = vld [vmem:[%s10266_s14 + $0x18] sm:$0xe] }
  0x8e   : > { %v1075_v52 = vsel %vm10930_vm5, %v7819_v35, %v12940_v60  ;;  %v12941_v48 = vrot.slane %v10281_v14, 5  ;;  %v4469_v31 = vrot.slane %v4468_v21, 4  ;;  %v4792_v3 = vsel %vm10930_vm5, %v8287_v9, %v4791_v44  ;;  %v10969_v21 = vld [vmem:[%s10266_s14 + $0x30] sm:$0xe] }
  0x8f   : > { %v4793_v41 = vrot.slane %v4791_v44, 4  ;;  %9343 = vmatprep.mubr.bf16.mxu0 %v8265_v62  ;;  %v12942_v18 = vcombine.low %v10558_v7, %v10567_v27  ;;  %v4464_v14 = vsel %vm10315_vm2, %v4459_v45, %v4463_v2  ;;  %v4794_v35 = vrot.slane %v10602_v59, 5  ;;  %v10977_v62 = vld [vmem:[%s10266_s14 + $0x24] sm:$0xe] }
  0x90   : > { %v1078_v25 = vsel %vm10930_vm5, %v1076_v24, %v12941_v48  ;;  %v7820_v48 = vrot.slane %v10935_v38, 9  ;;  %v10133_v24 = vld [vmem:[%s10266_s14 + $0x10] sm:$0xf]  ;;  %v4474_v44 = vsel %vm10315_vm2, %v4469_v31, %v4473_v34  ;;  %v8288_v9 = vrot.slane %v10941_v28, 9 }
  0x91   : > { %v7847_v56 = vcombine.low %v1075_v52, %v1078_v25  ;;  %9024 = vmatmul.mubr.bf16.gmra.mrb[20].mxu1 %v12942_v18  ;;  %v1081_v6 = vrot.slane %v10133_v24, 5  ;;  %v4798_v7 = vrot.slane %v10628_v10, 5  ;;  %v4801_v2 = vrot.slane %v10631_v49, 5 }
  0x92   : > { %v8266_v59 = vcombine.low %v4464_v14, %v4474_v44  ;;  %v4795_v45 = vsel %vm10930_vm5, %v4793_v41, %v4794_v35  ;;  %v12943_v49 = vrot.slane %v10306_v32, 5  ;;  %v10031_v41 = vld [vmem:[%s12783_s1 + $0xc8] sm:$0xff]   ;;  %v10134_v14 = vld [vmem:[%s10266_s14 + $0x1c] sm:$0xf]  ;;  %v8289_v24 = vrot.slane %v10969_v21, 9 }
  0x93   : > { %9043 = vmatprep.mubr.bf16.mxu1 %v7847_v56  ;;  %v1082_v60 = vsel %vm10930_vm5, %v7820_v48, %v1081_v6  ;;  %v1083_v52 = vrot.slane %v1081_v6, 4  ;;  %v8315_v34 = vcombine.low %v4792_v3, %v4795_v45  ;;  %v4799_v25 = vsel %vm10930_vm5, %v8288_v9, %v4798_v7  ;;  %v10135_v3 = vld [vmem:[%s10266_s14 + $0x20] sm:$0x1]  ;;  %v11004_v45 = vld [vmem:[%s10266_s14 + $0x30] sm:$0xe] }
  0x94   : > { %v4800_v31 = vrot.slane %v4798_v7, 4  ;;  %v7821_v56 = vrot.slane %v10958_v19, 9  ;;  %v1088_v35 = vrot.slane %v10134_v14, 5  ;;  %v1091_v48 = vrot.slane %v10135_v3, 5  ;;  %9344 = vmatmul.mubr.bf16.gmra.mrb[20].mxu0 %v8266_v59  ;;  %v11001_v7 = vld [vmem:[%s10266_s14 + $0x3c] sm:$0xe] }
  0x95   : > { %v1085_v18 = vsel %vm10930_vm5, %v1083_v52, %v12943_v49  ;;  %v4805_v44 = vrot.slane %v10656_v50, 5  ;;  %v4808_v9 = vrot.slane %v10661_v37, 5  ;;  %9363 = vmatprep.mubr.bf16.mxu0 %v8315_v34  ;;  %v7822_v59 = vrot.slane %v10977_v62, 9  ;;  %v10137_v3 = vld [vmem:[%s10266_s14 + $0x2c] sm:$0x1] }
  0x96   : > { %v7848_v6 = vcombine.low %v1082_v60, %v1085_v18  ;;  %v4802_v32 = vsel %vm10930_vm5, %v4800_v31, %v4801_v2  ;;  %v1089_v49 = vsel %vm10930_vm5, %v7821_v56, %v1088_v35  ;;  %v1090_v14 = vrot.slane %v1088_v35, 4  ;;  %v11010_v60 = vld [vmem:[%s10266_s14 + $0x48] sm:$0xe] }
  0x97   : > { %v8316_v52 = vcombine.low %v4799_v25, %v4802_v32  ;;  %v4806_v2 = vsel %vm10930_vm5, %v8289_v24, %v4805_v44  ;;  %v4807_v31 = vrot.slane %v4805_v44, 4  ;;  %v10136_v18 = vld [vmem:[%s10266_s14 + $0x28] sm:$0xf]  ;;  %v1098_v36 = vrot.slane %v10137_v3, 5  ;;  %v11035_v3 = vld [vmem:[%s10266_s14 + $0x3c] sm:$0xe] }
  0x98   : > { %v1095_v37 = vrot.slane %v10136_v18, 5  ;;  %v1092_v34 = vsel %vm10930_vm5, %v1090_v14, %v1091_v48  ;;  %v8290_v25 = vrot.slane %v11001_v7, 9  ;;  %v4812_v56 = vrot.slane %v10668_v5, 5  ;;  %v10032_v24 = vld [vmem:[%s12783_s1 + $0x2c8] sm:$0xff]  }
  0x99   : > { %9044 = vmatmul.mubr.bf16.vlgmr.msra.gmra.mrb[0].mxu1 %v7848_v6  ;;  %v4815_v35 = vrot.slane %v10674_v20, 5  ;;  %v7849_v32 = vcombine.low %v1089_v49, %v1092_v34  ;;  %v4809_v6 = vsel %vm10930_vm5, %v4807_v31, %v4808_v9  ;;  %v7823_v18 = vrot.slane %v11004_v45, 9  ;;  %v8280_v49 = vld [vmem:[%s10266_s14 + $0x54] sm:$0xe] }
  0x9a   : > { %9068 = vmatpush3.bf16.msra.mxu1 %v10867_v17  ;;  %v1096_v48 = vsel %vm10930_vm5, %v7822_v59, %v1095_v37  ;;  %v1097_v44 = vrot.slane %v1095_v37, 4  ;;  %v8317_v14 = vcombine.low %v4806_v2, %v4809_v6  ;;  %v11031_v20 = vsel %vm10930_vm5, %v8290_v25, %v4812_v56  ;;  %v10033_v59 = vld [vmem:[%s12783_s1 + $0xd0] sm:$0xff]   ;;  %v10139_v37 = vld [vmem:[%s10266_s14 + $0x38] sm:$0x1] }
  0x9b   : > { %9069 = vmatprep.subr.bf16.mxu1 %v10031_v41  ;;  %v4814_v17 = vrot.slane %v4812_v56, 4  ;;  %9047 = vmatprep.mubr.bf16.mxu1 %v7849_v32  ;;  %v10138_v2 = vld [vmem:[%s10266_s14 + $0x34] sm:$0xf]  ;;  %v1105_v34 = vrot.slane %v10139_v37, 5  ;;  %v8291_v25 = vrot.slane %v11010_v60, 9  ;;  %v4819_v32 = vrot.slane %v10695_v16, 5 }
  0x9c   : > { %v1099_v9 = vsel %vm10930_vm5, %v1097_v44, %v1098_v36  ;;  %v1102_v31 = vrot.slane %v10138_v2, 5  ;;  %v4822_v36 = vrot.slane %v10703_v29, 5  ;;  %v1039_v44 = vld [vmem:[%s10266_s14 + $0x48] sm:$0xe]  ;;  %9364 = vmatmul.mubr.bf16.vlgmr.msra.gmra.mrb[0].mxu0 %v8316_v52  ;;  %v10034_v29 = vld [vmem:[%s12783_s1 + $0x2d0] sm:$0xff]  }
  0x9d   : > { %v7850_v56 = vcombine.low %v1096_v48, %v1099_v9  ;;  %v4816_v6 = vsel %vm10930_vm5, %v4814_v17, %v4815_v35  ;;  %v7824_v48 = vrot.slane %v11035_v3, 9  ;;  %v8281_v9 = vld [vmem:[%s10266_s14 + $0x60] sm:$0xe]  ;;  %9388 = vmatpush3.bf16.msra.mxu0 %v10891_v33  ;;  %9367 = vmatprep.mubr.bf16.mxu0 %v8317_v14  ;;  %v4820_v52 = vsel %vm10930_vm5, %v8291_v25, %v4819_v32  ;;  %v10141_v17 = vld [vmem:[%s10266_s14 + $0x44] sm:$0x1]  ;;  %v10035_v25 = vld [vmem:[%s12783_s1 + $0xd8] sm:$0xff]  }
  0x9e   : > { %9070 = vmatpush3.bf16.msra.mxu1 %v10031_v41  ;;  %v8318_v27 = vcombine.low %v11031_v20, %v4816_v6  ;;  %v1103_v2 = vsel %vm10930_vm5, %v7823_v18, %v1102_v31  ;;  %v1104_v37 = vrot.slane %v1102_v31, 4  ;;  %v4821_v41 = vrot.slane %v4819_v32, 4  ;;  %v10140_v35 = vld [vmem:[%s10266_s14 + $0x40] sm:$0xf]  ;;  %9389 = vmatprep.subr.bf16.mxu0 %v10032_v24 }
  0x9f   : > { %v1109_v20 = vrot.slane %v10140_v35, 5  ;;  %v1112_v6 = vrot.slane %v10141_v17, 5  ;;  %9071 = vmatprep.subr.bf16.mxu1 %v10033_v59  ;;  %v8292_v33 = vrot.slane %v8280_v49, 9  ;;  %v4826_v14 = vrot.slane %v10722_v8, 5 }
  0xa0   : > { %v1106_v18 = vsel %vm10930_vm5, %v1104_v37, %v1105_v34  ;;  %v4829_v31 = vrot.slane %v10727_v1, 5  ;;  %v4823_v35 = vsel %vm10930_vm5, %v4821_v41, %v4822_v36 }
  0xa1   : > { %9048 = vmatmul.mubr.bf16.gmra.mrb[4].mxu1 %v7850_v56  ;;  %v7851_v32 = vcombine.low %v1103_v2, %v1106_v18  ;;  %v1110_v34 = vsel %vm10930_vm5, %v7824_v48, %v1109_v20  ;;  %v1111_v37 = vrot.slane %v1109_v20, 4  ;;  %v8319_v49 = vcombine.low %v4820_v52, %v4823_v35  ;;  %v10036_v56 = vld [vmem:[%s12783_s1 + $0x2d8] sm:$0xff]   ;;  %v1040_v18 = vld [vmem:[%s10266_s14 + $0x54] sm:$0xe]  ;;  %9390 = vmatpush3.bf16.msra.mxu0 %v10032_v24  ;;  %v10143_v52 = vld [vmem:[%s10266_s14 + $0x50] sm:$0x1] }
  0xa2   : > { %9072 = vmatpush3.bf16.msra.mxu1 %v10033_v59  ;;  %v11077_v1 = vsel %vm10930_vm5, %v8292_v33, %v4826_v14  ;;  %v4828_v17 = vrot.slane %v4826_v14, 4  ;;  %v7825_v2 = vrot.slane %v1039_v44, 9  ;;  %v10142_v59 = vld [vmem:[%s10266_s14 + $0x4c] sm:$0xf]  ;;  %v1119_v41 = vrot.slane %v10143_v52, 5  ;;  %v10037_v33 = vld [vmem:[%s12783_s1 + $0xe0] sm:$0xff]   ;;  %9391 = vmatprep.subr.bf16.mxu0 %v10034_v29 }
  0xa3   : > { %9051 = vmatprep.mubr.bf16.mxu1 %v7851_v32  ;;  %v1113_v36 = vsel %vm10930_vm5, %v1111_v37, %v1112_v6  ;;  %v1116_v48 = vrot.slane %v10142_v59, 5  ;;  %v8293_v20 = vrot.slane %v8281_v9, 9  ;;  %v8282_v14 = vld [vmem:[%s10266_s14 + $0x6c] sm:$0xe]  ;;  %9073 = vmatprep.subr.bf16.mxu1 %v10035_v25  ;;  %v4833_v6 = vrot.slane %v10750_v43, 5 }
  0xa4   : > { %v7852_v44 = vcombine.low %v1110_v34, %v1113_v36  ;;  %v11093_v24 = vsel %vm10930_vm5, %v4828_v17, %v4829_v31  ;;  %v4836_v32 = vrot.slane %v10753_v0, 5  ;;  %v1041_v35 = vld [vmem:[%s10266_s14 + $0x60] sm:$0xe]  ;;  %v7826_v52 = vrot.slane %v1040_v18, 9  ;;  %9368 = vmatmul.mubr.bf16.gmra.mrb[4].mxu0 %v8318_v27  ;;  %v10144_v17 = vld [vmem:[%s10266_s14 + $0x58] sm:$0xf] }
  0xa5   : > { %v8320_v9 = vcombine.low %v11077_v1, %v11093_v24  ;;  %v1117_v37 = vsel %vm10930_vm5, %v7825_v2, %v1116_v48  ;;  %v1118_v59 = vrot.slane %v1116_v48, 4  ;;  %v11104_v31 = vsel %vm10930_vm5, %v8293_v20, %v4833_v6  ;;  %v10145_v0 = vld [vmem:[%s10266_s14 + $0x5c] sm:$0x1]  ;;  %9392 = vmatpush3.bf16.msra.mxu0 %v10034_v29  ;;  %9371 = vmatprep.mubr.bf16.mxu0 %v8319_v49  ;;  %v8283_v48 = vld [vmem:[%s10266_s14 + $0x78] sm:$0xe] }
  0xa6   : > { %9074 = vmatpush3.bf16.msra.mxu1 %v10035_v25  ;;  %v4835_v34 = vrot.slane %v4833_v6, 4  ;;  %v1123_v36 = vrot.slane %v10144_v17, 5  ;;  %v1126_v30 = vrot.slane %v10145_v0, 5  ;;  %v8294_v2 = vrot.slane %v8282_v14, 9  ;;  %v10039_v25 = vld [vmem:[%s12783_s1 + $0xe8] sm:$0xff]   ;;  %9393 = vmatprep.subr.bf16.mxu0 %v10036_v56 }
  0xa7   : > { %v1120_v1 = vsel %vm10930_vm5, %v1118_v59, %v1119_v41  ;;  %v4840_v18 = vrot.slane %v10774_v51, 5  ;;  %v4843_v27 = vrot.slane %v10785_v15, 5  ;;  %9075 = vmatprep.subr.bf16.mxu1 %v10037_v33  ;;  %v10038_v15 = vld [vmem:[%s12783_s1 + $0x2e0] sm:$0xff]   ;;  %v1042_v14 = vld [vmem:[%s10266_s14 + $0x6c] sm:$0xe] }
  0xa8   : > { %v7853_v20 = vcombine.low %v1117_v37, %v1120_v1  ;;  %v4837_v29 = vsel %vm10930_vm5, %v4835_v34, %v4836_v32  ;;  %v1124_v49 = vsel %vm10930_vm5, %v7826_v52, %v1123_v36  ;;  %v1125_v41 = vrot.slane %v1123_v36, 4  ;;  %v8284_v59 = vld [vmem:[%s10266_s14 + $0x84] sm:$0xe]  ;;  %v10147_v36 = vld [vmem:[%s10266_s14 + $0x68] sm:$0x1] }
  0xa9   : > { %9052 = vmatmul.mubr.bf16.gmra.mrb[8].mxu1 %v7852_v44  ;;  %v8321_v24 = vcombine.low %v11104_v31, %v4837_v29  ;;  %v11127_v6 = vsel %vm10930_vm5, %v8294_v2, %v4840_v18  ;;  %v4842_v37 = vrot.slane %v4840_v18, 4  ;;  %v7827_v32 = vrot.slane %v1041_v35, 9  ;;  %v10146_v34 = vld [vmem:[%s10266_s14 + $0x64] sm:$0xf]  ;;  %9394 = vmatpush3.bf16.msra.mxu0 %v10036_v56  ;;  %v10040_v56 = vld [vmem:[%s12783_s1 + $0x2e8] sm:$0xff]  }
  0xaa   : > { %9055 = vmatprep.mubr.bf16.mxu1 %v7853_v20  ;;  %v1127_v52 = vsel %vm10930_vm5, %v1125_v41, %v1126_v30  ;;  %9076 = vmatpush3.bf16.msra.mxu1 %v10037_v33  ;;  %v1130_v17 = vrot.slane %v10146_v34, 5  ;;  %v1133_v0 = vrot.slane %v10147_v36, 5  ;;  %v8295_v44 = vrot.slane %v8283_v48, 9  ;;  %v10041_v48 = vld [vmem:[%s12783_s1 + $0xf0] sm:$0xff]   ;;  %v1043_v20 = vld [vmem:[%s10266_s14 + $0x78] sm:$0xe] }
  0xab   : > { %v7854_v31 = vcombine.low %v1124_v49, %v1127_v52  ;;  %v11136_v1 = vsel %vm10930_vm5, %v4842_v37, %v4843_v27  ;;  %9077 = vmatprep.subr.bf16.mxu1 %v10039_v25  ;;  %v4847_v35 = vrot.slane %v10817_v58, 5  ;;  %v4850_v30 = vrot.slane %v10824_v23, 5  ;;  %9395 = vmatprep.subr.bf16.mxu0 %v10038_v15  ;;  %v10148_v49 = vld [vmem:[%s10266_s14 + $0x70] sm:$0xf]  ;;  %v10149_v37 = vld [vmem:[%s10266_s14 + $0x74] sm:$0x1] }
  0xac   : > { %v8322_v33 = vcombine.low %v11127_v6, %v11136_v1  ;;  %v1131_v2 = vsel %vm10930_vm5, %v7827_v32, %v1130_v17  ;;  %v1132_v18 = vrot.slane %v1130_v17, 4  ;;  %v7828_v27 = vrot.slane %v1042_v14, 9  ;;  %v8285_v34 = vld [vmem:[%s10266_s14 + $0x90] sm:$0xe]  ;;  %9372 = vmatmul.mubr.bf16.gmra.mrb[8].mxu0 %v8320_v9  ;;  %v11230_v1 = vld [vmem:[%s12783_s1 + $0x300] sm:$0xff]  }
  0xad   : > { %v11153_v23 = vsel %vm10930_vm5, %v8295_v44, %v4847_v35  ;;  %v4849_v29 = vrot.slane %v4847_v35, 4  ;;  %v1137_v41 = vrot.slane %v10148_v49, 5  ;;  %v1140_v52 = vrot.slane %v10149_v37, 5  ;;  %v10042_v44 = vld [vmem:[%s12783_s1 + $0x2f0] sm:$0xff]   ;;  %9375 = vmatprep.mubr.bf16.mxu0 %v8321_v24  ;;  %9396 = vmatpush3.bf16.msra.mxu0 %v10038_v15 }
  0xae   : > { %v1134_v14 = vsel %vm10930_vm5, %v1132_v18, %v1133_v0  ;;  %9078 = vmatpush3.bf16.msra.mxu1 %v10039_v25  ;;  %v8296_v32 = vrot.slane %v8284_v59, 9  ;;  %v4854_v17 = vrot.slane %v10829_v12, 5  ;;  %v4857_v36 = vrot.slane %v10836_v40, 5  ;;  %v1044_v0 = vld [vmem:[%s10266_s14 + $0x84] sm:$0xe]  ;;  %v10043_v40 = vld [vmem:[%s12783_s1 + $0xf8] sm:$0xff]   ;;  %9397 = vmatprep.subr.bf16.mxu0 %v10040_v56 }
  0xaf   : > { %v7855_v35 = vcombine.low %v1131_v2, %v1134_v14  ;;  %v4851_v9 = vsel %vm10930_vm5, %v4849_v29, %v4850_v30  ;;  %v11169_v25 = vsel %vm10930_vm5, %v7828_v27, %v1137_v41  ;;  %v1139_v59 = vrot.slane %v1137_v41, 4  ;;  %9079 = vmatprep.subr.bf16.mxu1 %v10041_v48  ;;  %v8286_v18 = vld [vmem:[%s10266_s14 + $0x9c] sm:$0xe]  ;;  %v10151_v41 = vld [vmem:[%s10266_s14 + $0x80] sm:$0x1] }
  0xb0   : > { %v8323_v24 = vcombine.low %v11153_v23, %v4851_v9  ;;  %v11178_v15 = vsel %vm10930_vm5, %v8296_v32, %v4854_v17  ;;  %v4856_v2 = vrot.slane %v4854_v17, 4  ;;  %v7829_v30 = vrot.slane %v1043_v20, 9  ;;  %v10150_v29 = vld [vmem:[%s10266_s14 + $0x7c] sm:$0xf]  ;;  %v10152_v9 = vld [vmem:[%s10266_s14 + $0x88] sm:$0xf] }
  0xb1   : > { %9056 = vmatmul.mubr.bf16.gmra.mrb[12].mxu1 %v7854_v31  ;;  %v1141_v27 = vsel %vm10930_vm5, %v1139_v59, %v1140_v52  ;;  %v1144_v49 = vrot.slane %v10150_v29, 5  ;;  %v1147_v37 = vrot.slane %v10151_v41, 5  ;;  %v8297_v14 = vrot.slane %v8285_v34, 9  ;;  %9398 = vmatpush3.bf16.msra.mxu0 %v10040_v56  ;;  %v10044_v59 = vld [vmem:[%s12783_s1 + $0x2f8] sm:$0xff]  }
  0xb2   : > { %9059 = vmatprep.mubr.bf16.mxu1 %v7855_v35  ;;  %v7856_v23 = vcombine.low %v11169_v25, %v1141_v27  ;;  %v11188_v32 = vsel %vm10930_vm5, %v4856_v2, %v4857_v36  ;;  %9080 = vmatpush3.bf16.msra.mxu1 %v10041_v48  ;;  %v4861_v31 = vrot.slane %v10859_v57, 5  ;;  %v4864_v20 = vrot.slane %v10874_v63, 5  ;;  %v10153_v63 = vld [vmem:[%s10266_s14 + $0x8c] sm:$0x1] }
  0xb3   : > { %v8324_v52 = vcombine.low %v11178_v15, %v11188_v32  ;;  %v1145_v34 = vsel %vm10930_vm5, %v7829_v30, %v1144_v49  ;;  %v1146_v17 = vrot.slane %v1144_v49, 4  ;;  %v7830_v35 = vrot.slane %v1044_v0, 9  ;;  %9081 = vmatprep.subr.bf16.mxu1 %v10043_v40  ;;  %9399 = vmatprep.subr.bf16.mxu0 %v10042_v44  ;;  %v11208_v0 = vld [vmem:[%s12783_s1 + $0x100] sm:$0xff]  }
  0xb4   : > { %v11198_v36 = vsel %vm10930_vm5, %v8297_v14, %v4861_v31  ;;  %v4863_v48 = vrot.slane %v4861_v31, 4  ;;  %v1151_v25 = vrot.slane %v10152_v9, 5  ;;  %v1154_v56 = vrot.slane %v10153_v63, 5  ;;  %9376 = vmatmul.mubr.bf16.gmra.mrb[12].mxu0 %v8322_v33  ;;  %v1422_v9 = vld [vmem:[%s10266_s14 + $0x8] sm:$0x3] }
  0xb5   : > { %v1148_v2 = vsel %vm10930_vm5, %v1146_v17, %v1147_v37  ;;  %v8298_v30 = vrot.slane %v8286_v18, 9  ;;  %v4868_v27 = vrot.slane %v10880_v54, 5  ;;  %v4871_v29 = vrot.slane %v10901_v11, 5  ;;  %9379 = vmatprep.mubr.bf16.mxu0 %v8323_v24  ;;  %9400 = vmatpush3.bf16.msra.mxu0 %v10042_v44  ;;  %v8335_v63 = vld [vmem:[%s10266_s14 + $0x20] sm:$0x3] }
  0xb6   : > { %v7857_v49 = vcombine.low %v1145_v34, %v1148_v2  ;;  %v4865_v41 = vsel %vm10930_vm5, %v4863_v48, %v4864_v20  ;;  %v1152_v14 = vsel %vm10930_vm5, %v7830_v35, %v1151_v25  ;;  %v1153_v31 = vrot.slane %v1151_v25, 4  ;;  %9082 = vmatpush3.bf16.msra.mxu1 %v10043_v40  ;;  %9401 = vmatprep.subr.bf16.mxu0 %v10044_v59 }
  0xb7   : > { %v8325_v18 = vcombine.low %v11198_v36, %v4865_v41  ;;  %v11225_v11 = vsel %vm10930_vm5, %v8298_v30, %v4868_v27  ;;  %v4870_v6 = vrot.slane %v4868_v27, 4  ;;  %v1438_v44 = vshrl.u32 %v10904_v46, 16  ;;  %9107 = vmatprep.subr.bf16.mxu1 %v11208_v0 }
  0xb8   : > { %v1155_v33 = vsel %vm10930_vm5, %v1153_v31, %v1154_v56  ;;  %v1441_v40 = vshll.u32 %v10904_v46, 16  ;;  %v12944_v20 = vshrl.u32 %v10278_v13, 16  ;;  %v1452_v17 = vshrl.u32 %v1422_v9, 16 }
  0xb9   : > { %9060 = vmatmul.mubr.bf16.gmra.mrb[16].mxu1 %v7856_v23  ;;  %v7858_v24 = vcombine.low %v1152_v14, %v1155_v33  ;;  %v4872_v37 = vsel %vm10930_vm5, %v4870_v6, %v4871_v29  ;;  %v1440_v36 = vrot.slane %v1438_v44, 5  ;;  %v1455_v25 = vshll.u32 %v1422_v9, 16  ;;  %9402 = vmatpush3.bf16.msra.mxu0 %v10044_v59  ;;  %v1423_v9 = vld [vmem:[%s10266_s14 + $0x14] sm:$0x3] }
  0xba   : > { %v1446_v34 = vrot.slane %v12944_v20, 5  ;;  %9063 = vmatprep.mubr.bf16.mxu1 %v7857_v49  ;;  %v8326_v35 = vcombine.low %v11225_v11, %v4872_v37  ;;  %v1443_v48 = vrot.slane %v1441_v40, 6  ;;  %v1454_v23 = vrot.slane %v1452_v17, 5  ;;  %9427 = vmatprep.subr.bf16.mxu0 %v11230_v1 }
  0xbb   : > { %v5152_v56 = vshrl.u32 %v10912_v39, 16  ;;  %v5155_v2 = vshll.u32 %v10912_v39, 16  ;;  %v1457_v13 = vrot.slane %v1455_v25, 6  ;;  %v12945_v27 = vshrl.u32 %v10599_v55, 16 }
  0xbc   : > { %v1448_v46 = vor.u32 %v10326_v47, %v1446_v34  ;;  %v1444_v30 = vor.u32 %v1443_v48, %v1440_v36  ;;  %v12946_v49 = vshll.u32 %v10599_v55, 16  ;;  %v5166_v39 = vshrl.u32 %v8335_v63, 16  ;;  %9380 = vmatmul.mubr.bf16.gmra.mrb[16].mxu0 %v8324_v52 }
  0xbd   : > { %v5160_v29 = vrot.slane %v12945_v27, 5  ;;  %v5154_v14 = vrot.slane %v5152_v56, 5  ;;  %v5157_v31 = vrot.slane %v5155_v2, 6  ;;  %v1458_v55 = vor.u32 %v1457_v13, %v1454_v23  ;;  %9383 = vmatprep.mubr.bf16.mxu0 %v8325_v18  ;;  %v8336_v2 = vld [vmem:[%s10266_s14 + $0x2c] sm:$0x3] }
  0xbe   : > { %v5161_v41 = vrot.slane %v12946_v49, 6  ;;  %v1450_v47 = vrot.slane %v1448_v46, 4  ;;  %v1445_v11 = vrot.slane %v1444_v30, 4  ;;  %v5169_v33 = vshll.u32 %v8335_v63, 16 }
  0xbf   : > { %v5158_v44 = vor.u32 %v5157_v31, %v5154_v14  ;;  %v5168_v40 = vrot.slane %v5166_v39, 5  ;;  %v1461_v37 = vshrl.u32 %v10935_v38, 16  ;;  %v1464_v20 = vshll.u32 %v10935_v38, 16 }
  0xc0   : > { %v5162_v6 = vor.u32 %v5161_v41, %v5160_v29  ;;  %v1449_v34 = vsel %vm11253_vm8, %v1445_v11, %v1448_v46  ;;  %v1459_v17 = vsel %vm11253_vm8, %v1450_v47, %v1458_v55  ;;  %v5171_v32 = vrot.slane %v5169_v33, 6 }
  0xc1   : > { %9064 = vmatmul.mubr.bf16.gmra.mrb[20].mxu1 %v7858_v24  ;;  %v7883_v52 = vcombine.low %v1449_v34, %v1459_v17  ;;  %v5159_v36 = vrot.slane %v5158_v44, 4  ;;  %v1463_v48 = vrot.slane %v1461_v37, 5  ;;  %v1466_v18 = vrot.slane %v1464_v20, 6 }
  0xc2   : > { %v5164_v15 = vrot.slane %v5162_v6, 4  ;;  %v5172_v25 = vor.u32 %v5171_v32, %v5168_v40  ;;  %v1473_v63 = vrot.slane %v10336_v61, 4  ;;  %v1475_v23 = vshrl.u32 %v1423_v9, 16 }
  0xc3   : > { %v1478_v56 = vshll.u32 %v1423_v9, 16  ;;  %9083 = vmatprep.mubr.bf16.mxu1 %v7883_v52  ;;  %v5163_v38 = vsel %vm11253_vm8, %v5159_v36, %v5162_v6  ;;  %v1467_v46 = vor.u32 %v1466_v18, %v1463_v48  ;;  %v5175_v30 = vshrl.u32 %v10941_v28, 16  ;;  %v10047_v52 = vld [vmem:[%s12783_s1 + $0x108] sm:$0xff]  }
  0xc4   : > { %v5178_v13 = vshll.u32 %v10941_v28, 16  ;;  %v5173_v24 = vsel %vm11253_vm8, %v5164_v15, %v5172_v25  ;;  %v1477_v27 = vrot.slane %v1475_v23, 5  ;;  %v12949_v49 = vshrl.u32 %v10628_v10, 16  ;;  %9384 = vmatmul.mubr.bf16.gmra.mrb[20].mxu0 %v8326_v35 }
  0xc5   : > { %v1480_v29 = vrot.slane %v1478_v56, 6  ;;  %v8363_v47 = vcombine.low %v5163_v38, %v5173_v24  ;;  %v1468_v14 = vrot.slane %v1467_v46, 4  ;;  %v5177_v31 = vrot.slane %v5175_v30, 5  ;;  %v10048_v38 = vld [vmem:[%s12783_s1 + $0x308] sm:$0xff]  }
  0xc6   : > { %v5183_v41 = vrot.slane %v12949_v49, 5  ;;  %v5180_v39 = vrot.slane %v5178_v13, 6  ;;  %v12950_v11 = vshll.u32 %v10628_v10, 16  ;;  %v5189_v6 = vshrl.u32 %v8336_v2, 16  ;;  %v1424_v10 = vld [vmem:[%s10266_s14 + $0x20] sm:$0x3] }
  0xc7   : > { %v1481_v9 = vor.u32 %v1480_v29, %v1477_v27  ;;  %v5192_v28 = vshll.u32 %v8336_v2, 16  ;;  %9403 = vmatprep.mubr.bf16.mxu0 %v8363_v47  ;;  %v1472_v33 = vsel %vm11253_vm8, %v1468_v14, %v10336_v61  ;;  %v1484_v40 = vshrl.u32 %v10958_v19, 16  ;;  %v8337_v13 = vld [vmem:[%s10266_s14 + $0x38] sm:$0x3] }
  0xc8   : > { %v5184_v55 = vrot.slane %v12950_v11, 6  ;;  %v5181_v44 = vor.u32 %v5180_v39, %v5177_v31  ;;  %v1487_v37 = vshll.u32 %v10958_v19, 16  ;;  %v5191_v34 = vrot.slane %v5189_v6, 5  ;;  %v10049_v31 = vld [vmem:[%s12783_s1 + $0x110] sm:$0xff]  }
  0xc9   : > { %v1482_v20 = vsel %vm11253_vm8, %v1473_v63, %v1481_v9  ;;  %v5194_v17 = vrot.slane %v5192_v28, 6  ;;  %v1486_v61 = vrot.slane %v1484_v40, 5  ;;  %v12951_v19 = vshrl.u32 %v10349_v4, 16 }
  0xca   : > { %v5185_v35 = vor.u32 %v5184_v55, %v5183_v41  ;;  %v7884_v15 = vcombine.low %v1472_v33, %v1482_v20  ;;  %v5182_v32 = vrot.slane %v5181_v44, 4  ;;  %v1489_v36 = vrot.slane %v1487_v37, 6  ;;  %v1425_v20 = vld [vmem:[%s10266_s14 + $0x2c] sm:$0x3] }
  0xcb   : > { %v5195_v18 = vor.u32 %v5194_v17, %v5191_v34  ;;  %v1492_v25 = vrot.slane %v12951_v19, 5  ;;  %v12952_v63 = vshll.u32 %v10349_v4, 16  ;;  %v1498_v2 = vshrl.u32 %v1424_v10, 16  ;;  %v10050_v17 = vld [vmem:[%s12783_s1 + $0x310] sm:$0xff]  }
  0xcc   : > { %v5187_v48 = vrot.slane %v5185_v35, 4  ;;  %9084 = vmatmul.mubr.bf16.vlgmr.msra.gmra.mrb[0].mxu1 %v7884_v15  ;;  %v5186_v56 = vsel %vm11253_vm8, %v5182_v32, %v5185_v35  ;;  %v1490_v46 = vor.u32 %v1489_v36, %v1486_v61  ;;  %v1501_v30 = vshll.u32 %v1424_v10, 16 }
  0xcd   : > { %v1493_v23 = vrot.slane %v12952_v63, 6  ;;  %9108 = vmatpush3.bf16.msra.mxu1 %v11208_v0  ;;  %v5198_v4 = vshrl.u32 %v10969_v21, 16  ;;  %v5201_v29 = vshll.u32 %v10969_v21, 16  ;;  %v1500_v47 = vrot.slane %v1498_v2, 5 }
  0xce   : > { %v5196_v24 = vsel %vm11253_vm8, %v5187_v48, %v5195_v18  ;;  %9109 = vmatprep.subr.bf16.mxu1 %v10047_v52  ;;  %v1491_v41 = vrot.slane %v1490_v46, 4  ;;  %v1503_v14 = vrot.slane %v1501_v30, 6  ;;  %v12953_v0 = vshrl.u32 %v10656_v50, 16  ;;  %v10052_v46 = vld [vmem:[%s12783_s1 + $0x318] sm:$0xff]  }
  0xcf   : > { %v1494_v27 = vor.u32 %v1493_v23, %v1492_v25  ;;  %v8364_v49 = vcombine.low %v5186_v56, %v5196_v24  ;;  %v5200_v9 = vrot.slane %v5198_v4, 5  ;;  %v5203_v11 = vrot.slane %v5201_v29, 6  ;;  %v8338_v56 = vld [vmem:[%s10266_s14 + $0x44] sm:$0x3] }
  0xd0   : > { %v5206_v55 = vrot.slane %v12953_v0, 5  ;;  %v1504_v6 = vor.u32 %v1503_v14, %v1500_v47  ;;  %v12954_v28 = vshll.u32 %v10656_v50, 16  ;;  %v5212_v44 = vshrl.u32 %v8337_v13, 16 }
  0xd1   : > { %v1496_v39 = vrot.slane %v1494_v27, 4  ;;  %9404 = vmatmul.mubr.bf16.vlgmr.msra.gmra.mrb[0].mxu0 %v8364_v49  ;;  %v1495_v21 = vsel %vm11253_vm8, %v1491_v41, %v1494_v27  ;;  %9110 = vmatpush3.bf16.msra.mxu1 %v10047_v52  ;;  %v5204_v40 = vor.u32 %v5203_v11, %v5200_v9  ;;  %v5215_v37 = vshll.u32 %v8337_v13, 16 }
  0xd2   : > { %v5207_v33 = vrot.slane %v12954_v28, 6  ;;  %9428 = vmatpush3.bf16.msra.mxu0 %v11230_v1  ;;  %v1507_v35 = vshrl.u32 %v10977_v62, 16  ;;  %v1510_v34 = vshll.u32 %v10977_v62, 16  ;;  %v5214_v15 = vrot.slane %v5212_v44, 5  ;;  %9111 = vmatprep.subr.bf16.mxu1 %v10049_v31  ;;  %v10051_v62 = vld [vmem:[%s12783_s1 + $0x118] sm:$0xff]   ;;  %v10054_v44 = vld [vmem:[%s12783_s1 + $0x320] sm:$0xff]  }
  0xd3   : > { %9429 = vmatprep.subr.bf16.mxu0 %v10048_v38  ;;  %v1505_v50 = vsel %vm11253_vm8, %v1496_v39, %v1504_v6  ;;  %v12955_v1 = vshrl.u32 %v10372_v26, 16  ;;  %v5205_v61 = vrot.slane %v5204_v40, 4  ;;  %v5217_v36 = vrot.slane %v5215_v37, 6 }
  0xd4   : > { %v5208_v10 = vor.u32 %v5207_v33, %v5206_v55  ;;  %v7885_v52 = vcombine.low %v1495_v21, %v1505_v50  ;;  %v1509_v48 = vrot.slane %v1507_v35, 5  ;;  %v1512_v19 = vrot.slane %v1510_v34, 6  ;;  %v1426_v33 = vld [vmem:[%s10266_s14 + $0x38] sm:$0x3] }
  0xd5   : > { %v1515_v32 = vrot.slane %v12955_v1, 5  ;;  %v12956_v25 = vshll.u32 %v10372_v26, 16  ;;  %v1521_v23 = vshrl.u32 %v1425_v20, 16  ;;  %v5218_v30 = vor.u32 %v5217_v36, %v5214_v15  ;;  %9112 = vmatpush3.bf16.msra.mxu1 %v10049_v31  ;;  %v12959_v36 = vld [vmem:[#allocation4_spill] sm:$0xff] }
  0xd6   : > { %v5210_v18 = vrot.slane %v5208_v10, 4  ;;  %9087 = vmatprep.mubr.bf16.mxu1 %v7885_v52  ;;  %v5209_v2 = vsel %vm11253_vm8, %v5205_v61, %v5208_v10  ;;  %9430 = vmatpush3.bf16.msra.mxu0 %v10048_v38  ;;  %v1524_v13 = vshll.u32 %v1425_v20, 16  ;;  %v5221_v24 = vshrl.u32 %v11001_v7, 16  ;;  %v10055_v52 = vld [vmem:[%s12783_s1 + $0x128] sm:$0xff]  }
  0xd7   : > { %v1516_v63 = vrot.slane %v12956_v25, 6  ;;  %v1513_v27 = vor.u32 %v1512_v19, %v1509_v48  ;;  %v1523_v29 = vrot.slane %v1521_v23, 5  ;;  %v5224_v26 = vshll.u32 %v11001_v7, 16  ;;  %9431 = vmatprep.subr.bf16.mxu0 %v10050_v17  ;;  %9113 = vmatprep.subr.bf16.mxu1 %v10051_v62  ;;  %v10053_v7 = vld [vmem:[%s12783_s1 + $0x120] sm:$0xff]  }
  0xd8   : > { %v5219_v49 = vsel %vm11253_vm8, %v5210_v18, %v5218_v30  ;;  %v1526_v41 = vrot.slane %v1524_v13, 6  ;;  %v5223_v47 = vrot.slane %v5221_v24, 5  ;;  %v12957_v14 = vshrl.u32 %v10668_v5, 16  ;;  %v10057_v13 = vld [vmem:[%s12783_s1 + $0x130] sm:$0xff]  }
  0xd9   : > { %v1517_v4 = vor.u32 %v1516_v63, %v1515_v32  ;;  %v8365_v38 = vcombine.low %v5209_v2, %v5219_v49  ;;  %v1514_v9 = vrot.slane %v1513_v27, 4  ;;  %v5226_v0 = vrot.slane %v5224_v26, 6  ;;  %9114 = vmatpush3.bf16.msra.mxu1 %v10051_v62  ;;  %v8339_v63 = vld [vmem:[%s10266_s14 + $0x50] sm:$0x3]  ;;  %v10056_v62 = vld [vmem:[%s12783_s1 + $0x328] sm:$0xff]  }
  0xda   : > { %v5229_v39 = vrot.slane %v12957_v14, 5  ;;  %v1527_v55 = vor.u32 %v1526_v41, %v1523_v29  ;;  %v12958_v31 = vshll.u32 %v10668_v5, 16  ;;  %v5235_v6 = vshrl.u32 %v8338_v56, 16  ;;  %9432 = vmatpush3.bf16.msra.mxu0 %v10050_v17  ;;  %9115 = vmatprep.subr.bf16.mxu1 %v10053_v7 }
  0xdb   : > { %v1519_v11 = vrot.slane %v1517_v4, 4  ;;  %v5238_v28 = vshll.u32 %v8338_v56, 16  ;;  %9407 = vmatprep.mubr.bf16.mxu0 %v8365_v38  ;;  %v1518_v40 = vsel %vm11253_vm8, %v1514_v9, %v1517_v4  ;;  %v5227_v37 = vor.u32 %v5226_v0, %v5223_v47  ;;  %9433 = vmatprep.subr.bf16.mxu0 %v10052_v46  ;;  %v10058_v47 = vld [vmem:[%s12783_s1 + $0x330] sm:$0xff]   ;;  %v1427_v0 = vld [vmem:[%s10266_s14 + $0x44] sm:$0x3] }
  0xdc   : > { %v5230_v21 = vrot.slane %v12958_v31, 6  ;;  %v1530_v20 = vshrl.u32 %v11004_v45, 16  ;;  %v1533_v35 = vshll.u32 %v11004_v45, 16  ;;  %v5237_v17 = vrot.slane %v5235_v6, 5 }
  0xdd   : > { %v1528_v5 = vsel %vm11253_vm8, %v1519_v11, %v1527_v55  ;;  %v5240_v50 = vrot.slane %v5238_v28, 6  ;;  %v5228_v15 = vrot.slane %v5227_v37, 4  ;;  %v12960_v48 = vshrl.u32 %v12959_v36, 16  ;;  %9116 = vmatpush3.bf16.msra.mxu1 %v10053_v7 }
  0xde   : > { %v5231_v34 = vor.u32 %v5230_v21, %v5229_v39  ;;  %v7886_v10 = vcombine.low %v1518_v40, %v1528_v5  ;;  %v1532_v1 = vrot.slane %v1530_v20, 5  ;;  %v1535_v32 = vrot.slane %v1533_v35, 6  ;;  %9434 = vmatpush3.bf16.msra.mxu0 %v10052_v46  ;;  %9117 = vmatprep.subr.bf16.mxu1 %v10055_v52 }
  0xdf   : > { %v5241_v45 = vor.u32 %v5240_v50, %v5237_v17  ;;  %v1538_v18 = vrot.slane %v12960_v48, 5  ;;  %v12961_v19 = vshll.u32 %v12959_v36, 16  ;;  %v1544_v2 = vshrl.u32 %v1426_v33, 16  ;;  %9435 = vmatprep.subr.bf16.mxu0 %v10054_v44  ;;  %v11405_v36 = vld [vmem:[%s12783_s1 + $0x140] sm:$0xff]  }
  0xe0   : > { %v5233_v61 = vrot.slane %v5231_v34, 4  ;;  %9088 = vmatmul.mubr.bf16.gmra.mrb[4].mxu1 %v7886_v10  ;;  %v5232_v23 = vsel %vm11253_vm8, %v5228_v15, %v5231_v34  ;;  %v1536_v56 = vor.u32 %v1535_v32, %v1532_v1  ;;  %v1547_v30 = vshll.u32 %v1426_v33, 16  ;;  %v10060_v10 = vld [vmem:[%s12783_s1 + $0x338] sm:$0xff]  }
  0xe1   : > { %v1539_v25 = vrot.slane %v12961_v19, 6  ;;  %v5244_v27 = vshrl.u32 %v11010_v60, 16  ;;  %v5247_v4 = vshll.u32 %v11010_v60, 16  ;;  %v1546_v49 = vrot.slane %v1544_v2, 5  ;;  %9118 = vmatpush3.bf16.msra.mxu1 %v10055_v52 }
  0xe2   : > { %v5242_v46 = vsel %vm11253_vm8, %v5233_v61, %v5241_v45  ;;  %v1537_v26 = vrot.slane %v1536_v56, 4  ;;  %v1549_v41 = vrot.slane %v1547_v30, 6  ;;  %v12962_v9 = vshrl.u32 %v10695_v16, 16  ;;  %9436 = vmatpush3.bf16.msra.mxu0 %v10054_v44  ;;  %v10059_v44 = vld [vmem:[%s12783_s1 + $0x138] sm:$0xff]   ;;  %9119 = vmatprep.subr.bf16.mxu1 %v10057_v13 }
  0xe3   : > { %v1540_v24 = vor.u32 %v1539_v25, %v1538_v18  ;;  %v8366_v29 = vcombine.low %v5232_v23, %v5242_v46  ;;  %v5246_v39 = vrot.slane %v5244_v27, 5  ;;  %v5249_v38 = vrot.slane %v5247_v4, 6  ;;  %9437 = vmatprep.subr.bf16.mxu0 %v10056_v62  ;;  %v8340_v45 = vld [vmem:[%s10266_s14 + $0x5c] sm:$0x3]  ;;  %v10154_v25 = vld [vmem:[%s10266_s14 + $0x54] sm:$0xe] }
  0xe4   : > { %v5252_v11 = vrot.slane %v12962_v9, 5  ;;  %v1550_v7 = vor.u32 %v1549_v41, %v1546_v49  ;;  %v12963_v55 = vshll.u32 %v10695_v16, 16  ;;  %v5258_v21 = vshrl.u32 %v8339_v63, 16  ;;  %v11417_v49 = vld [vmem:[%s12783_s1 + $0x340] sm:$0xff]  }
  0xe5   : > { %v1542_v14 = vrot.slane %v1540_v24, 4  ;;  %9408 = vmatmul.mubr.bf16.gmra.mrb[4].mxu0 %v8366_v29  ;;  %v1541_v60 = vsel %vm11253_vm8, %v1537_v26, %v1540_v24  ;;  %v5250_v6 = vor.u32 %v5249_v38, %v5246_v39  ;;  %v5261_v28 = vshll.u32 %v8339_v63, 16  ;;  %9120 = vmatpush3.bf16.msra.mxu1 %v10057_v13 }
  0xe6   : > { %v5253_v31 = vrot.slane %v12963_v55, 6  ;;  %v1553_v33 = vshrl.u32 %v11035_v3, 16  ;;  %v1556_v40 = vshll.u32 %v11035_v3, 16  ;;  %v5260_v16 = vrot.slane %v5258_v21, 5  ;;  %9438 = vmatpush3.bf16.msra.mxu0 %v10056_v62  ;;  %9121 = vmatprep.subr.bf16.mxu1 %v10059_v44 }
  0xe7   : > { %v1551_v37 = vsel %vm11253_vm8, %v1542_v14, %v1550_v7  ;;  %v12964_v35 = vshrl.u32 %v10417_v22, 16  ;;  %v5251_v17 = vrot.slane %v5250_v6, 4  ;;  %v5263_v50 = vrot.slane %v5261_v28, 6  ;;  %9439 = vmatprep.subr.bf16.mxu0 %v10058_v47 }
  0xe8   : > { %v5254_v20 = vor.u32 %v5253_v31, %v5252_v11  ;;  %v7887_v34 = vcombine.low %v1541_v60, %v1551_v37  ;;  %v1555_v3 = vrot.slane %v1553_v33, 5  ;;  %v1558_v1 = vrot.slane %v1556_v40, 6  ;;  %v1428_v11 = vld [vmem:[%s10266_s14 + $0x50] sm:$0x3]  ;;  %v10155_v60 = vld [vmem:[%s10266_s14 + $0x48] sm:$0xe] }
  0xe9   : > { %v1561_v5 = vrot.slane %v12964_v35, 5  ;;  %v12965_v32 = vshll.u32 %v10417_v22, 16  ;;  %v1567_v61 = vshrl.u32 %v1427_v0, 16  ;;  %v5264_v18 = vor.u32 %v5263_v50, %v5260_v16  ;;  %9122 = vmatpush3.bf16.msra.mxu1 %v10059_v44  ;;  %v12968_v16 = vld [vmem:[#allocation5_spill] sm:$0xff]  ;;  %v8341_v50 = vld [vmem:[%s10266_s14 + $0x68] sm:$0x3] }
  0xea   : > { %v5256_v15 = vrot.slane %v5254_v20, 4  ;;  %9091 = vmatprep.mubr.bf16.mxu1 %v7887_v34  ;;  %v5255_v48 = vsel %vm11253_vm8, %v5251_v17, %v5254_v20  ;;  %v1570_v19 = vshll.u32 %v1427_v0, 16  ;;  %v5267_v63 = vshrl.u32 %v10154_v25, 16  ;;  %9440 = vmatpush3.bf16.msra.mxu0 %v10058_v47 }
  0xeb   : > { %v1562_v52 = vrot.slane %v12965_v32, 6  ;;  %v1559_v62 = vor.u32 %v1558_v1, %v1555_v3  ;;  %v1569_v23 = vrot.slane %v1567_v61, 5  ;;  %v5270_v56 = vshll.u32 %v10154_v25, 16  ;;  %9441 = vmatprep.subr.bf16.mxu0 %v10060_v10  ;;  %9147 = vmatprep.subr.bf16.mxu1 %v11405_v36  ;;  %v10156_v61 = vld [vmem:[%s10266_s14 + $0x60] sm:$0xe] }
  0xec   : > { %v5265_v2 = vsel %vm11253_vm8, %v5256_v15, %v5264_v18  ;;  %v1572_v30 = vrot.slane %v1570_v19, 6  ;;  %v5269_v46 = vrot.slane %v5267_v63, 5  ;;  %v12966_v24 = vshrl.u32 %v10722_v8, 16 }
  0xed   : > { %v1563_v22 = vor.u32 %v1562_v52, %v1561_v5  ;;  %v8367_v4 = vcombine.low %v5255_v48, %v5265_v2  ;;  %v1560_v29 = vrot.slane %v1559_v62, 4  ;;  %v5272_v13 = vrot.slane %v5270_v56, 6 }
  0xee   : > { %v5275_v27 = vrot.slane %v12966_v24, 5  ;;  %v1573_v41 = vor.u32 %v1572_v30, %v1569_v23  ;;  %v12967_v14 = vshll.u32 %v10722_v8, 16  ;;  %v5281_v38 = vshrl.u32 %v8340_v45, 16  ;;  %9442 = vmatpush3.bf16.msra.mxu0 %v10060_v10  ;;  %v1429_v30 = vld [vmem:[%s10266_s14 + $0x5c] sm:$0x3] }
  0xef   : > { %v1565_v26 = vrot.slane %v1563_v22, 4  ;;  %v5284_v9 = vshll.u32 %v8340_v45, 16  ;;  %9411 = vmatprep.mubr.bf16.mxu0 %v8367_v4  ;;  %v1564_v47 = vsel %vm11253_vm8, %v1560_v29, %v1563_v22  ;;  %v5273_v0 = vor.u32 %v5272_v13, %v5269_v46  ;;  %9467 = vmatprep.subr.bf16.mxu0 %v11417_v49 }
  0xf0   : > { %v5276_v39 = vrot.slane %v12967_v14, 6  ;;  %v1576_v7 = vshrl.u32 %v10155_v60, 16  ;;  %v1579_v55 = vshll.u32 %v10155_v60, 16  ;;  %v5283_v21 = vrot.slane %v5281_v38, 5 }
  0xf1   : > { %v1574_v31 = vsel %vm11253_vm8, %v1565_v26, %v1573_v41  ;;  %v5286_v6 = vrot.slane %v5284_v9, 6  ;;  %v5274_v33 = vrot.slane %v5273_v0, 4  ;;  %v12969_v35 = vshrl.u32 %v12968_v16, 16  ;;  %v10157_v41 = vld [vmem:[%s10266_s14 + $0x54] sm:$0xe] }
  0xf2   : > { %v5277_v8 = vor.u32 %v5276_v39, %v5275_v27  ;;  %v7888_v28 = vcombine.low %v1564_v47, %v1574_v31  ;;  %v1578_v40 = vrot.slane %v1576_v7, 5  ;;  %v1581_v44 = vrot.slane %v1579_v55, 6 }
  0xf3   : > { %v5287_v20 = vor.u32 %v5286_v6, %v5283_v21  ;;  %v1584_v5 = vrot.slane %v12969_v35, 5  ;;  %v12970_v34 = vshll.u32 %v12968_v16, 16  ;;  %v1590_v15 = vshrl.u32 %v1428_v11, 16 }
  0xf4   : > { %v5279_v37 = vrot.slane %v5277_v8, 4  ;;  %9092 = vmatmul.mubr.bf16.gmra.mrb[8].mxu1 %v7888_v28  ;;  %v5278_v3 = vsel %vm11253_vm8, %v5274_v33, %v5277_v8  ;;  %v1582_v10 = vor.u32 %v1581_v44, %v1578_v40  ;;  %v1593_v1 = vshll.u32 %v1428_v11, 16  ;;  %v8342_v33 = vld [vmem:[%s10266_s14 + $0x74] sm:$0x3] }
  0xf5   : > { %v1585_v17 = vrot.slane %v12970_v34, 6  ;;  %v5290_v45 = vshrl.u32 %v10156_v61, 16  ;;  %v5293_v48 = vshll.u32 %v10156_v61, 16  ;;  %v1592_v25 = vrot.slane %v1590_v15, 5 }
  0xf6   : > { %v5288_v32 = vsel %vm11253_vm8, %v5279_v37, %v5287_v20  ;;  %v1583_v19 = vrot.slane %v1582_v10, 4  ;;  %v1595_v63 = vrot.slane %v1593_v1, 6  ;;  %v12971_v56 = vshrl.u32 %v10750_v43, 16  ;;  %v10158_v20 = vld [vmem:[%s10266_s14 + $0x6c] sm:$0xe] }
  0xf7   : > { %v1586_v52 = vor.u32 %v1585_v17, %v1584_v5  ;;  %v8368_v18 = vcombine.low %v5278_v3, %v5288_v32  ;;  %v5292_v22 = vrot.slane %v5290_v45, 5  ;;  %v5295_v23 = vrot.slane %v5293_v48, 6 }
  0xf8   : > { %v5298_v2 = vrot.slane %v12971_v56, 5  ;;  %v1596_v24 = vor.u32 %v1595_v63, %v1592_v25  ;;  %v12972_v27 = vshll.u32 %v10750_v43, 16  ;;  %v5304_v29 = vshrl.u32 %v8341_v50, 16  ;;  %v1430_v63 = vld [vmem:[%s10266_s14 + $0x68] sm:$0x3] }
  0xf9   : > { %v1588_v62 = vrot.slane %v1586_v52, 4  ;;  %9412 = vmatmul.mubr.bf16.gmra.mrb[8].mxu0 %v8368_v18  ;;  %v1587_v46 = vsel %vm11253_vm8, %v1583_v19, %v1586_v52  ;;  %v5296_v26 = vor.u32 %v5295_v23, %v5292_v22  ;;  %v5307_v13 = vshll.u32 %v8341_v50, 16  ;;  %v10159_v23 = vld [vmem:[%s10266_s14 + $0x60] sm:$0xe] }
  0xfa   : > { %v5299_v4 = vrot.slane %v12972_v27, 6  ;;  %v1599_v14 = vshrl.u32 %v10157_v41, 16  ;;  %v1602_v39 = vshll.u32 %v10157_v41, 16  ;;  %v5306_v11 = vrot.slane %v5304_v29, 5 }
  0xfb   : > { %v1597_v38 = vsel %vm11253_vm8, %v1588_v62, %v1596_v24  ;;  %v12973_v47 = vshrl.u32 %v10468_v42, 16  ;;  %v5297_v7 = vrot.slane %v5296_v26, 4  ;;  %v5309_v43 = vrot.slane %v5307_v13, 6 }
  0xfc   : > { %v5300_v9 = vor.u32 %v5299_v4, %v5298_v2  ;;  %v7889_v60 = vcombine.low %v1587_v46, %v1597_v38  ;;  %v1601_v55 = vrot.slane %v1599_v14, 5  ;;  %v1604_v8 = vrot.slane %v1602_v39, 6  ;;  %v12977_v14 = vld [vmem:[#allocation6_spill] sm:$0xff] }
  0xfd   : > { %v1607_v0 = vrot.slane %v12973_v47, 5  ;;  %v12974_v21 = vshll.u32 %v10468_v42, 16  ;;  %v1613_v28 = vshrl.u32 %v1429_v30, 16  ;;  %v5310_v44 = vor.u32 %v5309_v43, %v5306_v11  ;;  %v8343_v47 = vld [vmem:[%s10266_s14 + $0x80] sm:$0x3] }
  0xfe   : > { %v5302_v31 = vrot.slane %v5300_v9, 4  ;;  %9095 = vmatprep.mubr.bf16.mxu1 %v7889_v60  ;;  %v5301_v40 = vsel %vm11253_vm8, %v5297_v7, %v5300_v9  ;;  %v1616_v37 = vshll.u32 %v1429_v30, 16  ;;  %v5313_v16 = vshrl.u32 %v10158_v20, 16 }
  0xff   : > { %v1608_v6 = vrot.slane %v12974_v21, 6  ;;  %v1605_v35 = vor.u32 %v1604_v8, %v1601_v55  ;;  %v1615_v34 = vrot.slane %v1613_v28, 5  ;;  %v5316_v17 = vshll.u32 %v10158_v20, 16  ;;  %v10160_v8 = vld [vmem:[%s10266_s14 + $0x78] sm:$0xe] }
 0x100   : > { %v5311_v50 = vsel %vm11253_vm8, %v5302_v31, %v5310_v44  ;;  %v1618_v42 = vrot.slane %v1616_v37, 6  ;;  %v5315_v3 = vrot.slane %v5313_v16, 5  ;;  %v12975_v10 = vshrl.u32 %v10774_v51, 16 }
 0x101   : > { %v1609_v5 = vor.u32 %v1608_v6, %v1607_v0  ;;  %v8369_v1 = vcombine.low %v5301_v40, %v5311_v50  ;;  %v1606_v32 = vrot.slane %v1605_v35, 4  ;;  %v5318_v61 = vrot.slane %v5316_v17, 6 }
 0x102   : > { %v5321_v15 = vrot.slane %v12975_v10, 5  ;;  %v1619_v45 = vor.u32 %v1618_v42, %v1615_v34  ;;  %v12976_v48 = vshll.u32 %v10774_v51, 16  ;;  %v5327_v19 = vshrl.u32 %v8342_v33, 16  ;;  %v1431_v10 = vld [vmem:[%s10266_s14 + $0x74] sm:$0x3] }
 0x103   : > { %v1611_v52 = vrot.slane %v1609_v5, 4  ;;  %v5330_v25 = vshll.u32 %v8342_v33, 16  ;;  %9415 = vmatprep.mubr.bf16.mxu0 %v8369_v1  ;;  %v1610_v62 = vsel %vm11253_vm8, %v1606_v32, %v1609_v5  ;;  %v5319_v22 = vor.u32 %v5318_v61, %v5315_v3  ;;  %v10161_v32 = vld [vmem:[%s10266_s14 + $0x6c] sm:$0xe] }
 0x104   : > { %v5322_v18 = vrot.slane %v12976_v48, 6  ;;  %v1622_v56 = vshrl.u32 %v10159_v23, 16  ;;  %v1625_v2 = vshll.u32 %v10159_v23, 16  ;;  %v5329_v24 = vrot.slane %v5327_v19, 5  ;;  %v12982_v19 = vld [vmem:[#allocation7_spill] sm:$0xff] }
 0x105   : > { %v1620_v30 = vsel %vm11253_vm8, %v1611_v52, %v1619_v45  ;;  %v5332_v27 = vrot.slane %v5330_v25, 6  ;;  %v5320_v4 = vrot.slane %v5319_v22, 4  ;;  %v12978_v39 = vshrl.u32 %v12977_v14, 16 }
 0x106   : > { %v5323_v46 = vor.u32 %v5322_v18, %v5321_v15  ;;  %v7890_v51 = vcombine.low %v1610_v62, %v1620_v30  ;;  %v1624_v29 = vrot.slane %v1622_v56, 5  ;;  %v1627_v26 = vrot.slane %v1625_v2, 6 }
 0x107   : > { %v5333_v41 = vor.u32 %v5332_v27, %v5329_v24  ;;  %v1630_v38 = vrot.slane %v12978_v39, 5  ;;  %v12979_v9 = vshll.u32 %v12977_v14, 16  ;;  %v1636_v7 = vshrl.u32 %v1430_v63, 16  ;;  %v8344_v39 = vld [vmem:[%s10266_s14 + $0x8c] sm:$0x3] }
 0x108   : > { %v5325_v13 = vrot.slane %v5323_v46, 4  ;;  %9096 = vmatmul.mubr.bf16.gmra.mrb[12].mxu1 %v7890_v51  ;;  %v5324_v0 = vsel %vm11253_vm8, %v5320_v4, %v5323_v46  ;;  %v1628_v60 = vor.u32 %v1627_v26, %v1624_v29  ;;  %v1639_v43 = vshll.u32 %v1430_v63, 16  ;;  %v10162_v29 = vld [vmem:[%s10266_s14 + $0x84] sm:$0xe] }
 0x109   : > { %v1631_v11 = vrot.slane %v12979_v9, 6  ;;  %v5336_v21 = vshrl.u32 %v10160_v8, 16  ;;  %v5339_v6 = vshll.u32 %v10160_v8, 16  ;;  %v1638_v40 = vrot.slane %v1636_v7, 5 }
 0x10a   : > { %v5334_v55 = vsel %vm11253_vm8, %v5325_v13, %v5333_v41  ;;  %v1629_v33 = vrot.slane %v1628_v60, 4  ;;  %v1641_v44 = vrot.slane %v1639_v43, 6  ;;  %v12980_v35 = vshrl.u32 %v10817_v58, 16 }
 0x10b   : > { %v1632_v31 = vor.u32 %v1631_v11, %v1630_v38  ;;  %v8370_v28 = vcombine.low %v5324_v0, %v5334_v55  ;;  %v5338_v20 = vrot.slane %v5336_v21, 5  ;;  %v5341_v16 = vrot.slane %v5339_v6, 6 }
 0x10c   : > { %v5344_v5 = vrot.slane %v12980_v35, 5  ;;  %v1642_v17 = vor.u32 %v1641_v44, %v1638_v40  ;;  %v12981_v50 = vshll.u32 %v10817_v58, 16  ;;  %v5350_v3 = vshrl.u32 %v8343_v47, 16 }
 0x10d   : > { %v1634_v37 = vrot.slane %v1632_v31, 4  ;;  %9416 = vmatmul.mubr.bf16.gmra.mrb[12].mxu0 %v8370_v28  ;;  %v1633_v34 = vsel %vm11253_vm8, %v1629_v33, %v1632_v31  ;;  %v5342_v15 = vor.u32 %v5341_v16, %v5338_v20  ;;  %v5353_v1 = vshll.u32 %v8343_v47, 16 }
 0x10e   : > { %v5345_v42 = vrot.slane %v12981_v50, 6  ;;  %v1645_v52 = vshrl.u32 %v10161_v32, 16  ;;  %v1648_v61 = vshll.u32 %v10161_v32, 16  ;;  %v5352_v18 = vrot.slane %v5350_v3, 5  ;;  %v1432_v50 = vld [vmem:[%s10266_s14 + $0x80] sm:$0x3] }
 0x10f   : > { %v1643_v45 = vsel %vm11253_vm8, %v1634_v37, %v1642_v17  ;;  %v12983_v25 = vshrl.u32 %v12982_v19, 16  ;;  %v5343_v22 = vrot.slane %v5342_v15, 4  ;;  %v5355_v58 = vrot.slane %v5353_v1, 6  ;;  %v10163_v37 = vld [vmem:[%s10266_s14 + $0x78] sm:$0xe]  ;;  %v12987_v32 = vld [vmem:[#allocation8_spill] sm:$0xff] }
 0x110   : > { %v5346_v48 = vor.u32 %v5345_v42, %v5344_v5  ;;  %v7891_v62 = vcombine.low %v1633_v34, %v1643_v45  ;;  %v1647_v23 = vrot.slane %v1645_v52, 5  ;;  %v1650_v2 = vrot.slane %v1648_v61, 6 }
 0x111   : > { %v1653_v63 = vrot.slane %v12983_v25, 5  ;;  %v12984_v30 = vshll.u32 %v12982_v19, 16  ;;  %v1659_v24 = vshrl.u32 %v1431_v10, 16  ;;  %v5356_v51 = vor.u32 %v5355_v58, %v5352_v18  ;;  %v8345_v58 = vld [vmem:[%s10266_s14 + $0x98] sm:$0x3] }
 0x112   : > { %v5348_v56 = vrot.slane %v5346_v48, 4  ;;  %9099 = vmatprep.mubr.bf16.mxu1 %v7891_v62  ;;  %v5347_v27 = vsel %vm11253_vm8, %v5343_v22, %v5346_v48  ;;  %v1662_v4 = vshll.u32 %v1431_v10, 16  ;;  %v5359_v26 = vshrl.u32 %v10162_v29, 16 }
 0x113   : > { %v1654_v46 = vrot.slane %v12984_v30, 6  ;;  %v1651_v13 = vor.u32 %v1650_v2, %v1647_v23  ;;  %v1661_v14 = vrot.slane %v1659_v24, 5  ;;  %v5362_v38 = vshll.u32 %v10162_v29, 16  ;;  %v10164_v23 = vld [vmem:[%s10266_s14 + $0x90] sm:$0xe] }
 0x114   : > { %v5357_v9 = vsel %vm11253_vm8, %v5348_v56, %v5356_v51  ;;  %v1664_v11 = vrot.slane %v1662_v4, 6  ;;  %v5361_v47 = vrot.slane %v5359_v26, 5  ;;  %v12985_v0 = vshrl.u32 %v10829_v12, 16 }
 0x115   : > { %v1655_v41 = vor.u32 %v1654_v46, %v1653_v63  ;;  %v8371_v7 = vcombine.low %v5347_v27, %v5357_v9  ;;  %v1652_v43 = vrot.slane %v1651_v13, 4  ;;  %v5364_v31 = vrot.slane %v5362_v38, 6 }
 0x116   : > { %v5367_v60 = vrot.slane %v12985_v0, 5  ;;  %v1665_v8 = vor.u32 %v1664_v11, %v1661_v14  ;;  %v12986_v21 = vshll.u32 %v10829_v12, 16  ;;  %v5373_v28 = vshrl.u32 %v8344_v39, 16 }
 0x117   : > { %v1657_v55 = vrot.slane %v1655_v41, 4  ;;  %v5376_v33 = vshll.u32 %v8344_v39, 16  ;;  %9419 = vmatprep.mubr.bf16.mxu0 %v8371_v7  ;;  %v1656_v40 = vsel %vm11253_vm8, %v1652_v43, %v1655_v41  ;;  %v5365_v44 = vor.u32 %v5364_v31, %v5361_v47  ;;  %v1433_v41 = vld [vmem:[%s10266_s14 + $0x8c] sm:$0x3] }
 0x118   : > { %v5368_v6 = vrot.slane %v12986_v21, 6  ;;  %v1668_v20 = vshrl.u32 %v10163_v37, 16  ;;  %v1671_v16 = vshll.u32 %v10163_v37, 16  ;;  %v5375_v34 = vrot.slane %v5373_v28, 5  ;;  %v12992_v21 = vld [vmem:[#allocation9_spill] sm:$0xff] }
 0x119   : > { %v1666_v35 = vsel %vm11253_vm8, %v1657_v55, %v1665_v8  ;;  %v5378_v17 = vrot.slane %v5376_v33, 6  ;;  %v5366_v42 = vrot.slane %v5365_v44, 4  ;;  %v12988_v52 = vshrl.u32 %v12987_v32, 16 }
 0x11a   : > { %v5369_v5 = vor.u32 %v5368_v6, %v5367_v60  ;;  %v7892_v12 = vcombine.low %v1656_v40, %v1666_v35  ;;  %v1670_v3 = vrot.slane %v1668_v20, 5  ;;  %v1673_v10 = vrot.slane %v1671_v16, 6  ;;  %v10165_v60 = vld [vmem:[%s10266_s14 + $0x84] sm:$0xe] }
 0x11b   : > { %v5379_v1 = vor.u32 %v5378_v17, %v5375_v34  ;;  %v1676_v61 = vrot.slane %v12988_v52, 5  ;;  %v12989_v45 = vshll.u32 %v12987_v32, 16  ;;  %v1682_v25 = vshrl.u32 %v1432_v50, 16 }
 0x11c   : > { %v5371_v15 = vrot.slane %v5369_v5, 4  ;;  %9100 = vmatmul.mubr.bf16.gmra.mrb[16].mxu1 %v7892_v12  ;;  %v5370_v18 = vsel %vm11253_vm8, %v5366_v42, %v5369_v5  ;;  %v1674_v19 = vor.u32 %v1673_v10, %v1670_v3  ;;  %v1685_v63 = vshll.u32 %v1432_v50, 16  ;;  %v10166_v12 = vld [vmem:[%s10266_s14 + $0x9c] sm:$0xe] }
 0x11d   : > { %v1677_v48 = vrot.slane %v12989_v45, 6  ;;  %v5382_v56 = vshrl.u32 %v10164_v23, 16  ;;  %v5385_v2 = vshll.u32 %v10164_v23, 16  ;;  %v1684_v24 = vrot.slane %v1682_v25, 5 }
 0x11e   : > { %v5380_v62 = vsel %vm11253_vm8, %v5371_v15, %v5379_v1  ;;  %v1675_v46 = vrot.slane %v1674_v19, 4  ;;  %v1687_v27 = vrot.slane %v1685_v63, 6  ;;  %v12990_v26 = vshrl.u32 %v10859_v57, 16  ;;  %v8346_v1 = vld [vmem:[%s10266_s14 + $0xa4] sm:$0x3] }
 0x11f   : > { %v1678_v22 = vor.u32 %v1677_v48, %v1676_v61  ;;  %v8372_v30 = vcombine.low %v5370_v18, %v5380_v62  ;;  %v5384_v4 = vrot.slane %v5382_v56, 5  ;;  %v5387_v29 = vrot.slane %v5385_v2, 6  ;;  %v7963_v19 = vld [vmem:[%s10266_s14 + $0xc] sm:$0xf] }
 0x120   : > { %v5390_v13 = vrot.slane %v12990_v26, 5  ;;  %v1688_v39 = vor.u32 %v1687_v27, %v1684_v24  ;;  %v12991_v38 = vshll.u32 %v10859_v57, 16  ;;  %v5396_v11 = vshrl.u32 %v8345_v58, 16 }
 0x121   : > { %v1680_v51 = vrot.slane %v1678_v22, 4  ;;  %9420 = vmatmul.mubr.bf16.gmra.mrb[16].mxu0 %v8372_v30  ;;  %v1679_v14 = vsel %vm11253_vm8, %v1675_v46, %v1678_v22  ;;  %v5388_v47 = vor.u32 %v5387_v29, %v5384_v4  ;;  %v5399_v0 = vshll.u32 %v8345_v58, 16  ;;  %v10061_v46 = vld [vmem:[%s10266_s14 + $0xc] sm:$0xff]   ;;  %v7965_v4 = vld [vmem:[%s10266_s14 + $0x14] sm:$0x1] }
 0x122   : > { %v5391_v9 = vrot.slane %v12991_v38, 6  ;;  %v1691_v7 = vshrl.u32 %v10165_v60, 16  ;;  %v1694_v43 = vshll.u32 %v10165_v60, 16  ;;  %v5398_v8 = vrot.slane %v5396_v11, 5 }
 0x123   : > { %v1689_v55 = vsel %vm11253_vm8, %v1680_v51, %v1688_v39  ;;  %v12993_v6 = vshrl.u32 %v12992_v21, 16  ;;  %v5389_v40 = vrot.slane %v5388_v47, 4  ;;  %v5401_v57 = vrot.slane %v5399_v0, 6  ;;  %v11548_v51 = vld [vmem:[%s10266_s14 + $0x10] sm:$0xf] }
 0x124   : > { %v5392_v31 = vor.u32 %v5391_v9, %v5390_v13  ;;  %v7893_v33 = vcombine.low %v1679_v14, %v1689_v55  ;;  %v1693_v44 = vrot.slane %v1691_v7, 5  ;;  %v1696_v20 = vrot.slane %v1694_v43, 6  ;;  %v8443_v39 = vld [vmem:[%s10266_s14 + $0x24] sm:$0xf]  ;;  %v11555_v0 = vld [vmem:[%s10266_s14 + $0x28] sm:$0xf] }
 0x125   : > { %v1699_v28 = vrot.slane %v12993_v6, 5  ;;  %v12994_v16 = vshll.u32 %v12992_v21, 16  ;;  %v1705_v5 = vshrl.u32 %v1433_v41, 16  ;;  %v5402_v17 = vor.u32 %v5401_v57, %v5398_v8  ;;  %v8445_v6 = vld [vmem:[%s10266_s14 + $0x2c] sm:$0x1] }
 0x126   : > { %v5394_v37 = vrot.slane %v5392_v31, 4  ;;  %9103 = vmatprep.mubr.bf16.mxu1 %v7893_v33  ;;  %v5393_v34 = vsel %vm11253_vm8, %v5389_v40, %v5392_v31  ;;  %v1708_v50 = vshll.u32 %v1433_v41, 16  ;;  %v5405_v42 = vshrl.u32 %v10166_v12, 16  ;;  %v10062_v40 = vld [vmem:[%s10266_s14 + $0x24] sm:$0xff]  }
 0x127   : > { %v1700_v35 = vrot.slane %v12994_v16, 6  ;;  %v1697_v3 = vor.u32 %v1696_v20, %v1693_v44  ;;  %v1707_v15 = vrot.slane %v1705_v5, 5  ;;  %v5408_v32 = vshll.u32 %v10166_v12, 16  ;;  %v7966_v20 = vld [vmem:[%s10266_s14 + $0x18] sm:$0xf] }
 0x128   : > { %v5403_v52 = vsel %vm11253_vm8, %v5394_v37, %v5402_v17  ;;  %v1710_v61 = vrot.slane %v1708_v50, 6  ;;  %v5407_v45 = vrot.slane %v5405_v42, 5  ;;  %v12995_v48 = vshrl.u32 %v10880_v54, 16 }
 0x129   : > { %v1701_v10 = vor.u32 %v1700_v35, %v1699_v28  ;;  %v8373_v25 = vcombine.low %v5393_v34, %v5403_v52  ;;  %v1698_v63 = vrot.slane %v1697_v3, 4  ;;  %v5410_v22 = vrot.slane %v5408_v32, 6  ;;  %v11573_v3 = vld [vmem:[%s10266_s14 + $0x1c] sm:$0xf] }
 0x12a   : > { %v5413_v18 = vrot.slane %v12995_v48, 5  ;;  %v1711_v58 = vor.u32 %v1710_v61, %v1707_v15  ;;  %v12996_v23 = vshll.u32 %v10880_v54, 16  ;;  %v5419_v2 = vshrl.u32 %v8346_v1, 16  ;;  %v10067_v15 = vld [vmem:[%s12783_s1 + $0x148] sm:$0xff]  }
 0x12b   : > { %v1703_v62 = vrot.slane %v1701_v10, 4  ;;  %v5422_v30 = vshll.u32 %v8346_v1, 16  ;;  %9423 = vmatprep.mubr.bf16.mxu0 %v8373_v25  ;;  %v1702_v24 = vsel %vm11253_vm8, %v1698_v63, %v1701_v10  ;;  %v5411_v27 = vor.u32 %v5410_v22, %v5407_v45  ;;  %v10063_v10 = vld [vmem:[%s10266_s14 + $0x18] sm:$0xff]   ;;  %v10069_v48 = vld [vmem:[%s10266_s14 + $0x24] sm:$0xff]  }
 0x12c   : > { %v5414_v56 = vrot.slane %v12996_v23, 6  ;;  %v2331_v29 = vshrl.u32 %v7963_v19, 16  ;;  %v2334_v26 = vshll.u32 %v7963_v19, 16  ;;  %v5421_v41 = vrot.slane %v5419_v2, 5  ;;  %v8446_v2 = vld [vmem:[%s10266_s14 + $0x30] sm:$0xf] }
 0x12d   : > { %v1712_v13 = vsel %vm11253_vm8, %v1703_v62, %v1711_v58  ;;  %v5424_v14 = vrot.slane %v5422_v30, 6  ;;  %v5412_v9 = vrot.slane %v5411_v27, 4  ;;  %v12888_v43 = vshll.u32 %v11548_v51, 16  ;;  %v7968_v62 = vld [vmem:[%s10266_s14 + $0x20] sm:$0x1]  ;;  %v10065_v30 = vld [vmem:[%s10266_s14 + $0x30] sm:$0xff]  }
 0x12e   : > { %v5415_v54 = vor.u32 %v5414_v56, %v5413_v18  ;;  %v7894_v38 = vcombine.low %v1702_v24, %v1712_v13  ;;  %v2333_v11 = vrot.slane %v2331_v29, 4  ;;  %v2336_v47 = vrot.slane %v2334_v26, 5  ;;  %v11594_v29 = vld [vmem:[%s10266_s14 + $0x34] sm:$0xf]  ;;  %v10068_v26 = vld [vmem:[%s12783_s1 + $0x348] sm:$0xff]   ;;  %v10070_v13 = vld [vmem:[%s10266_s14 + $0x3c] sm:$0xff]  }
 0x12f   : > { %v5425_v7 = vor.u32 %v5424_v14, %v5421_v41  ;;  %v12891_v55 = vshrl.u32 %v11548_v51, 16  ;;  %v2350_v21 = vshll.u32 %v7965_v4, 16  ;;  %v6045_v28 = vshrl.u32 %v8443_v39, 16 }
 0x130   : > { %v5417_v60 = vrot.slane %v5415_v54, 4  ;;  %9104 = vmatmul.mubr.bf16.gmra.mrb[20].mxu1 %v7894_v38  ;;  %v5416_v31 = vsel %vm11253_vm8, %v5412_v9, %v5415_v54  ;;  %v2337_v8 = vor.u32 %v2336_v47, %v2333_v11  ;;  %v2342_v57 = vrot.slane %v12888_v43, 5  ;;  %v8448_v38 = vld [vmem:[%s10266_s14 + $0x38] sm:$0x1]  ;;  %v7969_v9 = vld [vmem:[%s10266_s14 + $0x24] sm:$0xf] }
 0x131   : > { %9123 = vmatprep.mubr.bf16.mxu1 %v10061_v46  ;;  %v2346_v44 = vrot.slane %v12891_v55, 4  ;;  %v6048_v37 = vshll.u32 %v8443_v39, 16  ;;  %v2352_v5 = vrot.slane %v2350_v21, 5  ;;  %v6047_v34 = vrot.slane %v6045_v28, 4  ;;  %v10073_v11 = vld [vmem:[%s12783_s1 + $0x150] sm:$0xff]  }
 0x132   : > { %v5426_v33 = vsel %vm11253_vm8, %v5417_v60, %v5425_v7  ;;  %v2338_v35 = vrot.slane %v2337_v8, 4  ;;  %v12882_v12 = vshll.u32 %v11555_v0, 16  ;;  %v12883_v42 = vshrl.u32 %v11555_v0, 16  ;;  %v11615_v8 = vld [vmem:[%s10266_s14 + $0x28] sm:$0xf] }
 0x133   : > { %v8374_v16 = vcombine.low %v5416_v31, %v5426_v33  ;;  %v2347_v17 = vor.u32 %v2346_v44, %v2342_v57  ;;  %v6050_v50 = vrot.slane %v6048_v37, 5  ;;  %v6064_v52 = vshll.u32 %v8445_v6, 16  ;;  %12998 = vst [vmem:[#allocation4_spill] sm:$0xff] %v11615_v8  ;;  %v10071_v37 = vld [vmem:[%s10266_s14 + $0x30] sm:$0xff]  }
 0x134   : > { %v2343_v32 = vsel %vm10315_vm2, %v2338_v35, %v2342_v57  ;;  %v2355_v61 = vshrl.u32 %v7966_v20, 16  ;;  %v2358_v45 = vshll.u32 %v7966_v20, 16  ;;  %v6056_v25 = vrot.slane %v12882_v12, 5  ;;  %v11625_v20 = vld [vmem:[%s12783_s1 + $0x350] sm:$0xff]  }
 0x135   : > { %9424 = vmatmul.mubr.bf16.gmra.mrb[20].mxu0 %v8374_v16  ;;  %v2348_v18 = vrot.slane %v2347_v17, 4  ;;  %v6051_v19 = vor.u32 %v6050_v50, %v6047_v34  ;;  %v6060_v63 = vrot.slane %v12883_v42, 4  ;;  %v6066_v22 = vrot.slane %v6064_v52, 5  ;;  %v7996_v42 = vld [vmem:[%s10266_s14 + $0x90] sm:$0xf] }
 0x136   : > { %9443 = vmatprep.mubr.bf16.mxu0 %v10062_v40  ;;  %v2357_v58 = vrot.slane %v2355_v61, 4  ;;  %v2360_v23 = vrot.slane %v2358_v45, 5  ;;  %v12876_v56 = vshll.u32 %v11573_v3, 16  ;;  %v12878_v4 = vshrl.u32 %v11573_v3, 16  ;;  %v10075_v61 = vld [vmem:[%s10266_s14 + $0x3c] sm:$0xff]  }
 0x137   : > { %v2353_v46 = vsel %vm10315_vm2, %v2348_v18, %v2352_v5  ;;  %v6052_v24 = vrot.slane %v6051_v19, 4  ;;  %v6061_v27 = vor.u32 %v6060_v63, %v6056_v25  ;;  %v2374_v39 = vshll.u32 %v7968_v62, 16  ;;  %v10079_v19 = vld [vmem:[%s12783_s1 + $0x158] sm:$0xff]  }
 0x138   : > { %9124 = vmatmul.mubr.bf16.vlgmr.msra.gmra.mrb[0].mxu1 %v10063_v10  ;;  %v11600_v54 = vcombine.low %v2343_v32, %v2353_v46  ;;  %v2361_v41 = vor.u32 %v2360_v23, %v2357_v58  ;;  %v2366_v14 = vrot.slane %v12876_v56, 5  ;;  %v2370_v7 = vrot.slane %v12878_v4, 4  ;;  %v7971_v32 = vld [vmem:[%s10266_s14 + $0x2c] sm:$0x1]  ;;  %v11647_v58 = vld [vmem:[%s10266_s14 + $0x40] sm:$0xf] }
 0x139   : > { %9148 = vmatpush3.bf16.msra.mxu1 %v11405_v36  ;;  %9127 = vmatprep.mubr.bf16.mxu1 %v10069_v48  ;;  %v6057_v47 = vsel %vm10315_vm2, %v6052_v24, %v6056_v25  ;;  %v6062_v60 = vrot.slane %v6061_v27, 4  ;;  %v6069_v31 = vshrl.u32 %v8446_v2, 16  ;;  %v2376_v6 = vrot.slane %v2374_v39, 5  ;;  %12999 = vst [vmem:[#allocation5_spill] sm:$0xff] %v11647_v58  ;;  %v10072_v23 = vld [vmem:[%s10266_s14 + $0x48] sm:$0xff]  }
 0x13a   : > { %9149 = vmatprep.subr.bf16.mxu1 %v10067_v15  ;;  %v2362_v21 = vrot.slane %v2361_v41, 4  ;;  %v6072_v36 = vshll.u32 %v8446_v2, 16  ;;  %v12870_v28 = vshll.u32 %v11594_v29, 16  ;;  %v2371_v40 = vor.u32 %v2370_v7, %v2366_v14  ;;  %v10076_v2 = vld [vmem:[%s10266_s14 + $0x54] sm:$0xff]   ;;  %v11663_v41 = vld [vmem:[%s12783_s1 + $0x160] sm:$0xff]  }
 0x13b   : > { %v6067_v33 = vsel %vm10315_vm2, %v6062_v60, %v6066_v22  ;;  %v6071_v57 = vrot.slane %v6069_v31, 4  ;;  %v12873_v44 = vshrl.u32 %v11594_v29, 16  ;;  %v6088_v10 = vshll.u32 %v8448_v38, 16  ;;  %v10077_v60 = vld [vmem:[%s10266_s14 + $0x48] sm:$0xff]  }
 0x13c   : > { %v11627_v16 = vcombine.low %v6057_v47, %v6067_v33  ;;  %v2367_v35 = vsel %vm10315_vm2, %v2362_v21, %v2366_v14  ;;  %v6074_v5 = vrot.slane %v6072_v36, 5  ;;  %v6080_v34 = vrot.slane %v12870_v28, 5  ;;  %v7972_v21 = vld [vmem:[%s10266_s14 + $0x30] sm:$0xf]  ;;  %v10081_v36 = vld [vmem:[%s10266_s14 + $0x54] sm:$0xff]  }
 0x13d   : > { %9444 = vmatmul.mubr.bf16.vlgmr.msra.gmra.mrb[0].mxu0 %v10065_v30  ;;  %9150 = vmatpush3.bf16.msra.mxu1 %v10067_v15  ;;  %v2372_v17 = vrot.slane %v2371_v40, 4  ;;  %v6084_v50 = vrot.slane %v12873_v44, 4  ;;  %v2379_v52 = vshrl.u32 %v7969_v9, 16  ;;  %v2382_v48 = vshll.u32 %v7969_v9, 16  ;;  %v8449_v15 = vld [vmem:[%s10266_s14 + $0x3c] sm:$0xf] }
 0x13e   : > { %9468 = vmatpush3.bf16.msra.mxu0 %v11417_v49  ;;  %9447 = vmatprep.mubr.bf16.mxu0 %v10070_v13  ;;  %v6075_v45 = vor.u32 %v6074_v5, %v6071_v57  ;;  %v12864_v18 = vshll.u32 %v11615_v8, 16  ;;  %v12867_v49 = vshrl.u32 %v11615_v8, 16  ;;  %v6090_v62 = vrot.slane %v6088_v10, 5  ;;  %v11654_v30 = vld [vmem:[%s12783_s1 + $0x358] sm:$0xff]   ;;  %v8451_v9 = vld [vmem:[%s10266_s14 + $0x44] sm:$0x1] }
 0x13f   : > { %9469 = vmatprep.subr.bf16.mxu0 %v10068_v26  ;;  %9151 = vmatprep.subr.bf16.mxu1 %v10073_v11  ;;  %v2377_v25 = vsel %vm10315_vm2, %v2372_v17, %v2376_v6  ;;  %v6085_v63 = vor.u32 %v6084_v50, %v6080_v34  ;;  %v2381_v22 = vrot.slane %v2379_v52, 4  ;;  %v2384_v27 = vrot.slane %v2382_v48, 5  ;;  %v11675_v6 = vld [vmem:[%s10266_s14 + $0x34] sm:$0xf]  ;;  %v7974_v10 = vld [vmem:[%s10266_s14 + $0x38] sm:$0x1] }
 0x140   : > { %9128 = vmatmul.mubr.bf16.gmra.mrb[4].mxu1 %v10071_v37  ;;  %v11656_v46 = vcombine.low %v2367_v35, %v2377_v25  ;;  %v6076_v24 = vrot.slane %v6075_v45, 4  ;;  %v2390_v13 = vrot.slane %v12864_v18, 5  ;;  %v2394_v39 = vrot.slane %v12867_v49, 4  ;;  %13000 = vst [vmem:[#allocation6_spill] sm:$0xff] %v11675_v6  ;;  %v10086_v35 = vld [vmem:[%s12783_s1 + $0x360] sm:$0xff]  }
 0x141   : > { %9152 = vmatpush3.bf16.msra.mxu1 %v10073_v11  ;;  %v6086_v14 = vrot.slane %v6085_v63, 4  ;;  %v2398_v38 = vshll.u32 %v7971_v32, 16  ;;  %v6093_v47 = vshrl.u32 %v8449_v15, 16  ;;  %9131 = vmatprep.mubr.bf16.mxu1 %v10075_v61  ;;  %v2385_v11 = vor.u32 %v2384_v27, %v2381_v22  ;;  %v8452_v48 = vld [vmem:[%s10266_s14 + $0x48] sm:$0xf] }
 0x142   : > { %9470 = vmatpush3.bf16.msra.mxu0 %v10068_v26  ;;  %v6081_v26 = vsel %vm10315_vm2, %v6076_v24, %v6080_v34  ;;  %v6096_v7 = vshll.u32 %v8449_v15, 16  ;;  %v12858_v31 = vshll.u32 %v11647_v58, 16  ;;  %9153 = vmatprep.subr.bf16.mxu1 %v10079_v19  ;;  %v2395_v40 = vor.u32 %v2394_v39, %v2390_v13  ;;  %v10078_v15 = vld [vmem:[%s10266_s14 + $0x60] sm:$0xff]   ;;  %v11699_v22 = vld [vmem:[%s10266_s14 + $0x4c] sm:$0xf] }
 0x143   : > { %9471 = vmatprep.subr.bf16.mxu0 %v11625_v20  ;;  %v6091_v33 = vsel %vm10315_vm2, %v6086_v14, %v6090_v62  ;;  %v2400_v57 = vrot.slane %v2398_v38, 5  ;;  %v6095_v37 = vrot.slane %v6093_v47, 4  ;;  %v2386_v34 = vrot.slane %v2385_v11, 4  ;;  %13001 = vst [vmem:[#allocation7_spill] sm:$0xff] %v11699_v22  ;;  %v8454_v47 = vld [vmem:[%s10266_s14 + $0x50] sm:$0x1] }
 0x144   : > { %v11683_v5 = vcombine.low %v6081_v26, %v6091_v33  ;;  %v6098_v17 = vrot.slane %v6096_v7, 5  ;;  %v11687_v50 = vrot.slane %v12858_v31, 5  ;;  %v2396_v32 = vrot.slane %v2395_v40, 4  ;;  %v7975_v26 = vld [vmem:[%s10266_s14 + $0x3c] sm:$0xf]  ;;  %v10088_v11 = vld [vmem:[%s12783_s1 + $0x368] sm:$0xff]  }
 0x145   : > { %9448 = vmatmul.mubr.bf16.gmra.mrb[4].mxu0 %v10072_v23  ;;  %v12861_v52 = vshrl.u32 %v11647_v58, 16  ;;  %v6112_v61 = vshll.u32 %v8451_v9, 16  ;;  %v2403_v45 = vshrl.u32 %v7972_v21, 16  ;;  %9154 = vmatpush3.bf16.msra.mxu1 %v10079_v19  ;;  %v2391_v25 = vsel %vm10315_vm2, %v2386_v34, %v2390_v13  ;;  %v10087_v23 = vld [vmem:[%s12783_s1 + $0x168] sm:$0xff]   ;;  %v12226_v58 = vld [vmem:[%s10266_s14 + $0x3c] sm:$0xe] }
 0x146   : > { %9472 = vmatpush3.bf16.msra.mxu0 %v11625_v20  ;;  %9451 = vmatprep.mubr.bf16.mxu0 %v10076_v2  ;;  %v6099_v63 = vor.u32 %v6098_v17, %v6095_v37  ;;  %v2406_v62 = vshll.u32 %v7972_v21, 16  ;;  %v12852_v20 = vshll.u32 %v11675_v6, 16  ;;  %v2401_v19 = vsel %vm10315_vm2, %v2396_v32, %v2400_v57  ;;  %v10082_v13 = vld [vmem:[%s10266_s14 + $0x6c] sm:$0xff]   ;;  %v10083_v32 = vld [vmem:[%s10266_s14 + $0x60] sm:$0xff]   ;;  %13008 = vst [vmem:[#allocation13_spill] sm:$0xff] %v12226_v58 }
 0x147   : > { %9473 = vmatprep.subr.bf16.mxu0 %v11654_v30  ;;  %9155 = vmatprep.subr.bf16.mxu1 %v11663_v41  ;;  %v6108_v2 = vrot.slane %v12861_v52, 4  ;;  %v6114_v24 = vrot.slane %v6112_v61, 5  ;;  %v2405_v27 = vrot.slane %v2403_v45, 4  ;;  %v11710_v14 = vcombine.low %v2391_v25, %v2401_v19  ;;  %v10093_v37 = vld [vmem:[%s12783_s1 + $0x170] sm:$0xff]   ;;  %v11745_v19 = vld [vmem:[%s10266_s14 + $0x40] sm:$0xf] }
 0x148   : > { %9132 = vmatmul.mubr.bf16.gmra.mrb[8].mxu1 %v10077_v60  ;;  %v6100_v39 = vrot.slane %v6099_v63, 4  ;;  %v2408_v38 = vrot.slane %v2406_v62, 5  ;;  %v11714_v9 = vrot.slane %v12852_v20, 5  ;;  %v12856_v7 = vshrl.u32 %v11675_v6, 16  ;;  %v10089_v25 = vld [vmem:[%s10266_s14 + $0x6c] sm:$0xff]   ;;  %13002 = vst [vmem:[#allocation8_spill] sm:$0xff] %v11745_v19 }
 0x149   : > { %9135 = vmatprep.mubr.bf16.mxu1 %v10081_v36  ;;  %v6109_v60 = vor.u32 %v6108_v2, %v11687_v50  ;;  %v2422_v21 = vshll.u32 %v7974_v10, 16  ;;  %v6117_v33 = vshrl.u32 %v8452_v48, 16  ;;  %9156 = vmatpush3.bf16.msra.mxu1 %v11663_v41  ;;  %v6120_v36 = vshll.u32 %v8452_v48, 16  ;;  %v8464_v52 = vld [vmem:[%s10266_s14 + $0x78] sm:$0xf] }
 0x14a   : > { %9474 = vmatpush3.bf16.msra.mxu0 %v11654_v30  ;;  %v6105_v40 = vsel %vm10315_vm2, %v6100_v39, %v11687_v50  ;;  %v2409_v30 = vor.u32 %v2408_v38, %v2405_v27  ;;  %v12847_v57 = vshll.u32 %v11699_v22, 16  ;;  %9157 = vmatprep.subr.bf16.mxu1 %v10087_v23  ;;  %v2418_v17 = vrot.slane %v12856_v7, 4  ;;  %v10094_v27 = vld [vmem:[%s12783_s1 + $0x370] sm:$0xff]   ;;  %v7977_v38 = vld [vmem:[%s10266_s14 + $0x44] sm:$0x1] }
 0x14b   : > { %9475 = vmatprep.subr.bf16.mxu0 %v10086_v35  ;;  %v6110_v34 = vrot.slane %v6109_v60, 4  ;;  %v2424_v41 = vrot.slane %v2422_v21, 5  ;;  %v6119_v10 = vrot.slane %v6117_v33, 4  ;;  %v6122_v61 = vrot.slane %v6120_v36, 5  ;;  %v7987_v49 = vld [vmem:[%s10266_s14 + $0x6c] sm:$0xf] }
 0x14c   : > { %v2410_v50 = vrot.slane %v2409_v30, 4  ;;  %v11737_v45 = vrot.slane %v12847_v57, 5  ;;  %v12849_v48 = vshrl.u32 %v11699_v22, 16  ;;  %v2419_v62 = vor.u32 %v2418_v17, %v11714_v9  ;;  %v10085_v30 = vld [vmem:[%s10266_s14 + $0x78] sm:$0xff]   ;;  %v11983_v28 = vld [vmem:[%s10266_s14 + $0x8c] sm:$0x1] }
 0x14d   : > { %9452 = vmatmul.mubr.bf16.gmra.mrb[8].mxu0 %v10078_v15  ;;  %v6115_v63 = vsel %vm10315_vm2, %v6110_v34, %v6114_v24  ;;  %v6136_v15 = vshll.u32 %v8454_v47, 16  ;;  %v2427_v2 = vshrl.u32 %v7975_v26, 16  ;;  %9158 = vmatpush3.bf16.msra.mxu1 %v10087_v23  ;;  %v6123_v24 = vor.u32 %v6122_v61, %v6119_v10  ;;  %v8455_v47 = vld [vmem:[%s10266_s14 + $0x54] sm:$0xf]  ;;  %v10099_v23 = vld [vmem:[%s12783_s1 + $0x178] sm:$0xff]  }
 0x14e   : > { %9455 = vmatprep.mubr.bf16.mxu0 %v10082_v13  ;;  %9476 = vmatpush3.bf16.msra.mxu0 %v10086_v35  ;;  %v11750_v13 = vcombine.low %v6105_v40, %v6115_v63  ;;  %v2415_v35 = vsel %vm10315_vm2, %v2410_v50, %v11714_v9  ;;  %v6132_v39 = vrot.slane %v12849_v48, 4  ;;  %v2420_v60 = vrot.slane %v2419_v62, 4  ;;  %v10090_v9 = vld [vmem:[%s10266_s14 + $0x84] sm:$0xff]   ;;  %v11773_v63 = vld [vmem:[%s10266_s14 + $0x58] sm:$0xf] }
 0x14f   : > { %9477 = vmatprep.subr.bf16.mxu0 %v10088_v11  ;;  %9159 = vmatprep.subr.bf16.mxu1 %v10093_v37  ;;  %v6138_v21 = vrot.slane %v6136_v15, 5  ;;  %v2429_v33 = vrot.slane %v2427_v2, 4  ;;  %v2430_v40 = vshll.u32 %v7975_v26, 16  ;;  %v6124_v36 = vrot.slane %v6123_v24, 4  ;;  %v10100_v26 = vld [vmem:[%s12783_s1 + $0x378] sm:$0xff]   ;;  %13003 = vst [vmem:[#allocation9_spill] sm:$0xff] %v11773_v63 }
 0x150   : > { %9136 = vmatmul.mubr.bf16.gmra.mrb[12].mxu1 %v10083_v32  ;;  %v6133_v34 = vor.u32 %v6132_v39, %v11737_v45  ;;  %v12846_v17 = vshll.u32 %v11745_v19, 16  ;;  %v12848_v10 = vshrl.u32 %v11745_v19, 16  ;;  %v2425_v32 = vsel %vm10315_vm2, %v2420_v60, %v2424_v41  ;;  %v10091_v15 = vld [vmem:[%s10266_s14 + $0x78] sm:$0xff]   ;;  %v7978_v39 = vld [vmem:[%s10266_s14 + $0x48] sm:$0xf]  ;;  %v11789_v60 = vld [vmem:[%s12783_s1 + $0x180] sm:$0xff]  }
 0x151   : > { %9139 = vmatprep.mubr.bf16.mxu1 %v10089_v25  ;;  %v2432_v50 = vrot.slane %v2430_v40, 5  ;;  %v2446_v61 = vshll.u32 %v7977_v38, 16  ;;  %v6141_v62 = vshrl.u32 %v8455_v47, 16  ;;  %9160 = vmatpush3.bf16.msra.mxu1 %v10093_v37  ;;  %v11776_v25 = vcombine.low %v2415_v35, %v2425_v32  ;;  %v8457_v41 = vld [vmem:[%s10266_s14 + $0x5c] sm:$0x1]  ;;  %v10095_v38 = vld [vmem:[%s10266_s14 + $0x84] sm:$0xff]  }
 0x152   : > { %9478 = vmatpush3.bf16.msra.mxu0 %v10088_v11  ;;  %v6129_v11 = vsel %vm10315_vm2, %v6124_v36, %v11737_v45  ;;  %v6134_v2 = vrot.slane %v6133_v34, 4  ;;  %v2438_v24 = vrot.slane %v12846_v17, 5  ;;  %9161 = vmatprep.subr.bf16.mxu1 %v10099_v23  ;;  %v2442_v35 = vrot.slane %v12848_v10, 4  ;;  %v11794_v36 = vld [vmem:[%s10266_s14 + $0x4c] sm:$0xf]  ;;  %v11799_v34 = vld [vmem:[%s12783_s1 + $0x380] sm:$0xff]  }
 0x153   : > { %9479 = vmatprep.subr.bf16.mxu0 %v10094_v27  ;;  %v2433_v37 = vor.u32 %v2432_v50, %v2429_v33  ;;  %v2448_v40 = vrot.slane %v2446_v61, 5  ;;  %v6143_v45 = vrot.slane %v6141_v62, 4  ;;  %13004 = vst [vmem:[#allocation3_spill] sm:$0xff] %v11794_v36  ;;  %v6144_v17 = vshll.u32 %v8455_v47, 16  ;;  %v7980_v50 = vld [vmem:[%s10266_s14 + $0x50] sm:$0x1] }
 0x154   : > { %v6139_v32 = vsel %vm10315_vm2, %v6134_v2, %v6138_v21  ;;  %v12850_v57 = vshll.u32 %v11773_v63, 16  ;;  %v12851_v33 = vshrl.u32 %v11773_v63, 16  ;;  %v2443_v62 = vor.u32 %v2442_v35, %v2438_v24  ;;  %v12200_v22 = vld [vmem:[%s10266_s14 + $0x30] sm:$0xe] }
 0x155   : > { %9456 = vmatmul.mubr.bf16.gmra.mrb[12].mxu0 %v10085_v30  ;;  %v11806_v61 = vcombine.low %v6129_v11, %v6139_v32  ;;  %v2434_v30 = vrot.slane %v2433_v37, 4  ;;  %v6160_v10 = vshll.u32 %v8457_v41, 16  ;;  %9162 = vmatpush3.bf16.msra.mxu1 %v10099_v23  ;;  %v6146_v48 = vrot.slane %v6144_v17, 5  ;;  %v10092_v23 = vld [vmem:[%s10266_s14 + $0x90] sm:$0xff]   ;;  %13006 = vst [vmem:[#allocation11_spill] sm:$0xff] %v12200_v22 }
 0x156   : > { %9459 = vmatprep.mubr.bf16.mxu0 %v10090_v9  ;;  %9480 = vmatpush3.bf16.msra.mxu0 %v10094_v27  ;;  %v6152_v47 = vrot.slane %v12850_v57, 5  ;;  %v6156_v21 = vrot.slane %v12851_v33, 4  ;;  %v2451_v2 = vshrl.u32 %v7978_v39, 16  ;;  %v2444_v9 = vrot.slane %v2443_v62, 4  ;;  %v8458_v57 = vld [vmem:[%s10266_s14 + $0x60] sm:$0xf] }
 0x157   : > { %9481 = vmatprep.subr.bf16.mxu0 %v10100_v26  ;;  %9187 = vmatprep.subr.bf16.mxu1 %v11789_v60  ;;  %v2439_v27 = vsel %vm10315_vm2, %v2434_v30, %v2438_v24  ;;  %v6162_v11 = vrot.slane %v6160_v10, 5  ;;  %v2454_v41 = vshll.u32 %v7978_v39, 16  ;;  %v6147_v17 = vor.u32 %v6146_v48, %v6143_v45  ;;  %v10096_v33 = vld [vmem:[%s10266_s14 + $0x9c] sm:$0xff]  }
 0x158   : > { %9140 = vmatmul.mubr.bf16.gmra.mrb[16].mxu1 %v10091_v15  ;;  %v6157_v37 = vor.u32 %v6156_v21, %v6152_v47  ;;  %v2453_v35 = vrot.slane %v2451_v2, 4  ;;  %v12853_v32 = vshll.u32 %v11794_v36, 16  ;;  %v2449_v20 = vsel %vm10315_vm2, %v2444_v9, %v2448_v40  ;;  %v11823_v15 = vld [vmem:[%s10266_s14 + $0x64] sm:$0xf]  ;;  %v11833_v21 = vld [vmem:[%s10266_s14 + $0x68] sm:$0x1] }
 0x159   : > { %9143 = vmatprep.mubr.bf16.mxu1 %v10095_v38  ;;  %v2456_v24 = vrot.slane %v2454_v41, 5  ;;  %v12855_v10 = vshrl.u32 %v11794_v36, 16  ;;  %v2470_v39 = vshll.u32 %v7980_v50, 16  ;;  %v11826_v48 = vcombine.low %v2439_v27, %v2449_v20  ;;  %v10097_v2 = vld [vmem:[%s10266_s14 + $0x90] sm:$0xff]  }
 0x15a   : > { %9482 = vmatpush3.bf16.msra.mxu0 %v10100_v26  ;;  %v6148_v45 = vrot.slane %v6147_v17, 4  ;;  %v6158_v38 = vrot.slane %v6157_v37, 4  ;;  %v2462_v26 = vrot.slane %v12853_v32, 5  ;;  %v6165_v50 = vshrl.u32 %v8458_v57, 16  ;;  %v7981_v17 = vld [vmem:[%s10266_s14 + $0x54] sm:$0xf] }
 0x15b   : > { %9507 = vmatprep.subr.bf16.mxu0 %v11799_v34  ;;  %v2457_v30 = vor.u32 %v2456_v24, %v2453_v35  ;;  %v2466_v40 = vrot.slane %v12855_v10, 4  ;;  %v2472_v62 = vrot.slane %v2470_v39, 5  ;;  %v6168_v9 = vshll.u32 %v8458_v57, 16  ;;  %v11845_v39 = vld [vmem:[%s10266_s14 + $0x58] sm:$0xf] }
 0x15c   : > { %v6153_v20 = vsel %vm10315_vm2, %v6148_v45, %v6152_v47  ;;  %v6163_v27 = vsel %vm10315_vm2, %v6158_v38, %v6162_v11  ;;  %v12854_v41 = vshll.u32 %v11823_v15, 16  ;;  %v6167_v24 = vrot.slane %v6165_v50, 4  ;;  %v11852_v45 = vld [vmem:[%s10266_s14 + $0x5c] sm:$0x1]  ;;  %v11858_v50 = vld [vmem:[%s10266_s14 + $0x70] sm:$0xf] }
 0x15d   : > { %9460 = vmatmul.mubr.bf16.gmra.mrb[16].mxu0 %v10092_v23  ;;  %v11842_v37 = vcombine.low %v6153_v20, %v6163_v27  ;;  %v2458_v35 = vrot.slane %v2457_v30, 4  ;;  %v2467_v23 = vor.u32 %v2466_v40, %v2462_v26  ;;  %v6170_v32 = vrot.slane %v6168_v9, 5  ;;  %v10098_v27 = vld [vmem:[%s10266_s14 + $0xa8] sm:$0xff]  }
 0x15e   : > { %9463 = vmatprep.mubr.bf16.mxu0 %v10096_v33  ;;  %v6176_v47 = vrot.slane %v12854_v41, 5  ;;  %v12857_v11 = vshrl.u32 %v11823_v15, 16  ;;  %v6184_v57 = vshll.u32 %v11833_v21, 16  ;;  %v8461_v33 = vld [vmem:[%s10266_s14 + $0x6c] sm:$0xf]  ;;  %v2475_v20 = vshrl.u32 %v7981_v17, 16 }
 0x15f   : > { %v2463_v38 = vsel %vm10315_vm2, %v2458_v35, %v2462_v26  ;;  %v2468_v30 = vrot.slane %v2467_v23, 4  ;;  %v2478_v40 = vshll.u32 %v7981_v17, 16  ;;  %v6171_v9 = vor.u32 %v6170_v32, %v6167_v24 }
 0x160   : > { %9144 = vmatmul.mubr.bf16.gmra.mrb[20].mxu1 %v10097_v2  ;;  %v6180_v41 = vrot.slane %v12857_v11, 4  ;;  %v6186_v10 = vrot.slane %v6184_v57, 5  ;;  %v12859_v7 = vshll.u32 %v11845_v39, 16  ;;  %v2477_v35 = vrot.slane %v2475_v20, 4 }
 0x161   : > { %9163 = vmatprep.mubr.bf16.mxu1 %v11600_v54  ;;  %v2473_v26 = vsel %vm10315_vm2, %v2468_v30, %v2472_v62  ;;  %v2480_v23 = vrot.slane %v2478_v40, 5  ;;  %v12860_v17 = vshrl.u32 %v11845_v39, 16  ;;  %v6172_v32 = vrot.slane %v6171_v9, 4  ;;  %v11876_v62 = vld [vmem:[%s10266_s14 + $0x74] sm:$0x1] }
 0x162   : > { %v11868_v2 = vcombine.low %v2463_v38, %v2473_v26  ;;  %v6181_v24 = vor.u32 %v6180_v41, %v6176_v47  ;;  %v2486_v11 = vrot.slane %v12859_v7, 5  ;;  %v2494_v31 = vshll.u32 %v11852_v45, 16  ;;  %v7984_v9 = vld [vmem:[%s10266_s14 + $0x60] sm:$0xf] }
 0x163   : > { %v2481_v57 = vor.u32 %v2480_v23, %v2477_v35  ;;  %v2490_v54 = vrot.slane %v12860_v17, 4  ;;  %v6189_v30 = vshrl.u32 %v8461_v33, 16  ;;  %v6177_v38 = vsel %vm10315_vm2, %v6172_v32, %v6176_v47  ;;  %v11884_v17 = vld [vmem:[%s10266_s14 + $0x64] sm:$0xf] }
 0x164   : > { %v6182_v20 = vrot.slane %v6181_v24, 4  ;;  %v6192_v41 = vshll.u32 %v8461_v33, 16  ;;  %v12862_v40 = vshll.u32 %v11858_v50, 16  ;;  %v2496_v23 = vrot.slane %v2494_v31, 5  ;;  %v11895_v24 = vld [vmem:[%s10266_s14 + $0x68] sm:$0x1] }
 0x165   : > { %9464 = vmatmul.mubr.bf16.gmra.mrb[20].mxu0 %v10098_v27  ;;  %v2482_v26 = vrot.slane %v2481_v57, 4  ;;  %v2491_v35 = vor.u32 %v2490_v54, %v2486_v11  ;;  %v6191_v7 = vrot.slane %v6189_v30, 4  ;;  %v10103_v27 = vld [vmem:[%s12783_s1 + $0x188] sm:$0xff]   ;;  %v6208_v30 = vshll.u32 %v11876_v62, 16 }
 0x166   : > { %9483 = vmatprep.mubr.bf16.mxu0 %v11627_v16  ;;  %v6187_v47 = vsel %vm10315_vm2, %v6182_v20, %v6186_v10  ;;  %v6194_v33 = vrot.slane %v6192_v41, 5  ;;  %v6200_v32 = vrot.slane %v12862_v40, 5  ;;  %v12863_v16 = vshrl.u32 %v11858_v50, 16  ;;  %v10104_v10 = vld [vmem:[%s12783_s1 + $0x388] sm:$0xff]  }
 0x167   : > { %v11897_v31 = vcombine.low %v6177_v38, %v6187_v47  ;;  %v2487_v57 = vsel %vm10315_vm2, %v2482_v26, %v2486_v11  ;;  %v2492_v54 = vrot.slane %v2491_v35, 4  ;;  %v2499_v40 = vshrl.u32 %v7984_v9, 16  ;;  %v11910_v47 = vld [vmem:[%s10266_s14 + $0x7c] sm:$0xf] }
 0x168   : > { %9164 = vmatmul.mubr.bf16.vlgmr.msra.gmra.mrb[0].mxu1 %v11656_v46  ;;  %v6195_v20 = vor.u32 %v6194_v33, %v6191_v7  ;;  %v6204_v41 = vrot.slane %v12863_v16, 4  ;;  %v2502_v38 = vshll.u32 %v7984_v9, 16  ;;  %v10105_v46 = vld [vmem:[%s12783_s1 + $0x190] sm:$0xff]   ;;  %v6210_v26 = vrot.slane %v6208_v30, 5 }
 0x169   : > { %9188 = vmatpush3.bf16.msra.mxu1 %v11789_v60  ;;  %9167 = vmatprep.mubr.bf16.mxu1 %v11710_v14  ;;  %v2497_v11 = vsel %vm10315_vm2, %v2492_v54, %v2496_v23  ;;  %v12865_v7 = vshll.u32 %v11884_v17, 16  ;;  %v12866_v35 = vshrl.u32 %v11884_v17, 16  ;;  %v2501_v60 = vrot.slane %v2499_v40, 4 }
 0x16a   : > { %9189 = vmatprep.subr.bf16.mxu1 %v10103_v27  ;;  %v11921_v9 = vcombine.low %v2487_v57, %v2497_v11  ;;  %v6196_v33 = vrot.slane %v6195_v20, 4  ;;  %v6205_v16 = vor.u32 %v6204_v41, %v6200_v32  ;;  %v2504_v14 = vrot.slane %v2502_v38, 5 }
 0x16b   : > { %v2510_v18 = vrot.slane %v12865_v7, 5  ;;  %v2514_v23 = vrot.slane %v12866_v35, 4  ;;  %v2518_v54 = vshll.u32 %v11895_v24, 16  ;;  %v6213_v20 = vshrl.u32 %v8464_v52, 16  ;;  %v11933_v7 = vld [vmem:[%s10266_s14 + $0x80] sm:$0x1] }
 0x16c   : > { %v6201_v57 = vsel %vm10315_vm2, %v6196_v33, %v6200_v32  ;;  %v6206_v30 = vrot.slane %v6205_v16, 4  ;;  %v6216_v41 = vshll.u32 %v8464_v52, 16  ;;  %v2505_v40 = vor.u32 %v2504_v14, %v2501_v60  ;;  %v11945_v16 = vld [vmem:[%s10266_s14 + $0x70] sm:$0xf]  ;;  %v10107_v33 = vld [vmem:[%s12783_s1 + $0x198] sm:$0xff]  }
 0x16d   : > { %9484 = vmatmul.mubr.bf16.vlgmr.msra.gmra.mrb[0].mxu0 %v11683_v5  ;;  %9190 = vmatpush3.bf16.msra.mxu1 %v10103_v27  ;;  %v2515_v38 = vor.u32 %v2514_v23, %v2510_v18  ;;  %v2520_v11 = vrot.slane %v2518_v54, 5  ;;  %v12868_v35 = vshll.u32 %v11910_v47, 16  ;;  %v10106_v5 = vld [vmem:[%s12783_s1 + $0x390] sm:$0xff]   ;;  %v12869_v32 = vshrl.u32 %v11910_v47, 16 }
 0x16e   : > { %9508 = vmatpush3.bf16.msra.mxu0 %v11799_v34  ;;  %9487 = vmatprep.mubr.bf16.mxu0 %v11750_v13  ;;  %v6211_v52 = vsel %vm10315_vm2, %v6206_v30, %v6210_v26  ;;  %v6215_v34 = vrot.slane %v6213_v20, 4  ;;  %v6218_v27 = vrot.slane %v6216_v41, 5  ;;  %v2506_v13 = vrot.slane %v2505_v40, 4  ;;  %v11955_v54 = vld [vmem:[%s10266_s14 + $0x74] sm:$0x1]  ;;  %v10108_v30 = vld [vmem:[%s12783_s1 + $0x398] sm:$0xff]  }
 0x16f   : > { %9509 = vmatprep.subr.bf16.mxu0 %v10104_v10  ;;  %9191 = vmatprep.subr.bf16.mxu1 %v10105_v46  ;;  %v11950_v60 = vcombine.low %v6201_v57, %v6211_v52  ;;  %v2516_v14 = vrot.slane %v2515_v38, 4  ;;  %v6224_v23 = vrot.slane %v12868_v35, 5  ;;  %v8467_v26 = vld [vmem:[%s10266_s14 + $0x84] sm:$0xf]  ;;  %v6228_v41 = vrot.slane %v12869_v32, 4 }
 0x170   : > { %9168 = vmatmul.mubr.bf16.gmra.mrb[4].mxu1 %v11776_v25  ;;  %v6219_v20 = vor.u32 %v6218_v27, %v6215_v34  ;;  %v6232_v57 = vshll.u32 %v11933_v7, 16  ;;  %v2523_v40 = vshrl.u32 %v7987_v49, 16  ;;  %v2511_v38 = vsel %vm10315_vm2, %v2506_v13, %v2510_v18  ;;  %v10109_v52 = vld [vmem:[%s12783_s1 + $0x1a0] sm:$0xff]   ;;  %v11977_v13 = vld [vmem:[%s10266_s14 + $0x88] sm:$0xf] }
 0x171   : > { %9192 = vmatpush3.bf16.msra.mxu1 %v10105_v46  ;;  %v2521_v25 = vsel %vm10315_vm2, %v2516_v14, %v2520_v11  ;;  %v2526_v34 = vshll.u32 %v7987_v49, 16  ;;  %v12871_v27 = vshll.u32 %v11945_v16, 16  ;;  %9171 = vmatprep.mubr.bf16.mxu1 %v11826_v48  ;;  %v6229_v46 = vor.u32 %v6228_v41, %v6224_v23 }
 0x172   : > { %9510 = vmatpush3.bf16.msra.mxu0 %v10104_v10  ;;  %v11974_v35 = vcombine.low %v2511_v38, %v2521_v25  ;;  %v6220_v10 = vrot.slane %v6219_v20, 4  ;;  %v6234_v18 = vrot.slane %v6232_v57, 5  ;;  %9193 = vmatprep.subr.bf16.mxu1 %v10107_v33  ;;  %v2525_v11 = vrot.slane %v2523_v40, 4  ;;  %v7990_v38 = vld [vmem:[%s10266_s14 + $0x78] sm:$0xf]  ;;  %v10110_v40 = vld [vmem:[%s12783_s1 + $0x3a0] sm:$0xff]  }
 0x173   : > { %9511 = vmatprep.subr.bf16.mxu0 %v10106_v5  ;;  %v2528_v14 = vrot.slane %v2526_v34, 5  ;;  %v2534_v32 = vrot.slane %v12871_v27, 5  ;;  %v12872_v49 = vshrl.u32 %v11945_v16, 16  ;;  %v6230_v20 = vrot.slane %v6229_v46, 4 }
 0x174   : > { %v6225_v48 = vsel %vm10315_vm2, %v6220_v10, %v6224_v23  ;;  %v2542_v41 = vshll.u32 %v11955_v54, 16  ;;  %v6237_v57 = vshrl.u32 %v8467_v26, 16  ;;  %v12874_v27 = vshll.u32 %v11977_v13, 16  ;;  %v11998_v23 = vld [vmem:[%s10266_s14 + $0x7c] sm:$0xf] }
 0x175   : > { %9488 = vmatmul.mubr.bf16.gmra.mrb[4].mxu0 %v11806_v61  ;;  %v2529_v25 = vor.u32 %v2528_v14, %v2525_v11  ;;  %v2538_v34 = vrot.slane %v12872_v49, 4  ;;  %v6240_v61 = vshll.u32 %v8467_v26, 16  ;;  %9194 = vmatpush3.bf16.msra.mxu1 %v10107_v33  ;;  %v12875_v11 = vshrl.u32 %v11977_v13, 16 }
 0x176   : > { %9512 = vmatpush3.bf16.msra.mxu0 %v10106_v5  ;;  %9491 = vmatprep.mubr.bf16.mxu0 %v11842_v37  ;;  %v6235_v5 = vsel %vm10315_vm2, %v6230_v20, %v6234_v18  ;;  %v10111_v37 = vld [vmem:[%s12783_s1 + $0x1a8] sm:$0xff]   ;;  %v2544_v10 = vrot.slane %v2542_v41, 5  ;;  %v6239_v46 = vrot.slane %v6237_v57, 4  ;;  %v6248_v33 = vrot.slane %v12874_v27, 5 }
 0x177   : > { %9513 = vmatprep.subr.bf16.mxu0 %v10108_v30  ;;  %9195 = vmatprep.subr.bf16.mxu1 %v10109_v52  ;;  %v12006_v26 = vcombine.low %v6225_v48, %v6235_v5  ;;  %v2530_v14 = vrot.slane %v2529_v25, 4  ;;  %v2539_v49 = vor.u32 %v2538_v34, %v2534_v32  ;;  %v6242_v44 = vrot.slane %v6240_v61, 5  ;;  %v12018_v34 = vld [vmem:[%s10266_s14 + $0x80] sm:$0x1]  ;;  %v8470_v61 = vld [vmem:[%s10266_s14 + $0x90] sm:$0xf] }
 0x178   : > { %9172 = vmatmul.mubr.bf16.gmra.mrb[8].mxu1 %v11868_v2  ;;  %v6252_v18 = vrot.slane %v12875_v11, 4  ;;  %v6256_v20 = vshll.u32 %v11983_v28, 16  ;;  %v2547_v41 = vshrl.u32 %v7990_v38, 16  ;;  %v2550_v2 = vshll.u32 %v7990_v38, 16  ;;  %v10112_v5 = vld [vmem:[%s12783_s1 + $0x3a8] sm:$0xff]  }
 0x179   : > { %9175 = vmatprep.mubr.bf16.mxu1 %v11921_v9  ;;  %v2535_v48 = vsel %vm10315_vm2, %v2530_v14, %v2534_v32  ;;  %v2540_v57 = vrot.slane %v2539_v49, 4  ;;  %v6243_v25 = vor.u32 %v6242_v44, %v6239_v46  ;;  %9196 = vmatpush3.bf16.msra.mxu1 %v10109_v52  ;;  %v12877_v9 = vshll.u32 %v11998_v23, 16  ;;  %v12026_v32 = vld [vmem:[%s10266_s14 + $0x94] sm:$0xf]  ;;  %v12032_v46 = vld [vmem:[%s10266_s14 + $0x98] sm:$0x1] }
 0x17a   : > { %9514 = vmatpush3.bf16.msra.mxu0 %v10108_v30  ;;  %v6253_v27 = vor.u32 %v6252_v18, %v6248_v33  ;;  %v6258_v30 = vrot.slane %v6256_v20, 5  ;;  %v2549_v11 = vrot.slane %v2547_v41, 4  ;;  %9197 = vmatprep.subr.bf16.mxu1 %v10111_v37  ;;  %v2552_v38 = vrot.slane %v2550_v2, 5  ;;  %v10113_v14 = vld [vmem:[%s12783_s1 + $0x1b0] sm:$0xff]  }
 0x17b   : > { %9515 = vmatprep.subr.bf16.mxu0 %v10110_v40  ;;  %v2545_v44 = vsel %vm10315_vm2, %v2540_v57, %v2544_v10  ;;  %v6244_v49 = vrot.slane %v6243_v25, 4  ;;  %v12879_v52 = vshrl.u32 %v11998_v23, 16  ;;  %v2558_v41 = vrot.slane %v12877_v9, 5  ;;  %v10114_v57 = vld [vmem:[%s12783_s1 + $0x3b0] sm:$0xff]   ;;  %v7993_v25 = vld [vmem:[%s10266_s14 + $0x84] sm:$0xf] }
 0x17c   : > { %v8023_v18 = vcombine.low %v2535_v48, %v2545_v44  ;;  %v6254_v20 = vrot.slane %v6253_v27, 4  ;;  %v2566_v10 = vshll.u32 %v12018_v34, 16  ;;  %v2553_v56 = vor.u32 %v2552_v38, %v2549_v11  ;;  %v12051_v48 = vld [vmem:[%s10266_s14 + $0x88] sm:$0xf] }
 0x17d   : > { %9492 = vmatmul.mubr.bf16.gmra.mrb[8].mxu0 %v11897_v31  ;;  %v6249_v2 = vsel %vm10315_vm2, %v6244_v49, %v6248_v33  ;;  %v2562_v31 = vrot.slane %v12879_v52, 4  ;;  %v6261_v27 = vshrl.u32 %v8470_v61, 16  ;;  %9198 = vmatpush3.bf16.msra.mxu1 %v10111_v37  ;;  %v6264_v4 = vshll.u32 %v8470_v61, 16 }
 0x17e   : > { %9495 = vmatprep.mubr.bf16.mxu0 %v11950_v60  ;;  %9516 = vmatpush3.bf16.msra.mxu0 %v10110_v40  ;;  %v6259_v44 = vsel %vm10315_vm2, %v6254_v20, %v6258_v30  ;;  %v2568_v9 = vrot.slane %v2566_v10, 5  ;;  %v12880_v60 = vshll.u32 %v12026_v32, 16  ;;  %v10115_v40 = vld [vmem:[%s12783_s1 + $0x1b8] sm:$0xff]   ;;  %v2554_v33 = vrot.slane %v2553_v56, 4  ;;  %v12065_v20 = vld [vmem:[%s10266_s14 + $0x8c] sm:$0x1] }
 0x17f   : > { %9517 = vmatprep.subr.bf16.mxu0 %v10112_v5  ;;  %v8503_v11 = vcombine.low %v6249_v2, %v6259_v44  ;;  %v2563_v49 = vor.u32 %v2562_v31, %v2558_v41  ;;  %v6263_v38 = vrot.slane %v6261_v27, 4  ;;  %9199 = vmatprep.subr.bf16.mxu1 %v10113_v14  ;;  %v6266_v37 = vrot.slane %v6264_v4, 5 }
 0x180   : > { %9176 = vmatmul.mubr.bf16.gmra.mrb[12].mxu1 %v11974_v35  ;;  %v6272_v52 = vrot.slane %v12880_v60, 5  ;;  %v12881_v61 = vshrl.u32 %v12026_v32, 16  ;;  %v6280_v30 = vshll.u32 %v12032_v46, 16  ;;  %v2559_v56 = vsel %vm10315_vm2, %v2554_v33, %v2558_v41  ;;  %v8473_v60 = vld [vmem:[%s10266_s14 + $0x9c] sm:$0xf] }
 0x181   : > { %9179 = vmatprep.mubr.bf16.mxu1 %v8023_v18  ;;  %v2564_v10 = vrot.slane %v2563_v49, 4  ;;  %v2571_v2 = vshrl.u32 %v7993_v25, 16  ;;  %v2574_v35 = vshll.u32 %v7993_v25, 16  ;;  %v6267_v4 = vor.u32 %v6266_v37, %v6263_v38  ;;  %9200 = vmatpush3.bf16.msra.mxu1 %v10113_v14  ;;  %v12080_v49 = vld [vmem:[%s10266_s14 + $0xa0] sm:$0xf] }
 0x182   : > { %9518 = vmatpush3.bf16.msra.mxu0 %v10112_v5  ;;  %v6276_v31 = vrot.slane %v12881_v61, 4  ;;  %v6282_v27 = vrot.slane %v6280_v30, 5  ;;  %v12884_v44 = vshll.u32 %v12051_v48, 16  ;;  %v10116_v5 = vld [vmem:[%s12783_s1 + $0x3b8] sm:$0xff]   ;;  %v12887_v33 = vshrl.u32 %v12051_v48, 16  ;;  %9201 = vmatprep.subr.bf16.mxu1 %v10115_v40  ;;  %v12085_v14 = vld [vmem:[%s12783_s1 + $0x1c0] sm:$0xff]  }
 0x183   : > { %9519 = vmatprep.subr.bf16.mxu0 %v10114_v57  ;;  %v2569_v18 = vsel %vm10315_vm2, %v2564_v10, %v2568_v9  ;;  %v2573_v41 = vrot.slane %v2571_v2, 4  ;;  %v2576_v25 = vrot.slane %v2574_v35, 5  ;;  %v6268_v37 = vrot.slane %v6267_v4, 4  ;;  %v12091_v10 = vld [vmem:[%s10266_s14 + $0xa4] sm:$0x1] }
 0x184   : > { %v8024_v38 = vcombine.low %v2559_v56, %v2569_v18  ;;  %v6277_v30 = vor.u32 %v6276_v31, %v6272_v52  ;;  %v2582_v9 = vrot.slane %v12884_v44, 5  ;;  %v2586_v35 = vrot.slane %v12887_v33, 4  ;;  %v12101_v18 = vld [vmem:[%s10266_s14 + $0x94] sm:$0xf] }
 0x185   : > { %9496 = vmatmul.mubr.bf16.gmra.mrb[12].mxu0 %v12006_v26  ;;  %v2577_v2 = vor.u32 %v2576_v25, %v2573_v41  ;;  %v2590_v61 = vshll.u32 %v12065_v20, 16  ;;  %v6285_v12 = vshrl.u32 %v8473_v60, 16  ;;  %v6273_v26 = vsel %vm10315_vm2, %v6268_v37, %v6272_v52  ;;  %9202 = vmatpush3.bf16.msra.mxu1 %v10115_v40 }
 0x186   : > { %9499 = vmatprep.mubr.bf16.mxu0 %v8503_v11  ;;  %9520 = vmatpush3.bf16.msra.mxu0 %v10114_v57  ;;  %v6278_v56 = vrot.slane %v6277_v30, 4  ;;  %v6288_v4 = vshll.u32 %v8473_v60, 16  ;;  %v12885_v31 = vshll.u32 %v12080_v49, 16  ;;  %v12106_v57 = vld [vmem:[%s12783_s1 + $0x3c0] sm:$0xff]   ;;  %v2587_v41 = vor.u32 %v2586_v35, %v2582_v9  ;;  %v12118_v35 = vld [vmem:[%s10266_s14 + $0x98] sm:$0x1] }
 0x187   : > { %9521 = vmatprep.subr.bf16.mxu0 %v10116_v5  ;;  %v2578_v11 = vrot.slane %v2577_v2, 4  ;;  %v2592_v25 = vrot.slane %v2590_v61, 5  ;;  %v6287_v44 = vrot.slane %v6285_v12, 4  ;;  %9227 = vmatprep.subr.bf16.mxu1 %v12085_v14  ;;  %v12886_v37 = vshrl.u32 %v12080_v49, 16 }
 0x188   : > { %9180 = vmatmul.mubr.bf16.gmra.mrb[16].mxu1 %v8024_v38  ;;  %v6283_v52 = vsel %vm10315_vm2, %v6278_v56, %v6282_v27  ;;  %v6290_v60 = vrot.slane %v6288_v4, 5  ;;  %v6296_v40 = vrot.slane %v12885_v31, 5  ;;  %v2588_v61 = vrot.slane %v2587_v41, 4  ;;  %v8476_v31 = vld [vmem:[%s10266_s14 + $0xa8] sm:$0xf] }
 0x189   : > { %v8504_v30 = vcombine.low %v6273_v26, %v6283_v52  ;;  %v2583_v2 = vsel %vm10315_vm2, %v2578_v11, %v2582_v9  ;;  %v6304_v12 = vshll.u32 %v12091_v10, 16  ;;  %v6300_v27 = vrot.slane %v12886_v37, 4  ;;  %v12129_v41 = vld [vmem:[%s10266_s14 + $0xac] sm:$0xf] }
 0x18a   : > { %9522 = vmatpush3.bf16.msra.mxu0 %v10116_v5  ;;  %v6291_v38 = vor.u32 %v6290_v60, %v6287_v44  ;;  %v2595_v56 = vshrl.u32 %v7996_v42, 16  ;;  %v2598_v4 = vshll.u32 %v7996_v42, 16  ;;  %v2593_v26 = vsel %vm10315_vm2, %v2588_v61, %v2592_v25 }
 0x18b   : > { %9547 = vmatprep.subr.bf16.mxu0 %v12106_v57  ;;  %v6306_v52 = vrot.slane %v6304_v12, 5  ;;  %v12889_v9 = vshll.u32 %v12101_v18, 16  ;;  %v12890_v11 = vshrl.u32 %v12101_v18, 16  ;;  %v8025_v44 = vcombine.low %v2583_v2, %v2593_v26 }
 0x18c   : > { %v6292_v5 = vrot.slane %v6291_v38, 4  ;;  %v6301_v60 = vor.u32 %v6300_v27, %v6296_v40  ;;  %v2597_v42 = vrot.slane %v2595_v56, 4  ;;  %v2600_v37 = vrot.slane %v2598_v4, 5  ;;  %v12139_v56 = vld [vmem:[%s10266_s14 + $0xb0] sm:$0x1] }
 0x18d   : > { %9500 = vmatmul.mubr.bf16.gmra.mrb[16].mxu0 %v8504_v30  ;;  %v2606_v33 = vrot.slane %v12889_v9, 5  ;;  %v2610_v25 = vrot.slane %v12890_v11, 4  ;;  %v2614_v61 = vshll.u32 %v12118_v35, 16  ;;  %9183 = vmatprep.mubr.bf16.mxu1 %v8025_v44  ;;  %v6309_v2 = vshrl.u32 %v8476_v31, 16  ;;  %v12143_v9 = vld [vmem:[%s10266_s14 + $0xc] sm:$0xe] }
 0x18e   : > { %v6297_v12 = vsel %vm10315_vm2, %v6292_v5, %v6296_v40  ;;  %v6302_v30 = vrot.slane %v6301_v60, 4  ;;  %v6312_v26 = vshll.u32 %v8476_v31, 16  ;;  %v2601_v38 = vor.u32 %v2600_v37, %v2597_v42 }
 0x18f   : > { %v2611_v27 = vor.u32 %v2610_v25, %v2606_v33  ;;  %v2616_v43 = vrot.slane %v2614_v61, 5  ;;  %v12892_v4 = vshll.u32 %v12129_v41, 16  ;;  %v6311_v44 = vrot.slane %v6309_v2, 4  ;;  %v10167_v2 = vld [vmem:[%s10266_s14 + $0x10] sm:$0xf] }
 0x190   : > { %v6307_v11 = vsel %vm10315_vm2, %v6302_v30, %v6306_v52  ;;  %v6314_v55 = vrot.slane %v6312_v26, 5  ;;  %v12893_v40 = vshrl.u32 %v12129_v41, 16  ;;  %v2602_v37 = vrot.slane %v2601_v38, 4  ;;  %v12155_v30 = vld [vmem:[%s10266_s14 + $0x24] sm:$0xe] }
 0x191   : > { %v8505_v31 = vcombine.low %v6297_v12, %v6307_v11  ;;  %v2612_v5 = vrot.slane %v2611_v27, 4  ;;  %v6320_v60 = vrot.slane %v12892_v4, 5  ;;  %v6328_v61 = vshll.u32 %v12139_v56, 16  ;;  %v10168_v26 = vld [vmem:[%s10266_s14 + $0x14] sm:$0x1] }
 0x192   : > { %v6315_v42 = vor.u32 %v6314_v55, %v6311_v44  ;;  %v6324_v25 = vrot.slane %v12893_v40, 4  ;;  %v8047_v52 = vrot.slane %v12143_v9, 9  ;;  %v2607_v11 = vsel %vm10315_vm2, %v2602_v37, %v2606_v33  ;;  %v12164_v27 = vld [vmem:[%s10266_s14 + $0x18] sm:$0xe] }
 0x193   : > { %9503 = vmatprep.mubr.bf16.mxu0 %v8505_v31  ;;  %v2617_v12 = vsel %vm10315_vm2, %v2612_v5, %v2616_v43  ;;  %v2934_v55 = vrot.slane %v10167_v2, 5  ;;  %v2937_v38 = vrot.slane %v10168_v26, 5  ;;  %v6330_v36 = vrot.slane %v6328_v61, 5  ;;  %v10169_v43 = vld [vmem:[%s10266_s14 + $0x28] sm:$0xf] }
 0x194   : > { %v8026_v44 = vcombine.low %v2607_v11, %v2617_v12  ;;  %v6316_v4 = vrot.slane %v6315_v42, 4  ;;  %v6325_v40 = vor.u32 %v6324_v25, %v6320_v60  ;;  %v8527_v37 = vrot.slane %v12155_v30, 9  ;;  %v12171_v2 = vld [vmem:[%s10266_s14 + $0x30] sm:$0xe]  ;;  %v10170_v25 = vld [vmem:[%s10266_s14 + $0x2c] sm:$0x1] }
 0x195   : > { %v2935_v31 = vsel %vm10930_vm5, %v8047_v52, %v2934_v55  ;;  %v2936_v33 = vrot.slane %v2934_v55, 4  ;;  %v6648_v5 = vrot.slane %v10169_v43, 5  ;;  %v6651_v61 = vrot.slane %v10170_v25, 5  ;;  %v10171_v43 = vld [vmem:[%s10266_s14 + $0x1c] sm:$0xf] }
 0x196   : > { %9184 = vmatmul.mubr.bf16.gmra.mrb[20].mxu1 %v8026_v44  ;;  %v6321_v11 = vsel %vm10315_vm2, %v6316_v4, %v6320_v60  ;;  %v6326_v42 = vrot.slane %v6325_v40, 4  ;;  %v8048_v12 = vrot.slane %v12164_v27, 9  ;;  %v2941_v63 = vrot.slane %v10171_v43, 5  ;;  %v12183_v44 = vld [vmem:[%s10266_s14 + $0x24] sm:$0xe] }
 0x197   : > { %v2938_v52 = vsel %vm10930_vm5, %v2936_v33, %v2937_v38  ;;  %v6649_v55 = vsel %vm10930_vm5, %v8527_v37, %v6648_v5  ;;  %v6650_v26 = vrot.slane %v6648_v5, 4  ;;  %v10172_v60 = vld [vmem:[%s10266_s14 + $0x20] sm:$0x1]  ;;  %v8528_v19 = vrot.slane %v12171_v2, 9  ;;  %v12190_v38 = vld [vmem:[%s10266_s14 + $0x3c] sm:$0xe] }
 0x198   : > { %v6331_v4 = vsel %vm10315_vm2, %v6326_v42, %v6330_v36  ;;  %v8075_v40 = vcombine.low %v2935_v31, %v2938_v52  ;;  %v2944_v25 = vrot.slane %v10172_v60, 5  ;;  %13005 = vst [vmem:[#allocation10_spill] sm:$0xff] %v12190_v38  ;;  %v2942_v5 = vsel %vm10930_vm5, %v8048_v12, %v2941_v63  ;;  %v10173_v36 = vld [vmem:[%s10266_s14 + $0x34] sm:$0xf]  ;;  %v10174_v42 = vld [vmem:[%s10266_s14 + $0x38] sm:$0x1] }
 0x199   : > { %v8506_v33 = vcombine.low %v6321_v11, %v6331_v4  ;;  %v6652_v37 = vsel %vm10930_vm5, %v6650_v26, %v6651_v61  ;;  %v2943_v43 = vrot.slane %v2941_v63, 4  ;;  %v6655_v31 = vrot.slane %v10173_v36, 5  ;;  %v10175_v61 = vld [vmem:[%s10266_s14 + $0x28] sm:$0xf]  ;;  %v10176_v63 = vld [vmem:[%s10266_s14 + $0x2c] sm:$0x1] }
 0x19a   : > { %9203 = vmatprep.mubr.bf16.mxu1 %v8075_v40  ;;  %v8555_v1 = vcombine.low %v6649_v55, %v6652_v37  ;;  %v6658_v52 = vrot.slane %v10174_v42, 5  ;;  %v8049_v60 = vrot.slane %v12183_v44, 9  ;;  %v2948_v12 = vrot.slane %v10175_v61, 5  ;;  %v12214_v36 = vld [vmem:[%s10266_s14 + $0x48] sm:$0xe] }
 0x19b   : > { %9504 = vmatmul.mubr.bf16.gmra.mrb[20].mxu0 %v8506_v33  ;;  %v2945_v11 = vsel %vm10930_vm5, %v2943_v43, %v2944_v25  ;;  %v2951_v26 = vrot.slane %v10176_v63, 5  ;;  %v8529_v55 = vrot.slane %v12190_v38, 9  ;;  %v6656_v40 = vsel %vm10930_vm5, %v8528_v19, %v6655_v31  ;;  %v10119_v33 = vld [vmem:[%s12783_s1 + $0x1c8] sm:$0xff]   ;;  %v10177_v25 = vld [vmem:[%s10266_s14 + $0x40] sm:$0xf]  ;;  %13007 = vst [vmem:[#allocation12_spill] sm:$0xff] %v12214_v36 }
 0x19c   : > { %9523 = vmatprep.mubr.bf16.mxu0 %v8555_v1  ;;  %v8076_v4 = vcombine.low %v2942_v5, %v2945_v11  ;;  %v6657_v37 = vrot.slane %v6655_v31, 4  ;;  %v6662_v43 = vrot.slane %v10177_v25, 5  ;;  %v2949_v42 = vsel %vm10930_vm5, %v8049_v60, %v2948_v12  ;;  %v10178_v5 = vld [vmem:[%s10266_s14 + $0x44] sm:$0x1]  ;;  %v10179_v25 = vld [vmem:[%s10266_s14 + $0x34] sm:$0xf] }
 0x19d   : > { %v2950_v1 = vrot.slane %v2948_v12, 4  ;;  %v6665_v11 = vrot.slane %v10178_v5, 5  ;;  %v8050_v19 = vrot.slane %v12200_v22, 9  ;;  %v2955_v6 = vrot.slane %v10179_v25, 5  ;;  %v10121_v22 = vld [vmem:[%s12783_s1 + $0x1d0] sm:$0xff]  }
 0x19e   : > { %9204 = vmatmul.mubr.bf16.vlgmr.msra.gmra.mrb[0].mxu1 %v8076_v4  ;;  %v6659_v31 = vsel %vm10930_vm5, %v6657_v37, %v6658_v52  ;;  %v6663_v61 = vsel %vm10930_vm5, %v8529_v55, %v6662_v43  ;;  %v6664_v63 = vrot.slane %v6662_v43, 4  ;;  %v10180_v4 = vld [vmem:[%s10266_s14 + $0x38] sm:$0x1]  ;;  %v8530_v52 = vrot.slane %v12214_v36, 9  ;;  %v12234_v37 = vld [vmem:[%s10266_s14 + $0x54] sm:$0xe] }
 0x19f   : > { %v8556_v60 = vcombine.low %v6656_v40, %v6659_v31  ;;  %9228 = vmatpush3.bf16.msra.mxu1 %v12085_v14  ;;  %v2952_v12 = vsel %vm10930_vm5, %v2950_v1, %v2951_v26  ;;  %v2958_v5 = vrot.slane %v10180_v4, 5  ;;  %13009 = vst [vmem:[#allocation14_spill] sm:$0xff] %v12234_v37  ;;  %v10120_v55 = vld [vmem:[%s12783_s1 + $0x3c8] sm:$0xff]   ;;  %v2956_v26 = vsel %vm10930_vm5, %v8050_v19, %v2955_v6  ;;  %v10182_v4 = vld [vmem:[%s10266_s14 + $0x50] sm:$0x1] }
 0x1a0   : > { %9229 = vmatprep.subr.bf16.mxu1 %v10119_v33  ;;  %v8077_v40 = vcombine.low %v2949_v42, %v2952_v12  ;;  %v6666_v14 = vsel %vm10930_vm5, %v6664_v63, %v6665_v11  ;;  %v2957_v43 = vrot.slane %v2955_v6, 4  ;;  %v10181_v31 = vld [vmem:[%s10266_s14 + $0x4c] sm:$0xf]  ;;  %v6672_v36 = vrot.slane %v10182_v4, 5  ;;  %v12250_v12 = vld [vmem:[%s10266_s14 + $0x48] sm:$0xe] }
 0x1a1   : > { %v8557_v1 = vcombine.low %v6663_v61, %v6666_v14  ;;  %v6669_v25 = vrot.slane %v10181_v31, 5  ;;  %v8051_v42 = vrot.slane %v12226_v58, 9  ;;  %13010 = vst [vmem:[#allocation15_spill] sm:$0xff] %v12250_v12  ;;  %v10183_v6 = vld [vmem:[%s10266_s14 + $0x40] sm:$0xf]  ;;  %v8531_v14 = vrot.slane %v12234_v37, 9 }
 0x1a2   : > { %9207 = vmatprep.mubr.bf16.mxu1 %v8077_v40  ;;  %v2959_v11 = vsel %vm10930_vm5, %v2957_v43, %v2958_v5  ;;  %v2962_v19 = vrot.slane %v10183_v6, 5  ;;  %v10184_v61 = vld [vmem:[%s10266_s14 + $0x44] sm:$0x1]  ;;  %v10185_v38 = vld [vmem:[%s10266_s14 + $0x58] sm:$0xf]  ;;  %v13014_v53 = vshll.u32 %v11555_v0, 16 }
 0x1a3   : > { %v2965_v63 = vrot.slane %v10184_v61, 5  ;;  %9524 = vmatmul.mubr.bf16.vlgmr.msra.gmra.mrb[0].mxu0 %v8556_v60  ;;  %9230 = vmatpush3.bf16.msra.mxu1 %v10119_v33  ;;  %v8078_v31 = vcombine.low %v2956_v26, %v2959_v11  ;;  %v6670_v4 = vsel %vm10930_vm5, %v8530_v52, %v6669_v25  ;;  %v6671_v58 = vrot.slane %v6669_v25, 4  ;;  %v12261_v40 = vld [vmem:[%s10266_s14 + $0x60] sm:$0xe]  ;;  %v10186_v60 = vld [vmem:[%s10266_s14 + $0x5c] sm:$0x1] }
 0x1a4   : > { %v6676_v8 = vrot.slane %v10185_v38, 5  ;;  %9548 = vmatpush3.bf16.msra.mxu0 %v12106_v57  ;;  %9527 = vmatprep.mubr.bf16.mxu0 %v8557_v1  ;;  %v2963_v5 = vsel %vm10930_vm5, %v8051_v42, %v2962_v19  ;;  %v2964_v43 = vrot.slane %v2962_v19, 4  ;;  %v6679_v33 = vrot.slane %v10186_v60, 5  ;;  %v10123_v38 = vld [vmem:[%s12783_s1 + $0x1d8] sm:$0xff]   ;;  %v10122_v52 = vld [vmem:[%s12783_s1 + $0x3d0] sm:$0xff]  }
 0x1a5   : > { %v8052_v26 = vrot.slane %v12250_v12, 9  ;;  %9549 = vmatprep.subr.bf16.mxu0 %v10120_v55  ;;  %v6673_v57 = vsel %vm10930_vm5, %v6671_v58, %v6672_v36  ;;  %9231 = vmatprep.subr.bf16.mxu1 %v10121_v22  ;;  %v10187_v42 = vld [vmem:[%s10266_s14 + $0x4c] sm:$0xf]  ;;  %v12280_v6 = vld [vmem:[%s10266_s14 + $0x54] sm:$0xe]  ;;  %v8532_v60 = vrot.slane %v12261_v40, 9 }
 0x1a6   : > { %v6677_v1 = vsel %vm10930_vm5, %v8531_v14, %v6676_v8  ;;  %v6678_v25 = vrot.slane %v6676_v8, 4  ;;  %v2969_v11 = vrot.slane %v10187_v42, 5  ;;  %9208 = vmatmul.mubr.bf16.gmra.mrb[4].mxu1 %v8078_v31  ;;  %v8558_v19 = vcombine.low %v6670_v4, %v6673_v57  ;;  %v10188_v58 = vld [vmem:[%s10266_s14 + $0x50] sm:$0x1]  ;;  %v12287_v12 = vld [vmem:[%s10266_s14 + $0x6c] sm:$0xe] }
 0x1a7   : > { %v2966_v61 = vsel %vm10930_vm5, %v2964_v43, %v2965_v63  ;;  %v2972_v36 = vrot.slane %v10188_v58, 5  ;;  %9232 = vmatpush3.bf16.msra.mxu1 %v10121_v22  ;;  %v6683_v63 = vrot.slane %v11823_v15, 5  ;;  %v6686_v43 = vrot.slane %v11833_v21, 5  ;;  %v12297_v42 = vld [vmem:[%s10266_s14 + $0x60] sm:$0xe] }
 0x1a8   : > { %v8079_v37 = vcombine.low %v2963_v5, %v2966_v61  ;;  %v6680_v8 = vsel %vm10930_vm5, %v6678_v25, %v6679_v33  ;;  %v2970_v14 = vsel %vm10930_vm5, %v8052_v26, %v2969_v11  ;;  %v2971_v31 = vrot.slane %v2969_v11, 4  ;;  %9550 = vmatpush3.bf16.msra.mxu0 %v10120_v55  ;;  %9233 = vmatprep.subr.bf16.mxu1 %v10123_v38  ;;  %v10124_v55 = vld [vmem:[%s12783_s1 + $0x3d8] sm:$0xff]   ;;  %v10125_v26 = vld [vmem:[%s12783_s1 + $0x1e0] sm:$0xff]  }
 0x1a9   : > { %v8559_v4 = vcombine.low %v6677_v1, %v6680_v8  ;;  %v8053_v57 = vrot.slane %v12280_v6, 9  ;;  %9551 = vmatprep.subr.bf16.mxu0 %v10122_v52  ;;  %v2976_v5 = vrot.slane %v11845_v39, 5  ;;  %v2979_v33 = vrot.slane %v11852_v45, 5  ;;  %v12314_v61 = vld [vmem:[%s10266_s14 + $0x78] sm:$0xe] }
 0x1aa   : > { %9211 = vmatprep.mubr.bf16.mxu1 %v8079_v37  ;;  %v2973_v22 = vsel %vm10930_vm5, %v2971_v31, %v2972_v36  ;;  %v8533_v21 = vrot.slane %v12287_v12, 9  ;;  %v6684_v37 = vsel %vm10930_vm5, %v8532_v60, %v6683_v63  ;;  %v6685_v25 = vrot.slane %v6683_v63, 4 }
 0x1ab   : > { %v8080_v1 = vcombine.low %v2970_v14, %v2973_v22  ;;  %v6690_v11 = vrot.slane %v11858_v50, 5  ;;  %9528 = vmatmul.mubr.bf16.gmra.mrb[4].mxu0 %v8558_v19  ;;  %9234 = vmatpush3.bf16.msra.mxu1 %v10123_v38  ;;  %v2977_v45 = vsel %vm10930_vm5, %v8053_v57, %v2976_v5  ;;  %v2978_v58 = vrot.slane %v2976_v5, 4  ;;  %v12326_v19 = vld [vmem:[%s10266_s14 + $0x6c] sm:$0xe]  ;;  %v12339_v22 = vld [vmem:[%s10266_s14 + $0x84] sm:$0xe] }
 0x1ac   : > { %v6693_v36 = vrot.slane %v11876_v62, 5  ;;  %v8054_v8 = vrot.slane %v12297_v42, 9  ;;  %9552 = vmatpush3.bf16.msra.mxu0 %v10122_v52  ;;  %9531 = vmatprep.mubr.bf16.mxu0 %v8559_v4  ;;  %v6687_v60 = vsel %vm10930_vm5, %v6685_v25, %v6686_v43  ;;  %v2983_v38 = vrot.slane %v11884_v17, 5  ;;  %v10126_v4 = vld [vmem:[%s12783_s1 + $0x3e0] sm:$0xff]   ;;  %v10127_v43 = vld [vmem:[%s12783_s1 + $0x1e8] sm:$0xff]  }
 0x1ad   : > { %v6691_v14 = vsel %vm10930_vm5, %v8533_v21, %v6690_v11  ;;  %v6692_v31 = vrot.slane %v6690_v11, 4  ;;  %v8560_v63 = vcombine.low %v6684_v37, %v6687_v60  ;;  %9553 = vmatprep.subr.bf16.mxu0 %v10124_v55  ;;  %v2980_v62 = vsel %vm10930_vm5, %v2978_v58, %v2979_v33  ;;  %9235 = vmatprep.subr.bf16.mxu1 %v10125_v26  ;;  %v12349_v60 = vld [vmem:[%s10266_s14 + $0x78] sm:$0xe] }
 0x1ae   : > { %v2986_v57 = vrot.slane %v11895_v24, 5  ;;  %v8534_v52 = vrot.slane %v12314_v61, 9  ;;  %9212 = vmatmul.mubr.bf16.gmra.mrb[8].mxu1 %v8080_v1  ;;  %v8081_v5 = vcombine.low %v2977_v45, %v2980_v62  ;;  %v2984_v24 = vsel %vm10930_vm5, %v8054_v8, %v2983_v38 }
 0x1af   : > { %v6694_v33 = vsel %vm10930_vm5, %v6692_v31, %v6693_v36  ;;  %v2985_v21 = vrot.slane %v2983_v38, 4  ;;  %v6697_v25 = vrot.slane %v11910_v47, 5  ;;  %v6700_v11 = vrot.slane %v11933_v7, 5  ;;  %9236 = vmatpush3.bf16.msra.mxu1 %v10125_v26  ;;  %v12365_v38 = vld [vmem:[%s10266_s14 + $0x90] sm:$0xe] }
 0x1b0   : > { %v8561_v37 = vcombine.low %v6691_v14, %v6694_v33  ;;  %v8055_v58 = vrot.slane %v12326_v19, 9  ;;  %9554 = vmatpush3.bf16.msra.mxu0 %v10124_v55  ;;  %9215 = vmatprep.mubr.bf16.mxu1 %v8081_v5  ;;  %v2990_v45 = vrot.slane %v11945_v16, 5  ;;  %v2993_v36 = vrot.slane %v11955_v54, 5  ;;  %v10128_v55 = vld [vmem:[%s12783_s1 + $0x3e8] sm:$0xff]   ;;  %v10129_v54 = vld [vmem:[%s12783_s1 + $0x1f0] sm:$0xff]  }
 0x1b1   : > { %v2987_v1 = vsel %vm10930_vm5, %v2985_v21, %v2986_v57  ;;  %v8535_v8 = vrot.slane %v12339_v22, 9  ;;  %v12358_v7 = vsel %vm10930_vm5, %v8534_v52, %v6697_v25  ;;  %v6699_v26 = vrot.slane %v6697_v25, 4  ;;  %9555 = vmatprep.subr.bf16.mxu0 %v10126_v4  ;;  %9237 = vmatprep.subr.bf16.mxu1 %v10127_v43 }
 0x1b2   : > { %v8082_v14 = vcombine.low %v2984_v24, %v2987_v1  ;;  %v6704_v31 = vrot.slane %v11977_v13, 5  ;;  %v2991_v62 = vsel %vm10930_vm5, %v8055_v58, %v2990_v45  ;;  %v2992_v57 = vrot.slane %v2990_v45, 4  ;;  %v12380_v1 = vld [vmem:[%s10266_s14 + $0x84] sm:$0xe]  ;;  %v10131_v45 = vld [vmem:[%s12783_s1 + $0x1f8] sm:$0xff]  }
 0x1b3   : > { %v6707_v52 = vrot.slane %v11983_v28, 5  ;;  %v8056_v5 = vrot.slane %v12349_v60, 9  ;;  %9532 = vmatmul.mubr.bf16.gmra.mrb[8].mxu0 %v8560_v63  ;;  %v6701_v33 = vsel %vm10930_vm5, %v6699_v26, %v6700_v11  ;;  %9238 = vmatpush3.bf16.msra.mxu1 %v10127_v43  ;;  %v2997_v25 = vrot.slane %v11998_v23, 5  ;;  %v12388_v11 = vld [vmem:[%s10266_s14 + $0x9c] sm:$0xe] }
 0x1b4   : > { %v6705_v24 = vsel %vm10930_vm5, %v8535_v8, %v6704_v31  ;;  %v6706_v21 = vrot.slane %v6704_v31, 4  ;;  %9535 = vmatprep.mubr.bf16.mxu0 %v8561_v37  ;;  %v8562_v58 = vcombine.low %v12358_v7, %v6701_v33  ;;  %9556 = vmatpush3.bf16.msra.mxu0 %v10126_v4  ;;  %v2994_v28 = vsel %vm10930_vm5, %v2992_v57, %v2993_v36  ;;  %v12404_v57 = vld [vmem:[%s10266_s14 + $0x90] sm:$0xe] }
 0x1b5   : > { %v3000_v63 = vrot.slane %v12018_v34, 5  ;;  %v8536_v43 = vrot.slane %v12365_v38, 9  ;;  %9557 = vmatprep.subr.bf16.mxu0 %v10128_v55  ;;  %v8083_v8 = vcombine.low %v2991_v62, %v2994_v28  ;;  %v2998_v4 = vsel %vm10930_vm5, %v8056_v5, %v2997_v25  ;;  %9239 = vmatprep.subr.bf16.mxu1 %v10129_v54  ;;  %v10130_v34 = vld [vmem:[%s12783_s1 + $0x3f0] sm:$0xff]   ;;  %v12415_v28 = vld [vmem:[%s10266_s14 + $0xa8] sm:$0xe] }
 0x1b6   : > { %v6708_v37 = vsel %vm10930_vm5, %v6706_v21, %v6707_v52  ;;  %v2999_v36 = vrot.slane %v2997_v25, 4  ;;  %9216 = vmatmul.mubr.bf16.gmra.mrb[12].mxu1 %v8082_v14  ;;  %v6711_v26 = vrot.slane %v12026_v32, 5  ;;  %v6714_v31 = vrot.slane %v12032_v46, 5 }
 0x1b7   : > { %v8563_v7 = vcombine.low %v6705_v24, %v6708_v37  ;;  %v8057_v62 = vrot.slane %v12380_v1, 9  ;;  %9219 = vmatprep.mubr.bf16.mxu1 %v8083_v8  ;;  %9240 = vmatpush3.bf16.msra.mxu1 %v10129_v54  ;;  %v3004_v5 = vrot.slane %v12051_v48, 5  ;;  %v3007_v33 = vrot.slane %v12065_v20, 5 }
 0x1b8   : > { %v3001_v52 = vsel %vm10930_vm5, %v2999_v36, %v3000_v63  ;;  %v8537_v14 = vrot.slane %v12388_v11, 9  ;;  %9558 = vmatpush3.bf16.msra.mxu0 %v10128_v55  ;;  %v6712_v46 = vsel %vm10930_vm5, %v8536_v43, %v6711_v26  ;;  %v6713_v21 = vrot.slane %v6711_v26, 4  ;;  %9241 = vmatprep.subr.bf16.mxu1 %v10131_v45  ;;  %v10132_v55 = vld [vmem:[%s12783_s1 + $0x3f8] sm:$0xff]  }
 0x1b9   : > { %v8084_v24 = vcombine.low %v2998_v4, %v3001_v52  ;;  %v6718_v25 = vrot.slane %v12080_v49, 5  ;;  %9559 = vmatprep.subr.bf16.mxu0 %v10130_v34  ;;  %v3005_v54 = vsel %vm10930_vm5, %v8057_v62, %v3004_v5  ;;  %v3006_v63 = vrot.slane %v3004_v5, 4 }
 0x1ba   : > { %v6721_v20 = vrot.slane %v12091_v10, 5  ;;  %v8058_v8 = vrot.slane %v12404_v57, 9  ;;  %v6715_v43 = vsel %vm10930_vm5, %v6713_v21, %v6714_v31  ;;  %v3011_v36 = vrot.slane %v12101_v18, 5 }
 0x1bb   : > { %v6719_v37 = vsel %vm10930_vm5, %v8537_v14, %v6718_v25  ;;  %v6720_v4 = vrot.slane %v6718_v25, 4  ;;  %9536 = vmatmul.mubr.bf16.gmra.mrb[12].mxu0 %v8562_v58  ;;  %v8564_v26 = vcombine.low %v6712_v46, %v6715_v43  ;;  %v3008_v10 = vsel %vm10930_vm5, %v3006_v63, %v3007_v33  ;;  %9242 = vmatpush3.bf16.msra.mxu1 %v10131_v45 }
 0x1bc   : > { %v3014_v62 = vrot.slane %v12118_v35, 5  ;;  %v8538_v52 = vrot.slane %v12415_v28, 9  ;;  %9539 = vmatprep.mubr.bf16.mxu0 %v8563_v7  ;;  %9560 = vmatpush3.bf16.msra.mxu0 %v10130_v34  ;;  %v8085_v31 = vcombine.low %v3005_v54, %v3008_v10  ;;  %v3012_v14 = vsel %vm10930_vm5, %v8058_v8, %v3011_v36  ;;  %v8095_v35 = vld [vmem:[%s10266_s14 + $0x14] sm:$0x3] }
 0x1bd   : > { %v6722_v5 = vsel %vm10930_vm5, %v6720_v4, %v6721_v20  ;;  %v3013_v58 = vrot.slane %v3011_v36, 4  ;;  %v6725_v46 = vrot.slane %v12129_v41, 5  ;;  %v6728_v33 = vrot.slane %v12139_v56, 5  ;;  %9561 = vmatprep.subr.bf16.mxu0 %v10132_v55 }
 0x1be   : > { %v8565_v21 = vcombine.low %v6719_v37, %v6722_v5  ;;  %v3295_v25 = vshrl.u32 %v12143_v9, 16  ;;  %9220 = vmatmul.mubr.bf16.gmra.mrb[16].mxu1 %v8084_v24  ;;  %v3298_v34 = vshll.u32 %v12143_v9, 16  ;;  %v13011_v7 = vshrl.u32 %v11548_v51, 16 }
 0x1bf   : > { %v3015_v45 = vsel %vm10930_vm5, %v3013_v58, %v3014_v62  ;;  %v13012_v63 = vshll.u32 %v11548_v51, 16  ;;  %9223 = vmatprep.mubr.bf16.mxu1 %v8085_v31  ;;  %v6726_v56 = vsel %vm10930_vm5, %v8538_v52, %v6725_v46  ;;  %v6727_v43 = vrot.slane %v6725_v46, 4  ;;  %v8575_v62 = vld [vmem:[%s10266_s14 + $0x2c] sm:$0x3] }
 0x1c0   : > { %v3303_v54 = vrot.slane %v13011_v7, 5  ;;  %v8086_v8 = vcombine.low %v3012_v14, %v3015_v45  ;;  %v3297_v37 = vrot.slane %v3295_v25, 5  ;;  %9562 = vmatpush3.bf16.msra.mxu0 %v10132_v55  ;;  %v3300_v24 = vrot.slane %v3298_v34, 6 }
 0x1c1   : > { %v3304_v20 = vrot.slane %v13012_v63, 6  ;;  %v3309_v36 = vshrl.u32 %v8095_v35, 16  ;;  %v3312_v10 = vshll.u32 %v8095_v35, 16  ;;  %v6729_v9 = vsel %vm10930_vm5, %v6727_v43, %v6728_v33 }
 0x1c2   : > { %v7009_v5 = vshrl.u32 %v12155_v30, 16  ;;  %v7012_v51 = vshll.u32 %v12155_v30, 16  ;;  %v13013_v31 = vshrl.u32 %v11555_v0, 16  ;;  %v8566_v58 = vcombine.low %v6726_v56, %v6729_v9 }
 0x1c3   : > { %v3305_v4 = vor.u32 %v3304_v20, %v3303_v54  ;;  %v3301_v52 = vor.u32 %v3300_v24, %v3297_v37  ;;  %v3311_v25 = vrot.slane %v3309_v36, 5  ;;  %9540 = vmatmul.mubr.bf16.gmra.mrb[16].mxu0 %v8564_v26  ;;  %v3314_v55 = vrot.slane %v3312_v10, 6  ;;  %v8096_v36 = vld [vmem:[%s10266_s14 + $0x20] sm:$0x3] }
 0x1c4   : > { %v7017_v14 = vrot.slane %v13013_v31, 5  ;;  %v7011_v45 = vrot.slane %v7009_v5, 5  ;;  %v7014_v35 = vrot.slane %v7012_v51, 6  ;;  %v7018_v33 = vrot.slane %v13014_v53, 6  ;;  %9543 = vmatprep.mubr.bf16.mxu0 %v8565_v21 }
 0x1c5   : > { %v3307_v46 = vrot.slane %v3305_v4, 4  ;;  %v3302_v34 = vrot.slane %v3301_v52, 4  ;;  %v7023_v7 = vshrl.u32 %v8575_v62, 16  ;;  %v7026_v54 = vshll.u32 %v8575_v62, 16 }
 0x1c6   : > { %v3318_v30 = vshrl.u32 %v12164_v27, 16  ;;  %v3315_v63 = vor.u32 %v3314_v55, %v3311_v25  ;;  %v7015_v20 = vor.u32 %v7014_v35, %v7011_v45  ;;  %v7019_v56 = vor.u32 %v7018_v33, %v7017_v14  ;;  %9224 = vmatmul.mubr.bf16.gmra.mrb[20].mxu1 %v8086_v8  ;;  %v8576_v35 = vld [vmem:[%s10266_s14 + $0x38] sm:$0x3] }
 0x1c7   : > { %v3321_v43 = vshll.u32 %v12164_v27, 16  ;;  %v3306_v26 = vsel %vm11253_vm8, %v3302_v34, %v3305_v4  ;;  %v7025_v37 = vrot.slane %v7023_v7, 5  ;;  %v7028_v24 = vrot.slane %v7026_v54, 6 }
 0x1c8   : > { %v3320_v0 = vrot.slane %v3318_v30, 5  ;;  %v3316_v21 = vsel %vm11253_vm8, %v3307_v46, %v3315_v63  ;;  %v7016_v10 = vrot.slane %v7015_v20, 4  ;;  %v7021_v9 = vrot.slane %v7019_v56, 4 }
 0x1c9   : > { %v3323_v62 = vrot.slane %v3321_v43, 6  ;;  %v8123_v5 = vcombine.low %v3306_v26, %v3316_v21  ;;  %v7029_v51 = vor.u32 %v7028_v24, %v7025_v37  ;;  %v13015_v31 = vshrl.u32 %v11573_v3, 16  ;;  %v8097_v21 = vld [vmem:[%s10266_s14 + $0x2c] sm:$0x3] }
 0x1ca   : > { %v13016_v8 = vshll.u32 %v11573_v3, 16  ;;  %v7020_v4 = vsel %vm11253_vm8, %v7016_v10, %v7019_v56  ;;  %v3332_v25 = vshrl.u32 %v8096_v36, 16  ;;  %v3335_v55 = vshll.u32 %v8096_v36, 16 }
 0x1cb   : > { %v3326_v27 = vrot.slane %v13015_v31, 5  ;;  %v3324_v52 = vor.u32 %v3323_v62, %v3320_v0  ;;  %9243 = vmatprep.mubr.bf16.mxu1 %v8123_v5  ;;  %v7030_v46 = vsel %vm11253_vm8, %v7021_v9, %v7029_v51  ;;  %v7032_v53 = vshrl.u32 %v12171_v2, 16  ;;  %9544 = vmatmul.mubr.bf16.gmra.mrb[20].mxu0 %v8566_v58  ;;  %v13019_v31 = vld [vmem:[#allocation4_spill] sm:$0xff] }
 0x1cc   : > { %v3327_v14 = vrot.slane %v13016_v8, 6  ;;  %v7035_v33 = vshll.u32 %v12171_v2, 16  ;;  %v8603_v3 = vcombine.low %v7020_v4, %v7030_v46  ;;  %v3334_v7 = vrot.slane %v3332_v25, 5 }
 0x1cd   : > { %v3325_v34 = vrot.slane %v3324_v52, 4  ;;  %v3337_v54 = vrot.slane %v3335_v55, 6  ;;  %v7034_v63 = vrot.slane %v7032_v53, 5  ;;  %v13017_v56 = vshrl.u32 %v11594_v29, 16 }
 0x1ce   : > { %v3328_v45 = vor.u32 %v3327_v14, %v3326_v27  ;;  %v7037_v20 = vrot.slane %v7035_v33, 6  ;;  %9563 = vmatprep.mubr.bf16.mxu0 %v8603_v3  ;;  %v13018_v24 = vshll.u32 %v11594_v29, 16  ;;  %v7046_v58 = vshrl.u32 %v8576_v35, 16  ;;  %v13022_v3 = vld [vmem:[#allocation10_spill] sm:$0xff] }
 0x1cf   : > { %v7040_v43 = vrot.slane %v13017_v56, 5  ;;  %v3338_v37 = vor.u32 %v3337_v54, %v3334_v7  ;;  %v7049_v0 = vshll.u32 %v8576_v35, 16  ;;  %v3341_v10 = vshrl.u32 %v12183_v44, 16 }
 0x1d0   : > { %v3330_v30 = vrot.slane %v3328_v45, 4  ;;  %v3329_v26 = vsel %vm11253_vm8, %v3325_v34, %v3328_v45  ;;  %v7041_v2 = vrot.slane %v13018_v24, 6  ;;  %v7038_v36 = vor.u32 %v7037_v20, %v7034_v63  ;;  %v8577_v63 = vld [vmem:[%s10266_s14 + $0x44] sm:$0x3] }
 0x1d1   : > { %v3344_v9 = vshll.u32 %v12183_v44, 16  ;;  %v7048_v51 = vrot.slane %v7046_v58, 5  ;;  %v13020_v27 = vshrl.u32 %v13019_v31, 16  ;;  %v7051_v4 = vrot.slane %v7049_v0, 6 }
 0x1d2   : > { %v3339_v62 = vsel %vm11253_vm8, %v3330_v30, %v3338_v37  ;;  %v7042_v5 = vor.u32 %v7041_v2, %v7040_v43  ;;  %v7039_v29 = vrot.slane %v7038_v36, 4  ;;  %v3343_v52 = vrot.slane %v3341_v10, 5  ;;  %v13023_v37 = vld [vmem:[#allocation5_spill] sm:$0xff] }
 0x1d3   : > { %v3349_v8 = vrot.slane %v13020_v27, 5  ;;  %v8124_v14 = vcombine.low %v3329_v26, %v3339_v62  ;;  %v3346_v55 = vrot.slane %v3344_v9, 6  ;;  %v13021_v46 = vshll.u32 %v13019_v31, 16 }
 0x1d4   : > { %v7044_v25 = vrot.slane %v7042_v5, 4  ;;  %v3355_v35 = vshrl.u32 %v8097_v21, 16  ;;  %v7043_v44 = vsel %vm11253_vm8, %v7039_v29, %v7042_v5  ;;  %v7052_v53 = vor.u32 %v7051_v4, %v7048_v51 }
 0x1d5   : > { %v3350_v45 = vrot.slane %v13021_v46, 6  ;;  %9244 = vmatmul.mubr.bf16.vlgmr.msra.gmra.mrb[0].mxu1 %v8124_v14  ;;  %v3358_v33 = vshll.u32 %v8097_v21, 16  ;;  %v7055_v34 = vshrl.u32 %v13022_v3, 16  ;;  %v3347_v7 = vor.u32 %v3346_v55, %v3343_v52  ;;  %v8098_v46 = vld [vmem:[%s10266_s14 + $0x38] sm:$0x3] }
 0x1d6   : > { %v3357_v30 = vrot.slane %v3355_v35, 5  ;;  %v7058_v20 = vshll.u32 %v13022_v3, 16  ;;  %v7053_v56 = vsel %vm11253_vm8, %v7044_v25, %v7052_v53  ;;  %v13024_v24 = vshrl.u32 %v13023_v37, 16 }
 0x1d7   : > { %v3351_v54 = vor.u32 %v3350_v45, %v3349_v8  ;;  %v3360_v43 = vrot.slane %v3358_v33, 6  ;;  %v7057_v26 = vrot.slane %v7055_v34, 5  ;;  %v8604_v58 = vcombine.low %v7043_v44, %v7053_v56  ;;  %v13026_v8 = vld [vmem:[#allocation11_spill] sm:$0xff]  ;;  %v13027_v34 = vld [vmem:[#allocation6_spill] sm:$0xff] }
 0x1d8   : > { %v7063_v2 = vrot.slane %v13024_v24, 5  ;;  %v3348_v36 = vrot.slane %v3347_v7, 4  ;;  %v7060_v21 = vrot.slane %v7058_v20, 6  ;;  %v13025_v9 = vshll.u32 %v13023_v37, 16 }
 0x1d9   : > { %v3353_v0 = vrot.slane %v3351_v54, 4  ;;  %v3361_v10 = vor.u32 %v3360_v43, %v3357_v30  ;;  %v7069_v5 = vshrl.u32 %v8577_v63, 16  ;;  %v7072_v51 = vshll.u32 %v8577_v63, 16  ;;  %9564 = vmatmul.mubr.bf16.vlgmr.msra.gmra.mrb[0].mxu0 %v8604_v58  ;;  %v13030_v58 = vld [vmem:[#allocation12_spill] sm:$0xff] }
 0x1da   : > { %v7064_v62 = vrot.slane %v13025_v9, 6  ;;  %v3352_v31 = vsel %vm11253_vm8, %v3348_v36, %v3351_v54  ;;  %v7061_v27 = vor.u32 %v7060_v21, %v7057_v26  ;;  %v3364_v14 = vshrl.u32 %v13026_v8, 16 }
 0x1db   : > { %v3367_v29 = vshll.u32 %v13026_v8, 16  ;;  %v3362_v4 = vsel %vm11253_vm8, %v3353_v0, %v3361_v10  ;;  %v7071_v25 = vrot.slane %v7069_v5, 5  ;;  %v7074_v55 = vrot.slane %v7072_v51, 6 }
 0x1dc   : > { %v7065_v52 = vor.u32 %v7064_v62, %v7063_v2  ;;  %v8125_v45 = vcombine.low %v3352_v31, %v3362_v4  ;;  %v7062_v35 = vrot.slane %v7061_v27, 4  ;;  %v3366_v44 = vrot.slane %v3364_v14, 5  ;;  %v8578_v2 = vld [vmem:[%s10266_s14 + $0x50] sm:$0x3]  ;;  %v13031_v27 = vld [vmem:[#allocation7_spill] sm:$0xff] }
 0x1dd   : > { %v3369_v53 = vrot.slane %v3367_v29, 6  ;;  %v7075_v3 = vor.u32 %v7074_v55, %v7071_v25  ;;  %v13028_v7 = vshrl.u32 %v13027_v34, 16  ;;  %v13029_v30 = vshll.u32 %v13027_v34, 16 }
 0x1de   : > { %v7067_v33 = vrot.slane %v7065_v52, 4  ;;  %9247 = vmatprep.mubr.bf16.mxu1 %v8125_v45  ;;  %v7066_v20 = vsel %vm11253_vm8, %v7062_v35, %v7065_v52  ;;  %v3378_v43 = vshrl.u32 %v8098_v46, 16  ;;  %v3381_v26 = vshll.u32 %v8098_v46, 16  ;;  %v8099_v35 = vld [vmem:[%s10266_s14 + $0x44] sm:$0x3] }
 0x1df   : > { %v3372_v54 = vrot.slane %v13028_v7, 5  ;;  %v3373_v63 = vrot.slane %v13029_v30, 6  ;;  %v3370_v56 = vor.u32 %v3369_v53, %v3366_v44  ;;  %v7078_v36 = vshrl.u32 %v13030_v58, 16  ;;  %v13034_v44 = vld [vmem:[#allocation13_spill] sm:$0xff] }
 0x1e0   : > { %v7076_v37 = vsel %vm11253_vm8, %v7067_v33, %v7075_v3  ;;  %v7081_v0 = vshll.u32 %v13030_v58, 16  ;;  %v3380_v9 = vrot.slane %v3378_v43, 5  ;;  %v3383_v62 = vrot.slane %v3381_v26, 6 }
 0x1e1   : > { %v3374_v24 = vor.u32 %v3373_v63, %v3372_v54  ;;  %v8605_v21 = vcombine.low %v7066_v20, %v7076_v37  ;;  %v3371_v10 = vrot.slane %v3370_v56, 4  ;;  %v7080_v51 = vrot.slane %v7078_v36, 5  ;;  %v13035_v54 = vld [vmem:[#allocation8_spill] sm:$0xff] }
 0x1e2   : > { %v7083_v31 = vrot.slane %v7081_v0, 6  ;;  %v13032_v8 = vshrl.u32 %v13031_v27, 16  ;;  %v3384_v4 = vor.u32 %v3383_v62, %v3380_v9  ;;  %v13033_v52 = vshll.u32 %v13031_v27, 16  ;;  %v13038_v9 = vld [vmem:[#allocation14_spill] sm:$0xff] }
 0x1e3   : > { %v3376_v5 = vrot.slane %v3374_v24, 4  ;;  %9567 = vmatprep.mubr.bf16.mxu0 %v8605_v21  ;;  %v3375_v29 = vsel %vm11253_vm8, %v3371_v10, %v3374_v24  ;;  %v7092_v55 = vshrl.u32 %v8578_v2, 16  ;;  %v7095_v45 = vshll.u32 %v8578_v2, 16  ;;  %v8579_v27 = vld [vmem:[%s10266_s14 + $0x5c] sm:$0x3] }
 0x1e4   : > { %v7086_v14 = vrot.slane %v13032_v8, 5  ;;  %v7087_v25 = vrot.slane %v13033_v52, 6  ;;  %v7084_v46 = vor.u32 %v7083_v31, %v7080_v51  ;;  %v3387_v53 = vshrl.u32 %v13034_v44, 16  ;;  %v13039_v52 = vld [vmem:[#allocation9_spill] sm:$0xff] }
 0x1e5   : > { %v3390_v33 = vshll.u32 %v13034_v44, 16  ;;  %v3385_v3 = vsel %vm11253_vm8, %v3376_v5, %v3384_v4  ;;  %v7094_v7 = vrot.slane %v7092_v55, 5  ;;  %v13036_v30 = vshrl.u32 %v13035_v54, 16 }
 0x1e6   : > { %v7088_v34 = vor.u32 %v7087_v25, %v7086_v14  ;;  %v8126_v20 = vcombine.low %v3375_v29, %v3385_v3  ;;  %v7085_v56 = vrot.slane %v7084_v46, 4  ;;  %v7097_v43 = vrot.slane %v7095_v45, 6 }
 0x1e7   : > { %v3395_v63 = vrot.slane %v13036_v30, 5  ;;  %v3389_v26 = vrot.slane %v3387_v53, 5  ;;  %v3392_v24 = vrot.slane %v3390_v33, 6  ;;  %v13037_v2 = vshll.u32 %v13035_v54, 16 }
 0x1e8   : > { %v7090_v37 = vrot.slane %v7088_v34, 4  ;;  %v3401_v36 = vshrl.u32 %v8099_v35, 16  ;;  %9248 = vmatmul.mubr.bf16.gmra.mrb[4].mxu1 %v8126_v20  ;;  %v7089_v0 = vsel %vm11253_vm8, %v7085_v56, %v7088_v34  ;;  %v7098_v21 = vor.u32 %v7097_v43, %v7094_v7 }
 0x1e9   : > { %v3396_v58 = vrot.slane %v13037_v2, 6  ;;  %v3404_v10 = vshll.u32 %v8099_v35, 16  ;;  %v7101_v62 = vshrl.u32 %v13038_v9, 16  ;;  %v3393_v5 = vor.u32 %v3392_v24, %v3389_v26  ;;  %v8100_v2 = vld [vmem:[%s10266_s14 + $0x50] sm:$0x3] }
 0x1ea   : > { %v3403_v31 = vrot.slane %v3401_v36, 5  ;;  %v7104_v8 = vshll.u32 %v13038_v9, 16  ;;  %v7099_v14 = vsel %vm11253_vm8, %v7090_v37, %v7098_v21  ;;  %v13040_v25 = vshrl.u32 %v13039_v52, 16 }
 0x1eb   : > { %v3397_v51 = vor.u32 %v3396_v58, %v3395_v63  ;;  %v3406_v29 = vrot.slane %v3404_v10, 6  ;;  %v7103_v4 = vrot.slane %v7101_v62, 5  ;;  %v8606_v46 = vcombine.low %v7089_v0, %v7099_v14  ;;  %v13042_v63 = vld [vmem:[#allocation15_spill] sm:$0xff] }
 0x1ec   : > { %v7109_v55 = vrot.slane %v13040_v25, 5  ;;  %v3394_v45 = vrot.slane %v3393_v5, 4  ;;  %v7106_v44 = vrot.slane %v7104_v8, 6  ;;  %v13041_v33 = vshll.u32 %v13039_v52, 16  ;;  %v13043_v62 = vld [vmem:[#allocation3_spill] sm:$0xff] }
 0x1ed   : > { %v3399_v35 = vrot.slane %v3397_v51, 4  ;;  %v3407_v53 = vor.u32 %v3406_v29, %v3403_v31  ;;  %v7115_v34 = vshrl.u32 %v8579_v27, 16  ;;  %v7118_v7 = vshll.u32 %v8579_v27, 16  ;;  %9568 = vmatmul.mubr.bf16.gmra.mrb[4].mxu0 %v8606_v46 }
 0x1ee   : > { %v7110_v3 = vrot.slane %v13041_v33, 6  ;;  %v3398_v54 = vsel %vm11253_vm8, %v3394_v45, %v3397_v51  ;;  %v7107_v30 = vor.u32 %v7106_v44, %v7103_v4  ;;  %v3410_v20 = vshrl.u32 %v13042_v63, 16 }
 0x1ef   : > { %v3413_v56 = vshll.u32 %v13042_v63, 16  ;;  %v3408_v43 = vsel %vm11253_vm8, %v3399_v35, %v3407_v53  ;;  %v7117_v37 = vrot.slane %v7115_v34, 5  ;;  %v7120_v24 = vrot.slane %v7118_v7, 6 }
 0x1f0   : > { %v7111_v26 = vor.u32 %v7110_v3, %v7109_v55  ;;  %v8127_v58 = vcombine.low %v3398_v54, %v3408_v43  ;;  %v7108_v36 = vrot.slane %v7107_v30, 4  ;;  %v3412_v0 = vrot.slane %v3410_v20, 5  ;;  %v8580_v55 = vld [vmem:[%s10266_s14 + $0x68] sm:$0x3] }
 0x1f1   : > { %v3415_v21 = vrot.slane %v3413_v56, 6  ;;  %v7121_v9 = vor.u32 %v7120_v24, %v7117_v37  ;;  %v13044_v5 = vshrl.u32 %v13043_v62, 16  ;;  %v13045_v31 = vshll.u32 %v13043_v62, 16  ;;  %v8101_v24 = vld [vmem:[%s10266_s14 + $0x5c] sm:$0x3] }
 0x1f2   : > { %v7113_v10 = vrot.slane %v7111_v26, 4  ;;  %9251 = vmatprep.mubr.bf16.mxu1 %v8127_v58  ;;  %v7112_v8 = vsel %vm11253_vm8, %v7108_v36, %v7111_v26  ;;  %v3424_v29 = vshrl.u32 %v8100_v2, 16  ;;  %v3427_v4 = vshll.u32 %v8100_v2, 16 }
 0x1f3   : > { %v3418_v51 = vrot.slane %v13044_v5, 5  ;;  %v3419_v27 = vrot.slane %v13045_v31, 6  ;;  %v3416_v14 = vor.u32 %v3415_v21, %v3412_v0  ;;  %v7124_v46 = vshrl.u32 %v12261_v40, 16 }
 0x1f4   : > { %v7122_v52 = vsel %vm11253_vm8, %v7113_v10, %v7121_v9  ;;  %v7127_v45 = vshll.u32 %v12261_v40, 16  ;;  %v3426_v53 = vrot.slane %v3424_v29, 5  ;;  %v3429_v33 = vrot.slane %v3427_v4, 6 }
 0x1f5   : > { %v3420_v25 = vor.u32 %v3419_v27, %v3418_v51  ;;  %v8607_v35 = vcombine.low %v7112_v8, %v7122_v52  ;;  %v3417_v44 = vrot.slane %v3416_v14, 4  ;;  %v7126_v34 = vrot.slane %v7124_v46, 5 }
 0x1f6   : > { %v7129_v7 = vrot.slane %v7127_v45, 6  ;;  %v13046_v54 = vshrl.u32 %v11823_v15, 16  ;;  %v3430_v20 = vor.u32 %v3429_v33, %v3426_v53  ;;  %v13047_v56 = vshll.u32 %v11823_v15, 16 }
 0x1f7   : > { %v3422_v3 = vrot.slane %v3420_v25, 4  ;;  %9571 = vmatprep.mubr.bf16.mxu0 %v8607_v35  ;;  %v3421_v63 = vsel %vm11253_vm8, %v3417_v44, %v3420_v25  ;;  %v7138_v40 = vshrl.u32 %v8580_v55, 16  ;;  %v7141_v37 = vshll.u32 %v8580_v55, 16  ;;  %v8581_v35 = vld [vmem:[%s10266_s14 + $0x74] sm:$0x3] }
 0x1f8   : > { %v7132_v30 = vrot.slane %v13046_v54, 5  ;;  %v7133_v43 = vrot.slane %v13047_v56, 6  ;;  %v7130_v26 = vor.u32 %v7129_v7, %v7126_v34  ;;  %v3433_v2 = vshrl.u32 %v12280_v6, 16 }
 0x1f9   : > { %v3436_v58 = vshll.u32 %v12280_v6, 16  ;;  %v3431_v36 = vsel %vm11253_vm8, %v3422_v3, %v3430_v20  ;;  %v7140_v21 = vrot.slane %v7138_v40, 5  ;;  %v13048_v10 = vshrl.u32 %v11845_v39, 16 }
 0x1fa   : > { %v7134_v0 = vor.u32 %v7133_v43, %v7132_v30  ;;  %v8128_v62 = vcombine.low %v3421_v63, %v3431_v36  ;;  %v7131_v15 = vrot.slane %v7130_v26, 4  ;;  %v7143_v5 = vrot.slane %v7141_v37, 6 }
 0x1fb   : > { %v3441_v9 = vrot.slane %v13048_v10, 5  ;;  %v3435_v51 = vrot.slane %v3433_v2, 5  ;;  %v3438_v27 = vrot.slane %v3436_v58, 6  ;;  %v13049_v8 = vshll.u32 %v11845_v39, 16  ;;  %v8102_v10 = vld [vmem:[%s10266_s14 + $0x68] sm:$0x3] }
 0x1fc   : > { %v7136_v31 = vrot.slane %v7134_v0, 4  ;;  %v3447_v29 = vshrl.u32 %v8101_v24, 16  ;;  %9252 = vmatmul.mubr.bf16.gmra.mrb[8].mxu1 %v8128_v62  ;;  %v7135_v6 = vsel %vm11253_vm8, %v7131_v15, %v7134_v0  ;;  %v7144_v4 = vor.u32 %v7143_v5, %v7140_v21 }
 0x1fd   : > { %v3442_v14 = vrot.slane %v13049_v8, 6  ;;  %v3450_v52 = vshll.u32 %v8101_v24, 16  ;;  %v7147_v25 = vshrl.u32 %v12287_v12, 16  ;;  %v3439_v55 = vor.u32 %v3438_v27, %v3435_v51 }
 0x1fe   : > { %v3449_v45 = vrot.slane %v3447_v29, 5  ;;  %v7150_v44 = vshll.u32 %v12287_v12, 16  ;;  %v7145_v53 = vsel %vm11253_vm8, %v7136_v31, %v7144_v4  ;;  %v13050_v3 = vshrl.u32 %v11858_v50, 16 }
 0x1ff   : > { %v3443_v46 = vor.u32 %v3442_v14, %v3441_v9  ;;  %v3452_v39 = vrot.slane %v3450_v52, 6  ;;  %v7149_v33 = vrot.slane %v7147_v25, 5  ;;  %v8608_v7 = vcombine.low %v7135_v6, %v7145_v53 }
 0x200   : > { %v7155_v34 = vrot.slane %v13050_v3, 5  ;;  %v3440_v54 = vrot.slane %v3439_v55, 4  ;;  %v7152_v63 = vrot.slane %v7150_v44, 6  ;;  %v13051_v56 = vshll.u32 %v11858_v50, 16  ;;  %v8582_v55 = vld [vmem:[%s10266_s14 + $0x80] sm:$0x3] }
 0x201   : > { %v3445_v30 = vrot.slane %v3443_v46, 4  ;;  %v3453_v20 = vor.u32 %v3452_v39, %v3449_v45  ;;  %v7161_v40 = vshrl.u32 %v8581_v35, 16  ;;  %v7164_v26 = vshll.u32 %v8581_v35, 16  ;;  %9572 = vmatmul.mubr.bf16.gmra.mrb[8].mxu0 %v8608_v7 }
 0x202   : > { %v7156_v43 = vrot.slane %v13051_v56, 6  ;;  %v3444_v12 = vsel %vm11253_vm8, %v3440_v54, %v3443_v46  ;;  %v7153_v37 = vor.u32 %v7152_v63, %v7149_v33  ;;  %v3456_v24 = vshrl.u32 %v12297_v42, 16 }
 0x203   : > { %v3459_v2 = vshll.u32 %v12297_v42, 16  ;;  %v3454_v58 = vsel %vm11253_vm8, %v3445_v30, %v3453_v20  ;;  %v7163_v0 = vrot.slane %v7161_v40, 5  ;;  %v7166_v21 = vrot.slane %v7164_v26, 6  ;;  %v8103_v40 = vld [vmem:[%s10266_s14 + $0x74] sm:$0x3] }
 0x204   : > { %v7157_v36 = vor.u32 %v7156_v43, %v7155_v34  ;;  %v8129_v50 = vcombine.low %v3444_v12, %v3454_v58  ;;  %v7154_v9 = vrot.slane %v7153_v37, 4  ;;  %v3458_v62 = vrot.slane %v3456_v24, 5 }
 0x205   : > { %v3461_v15 = vrot.slane %v3459_v2, 6  ;;  %v7167_v51 = vor.u32 %v7166_v21, %v7163_v0  ;;  %v13052_v31 = vshrl.u32 %v11884_v17, 16  ;;  %v13053_v8 = vshll.u32 %v11884_v17, 16 }
 0x206   : > { %v7159_v5 = vrot.slane %v7157_v36, 4  ;;  %9255 = vmatprep.mubr.bf16.mxu1 %v8129_v50  ;;  %v7158_v14 = vsel %vm11253_vm8, %v7154_v9, %v7157_v36  ;;  %v3470_v6 = vshrl.u32 %v8102_v10, 16  ;;  %v3473_v4 = vshll.u32 %v8102_v10, 16 }
 0x207   : > { %v3464_v27 = vrot.slane %v13052_v31, 5  ;;  %v3465_v42 = vrot.slane %v13053_v8, 6  ;;  %v3462_v29 = vor.u32 %v3461_v15, %v3458_v62  ;;  %v7170_v46 = vshrl.u32 %v12314_v61, 16 }
 0x208   : > { %v7168_v52 = vsel %vm11253_vm8, %v7159_v5, %v7167_v51  ;;  %v7173_v45 = vshll.u32 %v12314_v61, 16  ;;  %v3472_v44 = vrot.slane %v3470_v6, 5  ;;  %v3475_v53 = vrot.slane %v3473_v4, 6 }
 0x209   : > { %v3466_v25 = vor.u32 %v3465_v42, %v3464_v27  ;;  %v8609_v35 = vcombine.low %v7158_v14, %v7168_v52  ;;  %v3463_v17 = vrot.slane %v3462_v29, 4  ;;  %v7172_v33 = vrot.slane %v7170_v46, 5  ;;  %v8583_v29 = vld [vmem:[%s10266_s14 + $0x8c] sm:$0x3] }
 0x20a   : > { %v7175_v3 = vrot.slane %v7173_v45, 6  ;;  %v13054_v34 = vshrl.u32 %v11910_v47, 16  ;;  %v3476_v30 = vor.u32 %v3475_v53, %v3472_v44  ;;  %v13055_v63 = vshll.u32 %v11910_v47, 16 }
 0x20b   : > { %v3468_v39 = vrot.slane %v3466_v25, 4  ;;  %9575 = vmatprep.mubr.bf16.mxu0 %v8609_v35  ;;  %v3467_v54 = vsel %vm11253_vm8, %v3463_v17, %v3466_v25  ;;  %v7184_v61 = vshrl.u32 %v8582_v55, 16  ;;  %v7187_v43 = vshll.u32 %v8582_v55, 16 }
 0x20c   : > { %v7178_v7 = vrot.slane %v13054_v34, 5  ;;  %v7179_v20 = vrot.slane %v13055_v63, 6  ;;  %v7176_v56 = vor.u32 %v7175_v3, %v7172_v33  ;;  %v3479_v26 = vshrl.u32 %v12326_v19, 16 }
 0x20d   : > { %v3482_v12 = vshll.u32 %v12326_v19, 16  ;;  %v3477_v37 = vsel %vm11253_vm8, %v3468_v39, %v3476_v30  ;;  %v7186_v2 = vrot.slane %v7184_v61, 5  ;;  %v13056_v58 = vshrl.u32 %v11945_v16, 16 }
 0x20e   : > { %v7180_v24 = vor.u32 %v7179_v20, %v7178_v7  ;;  %v8130_v0 = vcombine.low %v3467_v54, %v3477_v37  ;;  %v7177_v47 = vrot.slane %v7176_v56, 4  ;;  %v7189_v21 = vrot.slane %v7187_v43, 6  ;;  %v8104_v56 = vld [vmem:[%s10266_s14 + $0x80] sm:$0x3] }
 0x20f   : > { %v3487_v36 = vrot.slane %v13056_v58, 5  ;;  %v3481_v10 = vrot.slane %v3479_v26, 5  ;;  %v3484_v9 = vrot.slane %v3482_v12, 6  ;;  %v13057_v62 = vshll.u32 %v11945_v16, 16 }
 0x210   : > { %v7182_v50 = vrot.slane %v7180_v24, 4  ;;  %v3493_v5 = vshrl.u32 %v8103_v40, 16  ;;  %9256 = vmatmul.mubr.bf16.gmra.mrb[12].mxu1 %v8130_v0  ;;  %v7181_v19 = vsel %vm11253_vm8, %v7177_v47, %v7180_v24  ;;  %v7190_v51 = vor.u32 %v7189_v21, %v7186_v2 }
 0x211   : > { %v3488_v15 = vrot.slane %v13057_v62, 6  ;;  %v3496_v31 = vshll.u32 %v8103_v40, 16  ;;  %v7193_v27 = vshrl.u32 %v12339_v22, 16  ;;  %v3485_v8 = vor.u32 %v3484_v9, %v3481_v10  ;;  %v8584_v9 = vld [vmem:[%s10266_s14 + $0x98] sm:$0x3] }
 0x212   : > { %v3495_v14 = vrot.slane %v3493_v5, 5  ;;  %v7196_v6 = vshll.u32 %v12339_v22, 16  ;;  %v7191_v4 = vsel %vm11253_vm8, %v7182_v50, %v7190_v51  ;;  %v13058_v25 = vshrl.u32 %v11977_v13, 16 }
 0x213   : > { %v3489_v42 = vor.u32 %v3488_v15, %v3487_v36  ;;  %v3498_v16 = vrot.slane %v3496_v31, 6  ;;  %v7195_v52 = vrot.slane %v7193_v27, 5  ;;  %v8610_v46 = vcombine.low %v7181_v19, %v7191_v4 }
 0x214   : > { %v7201_v55 = vrot.slane %v13058_v25, 5  ;;  %v3486_v45 = vrot.slane %v3485_v8, 4  ;;  %v7198_v17 = vrot.slane %v7196_v6, 6  ;;  %v13059_v53 = vshll.u32 %v11977_v13, 16 }
 0x215   : > { %v3491_v35 = vrot.slane %v3489_v42, 4  ;;  %v3499_v44 = vor.u32 %v3498_v16, %v3495_v14  ;;  %v7207_v33 = vshrl.u32 %v8583_v29, 16  ;;  %v7210_v3 = vshll.u32 %v8583_v29, 16  ;;  %9576 = vmatmul.mubr.bf16.gmra.mrb[12].mxu0 %v8610_v46 }
 0x216   : > { %v7202_v39 = vrot.slane %v13059_v53, 6  ;;  %v3490_v22 = vsel %vm11253_vm8, %v3486_v45, %v3489_v42  ;;  %v7199_v34 = vor.u32 %v7198_v17, %v7195_v52  ;;  %v3502_v7 = vshrl.u32 %v12349_v60, 16 }
 0x217   : > { %v3505_v54 = vshll.u32 %v12349_v60, 16  ;;  %v3500_v30 = vsel %vm11253_vm8, %v3491_v35, %v3499_v44  ;;  %v7209_v20 = vrot.slane %v7207_v33, 5  ;;  %v7212_v61 = vrot.slane %v7210_v3, 6 }
 0x218   : > { %v7203_v63 = vor.u32 %v7202_v39, %v7201_v55  ;;  %v8131_v13 = vcombine.low %v3490_v22, %v3500_v30  ;;  %v7200_v43 = vrot.slane %v7199_v34, 4  ;;  %v3504_v40 = vrot.slane %v3502_v7, 5  ;;  %v8105_v55 = vld [vmem:[%s10266_s14 + $0x8c] sm:$0x3] }
 0x219   : > { %v3507_v26 = vrot.slane %v3505_v54, 6  ;;  %v7213_v37 = vor.u32 %v7212_v61, %v7209_v20  ;;  %v13060_v24 = vshrl.u32 %v11998_v23, 16  ;;  %v13061_v58 = vshll.u32 %v11998_v23, 16 }
 0x21a   : > { %v7205_v12 = vrot.slane %v7203_v63, 4  ;;  %9259 = vmatprep.mubr.bf16.mxu1 %v8131_v13  ;;  %v7204_v36 = vsel %vm11253_vm8, %v7200_v43, %v7203_v63  ;;  %v3516_v47 = vshrl.u32 %v8104_v56, 16  ;;  %v3519_v21 = vshll.u32 %v8104_v56, 16 }
 0x21b   : > { %v3510_v2 = vrot.slane %v13060_v24, 5  ;;  %v3511_v60 = vrot.slane %v13061_v58, 6  ;;  %v3508_v0 = vor.u32 %v3507_v26, %v3504_v40  ;;  %v7216_v62 = vshrl.u32 %v12365_v38, 16  ;;  %v8585_v26 = vld [vmem:[%s10266_s14 + $0xa4] sm:$0x3] }
 0x21c   : > { %v7214_v10 = vsel %vm11253_vm8, %v7205_v12, %v7213_v37  ;;  %v7219_v15 = vshll.u32 %v12365_v38, 16  ;;  %v3518_v19 = vrot.slane %v3516_v47, 5  ;;  %v3521_v51 = vrot.slane %v3519_v21, 6 }
 0x21d   : > { %v3512_v50 = vor.u32 %v3511_v60, %v3510_v2  ;;  %v8611_v5 = vcombine.low %v7204_v36, %v7214_v10  ;;  %v3509_v23 = vrot.slane %v3508_v0, 4  ;;  %v7218_v27 = vrot.slane %v7216_v62, 5 }
 0x21e   : > { %v7221_v8 = vrot.slane %v7219_v15, 6  ;;  %v13062_v42 = vshrl.u32 %v12026_v32, 16  ;;  %v3522_v6 = vor.u32 %v3521_v51, %v3518_v19  ;;  %v13063_v4 = vshll.u32 %v12026_v32, 16 }
 0x21f   : > { %v3514_v31 = vrot.slane %v3512_v50, 4  ;;  %9579 = vmatprep.mubr.bf16.mxu0 %v8611_v5  ;;  %v3513_v29 = vsel %vm11253_vm8, %v3509_v23, %v3512_v50  ;;  %v7230_v38 = vshrl.u32 %v8584_v9, 16  ;;  %v7233_v25 = vshll.u32 %v8584_v9, 16 }
 0x220   : > { %v7224_v14 = vrot.slane %v13062_v42, 5  ;;  %v7225_v16 = vrot.slane %v13063_v4, 6  ;;  %v7222_v52 = vor.u32 %v7221_v8, %v7218_v27  ;;  %v3525_v46 = vshrl.u32 %v12380_v1, 16  ;;  %v8106_v8 = vld [vmem:[%s10266_s14 + $0x98] sm:$0x3] }
 0x221   : > { %v3528_v45 = vshll.u32 %v12380_v1, 16  ;;  %v3523_v35 = vsel %vm11253_vm8, %v3514_v31, %v3522_v6  ;;  %v7232_v44 = vrot.slane %v7230_v38, 5  ;;  %v13064_v53 = vshrl.u32 %v12051_v48, 16 }
 0x222   : > { %v7226_v17 = vor.u32 %v7225_v16, %v7224_v14  ;;  %v8132_v33 = vcombine.low %v3513_v29, %v3523_v35  ;;  %v7223_v32 = vrot.slane %v7222_v52, 4  ;;  %v7235_v3 = vrot.slane %v7233_v25, 6 }
 0x223   : > { %v3533_v39 = vrot.slane %v13064_v53, 5  ;;  %v3527_v22 = vrot.slane %v3525_v46, 5  ;;  %v3530_v7 = vrot.slane %v3528_v45, 6  ;;  %v13065_v54 = vshll.u32 %v12051_v48, 16 }
 0x224   : > { %v7228_v34 = vrot.slane %v7226_v17, 4  ;;  %v3539_v63 = vshrl.u32 %v8105_v55, 16  ;;  %9260 = vmatmul.mubr.bf16.gmra.mrb[16].mxu1 %v8132_v33  ;;  %v7227_v1 = vsel %vm11253_vm8, %v7223_v32, %v7226_v17  ;;  %v7236_v20 = vor.u32 %v7235_v3, %v7232_v44  ;;  %v8586_v44 = vld [vmem:[%s10266_s14 + $0xb0] sm:$0x3] }
 0x225   : > { %v3534_v30 = vrot.slane %v13065_v54, 6  ;;  %v3542_v61 = vshll.u32 %v8105_v55, 16  ;;  %v7239_v56 = vshrl.u32 %v12388_v11, 16  ;;  %v3531_v13 = vor.u32 %v3530_v7, %v3527_v22 }
 0x226   : > { %v3541_v40 = vrot.slane %v3539_v63, 5  ;;  %v7242_v12 = vshll.u32 %v12388_v11, 16  ;;  %v7237_v37 = vsel %vm11253_vm8, %v7228_v34, %v7236_v20  ;;  %v13066_v2 = vshrl.u32 %v12080_v49, 16 }
 0x227   : > { %v3535_v43 = vor.u32 %v3534_v30, %v3533_v39  ;;  %v3544_v48 = vrot.slane %v3542_v61, 6  ;;  %v7241_v24 = vrot.slane %v7239_v56, 5  ;;  %v8612_v60 = vcombine.low %v7227_v1, %v7237_v37 }
 0x228   : > { %v7247_v58 = vrot.slane %v13066_v2, 5  ;;  %v3532_v36 = vrot.slane %v3531_v13, 4  ;;  %v7244_v47 = vrot.slane %v7242_v12, 6  ;;  %v13067_v10 = vshll.u32 %v12080_v49, 16 }
 0x229   : > { %v3537_v0 = vrot.slane %v3535_v43, 4  ;;  %v3545_v21 = vor.u32 %v3544_v48, %v3541_v40  ;;  %v7253_v9 = vshrl.u32 %v8585_v26, 16  ;;  %v7256_v62 = vshll.u32 %v8585_v26, 16  ;;  %9580 = vmatmul.mubr.bf16.gmra.mrb[16].mxu0 %v8612_v60 }
 0x22a   : > { %v7248_v50 = vrot.slane %v13067_v10, 6  ;;  %v3536_v11 = vsel %vm11253_vm8, %v3532_v36, %v3535_v43  ;;  %v7245_v15 = vor.u32 %v7244_v47, %v7241_v24  ;;  %v3548_v5 = vshrl.u32 %v12404_v57, 16 }
 0x22b   : > { %v3551_v23 = vshll.u32 %v12404_v57, 16  ;;  %v3546_v19 = vsel %vm11253_vm8, %v3537_v0, %v3545_v21  ;;  %v7255_v31 = vrot.slane %v7253_v9, 5  ;;  %v7258_v27 = vrot.slane %v7256_v62, 6 }
 0x22c   : > { %v7249_v51 = vor.u32 %v7248_v50, %v7247_v58  ;;  %v8133_v49 = vcombine.low %v3536_v11, %v3546_v19  ;;  %v7246_v42 = vrot.slane %v7245_v15, 4  ;;  %v3550_v14 = vrot.slane %v3548_v5, 5  ;;  %v12712_v50 = vld [vmem:[%s12784_s2] ss:$0 sm:$0xff] }
 0x22d   : > { %v3553_v29 = vrot.slane %v3551_v23, 6  ;;  %v7259_v4 = vor.u32 %v7258_v27, %v7255_v31  ;;  %v13068_v16 = vshrl.u32 %v12101_v18, 16  ;;  %v13069_v52 = vshll.u32 %v12101_v18, 16  ;;  %v12717_v11 = vld [vmem:[%s12785_s3] ss:$0 sm:$0xff] }
 0x22e   : > { %v7251_v6 = vrot.slane %v7249_v51, 4  ;;  %9263 = vmatprep.mubr.bf16.mxu1 %v8133_v49  ;;  %v7250_v25 = vsel %vm11253_vm8, %v7246_v42, %v7249_v51  ;;  %v3562_v46 = vshrl.u32 %v8106_v8, 16  ;;  %v3565_v45 = vshll.u32 %v8106_v8, 16 }
 0x22f   : > { %v3556_v38 = vrot.slane %v13068_v16, 5  ;;  %v3557_v57 = vrot.slane %v13069_v52, 6  ;;  %v3554_v55 = vor.u32 %v3553_v29, %v3550_v14  ;;  %v7262_v53 = vshrl.u32 %v12415_v28, 16 }
 0x230   : > { %v7260_v35 = vsel %vm11253_vm8, %v7251_v6, %v7259_v4  ;;  %v7265_v39 = vshll.u32 %v12415_v28, 16  ;;  %v3564_v18 = vrot.slane %v3562_v46, 5  ;;  %v3567_v3 = vrot.slane %v3565_v45, 6 }
 0x231   : > { %v3558_v17 = vor.u32 %v3557_v57, %v3556_v38  ;;  %v8613_v33 = vcombine.low %v7250_v25, %v7260_v35  ;;  %v3555_v32 = vrot.slane %v3554_v55, 4  ;;  %v7264_v34 = vrot.slane %v7262_v53, 5 }
 0x232   : > { %v7267_v7 = vrot.slane %v7265_v39, 6  ;;  %v13070_v54 = vshrl.u32 %v12129_v41, 16  ;;  %v3568_v1 = vor.u32 %v3567_v3, %v3564_v18  ;;  %v13071_v20 = vshll.u32 %v12129_v41, 16 }
 0x233   : > { %v3560_v22 = vrot.slane %v3558_v17, 4  ;;  %9583 = vmatprep.mubr.bf16.mxu0 %v8613_v33  ;;  %v3559_v63 = vsel %vm11253_vm8, %v3555_v32, %v3558_v17  ;;  %v7276_v56 = vshrl.u32 %v8586_v44, 16  ;;  %v7279_v13 = vshll.u32 %v8586_v44, 16 }
 0x234   : > { %v7270_v30 = vrot.slane %v13070_v54, 5  ;;  %v7271_v61 = vrot.slane %v13071_v20, 6  ;;  %v7268_v28 = vor.u32 %v7267_v7, %v7264_v34 }
 0x235   : > { %v3569_v43 = vsel %vm11253_vm8, %v3560_v22, %v3568_v1  ;;  %v7278_v26 = vrot.slane %v7276_v56, 5  ;;  %v7281_v48 = vrot.slane %v7279_v13, 6 }
 0x236   : > { %v7272_v40 = vor.u32 %v7271_v61, %v7270_v30  ;;  %v8134_v12 = vcombine.low %v3559_v63, %v3569_v43  ;;  %v7269_v37 = vrot.slane %v7268_v28, 4 }
 0x237   : > { %v7282_v58 = vor.u32 %v7281_v48, %v7278_v26 }
 0x238   : > { %v7274_v24 = vrot.slane %v7272_v40, 4  ;;  %9264 = vmatmul.mubr.bf16.gmra.mrb[20].mxu1 %v8134_v12  ;;  %v7273_v2 = vsel %vm11253_vm8, %v7269_v37, %v7272_v40 }
 0x23a   : > { %v7283_v41 = vsel %vm11253_vm8, %v7274_v24, %v7282_v58 }
 0x23b   : > { %v8614_v60 = vcombine.low %v7273_v2, %v7283_v41 }
 0x23d   : > { %9584 = vmatmul.mubr.bf16.gmra.mrb[20].mxu0 %v8614_v60 }
 0x2a8   : > { %v9245_v36 = vpop.f32.mrb[0].mxu1 }
 0x2a9   : > { %v3717_v0 = vpop.f32.mrb[1].mxu1 }
 0x2aa   : > { %v9246_v47 = vpop.f32.mrb[2].mxu1 }
 0x2ab   : > { %v3720_v21 = vpop.f32.mrb[3].mxu1 }
 0x2ac   : > { %v9565_v10 = vpop.f32.mrb[0].mxu0 }
 0x2ad   : > { %v9587_v9 = vadd.f32 %v9565_v10, %v9245_v36  ;;  %v7431_v62 = vpop.f32.mrb[1].mxu0 }
 0x2ae   : > { %v9588_v59 = vadd.f32 %v7431_v62, %v3717_v0  ;;  %v9566_v15 = vpop.f32.mrb[2].mxu0 }
 0x2af   : > { %v7559_v5 = vmul.f32 %v9587_v9, %v12712_v50  ;;  %v9589_v23 = vadd.f32 %v9566_v15, %v9246_v47  ;;  %v7434_v19 = vpop.f32.mrb[3].mxu0 }
 0x2b0   : > { %v7557_v51 = vmul.f32 %v9588_v59, %v12712_v50  ;;  %v9590_v31 = vadd.f32 %v7434_v19, %v3720_v21 }
 0x2b1   : > { %v7590_v27 = vadd.f32 %v12717_v11, %v7559_v5  ;;  %v7560_v8 = vmul.f32 %v9589_v23, %v12712_v50 }
 0x2b2   : > { %v7588_v49 = vadd.f32 %v12717_v11, %v7557_v51  ;;  %v7558_v42 = vmul.f32 %v9590_v31, %v12712_v50 }
 0x2b3   : > { %v7614_v14 = vmax.f32 %v7590_v27, 0.0  ;;  %v7591_v29 = vadd.f32 %v12717_v11, %v7560_v8 }
 0x2b4   : > { %v7612_v6 = vmax.f32 %v7588_v49, 0.0  ;;  %v7589_v4 = vadd.f32 %v12717_v11, %v7558_v42 }
 0x2b5   : > { %v7615_v16 = vmax.f32 %v7591_v29, 0.0 }
 0x2b6   : > { %v7636_v38 = vmax.f32 %v7612_v6, %v7614_v14  ;;  %v7613_v52 = vmax.f32 %v7589_v4, 0.0 }
 0x2b8   : > { %7648 = vst [vmem:[#allocation2] sm:$0xff] %v7636_v38  ;;  %v7637_v57 = vmax.f32 %v7613_v52, %v7615_v16 }
 0x2ba   : > { %7649 = vst [vmem:[#allocation2 + $0x8] sm:$0xff] %v7637_v57 }
 0x2bb   : > { %v9249_v25 = vpop.f32.mrb[4].mxu1 }
 0x2bc   : > { %v3733_v55 = vpop.f32.mrb[5].mxu1 }
 0x2bd   : > { %v9250_v46 = vpop.f32.mrb[6].mxu1 }
 0x2be   : > { %v3736_v45 = vpop.f32.mrb[7].mxu1 }
 0x2c0   : > { %v9569_v35 = vpop.f32.mrb[4].mxu0 }
 0x2c1   : > { %v9591_v17 = vadd.f32 %v9569_v35, %v9249_v25  ;;  %v7447_v44 = vpop.f32.mrb[5].mxu0  ;;  %v7660_v33 = vld [vmem:[#allocation2] ss:$2 sm:$0x3f] }
 0x2c2   : > { %v9592_v53 = vadd.f32 %v7447_v44, %v3733_v55  ;;  %v9570_v39 = vpop.f32.mrb[6].mxu0  ;;  %v7672_v32 = vld [vmem:[#allocation2 + $0x1] ss:$2 sm:$0x3f] }
 0x2c3   : > { %v7563_v18 = vmul.f32 %v9591_v17, %v12712_v50  ;;  %v9593_v3 = vadd.f32 %v9570_v39, %v9250_v46  ;;  %v7683_v22 = vmax.f32 %v7660_v33, %v7672_v32  ;;  %v7450_v7 = vpop.f32.mrb[7].mxu0 }
 0x2c4   : > { %v7561_v34 = vmul.f32 %v9592_v53, %v12712_v50  ;;  %v9594_v63 = vadd.f32 %v7450_v7, %v3736_v45 }
 0x2c5   : > { %v7594_v54 = vadd.f32 %v12717_v11, %v7563_v18  ;;  %v7564_v30 = vmul.f32 %v9593_v3, %v12712_v50  ;;  %v7689_v1 = vpack.c.bf16 %v7683_v22, %v7683_v22 }
 0x2c6   : > { %v7592_v20 = vadd.f32 %v12717_v11, %v7561_v34  ;;  %v7562_v28 = vmul.f32 %v9594_v63, %v12712_v50 }
 0x2c7   : > { %v7618_v61 = vmax.f32 %v7594_v54, 0.0  ;;  %v7595_v56 = vadd.f32 %v12717_v11, %v7564_v30  ;;  %7695 = vst [vmem:[%s12733_s29] sm:$0x7] %v7689_v1 }
 0x2c8   : > { %v7616_v13 = vmax.f32 %v7592_v20, 0.0  ;;  %v7593_v40 = vadd.f32 %v12717_v11, %v7562_v28 }
 0x2c9   : > { %v7619_v43 = vmax.f32 %v7595_v56, 0.0 }
 0x2ca   : > { %v7638_v26 = vmax.f32 %v7616_v13, %v7618_v61  ;;  %v7617_v12 = vmax.f32 %v7593_v40, 0.0 }
 0x2cc   : > { %7650 = vst [vmem:[#allocation2 + $0x10] sm:$0xff] %v7638_v26  ;;  %v7639_v37 = vmax.f32 %v7617_v12, %v7619_v43 }
 0x2ce   : > { %7651 = vst [vmem:[#allocation2 + $0x18] sm:$0xff] %v7639_v37 }
 0x2cf   : > { %v9253_v48 = vpop.f32.mrb[8].mxu1 }
 0x2d0   : > { %v3749_v24 = vpop.f32.mrb[9].mxu1 }
 0x2d1   : > { %v9254_v2 = vpop.f32.mrb[10].mxu1 }
 0x2d2   : > { %v3752_v58 = vpop.f32.mrb[11].mxu1 }
 0x2d4   : > { %v9573_v41 = vpop.f32.mrb[8].mxu0 }
 0x2d5   : > { %v9595_v60 = vadd.f32 %v9573_v41, %v9253_v48  ;;  %v7463_v36 = vpop.f32.mrb[9].mxu0  ;;  %v7662_v62 = vld [vmem:[#allocation2 + $0x10] ss:$2 sm:$0x3f] }
 0x2d6   : > { %v9596_v0 = vadd.f32 %v7463_v36, %v3749_v24  ;;  %v9574_v47 = vpop.f32.mrb[10].mxu0  ;;  %v7674_v59 = vld [vmem:[#allocation2 + $0x11] ss:$2 sm:$0x3f] }
 0x2d7   : > { %v7567_v21 = vmul.f32 %v9595_v60, %v12712_v50  ;;  %v9597_v10 = vadd.f32 %v9574_v47, %v9254_v2  ;;  %v7466_v9 = vpop.f32.mrb[11].mxu0  ;;  %v7684_v23 = vmax.f32 %v7662_v62, %v7674_v59 }
 0x2d8   : > { %v7565_v15 = vmul.f32 %v9596_v0, %v12712_v50  ;;  %v9598_v5 = vadd.f32 %v7466_v9, %v3752_v58 }
 0x2d9   : > { %v7598_v19 = vadd.f32 %v12717_v11, %v7567_v21  ;;  %v7568_v51 = vmul.f32 %v9597_v10, %v12712_v50  ;;  %v7690_v8 = vpack.c.bf16 %v7684_v23, %v7684_v23 }
 0x2da   : > { %v7596_v31 = vadd.f32 %v12717_v11, %v7565_v15  ;;  %v7566_v27 = vmul.f32 %v9598_v5, %v12712_v50 }
 0x2db   : > { %v7622_v49 = vmax.f32 %v7598_v19, 0.0  ;;  %v7599_v42 = vadd.f32 %v12717_v11, %v7568_v51  ;;  %7696 = vst [vmem:[%s12733_s29 + $0x4] sm:$0x7] %v7690_v8 }
 0x2dc   : > { %v7620_v14 = vmax.f32 %v7596_v31, 0.0  ;;  %v7597_v29 = vadd.f32 %v12717_v11, %v7566_v27 }
 0x2dd   : > { %v7623_v6 = vmax.f32 %v7599_v42, 0.0 }
 0x2de   : > { %v7640_v4 = vmax.f32 %v7620_v14, %v7622_v49  ;;  %v7621_v16 = vmax.f32 %v7597_v29, 0.0 }
 0x2e0   : > { %7652 = vst [vmem:[#allocation2 + $0x20] sm:$0xff] %v7640_v4  ;;  %v7641_v38 = vmax.f32 %v7621_v16, %v7623_v6 }
 0x2e2   : > { %7653 = vst [vmem:[#allocation2 + $0x28] sm:$0xff] %v7641_v38 }
 0x2e3   : > { %v9257_v52 = vpop.f32.mrb[12].mxu1 }
 0x2e4   : > { %v3765_v57 = vpop.f32.mrb[13].mxu1 }
 0x2e5   : > { %v9258_v25 = vpop.f32.mrb[14].mxu1 }
 0x2e6   : > { %v3768_v55 = vpop.f32.mrb[15].mxu1 }
 0x2e8   : > { %v9577_v46 = vpop.f32.mrb[12].mxu0 }
 0x2e9   : > { %v9599_v45 = vadd.f32 %v9577_v46, %v9257_v52  ;;  %v7479_v35 = vpop.f32.mrb[13].mxu0  ;;  %v7664_v53 = vld [vmem:[#allocation2 + $0x20] ss:$2 sm:$0x3f] }
 0x2ea   : > { %v9600_v17 = vadd.f32 %v7479_v35, %v3765_v57  ;;  %v9578_v44 = vpop.f32.mrb[14].mxu0  ;;  %v7676_v39 = vld [vmem:[#allocation2 + $0x21] ss:$2 sm:$0x3f] }
 0x2eb   : > { %v7571_v33 = vmul.f32 %v9599_v45, %v12712_v50  ;;  %v9601_v32 = vadd.f32 %v9578_v44, %v9258_v25  ;;  %v7685_v18 = vmax.f32 %v7664_v53, %v7676_v39  ;;  %v7482_v22 = vpop.f32.mrb[15].mxu0 }
 0x2ec   : > { %v7569_v3 = vmul.f32 %v9600_v17, %v12712_v50  ;;  %v9602_v54 = vadd.f32 %v7482_v22, %v3768_v55 }
 0x2ed   : > { %v7602_v34 = vadd.f32 %v12717_v11, %v7571_v33  ;;  %v7572_v7 = vmul.f32 %v9601_v32, %v12712_v50  ;;  %v7691_v30 = vpack.c.bf16 %v7685_v18, %v7685_v18 }
 0x2ee   : > { %v7600_v63 = vadd.f32 %v12717_v11, %v7569_v3  ;;  %v7570_v61 = vmul.f32 %v9602_v54, %v12712_v50 }
 0x2ef   : > { %v7626_v1 = vmax.f32 %v7602_v34, 0.0  ;;  %v7603_v20 = vadd.f32 %v12717_v11, %v7572_v7  ;;  %7697 = vst [vmem:[%s12733_s29 + $0x8] sm:$0x7] %v7691_v30 }
 0x2f0   : > { %v7624_v56 = vmax.f32 %v7600_v63, 0.0  ;;  %v7601_v13 = vadd.f32 %v12717_v11, %v7570_v61 }
 0x2f1   : > { %v7627_v28 = vmax.f32 %v7603_v20, 0.0 }
 0x2f2   : > { %v7642_v43 = vmax.f32 %v7624_v56, %v7626_v1  ;;  %v7625_v40 = vmax.f32 %v7601_v13, 0.0 }
 0x2f4   : > { %7654 = vst [vmem:[#allocation2 + $0x30] sm:$0xff] %v7642_v43  ;;  %v7643_v26 = vmax.f32 %v7625_v40, %v7627_v28 }
 0x2f6   : > { %7655 = vst [vmem:[#allocation2 + $0x38] sm:$0xff] %v7643_v26 }
 0x2f7   : > { %v9261_v12 = vpop.f32.mrb[16].mxu1 }
 0x2f8   : > { %v3781_v37 = vpop.f32.mrb[17].mxu1 }
 0x2f9   : > { %v9262_v48 = vpop.f32.mrb[18].mxu1 }
 0x2fa   : > { %v3784_v24 = vpop.f32.mrb[19].mxu1 }
 0x2fc   : > { %v9581_v2 = vpop.f32.mrb[16].mxu0 }
 0x2fd   : > { %v9603_v58 = vadd.f32 %v9581_v2, %v9261_v12  ;;  %v7495_v41 = vpop.f32.mrb[17].mxu0  ;;  %v7666_v10 = vld [vmem:[#allocation2 + $0x30] ss:$2 sm:$0x3f] }
 0x2fe   : > { %v9604_v60 = vadd.f32 %v7495_v41, %v3781_v37  ;;  %v9582_v36 = vpop.f32.mrb[18].mxu0  ;;  %v7678_v9 = vld [vmem:[#allocation2 + $0x31] ss:$2 sm:$0x3f] }
 0x2ff   : > { %v7575_v0 = vmul.f32 %v9603_v58, %v12712_v50  ;;  %v9605_v47 = vadd.f32 %v9582_v36, %v9262_v48  ;;  %v7498_v21 = vpop.f32.mrb[19].mxu0  ;;  %v7686_v15 = vmax.f32 %v7666_v10, %v7678_v9 }
 0x300   : > { %v7573_v62 = vmul.f32 %v9604_v60, %v12712_v50  ;;  %v9606_v59 = vadd.f32 %v7498_v21, %v3784_v24 }
 0x301   : > { %v7606_v5 = vadd.f32 %v12717_v11, %v7575_v0  ;;  %v7576_v23 = vmul.f32 %v9605_v47, %v12712_v50  ;;  %v7692_v31 = vpack.c.bf16 %v7686_v15, %v7686_v15 }
 0x302   : > { %v7604_v19 = vadd.f32 %v12717_v11, %v7573_v62  ;;  %v7574_v51 = vmul.f32 %v9606_v59, %v12712_v50 }
 0x303   : > { %v7630_v27 = vmax.f32 %v7606_v5, 0.0  ;;  %v7607_v8 = vadd.f32 %v12717_v11, %v7576_v23  ;;  %7698 = vst [vmem:[%s12733_s29 + $0xc] sm:$0x7] %v7692_v31 }
 0x304   : > { %v7628_v49 = vmax.f32 %v7604_v19, 0.0  ;;  %v7605_v42 = vadd.f32 %v12717_v11, %v7574_v51 }
 0x305   : > { %v7631_v14 = vmax.f32 %v7607_v8, 0.0 }
 0x306   : > { %v7644_v29 = vmax.f32 %v7628_v49, %v7630_v27  ;;  %v7629_v6 = vmax.f32 %v7605_v42, 0.0 }
 0x308   : > { %7656 = vst [vmem:[#allocation2 + $0x40] sm:$0xff] %v7644_v29  ;;  %v7645_v4 = vmax.f32 %v7629_v6, %v7631_v14 }
 0x30a   : > { %7657 = vst [vmem:[#allocation2 + $0x48] sm:$0xff] %v7645_v4 }
 0x30b   : > { %v9265_v16 = vpop.f32.mrb[20].mxu1 }
 0x30c   : > { %v3797_v38 = vpop.f32.mrb[21].mxu1 }
 0x30d   : > { %v9266_v52 = vpop.f32.mrb[22].mxu1 }
 0x30e   : > { %v3800_v57 = vpop.f32.mrb[23].mxu1 }
 0x310   : > { %v9585_v25 = vpop.f32.mrb[20].mxu0 }
 0x311   : > { %v9607_v55 = vadd.f32 %v9585_v25, %v9265_v16  ;;  %v7511_v46 = vpop.f32.mrb[21].mxu0  ;;  %v7668_v17 = vld [vmem:[#allocation2 + $0x40] ss:$2 sm:$0x3f] }
 0x312   : > { %v9608_v45 = vadd.f32 %v7511_v46, %v3797_v38  ;;  %v9586_v35 = vpop.f32.mrb[22].mxu0  ;;  %v7680_v44 = vld [vmem:[#allocation2 + $0x41] ss:$2 sm:$0x3f] }
 0x313   : > { %v7579_v53 = vmul.f32 %v9607_v55, %v12712_v50  ;;  %v9609_v39 = vadd.f32 %v9586_v35, %v9266_v52  ;;  %v7687_v33 = vmax.f32 %v7668_v17, %v7680_v44  ;;  %v7514_v18 = vpop.f32.mrb[23].mxu0 }
 0x314   : > { %v7577_v32 = vmul.f32 %v9608_v45, %v12712_v50  ;;  %v9610_v34 = vadd.f32 %v7514_v18, %v3800_v57 }
 0x315   : > { %v7610_v3 = vadd.f32 %v12717_v11, %v7579_v53  ;;  %v7580_v22 = vmul.f32 %v9609_v39, %v12712_v50  ;;  %v7693_v7 = vpack.c.bf16 %v7687_v33, %v7687_v33 }
 0x316   : > { %v7608_v54 = vadd.f32 %v12717_v11, %v7577_v32  ;;  %v7578_v1 = vmul.f32 %v9610_v34, %v12712_v50 }
 0x317   : > { %v7634_v30 = vmax.f32 %v7610_v3, 0.0  ;;  %v7611_v63 = vadd.f32 %v12717_v11, %v7580_v22  ;;  %7699 = vst [vmem:[%s12733_s29 + $0x10] sm:$0x7] %v7693_v7 }
 0x318   : > { %v7632_v20 = vmax.f32 %v7608_v54, 0.0  ;;  %v7609_v56 = vadd.f32 %v12717_v11, %v7578_v1 }
 0x319   : > { %v7635_v61 = vmax.f32 %v7611_v63, 0.0 }
 0x31a   : > { %v7646_v28 = vmax.f32 %v7632_v20, %v7634_v30  ;;  %v7633_v13 = vmax.f32 %v7609_v56, 0.0 }
 0x31c   : > { %7658 = vst [vmem:[#allocation2 + $0x50] sm:$0xff] %v7646_v28  ;;  %v7647_v43 = vmax.f32 %v7633_v13, %v7635_v61 }
 0x31e   : > { %7659 = vst [vmem:[#allocation2 + $0x58] sm:$0xff] %v7647_v43 }
 0x325   : > { %v7670_v40 = vld [vmem:[#allocation2 + $0x50] ss:$2 sm:$0x3f]  ;;  %v7682_v26 = vld [vmem:[#allocation2 + $0x51] ss:$2 sm:$0x3f] }
 0x326   : > { %v7688_v12 = vmax.f32 %v7670_v40, %v7682_v26 }
 0x328   : > { %v7694_v37 = vpack.c.bf16 %v7688_v12, %v7688_v12 }
 0x32a   : > { %7700 = vst [vmem:[%s12733_s29 + $0x14] sm:$0x7] %v7694_v37 }
 0x32b PF: > { %s14_s15 = sadd.s32 1, %s10195_s15  }
 0x32c   : > { %p11_p4 = scmp.ge.s32.totalorder %s14_s15, 4  }
 0x32e   :  { %13 = sbr.rel (!%p11_p4) target bundleno = 1 (0x1), region = 95 }

</bundles_post_ra>
